<compile_context>
chip_gen: v7x
topology: tpu7x:2x2x1
jax: 0.10.0
libtpu: 0.0.40
codegen_flags: <defaults>
</compile_context>

<pallas_src>
import functools

import jax
import jax.numpy as jnp
from jax.experimental import pallas as pl
from jax.experimental.pallas import tpu as pltpu

OUT_CHANNELS = 256  # hard-coded in _ASPP.__init__


# ----------------------------------------------------------------------------
# Fused ASPP kernel: all 5 branches + projection for one image per grid step.
# ----------------------------------------------------------------------------
def _aspp_fused_kernel(xp_ref, w0_ref, b0_ref, wd_ref, bd_ref,
                       wp_ref, bp_ref, wproj_ref, bproj_ref, o_ref,
                       *, H, W, rates, pad):
    xp = xp_ref[0]                                   # (Hp, Wp, cin)  bf16
    cin = xp.shape[-1]
    cout = o_ref.shape[-1]
    mm_dtype = wproj_ref.dtype

    # center (unpadded) pixels flattened to (H*W, cin)
    xc = xp[pad:pad + H, pad:pad + W, :].reshape(H * W, cin)

    # ---- branch 0: 1x1 conv (BN scale folded) + bias + ReLU, then project --
    z0 = jnp.dot(xc, w0_ref[...], preferred_element_type=jnp.float32)
    br0 = jnp.maximum(z0 + b0_ref[...], 0.0).astype(mm_dtype)
    acc = jnp.dot(br0, wproj_ref[0], preferred_element_type=jnp.float32)

    # ---- branches 1-3: 3x3 dilated conv via one fat-K im2col matmul --------
    for i, d in enumerate(rates):                    # rates is a static tuple
        patches = []
        for ky in range(3):
            for kx in range(3):
                r0 = pad + (ky - 1) * d
                c0 = pad + (kx - 1) * d
                patches.append(xp[r0:r0 + H, c0:c0 + W, :].reshape(H * W, cin))
        im2col = jnp.concatenate(patches, axis=-1)   # (H*W, 9*cin)
        z = jnp.dot(im2col, wd_ref[i], preferred_element_type=jnp.float32)
        br = jnp.maximum(z + bd_ref[i], 0.0).astype(mm_dtype)
        acc += jnp.dot(br, wproj_ref[i + 1], preferred_element_type=jnp.float32)

    # ---- branch 4: global avg pool -> 1x1 conv + BN + ReLU -----------------
    # (bilinear upsample from a 1x1 map, align_corners=False == broadcast,
    #  so its projection contribution is a per-image constant row)
    pooled = jnp.mean(xc.astype(jnp.float32), axis=0, keepdims=True)  # (1, cin)
    zp = jnp.dot(pooled.astype(mm_dtype), wp_ref[...],
                 preferred_element_type=jnp.float32)
    pvec = jnp.maximum(zp + bp_ref[...], 0.0).astype(mm_dtype)        # (1, cout)
    pool_contrib = jnp.dot(pvec, wproj_ref[4],
                           preferred_element_type=jnp.float32)        # (1, cout)

    # ---- projection epilogue: bias + ReLU (Dropout is identity in eval) ----
    y = jnp.maximum(acc + pool_contrib + bproj_ref[...], 0.0)
    o_ref[...] = y.reshape(1, H, W, cout).astype(o_ref.dtype)


def aspp_fused(xp, params, *, H, W):
    """xp: padded NHWC input (N, H+2p, W+2p, cin), p = max(rates)."""
    N, Hp, Wp, cin = xp.shape
    cout = OUT_CHANNELS
    rates = params["rates"]
    pad = max(rates)
    kernel = functools.partial(_aspp_fused_kernel, H=H, W=W,
                               rates=rates, pad=pad)
    return pl.pallas_call(
        kernel,
        out_shape=jax.ShapeDtypeStruct((N, H, W, cout), jnp.float32),
        grid_spec=pltpu.PrefetchScalarGridSpec(
            num_scalar_prefetch=0,
            grid=(N,),
            in_specs=[
                pl.BlockSpec((1, Hp, Wp, cin), lambda n: (n, 0, 0, 0)),
                pl.BlockSpec((cin, cout), lambda n: (0, 0)),
                pl.BlockSpec((1, cout), lambda n: (0, 0)),
                pl.BlockSpec((3, 9 * cin, cout), lambda n: (0, 0, 0)),
                pl.BlockSpec((3, 1, cout), lambda n: (0, 0, 0)),
                pl.BlockSpec((cin, cout), lambda n: (0, 0)),
                pl.BlockSpec((1, cout), lambda n: (0, 0)),
                pl.BlockSpec((5, cout, cout), lambda n: (0, 0, 0)),
                pl.BlockSpec((1, cout), lambda n: (0, 0)),
            ],
            out_specs=pl.BlockSpec((1, H, W, cout), lambda n: (n, 0, 0, 0)),
        ),
        compiler_params=pltpu.CompilerParams(
            dimension_semantics=("parallel",),
            vmem_limit_bytes=48 * 1024 * 1024,
        ),
    )(xp, params["w0"], params["b0"], params["wd"], params["bd"],
      params["wp"], params["bp"], params["wproj"], params["bproj"])


# ----------------------------------------------------------------------------
# Parameter setup (deterministic, synthetic) with eval-mode BN folded into
# the conv weights (scale) + per-channel biases.
# ----------------------------------------------------------------------------
def _fold_bn(gamma, beta, mean, var, eps=1e-5):
    scale = gamma / jnp.sqrt(var + eps)
    bias = beta - mean * scale
    return scale, bias


def _make_bn(key, c):
    k1, k2, k3, k4 = jax.random.split(key, 4)
    gamma = 1.0 + 0.1 * jax.random.normal(k1, (c,), jnp.float32)
    beta = 0.1 * jax.random.normal(k2, (c,), jnp.float32)
    mean = 0.1 * jax.random.normal(k3, (c,), jnp.float32)
    var = jnp.abs(jax.random.normal(k4, (c,), jnp.float32)) + 0.5
    return _fold_bn(gamma, beta, mean, var)


def init_aspp_params(key, in_channels, atrous_rates, mm_dtype=jnp.bfloat16):
    cout = OUT_CHANNELS
    keys = jax.random.split(key, 12)
    p = {"rates": tuple(atrous_rates)}

    # branch 0: 1x1 conv + BN
    w0 = 0.1 * jax.random.normal(keys[0], (in_channels, cout), jnp.float32)
    s0, b0 = _make_bn(keys[1], cout)
    p["w0"] = (w0 * s0[None, :]).astype(mm_dtype)
    p["b0"] = b0.reshape(1, cout)

    # branches 1-3: 3x3 dilated conv + BN, stored in im2col layout (9*cin, cout)
    wds, bds = [], []
    for i in range(3):
        w = 0.1 * jax.random.normal(keys[2 + i],
                                    (3, 3, in_channels, cout), jnp.float32)
        s, b = _make_bn(keys[5 + i], cout)
        wds.append((w * s[None, None, None, :]).reshape(9 * in_channels, cout))
        bds.append(b.reshape(1, cout))
    p["wd"] = jnp.stack(wds).astype(mm_dtype)        # (3, 9*cin, cout)
    p["bd"] = jnp.stack(bds)                         # (3, 1, cout) f32

    # pooling branch: 1x1 conv + BN
    wp = 0.1 * jax.random.normal(keys[8], (in_channels, cout), jnp.float32)
    sp, bp = _make_bn(keys[9], cout)
    p["wp"] = (wp * sp[None, :]).astype(mm_dtype)
    p["bp"] = bp.reshape(1, cout)

    # projection: 1x1 conv over concatenated 5*cout channels + BN,
    # split into 5 (cout, cout) blocks matching torch.cat branch order.
    wproj = 0.05 * jax.random.normal(keys[10], (5 * cout, cout), jnp.float32)
    sj, bj = _make_bn(keys[11], cout)
    p["wproj"] = (wproj * sj[None, :]).reshape(5, cout, cout).astype(mm_dtype)
    p["bproj"] = bj.reshape(1, cout)
    return p


# ----------------------------------------------------------------------------
# Full forward (NCHW in / NCHW out, like the PyTorch module, inference mode).
# ----------------------------------------------------------------------------
def aspp_forward(x_nchw, params, mm_dtype=jnp.bfloat16):
    N, cin, H, W = x_nchw.shape
    pad = max(params["rates"])
    x = jnp.transpose(x_nchw, (0, 2, 3, 1)).astype(mm_dtype)     # NHWC, bf16
    xp = jnp.pad(x, ((0, 0), (pad, pad), (pad, pad), (0, 0)))    # pad ONCE
    out = aspp_fused(xp, params, H=H, W=W)                       # (N, H, W, 256)
    return jnp.transpose(out, (0, 3, 1, 2))                      # NCHW f32


if __name__ == "__main__":
    key = jax.random.PRNGKey(0)
    k_in, k_par = jax.random.split(key)

    N, C_IN, H, W = 2, 8, 16, 16
    ATROUS_RATES = (1, 2, 3)

    x = jax.random.normal(k_in, (N, C_IN, H, W), jnp.float32)     # NCHW input
    params = init_aspp_params(k_par, C_IN, ATROUS_RATES)

    out = aspp_forward(x, params)
    out = jax.block_until_ready(out)

    assert out.shape == (N, OUT_CHANNELS, H, W), out.shape
    assert bool(jnp.all(jnp.isfinite(out))), "non-finite output"
    print("KERNEL_OK")
</pallas_src>

<mosaic_0001>
module attributes {stable_mosaic.version = 11 : i64} {
  func.func @_aspp_fused_kernel(%arg0: i32, %arg1: memref<1x22x22x8xbf16, #tpu.memory_space<vmem>>, %arg2: memref<8x256xbf16, #tpu.memory_space<vmem>>, %arg3: memref<1x256xf32, #tpu.memory_space<vmem>>, %arg4: memref<3x72x256xbf16, #tpu.memory_space<vmem>>, %arg5: memref<3x1x256xf32, #tpu.memory_space<vmem>>, %arg6: memref<8x256xbf16, #tpu.memory_space<vmem>>, %arg7: memref<1x256xf32, #tpu.memory_space<vmem>>, %arg8: memref<5x256x256xbf16, #tpu.memory_space<vmem>>, %arg9: memref<1x256xf32, #tpu.memory_space<vmem>>, %arg10: memref<1x16x16x256xf32, #tpu.memory_space<vmem>>) attributes {dimension_semantics = [#tpu.dimension_semantics<parallel>], iteration_bounds = array<i64: 2>, scalar_prefetch = 0 : i64, scratch_operands = 0 : i64, tpu.core_type = #tpu.core_type<tc>, window_params = [{transform_indices = @transform_0, window_bounds = array<i64: 1, 22, 22, 8>}, {pipeline_mode = #tpu.pipeline_mode<synchronous>, transform_indices = @transform_1, window_bounds = array<i64: 8, 256>}, {pipeline_mode = #tpu.pipeline_mode<synchronous>, transform_indices = @transform_2, window_bounds = array<i64: 1, 256>}, {pipeline_mode = #tpu.pipeline_mode<synchronous>, transform_indices = @transform_3, window_bounds = array<i64: 3, 72, 256>}, {pipeline_mode = #tpu.pipeline_mode<synchronous>, transform_indices = @transform_4, window_bounds = array<i64: 3, 1, 256>}, {pipeline_mode = #tpu.pipeline_mode<synchronous>, transform_indices = @transform_5, window_bounds = array<i64: 8, 256>}, {pipeline_mode = #tpu.pipeline_mode<synchronous>, transform_indices = @transform_6, window_bounds = array<i64: 1, 256>}, {pipeline_mode = #tpu.pipeline_mode<synchronous>, transform_indices = @transform_7, window_bounds = array<i64: 5, 256, 256>}, {pipeline_mode = #tpu.pipeline_mode<synchronous>, transform_indices = @transform_8, window_bounds = array<i64: 1, 256>}, {transform_indices = @transform_9, window_bounds = array<i64: 1, 16, 16, 256>}]} {
    %c0 = arith.constant 0 : index
    %c0_0 = arith.constant 0 : index
    %c0_1 = arith.constant 0 : index
    %c0_2 = arith.constant 0 : index
    %0 = vector.load %arg1[%c0, %c0_0, %c0_1, %c0_2] : memref<1x22x22x8xbf16, #tpu.memory_space<vmem>>, vector<1x22x22x8xbf16>
    %1 = vector.shape_cast %0 : vector<1x22x22x8xbf16> to vector<22x22x8xbf16>
    %2 = vector.extract_strided_slice %1 {offsets = [3, 3, 0], sizes = [16, 16, 8], strides = [1, 1, 1]} : vector<22x22x8xbf16> to vector<16x16x8xbf16>
    %3 = vector.shape_cast %2 : vector<16x16x8xbf16> to vector<256x8xbf16>
    %c0_3 = arith.constant 0 : index
    %c0_4 = arith.constant 0 : index
    %4 = vector.load %arg2[%c0_3, %c0_4] : memref<8x256xbf16, #tpu.memory_space<vmem>>, vector<8x256xbf16>
    %cst = arith.constant dense<0.000000e+00> : vector<256x256xf32>
    %5 = tpu.matmul %3, %4, %cst {dimension_numbers = #tpu.dot_dimension_numbers<[1], [0], [0], [1], [0, 0, 1, 1], [], []>} : vector<256x8xbf16>, vector<8x256xbf16>, vector<256x256xf32> -> vector<256x256xf32>
    %c0_5 = arith.constant 0 : index
    %c0_6 = arith.constant 0 : index
    %6 = vector.load %arg3[%c0_5, %c0_6] : memref<1x256xf32, #tpu.memory_space<vmem>>, vector<1x256xf32>
    %7 = vector.broadcast %6 : vector<1x256xf32> to vector<256x256xf32>
    %8 = arith.addf %5, %7 : vector<256x256xf32>
    %cst_7 = arith.constant 0.000000e+00 : f32
    %9 = vector.broadcast %cst_7 : f32 to vector<256x256xf32>
    %10 = arith.maximumf %8, %9 : vector<256x256xf32>
    %11 = arith.truncf %10 : vector<256x256xf32> to vector<256x256xbf16>
    %c0_8 = arith.constant 0 : index
    %c0_9 = arith.constant 0 : index
    %c0_10 = arith.constant 0 : index
    %12 = vector.load %arg8[%c0_8, %c0_9, %c0_10] : memref<5x256x256xbf16, #tpu.memory_space<vmem>>, vector<1x256x256xbf16>
    %13 = vector.shape_cast %12 : vector<1x256x256xbf16> to vector<256x256xbf16>
    %cst_11 = arith.constant dense<0.000000e+00> : vector<256x256xf32>
    %14 = tpu.matmul %11, %13, %cst_11 {dimension_numbers = #tpu.dot_dimension_numbers<[1], [0], [0], [1], [0, 0, 1, 1], [], []>} : vector<256x256xbf16>, vector<256x256xbf16>, vector<256x256xf32> -> vector<256x256xf32>
    %15 = vector.extract_strided_slice %1 {offsets = [2, 2, 0], sizes = [16, 16, 8], strides = [1, 1, 1]} : vector<22x22x8xbf16> to vector<16x16x8xbf16>
    %16 = vector.shape_cast %15 : vector<16x16x8xbf16> to vector<256x8xbf16>
    %17 = vector.extract_strided_slice %1 {offsets = [2, 3, 0], sizes = [16, 16, 8], strides = [1, 1, 1]} : vector<22x22x8xbf16> to vector<16x16x8xbf16>
    %18 = vector.shape_cast %17 : vector<16x16x8xbf16> to vector<256x8xbf16>
    %19 = vector.extract_strided_slice %1 {offsets = [2, 4, 0], sizes = [16, 16, 8], strides = [1, 1, 1]} : vector<22x22x8xbf16> to vector<16x16x8xbf16>
    %20 = vector.shape_cast %19 : vector<16x16x8xbf16> to vector<256x8xbf16>
    %21 = vector.extract_strided_slice %1 {offsets = [3, 2, 0], sizes = [16, 16, 8], strides = [1, 1, 1]} : vector<22x22x8xbf16> to vector<16x16x8xbf16>
    %22 = vector.shape_cast %21 : vector<16x16x8xbf16> to vector<256x8xbf16>
    %23 = vector.extract_strided_slice %1 {offsets = [3, 3, 0], sizes = [16, 16, 8], strides = [1, 1, 1]} : vector<22x22x8xbf16> to vector<16x16x8xbf16>
    %24 = vector.shape_cast %23 : vector<16x16x8xbf16> to vector<256x8xbf16>
    %25 = vector.extract_strided_slice %1 {offsets = [3, 4, 0], sizes = [16, 16, 8], strides = [1, 1, 1]} : vector<22x22x8xbf16> to vector<16x16x8xbf16>
    %26 = vector.shape_cast %25 : vector<16x16x8xbf16> to vector<256x8xbf16>
    %27 = vector.extract_strided_slice %1 {offsets = [4, 2, 0], sizes = [16, 16, 8], strides = [1, 1, 1]} : vector<22x22x8xbf16> to vector<16x16x8xbf16>
    %28 = vector.shape_cast %27 : vector<16x16x8xbf16> to vector<256x8xbf16>
    %29 = vector.extract_strided_slice %1 {offsets = [4, 3, 0], sizes = [16, 16, 8], strides = [1, 1, 1]} : vector<22x22x8xbf16> to vector<16x16x8xbf16>
    %30 = vector.shape_cast %29 : vector<16x16x8xbf16> to vector<256x8xbf16>
    %31 = vector.extract_strided_slice %1 {offsets = [4, 4, 0], sizes = [16, 16, 8], strides = [1, 1, 1]} : vector<22x22x8xbf16> to vector<16x16x8xbf16>
    %32 = vector.shape_cast %31 : vector<16x16x8xbf16> to vector<256x8xbf16>
    %33 = tpu.concatenate %16, %18, %20, %22, %24, %26, %28, %30, %32 in 1 : vector<256x8xbf16>, vector<256x8xbf16>, vector<256x8xbf16>, vector<256x8xbf16>, vector<256x8xbf16>, vector<256x8xbf16>, vector<256x8xbf16>, vector<256x8xbf16>, vector<256x8xbf16> -> vector<256x72xbf16>
    %c0_12 = arith.constant 0 : index
    %c0_13 = arith.constant 0 : index
    %c0_14 = arith.constant 0 : index
    %34 = vector.load %arg4[%c0_12, %c0_13, %c0_14] : memref<3x72x256xbf16, #tpu.memory_space<vmem>>, vector<1x72x256xbf16>
    %35 = vector.shape_cast %34 : vector<1x72x256xbf16> to vector<72x256xbf16>
    %cst_15 = arith.constant dense<0.000000e+00> : vector<256x256xf32>
    %36 = tpu.matmul %33, %35, %cst_15 {dimension_numbers = #tpu.dot_dimension_numbers<[1], [0], [0], [1], [0, 0, 1, 1], [], []>} : vector<256x72xbf16>, vector<72x256xbf16>, vector<256x256xf32> -> vector<256x256xf32>
    %c0_16 = arith.constant 0 : index
    %c0_17 = arith.constant 0 : index
    %c0_18 = arith.constant 0 : index
    %37 = vector.load %arg5[%c0_16, %c0_17, %c0_18] : memref<3x1x256xf32, #tpu.memory_space<vmem>>, vector<1x1x256xf32>
    %38 = vector.shape_cast %37 : vector<1x1x256xf32> to vector<1x256xf32>
    %39 = vector.broadcast %38 : vector<1x256xf32> to vector<256x256xf32>
    %40 = arith.addf %36, %39 : vector<256x256xf32>
    %cst_19 = arith.constant 0.000000e+00 : f32
    %41 = vector.broadcast %cst_19 : f32 to vector<256x256xf32>
    %42 = arith.maximumf %40, %41 : vector<256x256xf32>
    %43 = arith.truncf %42 : vector<256x256xf32> to vector<256x256xbf16>
    %c1 = arith.constant 1 : index
    %c0_20 = arith.constant 0 : index
    %c0_21 = arith.constant 0 : index
    %44 = vector.load %arg8[%c1, %c0_20, %c0_21] : memref<5x256x256xbf16, #tpu.memory_space<vmem>>, vector<1x256x256xbf16>
    %45 = vector.shape_cast %44 : vector<1x256x256xbf16> to vector<256x256xbf16>
    %cst_22 = arith.constant dense<0.000000e+00> : vector<256x256xf32>
    %46 = tpu.matmul %43, %45, %cst_22 {dimension_numbers = #tpu.dot_dimension_numbers<[1], [0], [0], [1], [0, 0, 1, 1], [], []>} : vector<256x256xbf16>, vector<256x256xbf16>, vector<256x256xf32> -> vector<256x256xf32>
    %47 = arith.addf %14, %46 : vector<256x256xf32>
    %48 = vector.extract_strided_slice %1 {offsets = [1, 1, 0], sizes = [16, 16, 8], strides = [1, 1, 1]} : vector<22x22x8xbf16> to vector<16x16x8xbf16>
    %49 = vector.shape_cast %48 : vector<16x16x8xbf16> to vector<256x8xbf16>
    %50 = vector.extract_strided_slice %1 {offsets = [1, 3, 0], sizes = [16, 16, 8], strides = [1, 1, 1]} : vector<22x22x8xbf16> to vector<16x16x8xbf16>
    %51 = vector.shape_cast %50 : vector<16x16x8xbf16> to vector<256x8xbf16>
    %52 = vector.extract_strided_slice %1 {offsets = [1, 5, 0], sizes = [16, 16, 8], strides = [1, 1, 1]} : vector<22x22x8xbf16> to vector<16x16x8xbf16>
    %53 = vector.shape_cast %52 : vector<16x16x8xbf16> to vector<256x8xbf16>
    %54 = vector.extract_strided_slice %1 {offsets = [3, 1, 0], sizes = [16, 16, 8], strides = [1, 1, 1]} : vector<22x22x8xbf16> to vector<16x16x8xbf16>
    %55 = vector.shape_cast %54 : vector<16x16x8xbf16> to vector<256x8xbf16>
    %56 = vector.extract_strided_slice %1 {offsets = [3, 3, 0], sizes = [16, 16, 8], strides = [1, 1, 1]} : vector<22x22x8xbf16> to vector<16x16x8xbf16>
    %57 = vector.shape_cast %56 : vector<16x16x8xbf16> to vector<256x8xbf16>
    %58 = vector.extract_strided_slice %1 {offsets = [3, 5, 0], sizes = [16, 16, 8], strides = [1, 1, 1]} : vector<22x22x8xbf16> to vector<16x16x8xbf16>
    %59 = vector.shape_cast %58 : vector<16x16x8xbf16> to vector<256x8xbf16>
    %60 = vector.extract_strided_slice %1 {offsets = [5, 1, 0], sizes = [16, 16, 8], strides = [1, 1, 1]} : vector<22x22x8xbf16> to vector<16x16x8xbf16>
    %61 = vector.shape_cast %60 : vector<16x16x8xbf16> to vector<256x8xbf16>
    %62 = vector.extract_strided_slice %1 {offsets = [5, 3, 0], sizes = [16, 16, 8], strides = [1, 1, 1]} : vector<22x22x8xbf16> to vector<16x16x8xbf16>
    %63 = vector.shape_cast %62 : vector<16x16x8xbf16> to vector<256x8xbf16>
    %64 = vector.extract_strided_slice %1 {offsets = [5, 5, 0], sizes = [16, 16, 8], strides = [1, 1, 1]} : vector<22x22x8xbf16> to vector<16x16x8xbf16>
    %65 = vector.shape_cast %64 : vector<16x16x8xbf16> to vector<256x8xbf16>
    %66 = tpu.concatenate %49, %51, %53, %55, %57, %59, %61, %63, %65 in 1 : vector<256x8xbf16>, vector<256x8xbf16>, vector<256x8xbf16>, vector<256x8xbf16>, vector<256x8xbf16>, vector<256x8xbf16>, vector<256x8xbf16>, vector<256x8xbf16>, vector<256x8xbf16> -> vector<256x72xbf16>
    %c1_23 = arith.constant 1 : index
    %c0_24 = arith.constant 0 : index
    %c0_25 = arith.constant 0 : index
    %67 = vector.load %arg4[%c1_23, %c0_24, %c0_25] : memref<3x72x256xbf16, #tpu.memory_space<vmem>>, vector<1x72x256xbf16>
    %68 = vector.shape_cast %67 : vector<1x72x256xbf16> to vector<72x256xbf16>
    %cst_26 = arith.constant dense<0.000000e+00> : vector<256x256xf32>
    %69 = tpu.matmul %66, %68, %cst_26 {dimension_numbers = #tpu.dot_dimension_numbers<[1], [0], [0], [1], [0, 0, 1, 1], [], []>} : vector<256x72xbf16>, vector<72x256xbf16>, vector<256x256xf32> -> vector<256x256xf32>
    %c1_27 = arith.constant 1 : index
    %c0_28 = arith.constant 0 : index
    %c0_29 = arith.constant 0 : index
    %70 = vector.load %arg5[%c1_27, %c0_28, %c0_29] : memref<3x1x256xf32, #tpu.memory_space<vmem>>, vector<1x1x256xf32>
    %71 = vector.shape_cast %70 : vector<1x1x256xf32> to vector<1x256xf32>
    %72 = vector.broadcast %71 : vector<1x256xf32> to vector<256x256xf32>
    %73 = arith.addf %69, %72 : vector<256x256xf32>
    %cst_30 = arith.constant 0.000000e+00 : f32
    %74 = vector.broadcast %cst_30 : f32 to vector<256x256xf32>
    %75 = arith.maximumf %73, %74 : vector<256x256xf32>
    %76 = arith.truncf %75 : vector<256x256xf32> to vector<256x256xbf16>
    %c2 = arith.constant 2 : index
    %c0_31 = arith.constant 0 : index
    %c0_32 = arith.constant 0 : index
    %77 = vector.load %arg8[%c2, %c0_31, %c0_32] : memref<5x256x256xbf16, #tpu.memory_space<vmem>>, vector<1x256x256xbf16>
    %78 = vector.shape_cast %77 : vector<1x256x256xbf16> to vector<256x256xbf16>
    %cst_33 = arith.constant dense<0.000000e+00> : vector<256x256xf32>
    %79 = tpu.matmul %76, %78, %cst_33 {dimension_numbers = #tpu.dot_dimension_numbers<[1], [0], [0], [1], [0, 0, 1, 1], [], []>} : vector<256x256xbf16>, vector<256x256xbf16>, vector<256x256xf32> -> vector<256x256xf32>
    %80 = arith.addf %47, %79 : vector<256x256xf32>
    %81 = vector.extract_strided_slice %1 {offsets = [0, 0, 0], sizes = [16, 16, 8], strides = [1, 1, 1]} : vector<22x22x8xbf16> to vector<16x16x8xbf16>
    %82 = vector.shape_cast %81 : vector<16x16x8xbf16> to vector<256x8xbf16>
    %83 = vector.extract_strided_slice %1 {offsets = [0, 3, 0], sizes = [16, 16, 8], strides = [1, 1, 1]} : vector<22x22x8xbf16> to vector<16x16x8xbf16>
    %84 = vector.shape_cast %83 : vector<16x16x8xbf16> to vector<256x8xbf16>
    %85 = vector.extract_strided_slice %1 {offsets = [0, 6, 0], sizes = [16, 16, 8], strides = [1, 1, 1]} : vector<22x22x8xbf16> to vector<16x16x8xbf16>
    %86 = vector.shape_cast %85 : vector<16x16x8xbf16> to vector<256x8xbf16>
    %87 = vector.extract_strided_slice %1 {offsets = [3, 0, 0], sizes = [16, 16, 8], strides = [1, 1, 1]} : vector<22x22x8xbf16> to vector<16x16x8xbf16>
    %88 = vector.shape_cast %87 : vector<16x16x8xbf16> to vector<256x8xbf16>
    %89 = vector.extract_strided_slice %1 {offsets = [3, 3, 0], sizes = [16, 16, 8], strides = [1, 1, 1]} : vector<22x22x8xbf16> to vector<16x16x8xbf16>
    %90 = vector.shape_cast %89 : vector<16x16x8xbf16> to vector<256x8xbf16>
    %91 = vector.extract_strided_slice %1 {offsets = [3, 6, 0], sizes = [16, 16, 8], strides = [1, 1, 1]} : vector<22x22x8xbf16> to vector<16x16x8xbf16>
    %92 = vector.shape_cast %91 : vector<16x16x8xbf16> to vector<256x8xbf16>
    %93 = vector.extract_strided_slice %1 {offsets = [6, 0, 0], sizes = [16, 16, 8], strides = [1, 1, 1]} : vector<22x22x8xbf16> to vector<16x16x8xbf16>
    %94 = vector.shape_cast %93 : vector<16x16x8xbf16> to vector<256x8xbf16>
    %95 = vector.extract_strided_slice %1 {offsets = [6, 3, 0], sizes = [16, 16, 8], strides = [1, 1, 1]} : vector<22x22x8xbf16> to vector<16x16x8xbf16>
    %96 = vector.shape_cast %95 : vector<16x16x8xbf16> to vector<256x8xbf16>
    %97 = vector.extract_strided_slice %1 {offsets = [6, 6, 0], sizes = [16, 16, 8], strides = [1, 1, 1]} : vector<22x22x8xbf16> to vector<16x16x8xbf16>
    %98 = vector.shape_cast %97 : vector<16x16x8xbf16> to vector<256x8xbf16>
    %99 = tpu.concatenate %82, %84, %86, %88, %90, %92, %94, %96, %98 in 1 : vector<256x8xbf16>, vector<256x8xbf16>, vector<256x8xbf16>, vector<256x8xbf16>, vector<256x8xbf16>, vector<256x8xbf16>, vector<256x8xbf16>, vector<256x8xbf16>, vector<256x8xbf16> -> vector<256x72xbf16>
    %c2_34 = arith.constant 2 : index
    %c0_35 = arith.constant 0 : index
    %c0_36 = arith.constant 0 : index
    %100 = vector.load %arg4[%c2_34, %c0_35, %c0_36] : memref<3x72x256xbf16, #tpu.memory_space<vmem>>, vector<1x72x256xbf16>
    %101 = vector.shape_cast %100 : vector<1x72x256xbf16> to vector<72x256xbf16>
    %cst_37 = arith.constant dense<0.000000e+00> : vector<256x256xf32>
    %102 = tpu.matmul %99, %101, %cst_37 {dimension_numbers = #tpu.dot_dimension_numbers<[1], [0], [0], [1], [0, 0, 1, 1], [], []>} : vector<256x72xbf16>, vector<72x256xbf16>, vector<256x256xf32> -> vector<256x256xf32>
    %c2_38 = arith.constant 2 : index
    %c0_39 = arith.constant 0 : index
    %c0_40 = arith.constant 0 : index
    %103 = vector.load %arg5[%c2_38, %c0_39, %c0_40] : memref<3x1x256xf32, #tpu.memory_space<vmem>>, vector<1x1x256xf32>
    %104 = vector.shape_cast %103 : vector<1x1x256xf32> to vector<1x256xf32>
    %105 = vector.broadcast %104 : vector<1x256xf32> to vector<256x256xf32>
    %106 = arith.addf %102, %105 : vector<256x256xf32>
    %cst_41 = arith.constant 0.000000e+00 : f32
    %107 = vector.broadcast %cst_41 : f32 to vector<256x256xf32>
    %108 = arith.maximumf %106, %107 : vector<256x256xf32>
    %109 = arith.truncf %108 : vector<256x256xf32> to vector<256x256xbf16>
    %c3 = arith.constant 3 : index
    %c0_42 = arith.constant 0 : index
    %c0_43 = arith.constant 0 : index
    %110 = vector.load %arg8[%c3, %c0_42, %c0_43] : memref<5x256x256xbf16, #tpu.memory_space<vmem>>, vector<1x256x256xbf16>
    %111 = vector.shape_cast %110 : vector<1x256x256xbf16> to vector<256x256xbf16>
    %cst_44 = arith.constant dense<0.000000e+00> : vector<256x256xf32>
    %112 = tpu.matmul %109, %111, %cst_44 {dimension_numbers = #tpu.dot_dimension_numbers<[1], [0], [0], [1], [0, 0, 1, 1], [], []>} : vector<256x256xbf16>, vector<256x256xbf16>, vector<256x256xf32> -> vector<256x256xf32>
    %113 = arith.addf %80, %112 : vector<256x256xf32>
    %114 = arith.extf %3 : vector<256x8xbf16> to vector<256x8xf32>
    %cst_45 = arith.constant dense<0.000000e+00> : vector<8xf32>
    %115 = vector.multi_reduction <add>, %114, %cst_45 [0] : vector<256x8xf32> to vector<8xf32>
    %116 = vector.shape_cast %115 : vector<8xf32> to vector<1x8xf32>
    %cst_46 = arith.constant 2.560000e+02 : f32
    %117 = vector.broadcast %cst_46 : f32 to vector<1x8xf32>
    %118 = arith.divf %116, %117 : vector<1x8xf32>
    %119 = arith.truncf %118 : vector<1x8xf32> to vector<1x8xbf16>
    %c0_47 = arith.constant 0 : index
    %c0_48 = arith.constant 0 : index
    %120 = vector.load %arg6[%c0_47, %c0_48] : memref<8x256xbf16, #tpu.memory_space<vmem>>, vector<8x256xbf16>
    %cst_49 = arith.constant dense<0.000000e+00> : vector<1x256xf32>
    %121 = tpu.matmul %119, %120, %cst_49 {dimension_numbers = #tpu.dot_dimension_numbers<[1], [0], [0], [1], [0, 0, 1, 1], [], []>} : vector<1x8xbf16>, vector<8x256xbf16>, vector<1x256xf32> -> vector<1x256xf32>
    %c0_50 = arith.constant 0 : index
    %c0_51 = arith.constant 0 : index
    %122 = vector.load %arg7[%c0_50, %c0_51] : memref<1x256xf32, #tpu.memory_space<vmem>>, vector<1x256xf32>
    %123 = arith.addf %121, %122 : vector<1x256xf32>
    %cst_52 = arith.constant 0.000000e+00 : f32
    %124 = vector.broadcast %cst_52 : f32 to vector<1x256xf32>
    %125 = arith.maximumf %123, %124 : vector<1x256xf32>
    %126 = arith.truncf %125 : vector<1x256xf32> to vector<1x256xbf16>
    %c4 = arith.constant 4 : index
    %c0_53 = arith.constant 0 : index
    %c0_54 = arith.constant 0 : index
    %127 = vector.load %arg8[%c4, %c0_53, %c0_54] : memref<5x256x256xbf16, #tpu.memory_space<vmem>>, vector<1x256x256xbf16>
    %128 = vector.shape_cast %127 : vector<1x256x256xbf16> to vector<256x256xbf16>
    %cst_55 = arith.constant dense<0.000000e+00> : vector<1x256xf32>
    %129 = tpu.matmul %126, %128, %cst_55 {dimension_numbers = #tpu.dot_dimension_numbers<[1], [0], [0], [1], [0, 0, 1, 1], [], []>} : vector<1x256xbf16>, vector<256x256xbf16>, vector<1x256xf32> -> vector<1x256xf32>
    %130 = vector.broadcast %129 : vector<1x256xf32> to vector<256x256xf32>
    %131 = arith.addf %113, %130 : vector<256x256xf32>
    %c0_56 = arith.constant 0 : index
    %c0_57 = arith.constant 0 : index
    %132 = vector.load %arg9[%c0_56, %c0_57] : memref<1x256xf32, #tpu.memory_space<vmem>>, vector<1x256xf32>
    %133 = vector.broadcast %132 : vector<1x256xf32> to vector<256x256xf32>
    %134 = arith.addf %131, %133 : vector<256x256xf32>
    %cst_58 = arith.constant 0.000000e+00 : f32
    %135 = vector.broadcast %cst_58 : f32 to vector<256x256xf32>
    %136 = arith.maximumf %134, %135 : vector<256x256xf32>
    %137 = vector.shape_cast %136 : vector<256x256xf32> to vector<1x16x16x256xf32>
    %c0_59 = arith.constant 0 : index
    %c0_60 = arith.constant 0 : index
    %c0_61 = arith.constant 0 : index
    %c0_62 = arith.constant 0 : index
    %138 = vector.load %arg10[%c0_59, %c0_60, %c0_61, %c0_62] : memref<1x16x16x256xf32, #tpu.memory_space<vmem>>, vector<1x16x16x256xf32>
    tpu.vector_store %arg10[%c0_59, %c0_60, %c0_61, %c0_62], %137 {strides = array<i32>} : memref<1x16x16x256xf32, #tpu.memory_space<vmem>>, vector<1x16x16x256xf32>,
    return
  }
  func.func @transform_0(%arg0: i32) -> (i32, i32, i32, i32) {
    %c0_i32 = arith.constant 0 : i32
    %c0_i32_0 = arith.constant 0 : i32
    %c0_i32_1 = arith.constant 0 : i32
    %c0_i32_2 = arith.constant 0 : i32
    return %arg0, %c0_i32, %c0_i32_0, %c0_i32_1 : i32, i32, i32, i32
  }
  func.func @transform_1(%arg0: i32) -> (i32, i32) {
    %c0_i32 = arith.constant 0 : i32
    %c0_i32_0 = arith.constant 0 : i32
    %c0_i32_1 = arith.constant 0 : i32
    return %c0_i32, %c0_i32_0 : i32, i32
  }
  func.func @transform_2(%arg0: i32) -> (i32, i32) {
    %c0_i32 = arith.constant 0 : i32
    %c0_i32_0 = arith.constant 0 : i32
    %c0_i32_1 = arith.constant 0 : i32
    return %c0_i32, %c0_i32_0 : i32, i32
  }
  func.func @transform_3(%arg0: i32) -> (i32, i32, i32) {
    %c0_i32 = arith.constant 0 : i32
    %c0_i32_0 = arith.constant 0 : i32
    %c0_i32_1 = arith.constant 0 : i32
    %c0_i32_2 = arith.constant 0 : i32
    return %c0_i32, %c0_i32_0, %c0_i32_1 : i32, i32, i32
  }
  func.func @transform_4(%arg0: i32) -> (i32, i32, i32) {
    %c0_i32 = arith.constant 0 : i32
    %c0_i32_0 = arith.constant 0 : i32
    %c0_i32_1 = arith.constant 0 : i32
    %c0_i32_2 = arith.constant 0 : i32
    return %c0_i32, %c0_i32_0, %c0_i32_1 : i32, i32, i32
  }
  func.func @transform_5(%arg0: i32) -> (i32, i32) {
    %c0_i32 = arith.constant 0 : i32
    %c0_i32_0 = arith.constant 0 : i32
    %c0_i32_1 = arith.constant 0 : i32
    return %c0_i32, %c0_i32_0 : i32, i32
  }
  func.func @transform_6(%arg0: i32) -> (i32, i32) {
    %c0_i32 = arith.constant 0 : i32
    %c0_i32_0 = arith.constant 0 : i32
    %c0_i32_1 = arith.constant 0 : i32
    return %c0_i32, %c0_i32_0 : i32, i32
  }
  func.func @transform_7(%arg0: i32) -> (i32, i32, i32) {
    %c0_i32 = arith.constant 0 : i32
    %c0_i32_0 = arith.constant 0 : i32
    %c0_i32_1 = arith.constant 0 : i32
    %c0_i32_2 = arith.constant 0 : i32
    return %c0_i32, %c0_i32_0, %c0_i32_1 : i32, i32, i32
  }
  func.func @transform_8(%arg0: i32) -> (i32, i32) {
    %c0_i32 = arith.constant 0 : i32
    %c0_i32_0 = arith.constant 0 : i32
    %c0_i32_1 = arith.constant 0 : i32
    return %c0_i32, %c0_i32_0 : i32, i32
  }
  func.func @transform_9(%arg0: i32) -> (i32, i32, i32, i32) {
    %c0_i32 = arith.constant 0 : i32
    %c0_i32_0 = arith.constant 0 : i32
    %c0_i32_1 = arith.constant 0 : i32
    %c0_i32_2 = arith.constant 0 : i32
    return %arg0, %c0_i32, %c0_i32_0, %c0_i32_1 : i32, i32, i32, i32
  }
}

</mosaic_0001>

<bundles_post_ra>
// kernel: tpu_custom_call.1
= control target key start
LH: loop header
LB: loop body
LE: loop exit
PB: predicated region body
PF: predicated region fallthrough
CT: control target
= control target key end

     0   :  { %14 = vsyncpa [#allocation3], 0  ;;  %s14501_s0 = inlined_call_operand.vmem [shape: bf16[2,22,22,8], index: 0, kind: input, shape index: {}]   ;;  %s14502_s1 = inlined_call_operand.vmem [shape: bf16[8,256], index: 1, kind: input, shape index: {}]   ;;  %s14503_s2 = inlined_call_operand.vmem [shape: f32[1,256], index: 2, kind: input, shape index: {}]   ;;  %s14504_s3 = inlined_call_operand.vmem [shape: bf16[3,72,256], index: 3, kind: input, shape index: {}]   ;;  %s14505_s4 = inlined_call_operand.vmem [shape: f32[3,1,256], index: 4, kind: input, shape index: {}]   ;;  %s14506_s5 = inlined_call_operand.vmem [shape: bf16[8,256], index: 5, kind: input, shape index: {}]   ;;  %s14507_s6 = inlined_call_operand.vmem [shape: f32[1,256], index: 6, kind: input, shape index: {}]   ;;  %s14508_s7 = inlined_call_operand.hbm [shape: bf16[5,256,256], index: 7, kind: input, shape index: {}]   ;;  %s14509_s8 = inlined_call_operand.vmem [shape: f32[1,256], index: 8, kind: input, shape index: {}]   ;;  %s14510_s9 = inlined_call_operand.hbm [shape: f32[2,16,16,256], index: 9, kind: output, shape index: {}]  }
   0x1   :  { %15 = vsyncpa [#allocation4], 0 }
   0x2   :  { %17 = vsyncpa [#allocation4 + $0x1], 0  ;;  %s9086_s30 = smov 0   ;;  %s9088_s10 = smov 0  }
   0x3   :  { %s9090_s11 = smov 0   ;;  %s9092_s12 = smov 0  }
   0x4 LB: > { %s9107_s13 = sadd.s32 4294967295, %s9020_s12   ;;  %s7764_s14 = sadd.s32 4294967294, %s9020_s12   ;;  %s9020_s12 = sphi %s9092_s12, %s15478_s12   ;;  %s9016_s11 = sphi %s9090_s11, %s15477_s11   ;;  %s9012_s10 = sphi %s9088_s10, %s15476_s10   ;;  %s9008_s30 = sphi %s9086_s30, %s15475_s30  }
   0x5   : > { %s9111_s15 = sadd.s32 1, %s9020_s12   ;;  %s224_s16 = sadd.s32 1, %s9016_s11 }
   0x6   : > { %s221_s17 = ssub.s32 %s9020_s12, %s9111_s15  ;;  %p234_p0 = scmp.ne.s32.totalorder %s9016_s11, %s9012_s10 }
   0x7   : > { %p222_p1 = scmp.eq.s32.totalorder %s221_s17, 0  ;;  %p235_p2 = scmp.eq.s32.totalorder %s9107_s13, 1 }
   0x8   : > { %p240_p3 = scmp.ne.s32.totalorder %s9012_s10, %s9008_s30  ;;  %p241_p4 = scmp.eq.s32.totalorder %s7764_s14, 1 }
   0x9   : > { %s9122_s18 = scalar_select %p222_p1, %s9016_s11, %s224_s16  }
   0xa   : > { %p9124_p5 = por %p235_p2, %p234_p0  ;;  %p9128_p6 = por %p241_p4, %p240_p3 }
   0xb   : > { %p7765_p7 = scmp.ge.s32.totalorder %s9020_s12, 1  ;;  %p248_p8 = scmp.lt.s32.totalorder %s9020_s12, 3 }
   0xc   : > { %s14863_s19 = scalar_select %p9124_p5, 1, 0 }
   0xd   : > { %s14864_s20 = scalar_select %p9128_p6, 1, 0 }
   0xe   : > { %p14511_p9 = scmp.eq.s32.totalorder %s9107_s13, 0  ;;  %p9135_p10 = pnand %p7765_p7, %p248_p8 }
   0xf   : > { %s9022_s22 = smov [#allocation2]   ;;  %s8926_s27 = scalar_lea.hbm %s14508_s7, 20480 }
  0x10   : > { %s14865_s21 = scalar_select %p9135_p10, 1, 0 }
  0x11   : > { %s278_s23 = sshll.u32 %s9022_s22, 4  ;;  %p8493_p11 = pneg %p9135_p10  ;;  %s279_s23 = int_to_ptr.vmem [resolvable:$true] %s278_s23 }
  0x12   : > { %p8927_p13 = scmp.ne.s32.totalorder %s14508_s7, %s8926_s27  ;;  %p8933_p3 = scmp.lt.u32.totalorder %s8926_s27, %s14508_s7 }
  0x13   : > { %p9143_p12 = pnand %p14511_p9, %p8493_p11 }
  0x15   : > { %p8928_p0 = pneg %p9143_p12 }
  0x17   : > { %p8929_p1 = pnand %p8928_p0, %p8927_p13 }
  0x19   : > { %p8930_p2 = pneg %p8929_p1 }
  0x1b   : > { %p8935_p4 = pnand %p8933_p3, %p8930_p2 }
  0x1d   : > { %8938 = shalt.err (!%p8935_p4)
}
  0x1e   : > { %s8939_s17 = scalar_lea.vmem %s279_s23, 20480  ;;  %p8947_p9 = scmp.lt.s32.totalorder %s279_s23, %s279_s23 }
  0x1f   : > { %p8940_p7 = scmp.ne.s32.totalorder %s279_s23, %s8939_s17  ;;  %p8948_p6 = scmp.lt.s32.totalorder %s8939_s17, %s8939_s17 }
  0x21   : > { %p8942_p8 = pnand %p8940_p7, %p8928_p0  ;;  %p8949_p5 = por %p8948_p6, %p8947_p9 }
  0x23   : > { %p8943_p11 = pneg %p8942_p8 }
  0x25   : > { %p8950_p10 = pnand %p8949_p5, %p8943_p11 }
  0x27   : > { %8953 = shalt.err (!%p8950_p10)
}
  0x28   : > { %s9023_s22 = smov 128   ;;  %s9024_s25 = smov 8  }
  0x29   : > { %8496 = dma.hbm_to_vmem [thread:$0]  (!%p9143_p12), %s14508_s7, 20480, %s279_s23, [#allocation3], %s9023_s22, %s9023_s22, %s9024_s25  }
  0x2a   : > { %p14867_p13 = scmp.ne.s32.totalorder %s14865_s21, 0 }
  0x2c   : > { %305 = sbr.rel (%p14867_p13) target bundleno = 1525 (0x5f5), region = 56 }
  0x33   : > { %p14868_p1 = scmp.eq.s32.totalorder %s9107_s13, 0 }
  0x35   : > { %8999 = dma.done.wait (%p14868_p1), [#allocation3], 20480   ;;  %p14869_p0 = pmov %p14868_p1 }
  0x36   : > { %p341_p5 = scmp.lt.s32.totalorder %s9107_s13, 1  ;;  %vm1387_vm0 = vcmask 1042432   ;;  %vm1388_vm1 = vcmask 1046532   ;;  %vm1530_vm3 = vcmask 1041408   ;;  %vm1531_vm4 = vcmask 1045508   ;;  %s9025_s21 = smov 24  }
  0x37   : > { %9001 = vsyncadd (%p14869_p0), [#allocation3], 4294946816  ;;  %vm413_vm6 = vsmask.f32 2304  ;;  %vm414_vm7 = vsmask.f32 6416 }
  0x38   : > { %s342_s27 = scalar_select %p341_p5, %s9107_s13, 1  ;;  %vm9176_vm2 = vmor %vm1387_vm0, %vm1388_vm1  ;;  %vm962_vm9 = vcmask 64512   ;;  %vm1011_vm10 = vcmask 1043456   ;;  %vm2125_vm11 = vcmask 130048   ;;  %vm2158_vm12 = vcmask 195584  }
  0x39   : > { %vm9198_vm5 = vmor %vm1530_vm3, %vm1531_vm4  ;;  %s9026_s16 = smov 16   ;;  %s9027_s17 = smov 48   ;;  %vm2191_vm13 = vcmask 261120   ;;  %vm2224_vm14 = vcmask 326656   ;;  %vm2257_vm15 = vcmask 392192   ;;  %vm2290_vm0 = vcmask 457728  }
  0x3a   : > { %s8486_s24 = smul.u32 264, %s342_s27  ;;  %s9028_s22 = smov 40   ;;  %vm9274_vm8 = vmor %vm413_vm6, %vm414_vm7  ;;  %vm2323_vm1 = vcmask 523264   ;;  %vm2422_vm3 = vcmask 588800   ;;  %v8601_v11 = vld [vmem:[#allocation2 + $0x1b0] ss:$8 sps:$4 sm:$0xff]  }
  0x3b   : > { %s14755_s25 = smov 64   ;;  %s14785_s26 = smov 8   ;;  %vm3697_vm4 = vsmask.f32 5392  ;;  %vm3489_vm6 = vsmask.f32 3328 }
  0x3c   : > { %s9174_s23 = scalar_lea.vmem %s14501_s0, %s8486_s24  ;;  %s9031_s27 = smov 56   ;;  %vm3490_vm7 = vsmask.f32 7440 }
  0x3d   : > { %v9181_v1 = vld [vmem:[%s9174_s23 + $0x24] sm:$0xf]  ;;  %v9184_v2 = vld [vmem:[%s9174_s23 + $0x28] sm:$0xf]  ;;  %v9187_v3 = vld [vmem:[%s9174_s23 + $0x2c] sm:$0x7] }
  0x3e   : > { %14872 = vst [vmem:[#allocation8_spill] sm:$0xff] %v9187_v3  ;;  %v7808_v4 = vrot.slane %v9181_v1, 9  ;;  %v1399_v5 = vrot.slane %v9184_v2, 5  ;;  %v1402_v6 = vrot.slane %v9187_v3, 5  ;;  %v353_v7 = vld [vmem:[%s9174_s23 + $0x18] sm:$0xf] }
  0x3f   : > { %v7824_v8 = vrot.slane %v9181_v1, 10  ;;  %v354_v9 = vld [vmem:[%s9174_s23 + $0x1c] sm:$0xf]  ;;  %v9196_v10 = vld [vmem:[%s9174_s23 + $0x20] sm:$0x7]  ;;  %v7823_v12 = vrot.slane %v353_v7, 10 }
  0x40   : > { %14873 = vst [vmem:[#allocation9_spill] sm:$0xff] %v9196_v10  ;;  %v1542_v13 = vrot.slane %v9184_v2, 6  ;;  %v1400_v14 = vsel %vm9176_vm2, %v7808_v4, %v1399_v5  ;;  %v1401_v15 = vrot.slane %v1399_v5, 4  ;;  %v1535_v16 = vrot.slane %v354_v9, 6  ;;  %v359_v18 = vld [vmem:[%s9174_s23 + $0x30] sm:$0xf] }
  0x41   : > { %v1538_v17 = vrot.slane %v9196_v10, 6  ;;  %v360_v19 = vld [vmem:[%s9174_s23 + $0x34] sm:$0xf]  ;;  %v9209_v20 = vld [vmem:[%s9174_s23 + $0x38] sm:$0x7]  ;;  %v7809_v21 = vrot.slane %v359_v18, 9 }
  0x42   : > { %14876 = vst [vmem:[#allocation10_spill] sm:$0xff] %v9209_v20  ;;  %v1543_v22 = vsel %vm9198_vm5, %v7824_v8, %v1542_v13  ;;  %v1544_v23 = vrot.slane %v1542_v13, 4  ;;  %v1403_v24 = vsel %vm9176_vm2, %v1401_v15, %v1402_v6  ;;  %v1536_v25 = vsel %vm9198_vm5, %v7823_v12, %v1535_v16  ;;  %s9032_s24 = smov 32   ;;  %s15074_s14 = smov 8  }
  0x43   : > { %v1537_v26 = vrot.slane %v1535_v16, 4  ;;  %v1406_v27 = vrot.slane %v360_v19, 5  ;;  %v9217_v28 = vcombine.low %v1400_v14, %v1403_v24  ;;  %v1409_v29 = vrot.slane %v9209_v20, 5  ;;  %v8549_v24 = vld [vmem:[%s14504_s3 + $0x4] ss:$8 sps:$4 sm:$0xff]   ;;  %s338_s28 = sand.u32 1, %s9012_s10  }
  0x44   : > { %v1545_v30 = vrot.slane %v9187_v3, 6  ;;  %v7825_v31 = vrot.slane %v359_v18, 10  ;;  %v1549_v35 = vrot.slane %v360_v19, 6  ;;  %v1552_v38 = vrot.slane %v9209_v20, 6  ;;  %2461 = vmatprep.subr.bf16.mxu1 %v8549_v24  ;;  %v8560_v24 = vld [vmem:[%s14504_s3 + $0x30] ss:$8 sps:$4 sm:$0xff]  }
  0x45   : > { %v1539_v32 = vsel %vm9198_vm5, %v1537_v26, %v1538_v17  ;;  %v1407_v33 = vsel %vm9176_vm2, %v7809_v21, %v1406_v27  ;;  %v1408_v34 = vrot.slane %v1406_v27, 4  ;;  %1873 = vrot.lane.b32.xlu1 %v9217_v28, %s9025_s21  ;;  %v9230_v39 = vshrl.u32 %v353_v7, 16  ;;  %s14459_s29 = scalar_lea.sflag [#allocation4], %s338_s28  ;;  %p15473_p9 = scmp.ne.s32.totalorder %s14863_s19, 0 }
  0x46   : > { %v7860_v36 = vcombine.low %v1536_v25, %v1539_v32  ;;  %v1546_v37 = vsel %vm9198_vm5, %v1544_v23, %v1545_v30  ;;  %v1550_v42 = vsel %vm9198_vm5, %v7825_v31, %v1549_v35  ;;  %v1551_v43 = vrot.slane %v1549_v35, 4  ;;  %v8551_v25 = vld [vmem:[%s14504_s3] ss:$8 sps:$4 sm:$0xff]  }
  0x47   : > { %14877 = vst [vmem:[#allocation11_spill] sm:$0xff] %v9230_v39  ;;  %v1410_v40 = vsel %vm9176_vm2, %v1408_v34, %v1409_v29  ;;  %v7861_v41 = vcombine.low %v1543_v22, %v1546_v37  ;;  %v1505_v45 = vrot.slane %v9230_v39, 5  ;;  %v9240_v46 = vshll.u32 %v353_v7, 16  ;;  %2462 = vmatpush1.bf16.msra.mxu1 %v8551_v25 }
  0x48   : > { %1838 = vrot.lane.b32.xlu0 %v7860_v36, %s9026_s16  ;;  %v9237_v44 = vcombine.low %v1407_v33, %v1410_v40  ;;  %v9242_v47 = vshrl.u32 %v354_v9, 16  ;;  %v1553_v48 = vsel %vm9198_vm5, %v1551_v43, %v1552_v38  ;;  %v9246_v49 = vshll.u32 %v354_v9, 16  ;;  %v9323_v40 = vld [vmem:[%s9174_s23 + $0x40] sm:$0xf] }
  0x49   : > { %14878 = vst [vmem:[#allocation12_spill] sm:$0xff] %v9240_v46  ;;  %v14515_v50 = vshrl.u32 %v9196_v10, 16  ;;  %v9250_v51 = vshll.u32 %v9196_v10, 16  ;;  %v9254_v52 = vcombine.low %v1550_v42, %v1553_v48  ;;  %v1508_v53 = vrot.slane %v9240_v46, 6  ;;  %v8555_v48 = vld [vmem:[%s14504_s3 + $0x24] ss:$8 sps:$4 sm:$0xff]  }
  0x4a   : > { %14879 = vst [vmem:[#allocation13_spill] sm:$0xff] %v9242_v47  ;;  %14880 = vst [vmem:[#allocation14_spill] sm:$0xff] %v9246_v49  ;;  %1975 = vrot.lane.b32.xlu1 %v9237_v44, %s9027_s17  ;;  %v1514_v54 = vrot.slane %v9242_v47, 5  ;;  %v9258_v55 = vshrl.u32 %v359_v18, 16  ;;  %v1517_v56 = vrot.slane %v9246_v49, 6  ;;  %v9264_v59 = vshll.u32 %v359_v18, 16 }
  0x4b   : > { %14881 = vst [vmem:[#allocation15_spill] sm:$0xff] %v9250_v51  ;;  %v1524_v57 = vrot.slane %v14515_v50, 5  ;;  %v1527_v58 = vrot.slane %v9250_v51, 6  ;;  %v1509_v60 = vor.u32 %v1508_v53, %v1505_v45  ;;  %v9268_v62 = vshrl.u32 %v360_v19, 16 }
  0x4c   : > { %14882 = vst [vmem:[#allocation16_spill] sm:$0xff] %v9258_v55  ;;  %14883 = vst [vmem:[#allocation17_spill] sm:$0xff] %v9264_v59  ;;  %1940 = vrot.lane.b32.xlu0 %v7861_v41, %s9028_s22  ;;  %v447_v61 = vrot.slane %v9258_v55, 5  ;;  %v9270_v63 = vshll.u32 %v360_v19, 16  ;;  %v14886_v4 = vmov 0  ;;  %v1518_v5 = vor.u32 %v1517_v56, %v1514_v54 }
  0x4d   : > { %14884 = vst [vmem:[#allocation18_spill] sm:$0xff] %v9268_v62  ;;  %v14887_v4 = vsel %vm9274_vm8, 4294967295, %v14886_v4  ;;  %v1528_v6 = vor.u32 %v1527_v58, %v1524_v57  ;;  %v450_v7 = vrot.slane %v9264_v59, 6  ;;  %v14514_v8 = vshrl.u32 %v9209_v20, 16 }
  0x4e   : > { %14885 = vst [vmem:[#allocation19_spill] sm:$0xff] %v9270_v63  ;;  %14888 = vst [vmem:[#allocation20_spill] sm:$0xff] %v14887_v4  ;;  %2045 = vrot.lane.b32.xlu1 %v9254_v52, %s14755_s25  ;;  %v1510_v9 = vrot.slane %v1509_v60, 4  ;;  %v456_v12 = vrot.slane %v9268_v62, 5  ;;  %v459_v13 = vrot.slane %v9270_v63, 6  ;;  %v9285_v14 = vshll.u32 %v9209_v20, 16 }
  0x4f   : > { %v1520_v15 = vrot.slane %v1518_v5, 4  ;;  %v451_v16 = vor.u32 %v450_v7, %v447_v61  ;;  %v466_v17 = vrot.slane %v14514_v8, 5  ;;  %v9290_v18 = vshrl.u32 %v9181_v1, 16  ;;  %v9347_v60 = vld [vmem:[%s9174_s23 + $0x44] sm:$0x7] }
  0x50   : > { %14889 = vst [vmem:[#allocation21_spill] sm:$0xff] %v9285_v14  ;;  %v1519_v19 = vsel %vm9274_vm8, %v1510_v9, %v1518_v5  ;;  %v460_v21 = vor.u32 %v459_v13, %v456_v12  ;;  %v469_v22 = vrot.slane %v9285_v14, 6  ;;  %v9296_v23 = vshll.u32 %v9181_v1, 16  ;;  %v8552_v1 = vld [vmem:[%s14504_s3 + $0x14] ss:$8 sps:$4 sm:$0xff]   ;;  %14895 = vst [vmem:[#allocation27_spill] sm:$0xff] %v9347_v60 }
  0x51   : > { %14890 = vst [vmem:[#allocation22_spill] sm:$0xff] %v9290_v18  ;;  %v1529_v26 = vsel %vm9274_vm8, %v1520_v15, %v1528_v6  ;;  %v452_v27 = vrot.slane %v451_v16, 4  ;;  %v419_v29 = vrot.slane %v9290_v18, 5  ;;  %v9308_v30 = vshrl.u32 %v9184_v2, 16  ;;  %2463 = vmatprep.subr.bf16.mxu1 %v8552_v1  ;;  %v362_v5 = vld [vmem:[%s9174_s23 + $0x3c] sm:$0xf] }
  0x52   : > { %14891 = vst [vmem:[#allocation23_spill] sm:$0xff] %v9296_v23  ;;  %v7859_v31 = vcombine.low %v1519_v19, %v1529_v26  ;;  %1840 = vrot.lane.b32.xlu1 %v7861_v41, %s9026_s16  ;;  %v462_v32 = vrot.slane %v460_v21, 4  ;;  %v470_v33 = vor.u32 %v469_v22, %v466_v17  ;;  %v422_v34 = vrot.slane %v9296_v23, 6  ;;  %v8557_v7 = vld [vmem:[%s14504_s3 + $0x20] ss:$8 sps:$4 sm:$0xff]  }
  0x53   : > { %14892 = vst [vmem:[#allocation24_spill] sm:$0xff] %v9308_v30  ;;  %v461_v35 = vsel %vm9274_vm8, %v452_v27, %v460_v21  ;;  %v428_v36 = vrot.slane %v9308_v30, 5  ;;  %v9319_v37 = vshll.u32 %v9184_v2, 16  ;;  %v14517_v38 = vshrl.u32 %v9187_v3, 16  ;;  %v8554_v2 = vld [vmem:[%s14504_s3 + $0x10] ss:$8 sps:$4 sm:$0xff]  }
  0x54   : > { %1758 = vrot.lane.b32.xlu0 %v7859_v31, %s14785_s26  ;;  %v9328_v41 = vsel %vm9274_vm8, %v462_v32, %v470_v33  ;;  %v6992_v42 = vunpack.c.l.bf16 %v461_v35  ;;  %v423_v43 = vor.u32 %v422_v34, %v419_v29  ;;  %v9331_v45 = vshll.u32 %v9187_v3, 16  ;;  %2464 = vmatpush1.bf16.msra.mxu1 %v8554_v2  ;;  %v8558_v16 = vld [vmem:[%s14504_s3 + $0x34] ss:$8 sps:$4 sm:$0xff]   ;;  %v2364_v62 = vld [vmem:[%s14504_s3 + $0x40] sm:$0xff] }
  0x55   : > { %14893 = vst [vmem:[#allocation25_spill] sm:$0xff] %v9319_v37  ;;  %v9340_v53 = vcombine.low %v461_v35, %v9328_v41  ;;  %v431_v54 = vrot.slane %v9319_v37, 6  ;;  %v438_v56 = vrot.slane %v14517_v38, 5  ;;  %v1413_v6 = vrot.slane %v9323_v40, 5  ;;  %2465 = vmatprep.subr.bf16.mxu1 %v8555_v48 }
  0x56   : > { %14894 = vst [vmem:[#allocation26_spill] sm:$0xff] %v9331_v45  ;;  %v424_v57 = vrot.slane %v423_v43, 4  ;;  %v441_v58 = vrot.slane %v9331_v45, 6  ;;  %v7025_v9 = vsel %vm962_vm9, %v6992_v42, 0.0  ;;  %v7810_v13 = vrot.slane %v362_v5, 9 }
  0x57   : > { %v432_v61 = vor.u32 %v431_v54, %v428_v36  ;;  %v1556_v15 = vrot.slane %v9323_v40, 6  ;;  %v6993_v17 = vunpack.c.l.bf16 %v9328_v41  ;;  %v1416_v22 = vrot.slane %v9347_v60, 5 }
  0x58   : > { %2010 = vrot.lane.b32.xlu0 %v9340_v53, %s9031_s27  ;;  %v442_v12 = vor.u32 %v441_v58, %v438_v56  ;;  %v7826_v26 = vrot.slane %v362_v5, 10  ;;  %v1559_v27 = vrot.slane %v9347_v60, 6  ;;  %v9369_v29 = vshrl.u32 %v362_v5, 16  ;;  %2466 = vmatpush1.bf16.msra.mxu1 %v8557_v7 }
  0x59   : > { %v433_v19 = vsel %vm9274_vm8, %v424_v57, %v432_v61  ;;  %v434_v21 = vrot.slane %v432_v61, 4  ;;  %v1415_v31 = vrot.slane %v1413_v6, 4  ;;  %v9373_v32 = vshll.u32 %v362_v5, 16  ;;  %2467 = vmatprep.subr.bf16.mxu1 %v8558_v16 }
  0x5a   : > { %v6990_v25 = vunpack.c.l.bf16 %v433_v19  ;;  %14896 = vst [vmem:[#allocation28_spill] sm:$0xff] %v9369_v29  ;;  %v9376_v33 = vshrl.u32 %v9323_v40, 16  ;;  %v1558_v41 = vrot.slane %v1556_v15, 4  ;;  %v475_v42 = vrot.slane %v9369_v29, 5 }
  0x5b   : > { %v443_v1 = vsel %vm9274_vm8, %v434_v21, %v442_v12  ;;  %14897 = vst [vmem:[#allocation29_spill] sm:$0xff] %v9373_v32  ;;  %v478_v43 = vrot.slane %v9373_v32, 6  ;;  %v1414_v54 = vsel %vm9176_vm2, %v7810_v13, %v1413_v6  ;;  %v9392_v56 = vshll.u32 %v9323_v40, 16  ;;  %v9401_v12 = vld [vmem:[%s9174_s23 + $0x48] sm:$0xf] }
  0x5c   : > { %14898 = vst [vmem:[#allocation30_spill] sm:$0xff] %v9376_v33  ;;  %v9378_v34 = vcombine.low %v433_v19, %v443_v1  ;;  %v6991_v35 = vunpack.c.l.bf16 %v443_v1  ;;  %v7022_v36 = vsel %vm962_vm9, %v6990_v25, 0.0  ;;  %v484_v2 = vrot.slane %v9376_v33, 5  ;;  %2468 = vmatpush1.bf16.msra.mxu1 %v8560_v24  ;;  %v9411_v25 = vld [vmem:[%s9174_s23 + $0x4c] sm:$0xf] }
  0x5d   : > { %14899 = vst [vmem:[#allocation31_spill] sm:$0xff] %v9392_v56  ;;  %v14516_v57 = vshrl.u32 %v9347_v60, 16  ;;  %v1417_v61 = vsel %vm9176_vm2, %v1415_v31, %v1416_v22  ;;  %v479_v5 = vor.u32 %v478_v43, %v475_v42  ;;  %v9398_v7 = vshll.u32 %v9347_v60, 16 }
  0x5e   : > { %v7023_v48 = vsel %vm962_vm9, %v6991_v35, 0.0  ;;  %1905 = vrot.lane.b32.xlu1 %v9378_v34, %s9032_s24  ;;  %1760 = vrot.lane.b32.xlu0 %v9378_v34, %s14785_s26  ;;  %v7027_v16 = vsel %vm962_vm9, %v6993_v17, 0.0  ;;  %v487_v6 = vrot.slane %v9392_v56, 6  ;;  %v1557_v19 = vsel %vm9198_vm5, %v7826_v26, %v1556_v15 }
  0x5f   : > { %v7024_v58 = vadd.f32 %v7023_v48, %v7022_v36  ;;  %14900 = vst [vmem:[#allocation32_spill] sm:$0xff] %v9398_v7  ;;  %v494_v40 = vrot.slane %v14516_v57, 5  ;;  %v480_v21 = vrot.slane %v479_v5, 4  ;;  %v497_v22 = vrot.slane %v9398_v7, 6  ;;  %v9427_v36 = vld [vmem:[%s9174_s23 + $0x50] sm:$0x7] }
  0x60   : > { %v9417_v17 = vcombine.low %v1414_v54, %v1417_v61  ;;  %v1560_v24 = vsel %vm9198_vm5, %v1558_v41, %v1559_v27  ;;  %v9422_v15 = vshrl.u32 %v9401_v12, 16  ;;  %14902 = vst [vmem:[#allocation34_spill] sm:$0xff] %v9427_v36  ;;  %v1420_v48 = vrot.slane %v9411_v25, 5 }
  0x61   : > { %v7026_v13 = vadd.f32 %v7025_v9, %v7024_v58  ;;  %v488_v9 = vor.u32 %v487_v6, %v484_v2  ;;  %v498_v31 = vor.u32 %v497_v22, %v494_v40  ;;  %v9429_v42 = vcombine.low %v1557_v19, %v1560_v24 }
  0x62   : > { %1907 = vrot.lane.b32.xlu1 %v9340_v53, %s9032_s24  ;;  %1875 = vrot.lane.b32.xlu0 %v9237_v44, %s9025_s21  ;;  %14901 = vst [vmem:[#allocation33_spill] sm:$0xff] %v9422_v15  ;;  %v503_v54 = vrot.slane %v9422_v15, 5  ;;  %v9440_v41 = vshll.u32 %v9401_v12, 16  ;;  %v9443_v2 = vshrl.u32 %v9411_v25, 16  ;;  %v9446_v58 = vshll.u32 %v9411_v25, 16 }
  0x63   : > { %v7028_v1 = vadd.f32 %v7027_v16, %v7026_v13  ;;  %v489_v26 = vsel %vm9274_vm8, %v480_v21, %v488_v9  ;;  %v490_v35 = vrot.slane %v488_v9, 4  ;;  %v7811_v40 = vrot.slane %v9401_v12, 9  ;;  %v9602_v15 = vld [vmem:[%s9174_s23 + $0x70] sm:$0xf] }
  0x64   : > { %v6994_v43 = vunpack.c.l.bf16 %v489_v26  ;;  %14903 = vst [vmem:[#allocation35_spill] sm:$0xff] %v9440_v41  ;;  %14904 = vst [vmem:[#allocation36_spill] sm:$0xff] %v9443_v2  ;;  %v506_v13 = vrot.slane %v9440_v41, 6  ;;  %v512_v19 = vrot.slane %v9443_v2, 5  ;;  %v515_v22 = vrot.slane %v9446_v58, 6 }
  0x65   : > { %v499_v27 = vsel %vm9274_vm8, %v490_v35, %v498_v31  ;;  %14905 = vst [vmem:[#allocation37_spill] sm:$0xff] %v9446_v58  ;;  %v14519_v24 = vshrl.u32 %v9427_v36, 16  ;;  %v9458_v9 = vshll.u32 %v9427_v36, 16  ;;  %v9461_v31 = vld [vmem:[%s9174_s23 + $0x54] sm:$0xf]  ;;  %v1423_v35 = vrot.slane %v9427_v36, 5 }
  0x66   : > { %1977 = vrot.lane.b32.xlu1 %v9417_v17, %s9027_s17  ;;  %1942 = vrot.lane.b32.xlu0 %v9254_v52, %s9028_s22  ;;  %v9448_v61 = vcombine.low %v489_v26, %v499_v27  ;;  %v6995_v5 = vunpack.c.l.bf16 %v499_v27  ;;  %v7029_v16 = vsel %vm962_vm9, %v6994_v43, 0.0  ;;  %v1422_v26 = vrot.slane %v1420_v48, 4 }
  0x67   : > { %v7030_v6 = vadd.f32 %v7029_v16, %v7028_v1  ;;  %14906 = vst [vmem:[#allocation38_spill] sm:$0xff] %v9458_v9  ;;  %v507_v43 = vor.u32 %v506_v13, %v503_v54  ;;  %v1563_v27 = vrot.slane %v9411_v25, 6  ;;  %v522_v16 = vrot.slane %v14519_v24, 5 }
  0x68   : > { %v7031_v21 = vsel %vm962_vm9, %v6995_v5, 0.0  ;;  %v516_v5 = vor.u32 %v515_v22, %v512_v19  ;;  %v525_v8 = vrot.slane %v9458_v9, 6  ;;  %v7827_v50 = vrot.slane %v9401_v12, 10  ;;  %v9496_v19 = vld [vmem:[%s9174_s23 + $0x5c] sm:$0x7] }
  0x69   : > { %v7032_v1 = vadd.f32 %v7031_v21, %v7030_v6  ;;  %v508_v57 = vrot.slane %v507_v43, 4  ;;  %v9474_v6 = vld [vmem:[%s9174_s23 + $0x58] sm:$0xf]  ;;  %v1421_v21 = vsel %vm9176_vm2, %v7811_v40, %v1420_v48  ;;  %v1566_v25 = vrot.slane %v9427_v36, 6  ;;  %14909 = vst [vmem:[#allocation41_spill] sm:$0xff] %v9496_v19 }
  0x6a   : > { %2047 = vrot.lane.b32.xlu1 %v9429_v42, %s14755_s25  ;;  %2012 = vrot.lane.b32.xlu0 %v9448_v61, %s9031_s27  ;;  %v518_v38 = vrot.slane %v516_v5, 4  ;;  %v526_v20 = vor.u32 %v525_v8, %v522_v16  ;;  %v9486_v54 = vshrl.u32 %v9461_v31, 16  ;;  %v9489_v13 = vshll.u32 %v9461_v31, 16 }
  0x6b   : > { %v517_v12 = vsel %vm9274_vm8, %v508_v57, %v516_v5  ;;  %v1424_v8 = vsel %vm9176_vm2, %v1422_v26, %v1423_v35  ;;  %v1565_v48 = vrot.slane %v1563_v27, 4  ;;  %v1564_v22 = vsel %vm9198_vm5, %v7827_v50, %v1563_v27 }
  0x6c   : > { %14907 = vst [vmem:[#allocation39_spill] sm:$0xff] %v9486_v54  ;;  %14908 = vst [vmem:[#allocation40_spill] sm:$0xff] %v9489_v13  ;;  %v6996_v40 = vunpack.c.l.bf16 %v517_v12  ;;  %v531_v43 = vrot.slane %v9486_v54, 5  ;;  %v534_v16 = vrot.slane %v9489_v13, 6  ;;  %v9504_v24 = vshrl.u32 %v9474_v6, 16 }
  0x6d   : > { %v9507_v26 = vshll.u32 %v9474_v6, 16  ;;  %v14527_v35 = vshrl.u32 %v9496_v19, 16  ;;  %v1567_v27 = vsel %vm9198_vm5, %v1565_v48, %v1566_v25  ;;  %v1427_v9 = vrot.slane %v9474_v6, 5 }
  0x6e   : > { %1842 = vrot.lane.b32.xlu1 %v9254_v52, %s9026_s16  ;;  %1762 = vrot.lane.b32.xlu0 %v9340_v53, %s14785_s26  ;;  %v527_v52 = vsel %vm9274_vm8, %v518_v38, %v526_v20  ;;  %v7033_v5 = vsel %vm962_vm9, %v6996_v40, 0.0  ;;  %14910 = vst [vmem:[#allocation42_spill] sm:$0xff] %v9504_v24  ;;  %v9513_v20 = vcombine.low %v1421_v21, %v1424_v8  ;;  %v540_v13 = vrot.slane %v9504_v24, 5  ;;  %v9528_v8 = vld [vmem:[%s9174_s23 + $0x60] sm:$0xf] }
  0x6f   : > { %v6997_v57 = vunpack.c.l.bf16 %v527_v52  ;;  %14911 = vst [vmem:[#allocation43_spill] sm:$0xff] %v9507_v26  ;;  %v7034_v50 = vadd.f32 %v7033_v5, %v7032_v1  ;;  %v535_v40 = vor.u32 %v534_v16, %v531_v43  ;;  %v543_v54 = vrot.slane %v9507_v26, 6 }
  0x70   : > { %v550_v21 = vrot.slane %v14527_v35, 5  ;;  %v9525_v1 = vshll.u32 %v9496_v19, 16  ;;  %v9534_v48 = vcombine.low %v1564_v22, %v1567_v27  ;;  %v9536_v43 = vcombine.low %v517_v12, %v527_v52  ;;  %v9550_v27 = vld [vmem:[%s9174_s23 + $0x68] sm:$0x7] }
  0x71   : > { %v7035_v38 = vsel %vm962_vm9, %v6997_v57, 0.0  ;;  %v536_v57 = vrot.slane %v535_v40, 4  ;;  %v544_v25 = vor.u32 %v543_v54, %v540_v13  ;;  %v7812_v5 = vrot.slane %v9461_v31, 9  ;;  %14913 = vst [vmem:[#allocation45_spill] sm:$0xff] %v9550_v27 }
  0x72   : > { %1909 = vrot.lane.b32.xlu1 %v9448_v61, %s9032_s24  ;;  %1877 = vrot.lane.b32.xlu0 %v9417_v17, %s9025_s21  ;;  %v7036_v36 = vadd.f32 %v7035_v38, %v7034_v50  ;;  %14912 = vst [vmem:[#allocation44_spill] sm:$0xff] %v9525_v1  ;;  %v553_v16 = vrot.slane %v9525_v1, 6  ;;  %v9541_v50 = vld [vmem:[%s9174_s23 + $0x64] sm:$0xf]  ;;  %v1429_v13 = vrot.slane %v1427_v9, 4  ;;  %v1430_v40 = vrot.slane %v9496_v19, 5 }
  0x73   : > { %v9545_v38 = vsel %vm9274_vm8, %v536_v57, %v544_v25  ;;  %v546_v54 = vrot.slane %v544_v25, 4  ;;  %v9553_v12 = vshrl.u32 %v9528_v8, 16  ;;  %v9556_v52 = vshll.u32 %v9528_v8, 16 }
  0x74   : > { %v554_v35 = vor.u32 %v553_v16, %v550_v21  ;;  %v6998_v22 = vunpack.c.l.bf16 %v9545_v38  ;;  %v9559_v1 = vshrl.u32 %v9541_v50, 16  ;;  %v1428_v21 = vsel %vm9176_vm2, %v7812_v5, %v1427_v9 }
  0x75   : > { %14914 = vst [vmem:[#allocation46_spill] sm:$0xff] %v9553_v12  ;;  %14915 = vst [vmem:[#allocation47_spill] sm:$0xff] %v9556_v52  ;;  %v1570_v57 = vrot.slane %v9474_v6, 6  ;;  %v7828_v26 = vrot.slane %v9461_v31, 10  ;;  %v1573_v24 = vrot.slane %v9496_v19, 6  ;;  %v559_v2 = vrot.slane %v9553_v12, 5 }
  0x76   : > { %1979 = vrot.lane.b32.xlu1 %v9513_v20, %s9027_s17  ;;  %1944 = vrot.lane.b32.xlu0 %v9429_v42, %s9028_s22  ;;  %14916 = vst [vmem:[#allocation48_spill] sm:$0xff] %v9559_v1  ;;  %v555_v25 = vsel %vm9274_vm8, %v546_v54, %v554_v35  ;;  %v7037_v16 = vsel %vm962_vm9, %v6998_v22, 0.0  ;;  %v562_v58 = vrot.slane %v9556_v52, 6  ;;  %v568_v41 = vrot.slane %v9559_v1, 5  ;;  %v9580_v6 = vld [vmem:[%s9174_s23 + $0x6c] sm:$0xf] }
  0x77   : > { %v6999_v51 = vunpack.c.l.bf16 %v555_v25  ;;  %v7038_v10 = vadd.f32 %v7037_v16, %v7036_v36  ;;  %v9577_v9 = vshll.u32 %v9541_v50, 16  ;;  %v1431_v35 = vsel %vm9176_vm2, %v1429_v13, %v1430_v40 }
  0x78   : > { %v14552_v5 = vshrl.u32 %v9550_v27, 16  ;;  %v9587_v36 = vshll.u32 %v9550_v27, 16  ;;  %v1572_v54 = vrot.slane %v1570_v57, 4  ;;  %v563_v16 = vor.u32 %v562_v58, %v559_v2 }
  0x79   : > { %14917 = vst [vmem:[#allocation49_spill] sm:$0xff] %v9577_v9  ;;  %v7039_v31 = vsel %vm962_vm9, %v6999_v51, 0.0  ;;  %v571_v13 = vrot.slane %v9577_v9, 6  ;;  %v9597_v12 = vcombine.low %v1428_v21, %v1431_v35  ;;  %v9621_v21 = vshll.u32 %v9580_v6, 16  ;;  %v9672_v9 = vld [vmem:[%s9174_s23 + $0x80] sm:$0x7] }
  0x7a   : > { %2049 = vrot.lane.b32.xlu1 %v9534_v48, %s14755_s25  ;;  %2014 = vrot.lane.b32.xlu0 %v9536_v43, %s9031_s27  ;;  %14918 = vst [vmem:[#allocation50_spill] sm:$0xff] %v9587_v36  ;;  %v7040_v22 = vadd.f32 %v7039_v31, %v7038_v10  ;;  %v578_v51 = vrot.slane %v14552_v5, 5  ;;  %v581_v40 = vrot.slane %v9587_v36, 6  ;;  %v564_v1 = vrot.slane %v563_v16, 4  ;;  %v9665_v36 = vld [vmem:[%s9174_s23 + $0x7c] sm:$0xf] }
  0x7b   : > { %v572_v52 = vor.u32 %v571_v13, %v568_v41  ;;  %14919 = vst [vmem:[#allocation51_spill] sm:$0xff] %v9597_v12  ;;  %v9605_v10 = vshrl.u32 %v9580_v6, 16  ;;  %v1574_v41 = vsel %vm9198_vm5, %v1572_v54, %v1573_v24  ;;  %14922 = vst [vmem:[#allocation54_spill] sm:$0xff] %v9621_v21  ;;  %v7813_v16 = vrot.slane %v9528_v8, 9 }
  0x7c   : > { %v582_v19 = vor.u32 %v581_v40, %v578_v51  ;;  %14926 = vst [vmem:[#allocation58_spill] sm:$0xff] %v9672_v9  ;;  %v14606_v59 = vmov 0  }
  0x7d   : > { %14920 = vst [vmem:[#allocation52_spill] sm:$0xff] %v9605_v10  ;;  %v9615_v2 = vsel %vm9274_vm8, %v564_v1, %v572_v52  ;;  %v574_v58 = vrot.slane %v572_v52, 4  ;;  %v587_v24 = vrot.slane %v9605_v10, 5  ;;  %v590_v1 = vrot.slane %v9621_v21, 6  ;;  %2493 = vmatprep.mubr.bf16.mxu1 %v14606_v59  ;;  %1050 = vmatprep.mubr.bf16.mxu0 %v14606_v59 }
  0x7e   : > { %1844 = vrot.lane.b32.xlu1 %v9429_v42, %s9026_s16  ;;  %1764 = vrot.lane.b32.xlu0 %v9448_v61, %s14785_s26  ;;  %v1571_v42 = vsel %vm9198_vm5, %v7828_v26, %v1570_v57  ;;  %v9618_v26 = vld [vmem:[%s9174_s23 + $0x74] sm:$0x7]  ;;  %v1434_v57 = vrot.slane %v9541_v50, 5  ;;  %v7000_v35 = vunpack.c.l.bf16 %v9615_v2  ;;  %v9632_v52 = vshrl.u32 %v9602_v15, 16 }
  0x7f   : > { %14921 = vst [vmem:[#allocation53_spill] sm:$0xff] %v9618_v26  ;;  %v9627_v31 = vsel %vm9274_vm8, %v574_v58, %v582_v19  ;;  %v9634_v54 = vcombine.low %v1571_v42, %v1574_v41  ;;  %v9644_v19 = vcombine.low %v9545_v38, %v555_v25  ;;  %v591_v58 = vor.u32 %v590_v1, %v587_v24  ;;  %v9648_v41 = vld [vmem:[%s9174_s23 + $0x78] sm:$0xf] }
  0x80   : > { %14923 = vst [vmem:[#allocation55_spill] sm:$0xff] %v9632_v52  ;;  %v7001_v13 = vunpack.c.l.bf16 %v9627_v31  ;;  %v7041_v51 = vsel %vm962_vm9, %v7000_v35, 0.0  ;;  %v596_v42 = vrot.slane %v9632_v52, 5  ;;  %v9652_v35 = vshll.u32 %v9602_v15, 16 }
  0x81   : > { %v7042_v40 = vadd.f32 %v7041_v51, %v7040_v22  ;;  %v14563_v21 = vshrl.u32 %v9618_v26, 16  ;;  %v9656_v10 = vshll.u32 %v9618_v26, 16  ;;  %v1436_v38 = vrot.slane %v1434_v57, 4 }
  0x82   : > { %1911 = vrot.lane.b32.xlu1 %v9536_v43, %s9032_s24  ;;  %1879 = vrot.lane.b32.xlu0 %v9513_v20, %s9025_s21  ;;  %v7043_v5 = vsel %vm962_vm9, %v7001_v13, 0.0  ;;  %14924 = vst [vmem:[#allocation56_spill] sm:$0xff] %v9652_v35  ;;  %v1437_v25 = vrot.slane %v9550_v27, 5  ;;  %v1577_v22 = vrot.slane %v9541_v50, 6  ;;  %v592_v1 = vrot.slane %v591_v58, 4 }
  0x83   : > { %14925 = vst [vmem:[#allocation57_spill] sm:$0xff] %v9656_v10  ;;  %v7044_v24 = vadd.f32 %v7043_v5, %v7042_v40  ;;  %v599_v51 = vrot.slane %v9652_v35, 6  ;;  %v606_v13 = vrot.slane %v14563_v21, 5  ;;  %v609_v52 = vrot.slane %v9656_v10, 6 }
  0x84   : > { %v7829_v50 = vrot.slane %v9528_v8, 10  ;;  %v9676_v58 = vshrl.u32 %v9648_v41, 16  ;;  %v1435_v21 = vsel %vm9176_vm2, %v7813_v16, %v1434_v57  ;;  %v1579_v10 = vrot.slane %v1577_v22, 4 }
  0x85   : > { %v600_v5 = vor.u32 %v599_v51, %v596_v42  ;;  %v610_v40 = vor.u32 %v609_v52, %v606_v13  ;;  %v1580_v35 = vrot.slane %v9550_v27, 6  ;;  %v9682_v14 = vshll.u32 %v9648_v41, 16 }
  0x86   : > { %1981 = vrot.lane.b32.xlu1 %v9597_v12, %s9027_s17  ;;  %1946 = vrot.lane.b32.xlu0 %v9534_v48, %s9028_s22  ;;  %14927 = vst [vmem:[#allocation59_spill] sm:$0xff] %v9676_v58  ;;  %v1438_v49 = vsel %vm9176_vm2, %v1436_v38, %v1437_v25  ;;  %v615_v42 = vrot.slane %v9676_v58, 5  ;;  %v9698_v51 = vshrl.u32 %v9665_v36, 16  ;;  %v1578_v38 = vsel %vm9198_vm5, %v7829_v50, %v1577_v22 }
  0x87   : > { %14928 = vst [vmem:[#allocation60_spill] sm:$0xff] %v9682_v14  ;;  %v9688_v8 = vsel %vm9274_vm8, %v592_v1, %v600_v5  ;;  %v602_v52 = vrot.slane %v600_v5, 4  ;;  %v618_v16 = vrot.slane %v9682_v14, 6  ;;  %v9707_v1 = vshll.u32 %v9665_v36, 16 }
  0x88   : > { %v7002_v57 = vunpack.c.l.bf16 %v9688_v8  ;;  %14929 = vst [vmem:[#allocation61_spill] sm:$0xff] %v9698_v51  ;;  %v9710_v13 = vcombine.low %v1435_v21, %v1438_v49  ;;  %v1581_v27 = vsel %vm9198_vm5, %v1579_v10, %v1580_v35  ;;  %v624_v50 = vrot.slane %v9698_v51, 5 }
  0x89   : > { %v9704_v25 = vsel %vm9274_vm8, %v602_v52, %v610_v40  ;;  %14930 = vst [vmem:[#allocation62_spill] sm:$0xff] %v9707_v1  ;;  %v619_v58 = vor.u32 %v618_v16, %v615_v42  ;;  %v627_v40 = vrot.slane %v9707_v1, 6  ;;  %v9729_v42 = vcombine.low %v1578_v38, %v1581_v27 }
  0x8a   : > { %2051 = vrot.lane.b32.xlu1 %v9634_v54, %s14755_s25  ;;  %2016 = vrot.lane.b32.xlu0 %v9644_v19, %s9031_s27  ;;  %14931 = vst [vmem:[#allocation63_spill] sm:$0xff] %v9710_v13  ;;  %v7003_v5 = vunpack.c.l.bf16 %v9704_v25  ;;  %v7045_v14 = vsel %vm962_vm9, %v7002_v57, 0.0  ;;  %v1441_v27 = vrot.slane %v9602_v15, 5  ;;  %v1587_v47 = vrot.slane %v9618_v26, 6 }
  0x8b   : > { %v7046_v22 = vadd.f32 %v7045_v14, %v7044_v24  ;;  %v620_v21 = vrot.slane %v619_v58, 4  ;;  %v9726_v14 = vshll.u32 %v9672_v9, 16  ;;  %v628_v35 = vor.u32 %v627_v40, %v624_v50  ;;  %v9736_v58 = vld [vmem:[%s9174_s23 + $0x84] sm:$0xf]  ;;  %v9749_v50 = vld [vmem:[%s9174_s23 + $0x88] sm:$0xf] }
  0x8c   : > { %v7047_v49 = vsel %vm962_vm9, %v7003_v5, 0.0  ;;  %v9744_v5 = vcombine.low %v9615_v2, %v9627_v31  ;;  %v9752_v40 = vld [vmem:[%s9174_s23 + $0x8c] sm:$0x7]  ;;  %v1444_v2 = vrot.slane %v9618_v26, 5  ;;  %v7830_v31 = vrot.slane %v9580_v6, 10 }
  0x8d   : > { %14932 = vst [vmem:[#allocation64_spill] sm:$0xff] %v9726_v14  ;;  %v7048_v10 = vadd.f32 %v7047_v49, %v7046_v22  ;;  %v637_v24 = vrot.slane %v9726_v14, 6  ;;  %v9733_v57 = vsel %vm9274_vm8, %v620_v21, %v628_v35  ;;  %v630_v16 = vrot.slane %v628_v35, 4  ;;  %14934 = vst [vmem:[#allocation66_spill] sm:$0xff] %v9752_v40 }
  0x8e   : > { %1846 = vrot.lane.b32.xlu1 %v9534_v48, %s9026_s16  ;;  %1766 = vrot.lane.b32.xlu0 %v9536_v43, %s14785_s26  ;;  %v14577_v48 = vshrl.u32 %v9672_v9, 16  ;;  %14933 = vst [vmem:[#allocation65_spill] sm:$0xff] %v9744_v5  ;;  %v7004_v22 = vunpack.c.l.bf16 %v9733_v57  ;;  %v7814_v49 = vrot.slane %v9580_v6, 9  ;;  %v1584_v14 = vrot.slane %v9602_v15, 6 }
  0x8f   : > { %v9776_v6 = vshrl.u32 %v9749_v50, 16  ;;  %v14605_v1 = vshrl.u32 %v9752_v40, 16 }
  0x90   : > { %v634_v52 = vrot.slane %v14577_v48, 5  ;;  %v7049_v35 = vsel %vm962_vm9, %v7004_v22, 0.0  ;;  %v1443_v48 = vrot.slane %v1441_v27, 4  ;;  %v9773_v22 = vshll.u32 %v9736_v58, 16 }
  0x91   : > { %14937 = vst [vmem:[#allocation69_spill] sm:$0xff] %v9776_v6  ;;  %v652_v46 = vrot.slane %v9776_v6, 5  ;;  %v1585_v63 = vsel %vm9198_vm5, %v7830_v31, %v1584_v14 }
  0x92   : > { %1913 = vrot.lane.b32.xlu1 %v9644_v19, %s9032_s24  ;;  %1881 = vrot.lane.b32.xlu0 %v9597_v12, %s9025_s21  ;;  %v638_v38 = vor.u32 %v637_v24, %v634_v52  ;;  %v7050_v24 = vadd.f32 %v7049_v35, %v7048_v10  ;;  %14936 = vst [vmem:[#allocation68_spill] sm:$0xff] %v9773_v22  ;;  %v9779_v10 = vshll.u32 %v9749_v50, 16 }
  0x93   : > { %v1442_v35 = vsel %vm9176_vm2, %v7814_v49, %v1441_v27  ;;  %v1445_v27 = vsel %vm9176_vm2, %v1443_v48, %v1444_v2  ;;  %v1586_v49 = vrot.slane %v1584_v14, 4 }
  0x94   : > { %v9757_v21 = vsel %vm9274_vm8, %v630_v16, %v638_v38  ;;  %v9769_v16 = vshrl.u32 %v9736_v58, 16  ;;  %14938 = vst [vmem:[#allocation70_spill] sm:$0xff] %v9779_v10  ;;  %v655_v39 = vrot.slane %v9779_v10, 6  ;;  %v9804_v26 = vcombine.low %v1442_v35, %v1445_v27  ;;  %v9837_v27 = vld [vmem:[%s9174_s23 + $0x94] sm:$0xf] }
  0x95   : > { %v7005_v52 = vunpack.c.l.bf16 %v9757_v21 }
  0x96   : > { %1983 = vrot.lane.b32.xlu1 %v9710_v13, %s9027_s17  ;;  %1948 = vrot.lane.b32.xlu0 %v9634_v54, %s9028_s22  ;;  %14935 = vst [vmem:[#allocation67_spill] sm:$0xff] %v9769_v16  ;;  %v643_v15 = vrot.slane %v9769_v16, 5  ;;  %v656_v6 = vor.u32 %v655_v39, %v652_v46  ;;  %v7890_v16 = vcombine.high %v2364_v62, %v2364_v62  ;;  %14940 = vst [vmem:[#allocation72_spill] sm:$0xff] %v9804_v26 }
  0x97   : > { %v7051_v38 = vsel %vm962_vm9, %v7005_v52, 0.0  ;;  %v646_v52 = vrot.slane %v9773_v22, 6  ;;  %v1588_v39 = vsel %vm9198_vm5, %v1586_v49, %v1587_v47  ;;  %v1448_v46 = vrot.slane %v9665_v36, 5  ;;  %v9829_v47 = vld [vmem:[%s9174_s23 + $0x90] sm:$0xf] }
  0x98   : > { %v7052_v51 = vadd.f32 %v7051_v38, %v7050_v24  ;;  %v662_v24 = vrot.slane %v14605_v1, 5  ;;  %v9801_v38 = vshll.u32 %v9752_v40, 16  ;;  %v658_v2 = vrot.slane %v656_v6, 4  ;;  %7891 = vmatprep.subr.msk.bf16.mxu1 %vm1011_vm10, %v7890_v16 }
  0x99   : > { %v647_v10 = vor.u32 %v646_v52, %v643_v15  ;;  %v9831_v15 = vcombine.low %v1585_v63, %v1588_v39  ;;  %v1451_v52 = vrot.slane %v9672_v9, 5  ;;  %v9845_v16 = vcombine.low %v9688_v8, %v9704_v25 }
  0x9a   : > { %2053 = vrot.lane.b32.xlu1 %v9729_v42, %s14755_s25  ;;  %2018 = vrot.lane.b32.xlu0 %v9744_v5, %s9031_s27  ;;  %14939 = vst [vmem:[#allocation71_spill] sm:$0xff] %v9801_v38  ;;  %v665_v22 = vrot.slane %v9801_v38, 6  ;;  %v1450_v63 = vrot.slane %v1448_v46, 4  ;;  %v1591_v49 = vrot.slane %v9665_v36, 6  ;;  %v9854_v39 = vshrl.u32 %v9829_v47, 16 }
  0x9b   : > { %v648_v48 = vrot.slane %v647_v10, 4  ;;  %14941 = vst [vmem:[#allocation73_spill] sm:$0xff] %v9845_v16  ;;  %v1594_v8 = vrot.slane %v9672_v9, 6  ;;  %v9862_v25 = vshrl.u32 %v9837_v27, 16  ;;  %v9865_v36 = vshll.u32 %v9837_v27, 16 }
  0x9c   : > { %14943 = vst [vmem:[#allocation75_spill] sm:$0xff] %v9854_v39  ;;  %v9883_v9 = vld [vmem:[%s9174_s23 + $0x9c] sm:$0xf] }
  0x9d   : > { %v9820_v31 = vsel %vm9274_vm8, %v648_v48, %v656_v6  ;;  %14945 = vst [vmem:[#allocation77_spill] sm:$0xff] %v9862_v25  ;;  %14946 = vst [vmem:[#allocation78_spill] sm:$0xff] %v9865_v36  ;;  %v680_v1 = vrot.slane %v9862_v25, 5  ;;  %v683_v59 = vrot.slane %v9865_v36, 6  ;;  %v1452_v25 = vsel %vm9176_vm2, %v1450_v63, %v1451_v52  ;;  %v9910_v63 = vld [vmem:[%s9174_s23 + $0xa0] sm:$0xf] }
  0x9e   : > { %1848 = vrot.lane.b32.xlu1 %v9634_v54, %s9026_s16  ;;  %1768 = vrot.lane.b32.xlu0 %v9644_v19, %s14785_s26  ;;  %v7889_v54 = vcombine.low %v2364_v62, %v2364_v62  ;;  %v666_v62 = vor.u32 %v665_v22, %v662_v24  ;;  %v7006_v35 = vunpack.c.l.bf16 %v9820_v31  ;;  %v7815_v22 = vrot.slane %v9648_v41, 9 }
  0xa0   : > { %v2456_v14 = vsel %vm1011_vm10, %v7889_v54, 0  ;;  %v9825_v10 = vsel %vm9274_vm8, %v658_v2, %v666_v62  ;;  %v7053_v24 = vsel %vm962_vm9, %v7006_v35, 0.0  ;;  %v9850_v54 = vld [vmem:[%s9174_s23 + $0x98] sm:$0x7]  ;;  %v9857_v62 = vshll.u32 %v9829_v47, 16 }
  0xa1   : > { %2470 = vmatpush1.bf16.msra.mxu1 %v2456_v14  ;;  %v7007_v6 = vunpack.c.l.bf16 %v9825_v10  ;;  %14942 = vst [vmem:[#allocation74_spill] sm:$0xff] %v9850_v54  ;;  %v7054_v48 = vadd.f32 %v7053_v24, %v7052_v51  ;;  %v7831_v14 = vrot.slane %v9648_v41, 10  ;;  %v671_v35 = vrot.slane %v9854_v39, 5 }
  0xa2   : > { %1915 = vrot.lane.b32.xlu1 %v9744_v5, %s9032_s24  ;;  %1883 = vrot.lane.b32.xlu0 %v9710_v13, %s9025_s21  ;;  %14944 = vst [vmem:[#allocation76_spill] sm:$0xff] %v9857_v62  ;;  %v14621_v24 = vshrl.u32 %v9850_v54, 16  ;;  %v1593_v41 = vrot.slane %v1591_v49, 4  ;;  %v9877_v38 = vshll.u32 %v9850_v54, 16  ;;  %v1449_v55 = vsel %vm9176_vm2, %v7815_v22, %v1448_v46 }
  0xa3   : > { %v7055_v2 = vsel %vm962_vm9, %v7007_v6, 0.0  ;;  %v674_v6 = vrot.slane %v9857_v62, 6  ;;  %v684_v62 = vor.u32 %v683_v59, %v680_v1  ;;  %v1592_v59 = vsel %vm9198_vm5, %v7831_v14, %v1591_v49 }
  0xa4   : > { %v7056_v51 = vadd.f32 %v7055_v2, %v7054_v48  ;;  %14947 = vst [vmem:[#allocation79_spill] sm:$0xff] %v9877_v38  ;;  %v690_v2 = vrot.slane %v14621_v24, 5  ;;  %v693_v39 = vrot.slane %v9877_v38, 6  ;;  %v1595_v1 = vsel %vm9198_vm5, %v1593_v41, %v1594_v8  ;;  %v9921_v8 = vld [vmem:[%s9174_s23 + $0xa4] sm:$0x7] }
  0xa5   : > { %v675_v48 = vor.u32 %v674_v6, %v671_v35  ;;  %v686_v35 = vrot.slane %v684_v62, 4  ;;  %v9902_v22 = vshrl.u32 %v9883_v9, 16  ;;  %v9913_v49 = vshll.u32 %v9883_v9, 16  ;;  %14951 = vst [vmem:[#allocation83_spill] sm:$0xff] %v9921_v8 }
  0xa6   : > { %1985 = vrot.lane.b32.xlu1 %v9804_v26, %s9027_s17  ;;  %1950 = vrot.lane.b32.xlu0 %v9729_v42, %s9028_s22  ;;  %v694_v6 = vor.u32 %v693_v39, %v690_v2  ;;  %v9915_v39 = vcombine.low %v1449_v55, %v1452_v25  ;;  %v9917_v14 = vcombine.low %v1592_v59, %v1595_v1  ;;  %v9933_v59 = vshrl.u32 %v9910_v63, 16 }
  0xa7   : > { %v676_v36 = vrot.slane %v675_v48, 4  ;;  %14948 = vst [vmem:[#allocation80_spill] sm:$0xff] %v9902_v22  ;;  %14949 = vst [vmem:[#allocation81_spill] sm:$0xff] %v9913_v49  ;;  %v699_v55 = vrot.slane %v9902_v22, 5  ;;  %v702_v25 = vrot.slane %v9913_v49, 6  ;;  %v9936_v1 = vshll.u32 %v9910_v63, 16 }
  0xa8   : > { %14950 = vst [vmem:[#allocation82_spill] sm:$0xff] %v9915_v39  ;;  %14952 = vst [vmem:[#allocation84_spill] sm:$0xff] %v9933_v59  ;;  %v9941_v38 = vshll.u32 %v9921_v8, 16  ;;  %v1598_v49 = vrot.slane %v9749_v50, 6  ;;  %v9947_v22 = vld [vmem:[%s9174_s23 + $0xa8] sm:$0xf] }
  0xa9   : > { %v9899_v46 = vsel %vm9274_vm8, %v676_v36, %v684_v62  ;;  %v1455_v36 = vrot.slane %v9749_v50, 5  ;;  %14953 = vst [vmem:[#allocation85_spill] sm:$0xff] %v9936_v1  ;;  %v703_v24 = vor.u32 %v702_v25, %v699_v55  ;;  %v9955_v55 = vcombine.low %v9733_v57, %v9757_v21  ;;  %v9966_v57 = vld [vmem:[%s9174_s23 + $0xac] sm:$0xf] }
  0xaa   : > { %2055 = vrot.lane.b32.xlu1 %v9831_v15, %s14755_s25  ;;  %2020 = vrot.lane.b32.xlu0 %v9845_v16, %s9031_s27  ;;  %v7008_v52 = vunpack.c.l.bf16 %v9899_v46  ;;  %14954 = vst [vmem:[#allocation86_spill] sm:$0xff] %v9941_v38  ;;  %v9969_v21 = vshrl.u32 %v9947_v22, 16  ;;  %v9998_v3 = vshrl.u32 %v9966_v57, 16 }
  0xab   : > { %v704_v50 = vrot.slane %v703_v24, 4  ;;  %v1457_v56 = vrot.slane %v1455_v36, 4  ;;  %v8859_v24 = vld [vmem:[%s9174_s23 + $0x18] sm:$0xf] }
  0xac   : > { %v7057_v41 = vsel %vm962_vm9, %v7008_v52, 0.0  ;;  %v14641_v52 = vshrl.u32 %v9921_v8, 16  ;;  %14955 = vst [vmem:[#allocation87_spill] sm:$0xff] %v9969_v21  ;;  %14957 = vst [vmem:[#allocation89_spill] sm:$0xff] %v9998_v3  ;;  %v736_v30 = vrot.slane %v9998_v3, 5 }
  0xad   : > { %v7058_v48 = vadd.f32 %v7057_v41, %v7056_v51  ;;  %v711_v41 = vrot.slane %v9936_v1, 6  ;;  %v8858_v1 = vld [vmem:[%s9174_s23 + $0x20] sm:$0x7] }
  0xae   : > { %1850 = vrot.lane.b32.xlu1 %v9729_v42, %s9026_s16  ;;  %1770 = vrot.lane.b32.xlu0 %v9744_v5, %s14785_s26  ;;  %v9906_v42 = vsel %vm9274_vm8, %v686_v35, %v694_v6  ;;  %v8857_v35 = vld [vmem:[%s9174_s23 + $0x1c] sm:$0xf]  ;;  %v718_v25 = vrot.slane %v14641_v52, 5  ;;  %v7807_v52 = vrot.slane %v8859_v24, 9  ;;  %v9993_v24 = vld [vmem:[%s9174_s23 + $0xb0] sm:$0x7] }
  0xaf   : > { %v7009_v62 = vunpack.c.l.bf16 %v9906_v42  ;;  %v1392_v6 = vrot.slane %v8857_v35, 5  ;;  %v1458_v35 = vrot.slane %v9752_v40, 5  ;;  %v10105_v5 = vld [vmem:[%s9174_s23 + $0xc0] sm:$0xf] }
  0xb1   : > { %v7059_v2 = vsel %vm962_vm9, %v7009_v62, 0.0  ;;  %v708_v62 = vrot.slane %v9933_v59, 5  ;;  %v1395_v59 = vrot.slane %v8858_v1, 5  ;;  %v1394_v33 = vrot.slane %v1392_v6, 4 }
  0xb2   : > { %1917 = vrot.lane.b32.xlu1 %v9845_v16, %s9032_s24  ;;  %1885 = vrot.lane.b32.xlu0 %v9804_v26, %s9025_s21  ;;  %v7060_v51 = vadd.f32 %v7059_v2, %v7058_v48  ;;  %v721_v48 = vrot.slane %v9941_v38, 6  ;;  %v7816_v2 = vrot.slane %v9736_v58, 9  ;;  %v9977_v1 = vshll.u32 %v9947_v22, 16 }
  0xb3   : > { %v712_v7 = vor.u32 %v711_v41, %v708_v62  ;;  %v7832_v41 = vrot.slane %v9736_v58, 10  ;;  %v727_v26 = vrot.slane %v9969_v21, 5 }
  0xb4   : > { %v722_v32 = vor.u32 %v721_v48, %v718_v25  ;;  %14956 = vst [vmem:[#allocation88_spill] sm:$0xff] %v9977_v1  ;;  %v1600_v25 = vrot.slane %v1598_v49, 4  ;;  %v1601_v48 = vrot.slane %v9752_v40, 6  ;;  %v730_v45 = vrot.slane %v9977_v1, 6 }
  0xb5   : > { %v9974_v38 = vsel %vm9274_vm8, %v704_v50, %v712_v7  ;;  %v714_v29 = vrot.slane %v712_v7, 4  ;;  %v1456_v58 = vsel %vm9176_vm2, %v7816_v2, %v1455_v36  ;;  %v1459_v40 = vsel %vm9176_vm2, %v1457_v56, %v1458_v35 }
  0xb6   : > { %1987 = vrot.lane.b32.xlu1 %v9915_v39, %s9027_s17  ;;  %1952 = vrot.lane.b32.xlu0 %v9831_v15, %s9028_s22  ;;  %v7010_v50 = vunpack.c.l.bf16 %v9974_v38  ;;  %v731_v1 = vor.u32 %v730_v45, %v727_v26  ;;  %v10019_v2 = vshll.u32 %v9966_v57, 16  ;;  %v1393_v45 = vsel %vm9176_vm2, %v7807_v52, %v1392_v6 }
  0xb7   : > { %v9963_v60 = vpop.permute.xlu1 %1873  ;;  %v9990_v7 = vsel %vm9274_vm8, %v714_v29, %v722_v32  ;;  %v10008_v32 = vsel %vm9176_vm2, %v1394_v33, %v1395_v59  ;;  %v14661_v33 = vshrl.u32 %v9993_v24, 16  ;;  %v10023_v59 = vshll.u32 %v9993_v24, 16 }
  0xb8   : > { %v7011_v37 = vunpack.c.l.bf16 %v9990_v7  ;;  %v7061_v29 = vsel %vm962_vm9, %v7010_v50, 0.0  ;;  %14958 = vst [vmem:[#allocation90_spill] sm:$0xff] %v10019_v2  ;;  %v1599_v26 = vsel %vm9198_vm5, %v7832_v41, %v1598_v49  ;;  %v732_v50 = vrot.slane %v731_v1, 4  ;;  %v10048_v41 = vld [vmem:[%s9174_s23 + $0xb8] sm:$0xf] }
  0xb9   : > { %v7062_v21 = vadd.f32 %v7061_v29, %v7060_v51  ;;  %14959 = vst [vmem:[#allocation91_spill] sm:$0xff] %v10023_v59  ;;  %v739_v29 = vrot.slane %v10019_v2, 6  ;;  %v746_v3 = vrot.slane %v14661_v33, 5  ;;  %v749_v6 = vrot.slane %v10023_v59, 6 }
  0xba   : > { %2057 = vrot.lane.b32.xlu1 %v9917_v14, %s14755_s25  ;;  %2022 = vrot.lane.b32.xlu0 %v9955_v55, %s9031_s27  ;;  %v9983_v62 = vpop.permute.xlu0 %1838  ;;  %v7063_v36 = vsel %vm962_vm9, %v7011_v37, 0.0  ;;  %v10032_v37 = vld [vmem:[%s9174_s23 + $0xb4] sm:$0xf]  ;;  %v10040_v52 = vcombine.low %v1456_v58, %v1459_v40  ;;  %v7843_v49 = vcombine.low %v1393_v45, %v10008_v32  ;;  %v7817_v40 = vrot.slane %v9829_v47, 9 }
  0xbb   : > { %v7064_v51 = vadd.f32 %v7063_v36, %v7062_v21  ;;  %v740_v21 = vor.u32 %v739_v29, %v736_v30  ;;  %v750_v1 = vor.u32 %v749_v6, %v746_v3  ;;  %v1462_v58 = vrot.slane %v9837_v27, 5  ;;  %v10058_v36 = vld [vmem:[%s9174_s23 + $0xbc] sm:$0x7] }
  0xbc   : > { %v10015_v56 = vpop.permute.xlu1 %1975  ;;  %14961 = vst [vmem:[#allocation93_spill] sm:$0xff] %v10058_v36  ;;  %v10061_v33 = vshll.u32 %v10032_v37, 16  ;;  %v1465_v3 = vrot.slane %v9850_v54, 5  ;;  %v10075_v6 = vshrl.u32 %v10048_v41, 16 }
  0xbd   : > { %v10068_v30 = vsel %vm9274_vm8, %v732_v50, %v740_v21  ;;  %v742_v32 = vrot.slane %v740_v21, 4  ;;  %v10085_v21 = vcombine.low %v9820_v31, %v9825_v10  ;;  %v1464_v2 = vrot.slane %v1462_v58, 4 }
  0xbe   : > { %1852 = vrot.lane.b32.xlu1 %v9831_v15, %s9026_s16  ;;  %1772 = vrot.lane.b32.xlu0 %v9845_v16, %s14785_s26  ;;  %v1602_v15 = vsel %vm9198_vm5, %v1600_v25, %v1601_v48  ;;  %v10034_v35 = vpop.permute.xlu0 %1940  ;;  %v10051_v25 = vshrl.u32 %v10032_v37, 16  ;;  %14962 = vst [vmem:[#allocation94_spill] sm:$0xff] %v10061_v33  ;;  %v758_v29 = vrot.slane %v10061_v33, 6  ;;  %14963 = vst [vmem:[#allocation95_spill] sm:$0xff] %v10075_v6  ;;  %v10092_v33 = vshll.u32 %v10048_v41, 16 }
  0xbf   : > { %v10053_v48 = vcombine.low %v1599_v26, %v1602_v15  ;;  %v1605_v26 = vrot.slane %v9837_v27, 6  ;;  %v7012_v15 = vunpack.c.l.bf16 %v10068_v30  ;;  %v10089_v27 = vsel %vm9274_vm8, %v742_v32, %v750_v1 }
  0xc0   : > { %14960 = vst [vmem:[#allocation92_spill] sm:$0xff] %v10051_v25  ;;  %v10063_v59 = vpop.permute.xlu1 %2045  ;;  %v755_v45 = vrot.slane %v10051_v25, 5  ;;  %14965 = vst [vmem:[#allocation97_spill] sm:$0xff] %v10092_v33  ;;  %v7013_v23 = vunpack.c.l.bf16 %v10089_v27  ;;  %v1608_v31 = vrot.slane %v9850_v54, 6  ;;  %v764_v16 = vrot.slane %v10075_v6, 5 }
  0xc1   : > { %v7065_v18 = vsel %vm962_vm9, %v7012_v15, 0.0  ;;  %v1607_v32 = vrot.slane %v1605_v26, 4  ;;  %v767_v25 = vrot.slane %v10092_v33, 6  ;;  %v1466_v33 = vsel %vm9176_vm2, %v1464_v2, %v1465_v3  ;;  %v10223_v54 = vld [vmem:[%s9174_s23 + $0xd0] sm:$0xf] }
  0xc2   : > { %1919 = vrot.lane.b32.xlu1 %v9955_v55, %s9032_s24  ;;  %1887 = vrot.lane.b32.xlu0 %v9915_v39, %s9025_s21  ;;  %v7833_v39 = vrot.slane %v9829_v47, 10  ;;  %v7066_v10 = vadd.f32 %v7065_v18, %v7064_v51  ;;  %v759_v13 = vor.u32 %v758_v29, %v755_v45  ;;  %v7067_v12 = vsel %vm962_vm9, %v7013_v23, 0.0 }
  0xc3   : > { %v10114_v23 = vshll.u32 %v10058_v36, 16  ;;  %v1463_v29 = vsel %vm9176_vm2, %v7817_v40, %v1462_v58 }
  0xc4   : > { %v1841_v18 = vpop.permute.xlu1 %1840  ;;  %v7068_v51 = vadd.f32 %v7067_v12, %v7066_v10  ;;  %v760_v45 = vrot.slane %v759_v13, 4  ;;  %v10122_v12 = vld [vmem:[%s9174_s23 + $0xc4] sm:$0xf]  ;;  %v10125_v13 = vshrl.u32 %v10105_v5, 16  ;;  %v1606_v2 = vsel %vm9198_vm5, %v7833_v39, %v1605_v26 }
  0xc5   : > { %14967 = vst [vmem:[#allocation98_spill] sm:$0xff] %v10114_v23  ;;  %v777_v6 = vrot.slane %v10114_v23, 6  ;;  %v10142_v3 = vcombine.low %v1463_v29, %v1466_v33  ;;  %v1469_v29 = vrot.slane %v9910_v63, 5 }
  0xc6   : > { %1989 = vrot.lane.b32.xlu1 %v10040_v52, %s9027_s17  ;;  %1954 = vrot.lane.b32.xlu0 %v9917_v14, %s9028_s22  ;;  %v10081_v50 = vpop.permute.xlu0 %1758 }
  0xc7   : > { %14964 = vst [vmem:[#allocation96_spill] sm:$0xff] %v10081_v50  ;;  %v2079_v1 = vsel %vm962_vm9, %v7843_v49, %v10081_v50  ;;  %v14966_v49 = vshrl.u32 %v10058_v36, 16  ;;  %v768_v50 = vor.u32 %v767_v25, %v764_v16  ;;  %v1609_v25 = vsel %vm9198_vm5, %v1607_v32, %v1608_v31 }
  0xc8   : > { %v2127_v10 = vsel %vm2125_vm11, %v2079_v1, %v9983_v62  ;;  %v783_v31 = vrot.slane %v10125_v13, 5 }
  0xc9   : > { %v774_v15 = vrot.slane %v14966_v49, 5  ;;  %v10131_v40 = vsel %vm9274_vm8, %v760_v45, %v768_v50  ;;  %v770_v16 = vrot.slane %v768_v50, 4  ;;  %v10145_v50 = vshll.u32 %v10105_v5, 16 }
  0xca   : > { %2059 = vrot.lane.b32.xlu1 %v10053_v48, %s14755_s25  ;;  %2024 = vrot.lane.b32.xlu0 %v10085_v21, %s9031_s27  ;;  %v2011_v47 = vpop.permute.xlu0 %2010  ;;  %v7014_v62 = vunpack.c.l.bf16 %v10131_v40  ;;  %v2160_v39 = vsel %vm2158_vm12, %v2127_v10, %v9963_v60  ;;  %v10167_v49 = vcombine.low %v1606_v2, %v1609_v25 }
  0xcb   : > { %v778_v58 = vor.u32 %v777_v6, %v774_v15  ;;  %14968 = vst [vmem:[#allocation99_spill] sm:$0xff] %v10145_v50 }
  0xcc   : > { %v7069_v33 = vsel %vm962_vm9, %v7014_v62, 0.0 }
  0xcd   : > { %v10158_v6 = vsel %vm9274_vm8, %v770_v16, %v778_v58  ;;  %v7070_v10 = vadd.f32 %v7069_v33, %v7068_v51  ;;  %v10178_v16 = vld [vmem:[%s9174_s23 + $0xc8] sm:$0x7]  ;;  %v10190_v33 = vshll.u32 %v10122_v12, 16 }
  0xce   : > { %1854 = vrot.lane.b32.xlu1 %v9917_v14, %s9026_s16  ;;  %1774 = vrot.lane.b32.xlu0 %v9955_v55, %s14785_s26  ;;  %v10148_v14 = vshrl.u32 %v10122_v12, 16  ;;  %v7015_v60 = vunpack.c.l.bf16 %v10158_v6  ;;  %14972 = vst [vmem:[#allocation103_spill] sm:$0xff] %v10178_v16 }
  0xcf   : > { %14974 = vst [vmem:[#allocation105_spill] sm:$0xff] %v10190_v33 }
  0xd0   : > { %14969 = vst [vmem:[#allocation100_spill] sm:$0xff] %v10148_v14  ;;  %v10150_v1 = vpop.permute.xlu1 %1905  ;;  %v10154_v26 = vpop.permute.xlu0 %1760  ;;  %v792_v58 = vrot.slane %v10148_v14, 5 }
  0xd1   : > { %14970 = vst [vmem:[#allocation101_spill] sm:$0xff] %v10150_v1  ;;  %14971 = vst [vmem:[#allocation102_spill] sm:$0xff] %v10154_v26  ;;  %v2193_v32 = vsel %vm2191_vm13, %v2160_v39, %v10150_v1  ;;  %v2082_v45 = vsel %vm962_vm9, %v9217_v28, %v10154_v26  ;;  %v786_v28 = vrot.slane %v10145_v50, 6 }
  0xd2   : > { %v2226_v15 = vsel %vm2224_vm14, %v2193_v32, %v10034_v35  ;;  %1921 = vrot.lane.b32.xlu1 %v10085_v21, %s9032_s24  ;;  %1889 = vrot.lane.b32.xlu0 %v10040_v52, %s9025_s21  ;;  %v2129_v2 = vsel %vm2125_vm11, %v2082_v45, %v1841_v18  ;;  %v7071_v35 = vsel %vm962_vm9, %v7015_v60, 0.0  ;;  %v10197_v45 = vshll.u32 %v10178_v16, 16 }
  0xd3   : > { %v2259_v25 = vsel %vm2257_vm15, %v2226_v15, %v10015_v56  ;;  %v7072_v1 = vadd.f32 %v7071_v35, %v7070_v10  ;;  %v787_v51 = vor.u32 %v786_v28, %v783_v31  ;;  %v14692_v56 = vshrl.u32 %v10178_v16, 16 }
  0xd4   : > { %v10186_v62 = vpop.permute.xlu1 %1907  ;;  %v1876_v39 = vpop.permute.xlu0 %1875  ;;  %v2292_v32 = vsel %vm2290_vm0, %v2259_v25, %v2011_v47  ;;  %14975 = vst [vmem:[#allocation106_spill] sm:$0xff] %v10197_v45  ;;  %v10205_v47 = vcombine.low %v9899_v46, %v9906_v42  ;;  %v7818_v31 = vrot.slane %v9883_v9, 9  ;;  %v1471_v15 = vrot.slane %v1469_v29, 4 }
  0xd5   : > { %14973 = vst [vmem:[#allocation104_spill] sm:$0xff] %v10186_v62  ;;  %v2162_v26 = vsel %vm2158_vm12, %v2129_v2, %v1876_v39  ;;  %v2325_v18 = vsel %vm2323_vm1, %v2292_v32, %v10063_v59  ;;  %v788_v60 = vrot.slane %v787_v51, 4  ;;  %v795_v59 = vrot.slane %v10190_v33, 6  ;;  %v10218_v32 = vld [vmem:[%s9174_s23 + $0xcc] sm:$0xf] }
  0xd6   : > { %1991 = vrot.lane.b32.xlu1 %v10142_v3, %s9027_s17  ;;  %1956 = vrot.lane.b32.xlu0 %v10053_v48, %s9028_s22  ;;  %v1472_v10 = vrot.slane %v9921_v8, 5  ;;  %v802_v28 = vrot.slane %v14692_v56, 5  ;;  %v805_v2 = vrot.slane %v10197_v45, 6  ;;  %v2195_v46 = vsel %vm2191_vm13, %v2162_v26, %v10186_v62 }
  0xd7   : > { %7892 = vmatmul.mubr.msk.bf16.vlgmr.msra.gmra.mrb[0].mxu1 %vm2422_vm3, %v2325_v18  ;;  %v14976_v35 = vmov 0   ;;  %v796_v39 = vor.u32 %v795_v59, %v792_v58  ;;  %v7834_v18 = vrot.slane %v9883_v9, 10  ;;  %v1612_v26 = vrot.slane %v9910_v63, 6 }
  0xd8   : > { %v1978_v25 = vpop.permute.xlu1 %1977  ;;  %v1943_v42 = vpop.permute.xlu0 %1942  ;;  %2503 = vmatprep.mubr.bf16.mxu1 %v14976_v35  ;;  %v806_v23 = vor.u32 %v805_v2, %v802_v28  ;;  %v1615_v56 = vrot.slane %v9921_v8, 6  ;;  %v1470_v9 = vsel %vm9176_vm2, %v7818_v31, %v1469_v29  ;;  %v1473_v28 = vsel %vm9176_vm2, %v1471_v15, %v1472_v10 }
  0xd9   : > { %v2228_v51 = vsel %vm2224_vm14, %v2195_v46, %v1943_v42  ;;  %v10233_v58 = vsel %vm9274_vm8, %v788_v60, %v796_v39  ;;  %v798_v59 = vrot.slane %v796_v39, 4  ;;  %v10241_v46 = vshrl.u32 %v10218_v32, 16 }
  0xda   : > { %2061 = vrot.lane.b32.xlu1 %v10167_v49, %s14755_s25  ;;  %2026 = vrot.lane.b32.xlu0 %v10205_v47, %s9031_s27  ;;  %v7016_v2 = vunpack.c.l.bf16 %v10233_v58  ;;  %v2261_v63 = vsel %vm2257_vm15, %v2228_v51, %v1978_v25  ;;  %v10251_v39 = vshll.u32 %v10218_v32, 16  ;;  %v10254_v29 = vshrl.u32 %v10223_v54, 16  ;;  %v10263_v51 = vld [vmem:[%s9174_s23 + $0xd4] sm:$0x7] }
  0xdb   : > { %14977 = vst [vmem:[#allocation107_spill] sm:$0xff] %v10241_v46  ;;  %v10248_v60 = vsel %vm9274_vm8, %v798_v59, %v806_v23  ;;  %v1613_v15 = vsel %vm9198_vm5, %v7834_v18, %v1612_v26  ;;  %14981 = vst [vmem:[#allocation111_spill] sm:$0xff] %v10263_v51  ;;  %v1614_v59 = vrot.slane %v1612_v26, 4  ;;  %v896_v18 = vld [vmem:[%s14502_s1] sm:$0xff]  ;;  %v10284_v26 = vshll.u32 %v10223_v54, 16 }
  0xdc   : > { %v2048_v42 = vpop.permute.xlu1 %2047  ;;  %v10244_v62 = vpop.permute.xlu0 %2012  ;;  %14979 = vst [vmem:[#allocation109_spill] sm:$0xff] %v10251_v39  ;;  %14980 = vst [vmem:[#allocation110_spill] sm:$0xff] %v10254_v29  ;;  %v7017_v10 = vunpack.c.l.bf16 %v10248_v60  ;;  %v7073_v25 = vsel %vm962_vm9, %v7016_v2, 0.0  ;;  %v10275_v2 = vcombine.low %v1470_v9, %v1473_v28  ;;  %v820_v8 = vrot.slane %v10254_v29, 5 }
  0xdd   : > { %14978 = vst [vmem:[#allocation108_spill] sm:$0xff] %v10244_v62  ;;  %v2294_v31 = vsel %vm2290_vm0, %v2261_v63, %v10244_v62  ;;  %v7074_v45 = vadd.f32 %v7073_v25, %v7072_v1  ;;  %v811_v63 = vrot.slane %v10241_v46, 5  ;;  %14983 = vst [vmem:[#allocation113_spill] sm:$0xff] %v10284_v26  ;;  %v10288_v9 = vshll.u32 %v10263_v51, 16 }
  0xde   : > { %1856 = vrot.lane.b32.xlu1 %v10053_v48, %s9026_s16  ;;  %1776 = vrot.lane.b32.xlu0 %v10085_v21, %s14785_s26  ;;  %v2327_v23 = vsel %vm2323_vm1, %v2294_v31, %v2048_v42  ;;  %v7075_v62 = vsel %vm962_vm9, %v7017_v10, 0.0  ;;  %v814_v48 = vrot.slane %v10251_v39, 6  ;;  %v14711_v31 = vshrl.u32 %v10263_v51, 16 }
  0xdf   : > { %7893 = vmatmul.mubr.msk.bf16.gmra.mrb[4].mxu1 %vm2422_vm3, %v2327_v23  ;;  %v7076_v1 = vadd.f32 %v7075_v62, %v7074_v45  ;;  %14984 = vst [vmem:[#allocation114_spill] sm:$0xff] %v10288_v9  ;;  %v7789_v25 = vcombine.high %v896_v18, %v896_v18  ;;  %v7788_v23 = vcombine.low %v896_v18, %v896_v18  ;;  %v823_v45 = vrot.slane %v10284_v26, 6 }
  0xe0   : > { %v1843_v14 = vpop.permute.xlu1 %1842  ;;  %v10280_v42 = vpop.permute.xlu0 %1762  ;;  %2513 = vmatprep.mubr.bf16.mxu1 %v14976_v35  ;;  %v815_v10 = vor.u32 %v814_v48, %v811_v63  ;;  %v1616_v62 = vsel %vm9198_vm5, %v1614_v59, %v1615_v56  ;;  %v830_v29 = vrot.slane %v14711_v31, 5  ;;  %v7819_v31 = vrot.slane %v9947_v22, 9 }
  0xe1   : > { %14982 = vst [vmem:[#allocation112_spill] sm:$0xff] %v10280_v42  ;;  %v2085_v28 = vsel %vm962_vm9, %v9237_v44, %v10280_v42  ;;  %v833_v44 = vrot.slane %v10288_v9, 6  ;;  %7790 = vmatprep.subr.msk.bf16.mxu0 %vm1011_vm10, %v7789_v25  ;;  %v1013_v18 = vsel %vm1011_vm10, %v7788_v23, 0  ;;  %v824_v46 = vor.u32 %v823_v45, %v820_v8  ;;  %v10339_v23 = vld [vmem:[%s9174_s23 + $0xdc] sm:$0xf] }
  0xe2   : > { %1923 = vrot.lane.b32.xlu1 %v10205_v47, %s9032_s24  ;;  %1891 = vrot.lane.b32.xlu0 %v10142_v3, %s9025_s21  ;;  %v816_v63 = vrot.slane %v815_v10, 4  ;;  %v2131_v42 = vsel %vm2125_vm11, %v2085_v28, %v1843_v14  ;;  %v10309_v26 = vcombine.low %v1613_v15, %v1616_v62  ;;  %v10313_v10 = vld [vmem:[%s9174_s23 + $0xd8] sm:$0xf]  ;;  %v10321_v8 = vcombine.low %v9974_v38, %v9990_v7 }
  0xe3   : > { %v834_v56 = vor.u32 %v833_v44, %v830_v29  ;;  %1019 = vmatpush1.bf16.msra.mxu0 %v1013_v18  ;;  %v1476_v14 = vrot.slane %v9966_v57, 5  ;;  %v826_v29 = vrot.slane %v824_v46, 4  ;;  %v1479_v15 = vrot.slane %v9993_v24, 5  ;;  %v10354_v18 = vld [vmem:[%s9174_s23 + $0xe0] sm:$0x7] }
  0xe4   : > { %v10305_v48 = vpop.permute.xlu1 %1909  ;;  %v1878_v39 = vpop.permute.xlu0 %1877  ;;  %v10345_v62 = vshll.u32 %v10313_v10, 16  ;;  %14988 = vst [vmem:[#allocation118_spill] sm:$0xff] %v10354_v18 }
  0xe5   : > { %14985 = vst [vmem:[#allocation115_spill] sm:$0xff] %v10305_v48  ;;  %v2164_v59 = vsel %vm2158_vm12, %v2131_v42, %v1878_v39  ;;  %v10326_v39 = vsel %vm9274_vm8, %v816_v63, %v824_v46  ;;  %v10336_v25 = vsel %vm9274_vm8, %v826_v29, %v834_v56  ;;  %v10342_v46 = vshrl.u32 %v10313_v10, 16 }
  0xe6   : > { %1993 = vrot.lane.b32.xlu1 %v10275_v2, %s9027_s17  ;;  %1958 = vrot.lane.b32.xlu0 %v10167_v49, %s9028_s22  ;;  %v7018_v42 = vunpack.c.l.bf16 %v10326_v39  ;;  %v2197_v38 = vsel %vm2191_vm13, %v2164_v59, %v10305_v48  ;;  %14987 = vst [vmem:[#allocation117_spill] sm:$0xff] %v10345_v62  ;;  %v1477_v45 = vsel %vm9176_vm2, %v7819_v31, %v1476_v14  ;;  %v7019_v44 = vunpack.c.l.bf16 %v10336_v25 }
  0xe7   : > { %7791 = vmatmul.mubr.msk.bf16.vlgmr.msra.gmra.mrb[0].mxu0 %vm962_vm9, %v9378_v34  ;;  %14986 = vst [vmem:[#allocation116_spill] sm:$0xff] %v10342_v46  ;;  %v1478_v56 = vrot.slane %v1476_v14, 4  ;;  %v1619_v59 = vrot.slane %v9966_v57, 6  ;;  %v10366_v48 = vshrl.u32 %v10339_v23, 16  ;;  %v10371_v14 = vshll.u32 %v10339_v23, 16 }
  0xe8   : > { %v1980_v28 = vpop.permute.xlu1 %1979  ;;  %v1945_v7 = vpop.permute.xlu0 %1944  ;;  %1060 = vmatprep.mubr.bf16.mxu0 %v14976_v35  ;;  %v7077_v63 = vsel %vm962_vm9, %v7018_v42, 0.0  ;;  %v842_v42 = vrot.slane %v10345_v62, 6  ;;  %v14722_v57 = vshrl.u32 %v10354_v18, 16 }
  0xe9   : > { %v2230_v34 = vsel %vm2224_vm14, %v2197_v38, %v1945_v7  ;;  %v7078_v29 = vadd.f32 %v7077_v63, %v7076_v1  ;;  %v839_v38 = vrot.slane %v10342_v46, 5  ;;  %v7079_v7 = vsel %vm962_vm9, %v7019_v44, 0.0  ;;  %14989 = vst [vmem:[#allocation119_spill] sm:$0xff] %v10366_v48  ;;  %14991 = vst [vmem:[#allocation121_spill] sm:$0xff] %v10371_v14 }
  0xea   : > { %2063 = vrot.lane.b32.xlu1 %v10309_v26, %s14755_s25  ;;  %2028 = vrot.lane.b32.xlu0 %v10321_v8, %s9031_s27  ;;  %v2263_v31 = vsel %vm2257_vm15, %v2230_v34, %v1980_v28  ;;  %v10375_v1 = vshll.u32 %v10354_v18, 16  ;;  %v7835_v34 = vrot.slane %v9947_v22, 10  ;;  %v848_v63 = vrot.slane %v10366_v48, 5 }
  0xeb   : > { %v7080_v50 = vadd.f32 %v7079_v7, %v7078_v29  ;;  %v843_v44 = vor.u32 %v842_v42, %v839_v38  ;;  %v851_v7 = vrot.slane %v10371_v14, 6  ;;  %v858_v62 = vrot.slane %v14722_v57, 5 }
  0xec   : > { %v2050_v9 = vpop.permute.xlu1 %2049  ;;  %v10368_v33 = vpop.permute.xlu0 %2014  ;;  %14992 = vst [vmem:[#allocation122_spill] sm:$0xff] %v10375_v1  ;;  %v1480_v22 = vsel %vm9176_vm2, %v1478_v56, %v1479_v15  ;;  %v1621_v38 = vrot.slane %v1619_v59, 4 }
  0xed   : > { %14990 = vst [vmem:[#allocation120_spill] sm:$0xff] %v10368_v33  ;;  %v2296_v28 = vsel %vm2290_vm0, %v2263_v31, %v10368_v33  ;;  %v861_v31 = vrot.slane %v10375_v1, 6  ;;  %v844_v42 = vrot.slane %v843_v44, 4  ;;  %v852_v57 = vor.u32 %v851_v7, %v848_v63  ;;  %v8567_v63 = vld [vmem:[#allocation2 + $0x104] ss:$8 sps:$4 sm:$0xff]  }
  0xee   : > { %1858 = vrot.lane.b32.xlu1 %v10167_v49, %s9026_s16  ;;  %1778 = vrot.lane.b32.xlu0 %v10205_v47, %s14785_s26  ;;  %v2329_v29 = vsel %vm2323_vm1, %v2296_v28, %v2050_v9  ;;  %v1622_v49 = vrot.slane %v9993_v24, 6  ;;  %v350_v1 = vld [vmem:[%s9174_s23 + $0xc] sm:$0xf] }
  0xef   : > { %7894 = vmatmul.mubr.msk.bf16.gmra.mrb[8].mxu1 %vm2422_vm3, %v2329_v29  ;;  %7792 = vmatmul.mubr.msk.bf16.gmra.mrb[4].mxu0 %vm962_vm9, %v9340_v53  ;;  %v862_v33 = vor.u32 %v861_v31, %v858_v62  ;;  %v10407_v53 = vcombine.low %v1477_v45, %v1480_v22  ;;  %v10411_v56 = vsel %vm9274_vm8, %v844_v42, %v852_v57  ;;  %v854_v44 = vrot.slane %v852_v57, 4  ;;  %v8565_v62 = vld [vmem:[#allocation2 + $0x100] ss:$8 sps:$4 sm:$0xff]  }
  0xf0   : > { %v1845_v9 = vpop.permute.xlu1 %1844  ;;  %v10396_v28 = vpop.permute.xlu0 %1764  ;;  %2523 = vmatprep.mubr.bf16.mxu1 %v14976_v35  ;;  %1070 = vmatprep.mubr.bf16.mxu0 %v14976_v35  ;;  %v1620_v29 = vsel %vm9198_vm5, %v7835_v34, %v1619_v59  ;;  %v7020_v7 = vunpack.c.l.bf16 %v10411_v56 }
  0xf1   : > { %14993 = vst [vmem:[#allocation123_spill] sm:$0xff] %v10396_v28  ;;  %v2088_v15 = vsel %vm962_vm9, %v9417_v17, %v10396_v28  ;;  %v1623_v17 = vsel %vm9198_vm5, %v1621_v38, %v1622_v49  ;;  %v10423_v42 = vsel %vm9274_vm8, %v854_v44, %v862_v33  ;;  %2943 = vmatprep.subr.bf16.mxu0 %v8567_v63  ;;  %v1483_v49 = vrot.slane %v10048_v41, 5 }
  0xf2   : > { %1925 = vrot.lane.b32.xlu1 %v10321_v8, %s9032_s24  ;;  %1893 = vrot.lane.b32.xlu0 %v10275_v2, %s9025_s21  ;;  %v2133_v45 = vsel %vm2125_vm11, %v2088_v15, %v1845_v9  ;;  %v7021_v28 = vunpack.c.l.bf16 %v10423_v42  ;;  %v7081_v59 = vsel %vm962_vm9, %v7020_v7, 0.0  ;;  %v10432_v34 = vcombine.low %v1620_v29, %v1623_v17  ;;  %v8568_v29 = vld [vmem:[#allocation2 + $0x110] ss:$8 sps:$4 sm:$0xff]  }
  0xf3   : > { %2944 = vmatpush1.bf16.msra.mxu0 %v8565_v62  ;;  %v10436_v33 = vcombine.low %v10068_v30, %v10089_v27  ;;  %v7082_v38 = vadd.f32 %v7081_v59, %v7080_v50  ;;  %v8570_v30 = vld [vmem:[#allocation2 + $0x114] ss:$8 sps:$4 sm:$0xff]   ;;  %v1485_v50 = vrot.slane %v1483_v49, 4  ;;  %v1626_v17 = vrot.slane %v10048_v41, 6  ;;  %v8573_v59 = vld [vmem:[#allocation2 + $0x124] ss:$8 sps:$4 sm:$0xff]  }
  0xf4   : > { %v10418_v31 = vpop.permute.xlu1 %1911  ;;  %v1880_v22 = vpop.permute.xlu0 %1879  ;;  %v7083_v9 = vsel %vm962_vm9, %v7021_v28, 0.0  ;;  %v1486_v28 = vrot.slane %v10058_v36, 5  ;;  %2945 = vmatprep.subr.bf16.mxu0 %v8570_v30 }
  0xf5   : > { %14994 = vst [vmem:[#allocation124_spill] sm:$0xff] %v10418_v31  ;;  %v2166_v57 = vsel %vm2158_vm12, %v2133_v45, %v1880_v22  ;;  %v10444_v63 = vadd.f32 %v7083_v9, %v7082_v38 }
  0xf6   : > { %1995 = vrot.lane.b32.xlu1 %v10407_v53, %s9027_s17  ;;  %1960 = vrot.lane.b32.xlu0 %v10309_v26, %s9028_s22  ;;  %v2199_v44 = vsel %vm2191_vm13, %v2166_v57, %v10418_v31  ;;  %v1487_v9 = vsel %vm9176_vm2, %v1485_v50, %v1486_v28 }
  0xf7   : > { %7793 = vmatmul.mubr.msk.bf16.gmra.mrb[8].mxu0 %vm962_vm9, %v9448_v61  ;;  %14995 = vst [vmem:[#allocation125_spill] sm:$0xff] %v10444_v63  ;;  %v7820_v61 = vrot.slane %v10032_v37, 9  ;;  %v8592_v63 = vld [vmem:[#allocation2 + $0x180] ss:$8 sps:$4 sm:$0xff]  }
  0xf8   : > { %v1982_v15 = vpop.permute.xlu1 %1981  ;;  %v1947_v62 = vpop.permute.xlu0 %1946  ;;  %1080 = vmatprep.mubr.bf16.mxu0 %v14976_v35  ;;  %2946 = vmatpush1.bf16.msra.mxu0 %v8568_v29 }
  0xf9   : > { %v2232_v27 = vsel %vm2224_vm14, %v2199_v44, %v1947_v62  ;;  %v1484_v41 = vsel %vm9176_vm2, %v7820_v61, %v1483_v49  ;;  %v1628_v44 = vrot.slane %v1626_v17, 4  ;;  %v1629_v62 = vrot.slane %v10058_v36, 6  ;;  %v8576_v49 = vld [vmem:[#allocation2 + $0x134] ss:$8 sps:$4 sm:$0xff]   ;;  %2947 = vmatprep.subr.bf16.mxu0 %v8573_v59 }
  0xfa   : > { %2065 = vrot.lane.b32.xlu1 %v10432_v34, %s14755_s25  ;;  %2030 = vrot.lane.b32.xlu0 %v10436_v33, %s9031_s27  ;;  %v2265_v7 = vsel %vm2257_vm15, %v2232_v27, %v1982_v15  ;;  %v7836_v15 = vrot.slane %v10032_v37, 10  ;;  %v10503_v59 = vcombine.low %v10131_v40, %v10158_v6  ;;  %v1493_v6 = vrot.slane %v10178_v16, 5 }
  0xfb   : > { %v1630_v61 = vsel %vm9198_vm5, %v1628_v44, %v1629_v62  ;;  %v8577_v44 = vld [vmem:[#allocation2 + $0x140] ss:$8 sps:$4 sm:$0xff]  }
  0xfc   : > { %v2052_v45 = vpop.permute.xlu1 %2051  ;;  %v10456_v22 = vpop.permute.xlu0 %2016  ;;  %v1627_v37 = vsel %vm9198_vm5, %v7836_v15, %v1626_v17 }
  0xfd   : > { %14996 = vst [vmem:[#allocation126_spill] sm:$0xff] %v10456_v22  ;;  %v2298_v57 = vsel %vm2290_vm0, %v2265_v7, %v10456_v22  ;;  %v8574_v7 = vld [vmem:[#allocation2 + $0x130] ss:$8 sps:$4 sm:$0xff]   ;;  %v10499_v17 = vcombine.low %v1627_v37, %v1630_v61 }
  0xfe   : > { %1860 = vrot.lane.b32.xlu1 %v10309_v26, %s9026_s16  ;;  %1780 = vrot.lane.b32.xlu0 %v10321_v8, %s14785_s26  ;;  %v2331_v38 = vsel %vm2323_vm1, %v2298_v57, %v2052_v45  ;;  %v8571_v26 = vld [vmem:[#allocation2 + $0x120] ss:$8 sps:$4 sm:$0xff]   ;;  %v8579_v57 = vld [vmem:[#allocation2 + $0x144] ss:$8 sps:$4 sm:$0xff]  }
  0xff   : > { %7895 = vmatmul.mubr.msk.bf16.gmra.mrb[12].mxu1 %vm2422_vm3, %v2331_v38  ;;  %7794 = vmatmul.mubr.msk.bf16.gmra.mrb[12].mxu0 %vm962_vm9, %v9536_v43  ;;  %v10485_v43 = vcombine.low %v1484_v41, %v1487_v9  ;;  %v1490_v38 = vrot.slane %v10122_v12, 5 }
 0x100   : > { %v1847_v29 = vpop.permute.xlu1 %1846  ;;  %v10474_v30 = vpop.permute.xlu0 %1766  ;;  %2533 = vmatprep.mubr.bf16.mxu1 %v14976_v35  ;;  %1090 = vmatprep.mubr.bf16.mxu0 %v14976_v35 }
 0x101   : > { %14997 = vst [vmem:[#allocation127_spill] sm:$0xff] %v10474_v30  ;;  %v2091_v27 = vsel %vm962_vm9, %v9513_v20, %v10474_v30  ;;  %2948 = vmatpush1.bf16.msra.mxu0 %v8571_v26  ;;  %v8582_v26 = vld [vmem:[#allocation2 + $0x154] ss:$8 sps:$4 sm:$0xff]   ;;  %v1492_v40 = vrot.slane %v1490_v38, 4 }
 0x102   : > { %1927 = vrot.lane.b32.xlu1 %v10436_v33, %s9032_s24  ;;  %1895 = vrot.lane.b32.xlu0 %v10407_v53, %s9025_s21  ;;  %v2135_v20 = vsel %vm2125_vm11, %v2091_v27, %v1847_v29  ;;  %v1633_v29 = vrot.slane %v10122_v12, 6 }
 0x103   : > { %2949 = vmatprep.subr.bf16.mxu0 %v8576_v49 }
 0x104   : > { %v10491_v50 = vpop.permute.xlu1 %1913  ;;  %v1882_v28 = vpop.permute.xlu0 %1881 }
 0x105   : > { %14998 = vst [vmem:[#allocation128_spill] sm:$0xff] %v10491_v50  ;;  %v2168_v45 = vsel %vm2158_vm12, %v2135_v20, %v1882_v28  ;;  %2950 = vmatpush1.bf16.msra.mxu0 %v8574_v7  ;;  %v8580_v20 = vld [vmem:[#allocation2 + $0x150] ss:$8 sps:$4 sm:$0xff]   ;;  %v8588_v28 = vld [vmem:[%s14504_s3 + $0x4c] ss:$8 sps:$4 sm:$0xff]   ;;  %v7837_v7 = vrot.slane %v10105_v5, 10 }
 0x106   : > { %1997 = vrot.lane.b32.xlu1 %v10485_v43, %s9027_s17  ;;  %1962 = vrot.lane.b32.xlu0 %v10432_v34, %s9028_s22  ;;  %v2201_v9 = vsel %vm2191_vm13, %v2168_v45, %v10491_v50 }
 0x107   : > { %7795 = vmatmul.mubr.msk.bf16.gmra.mrb[16].mxu0 %vm962_vm9, %v9644_v19  ;;  %2951 = vmatprep.subr.bf16.mxu0 %v8579_v57  ;;  %v7821_v19 = vrot.slane %v10105_v5, 9  ;;  %v1494_v57 = vsel %vm9176_vm2, %v1492_v40, %v1493_v6  ;;  %v8583_v40 = vld [vmem:[#allocation2 + $0x160] ss:$8 sps:$4 sm:$0xff]  }
 0x108   : > { %v1984_v41 = vpop.permute.xlu1 %1983  ;;  %v1949_v15 = vpop.permute.xlu0 %1948  ;;  %1100 = vmatprep.mubr.bf16.mxu0 %v14976_v35  ;;  %4653 = vmatprep.subr.bf16.mxu1 %v8588_v28 }
 0x109   : > { %v2234_v62 = vsel %vm2224_vm14, %v2201_v9, %v1949_v15  ;;  %2952 = vmatpush1.bf16.msra.mxu0 %v8577_v44  ;;  %v1491_v45 = vsel %vm9176_vm2, %v7821_v19, %v1490_v38  ;;  %v1636_v9 = vrot.slane %v10178_v16, 6  ;;  %v15000_v15 = vld [vmem:[#allocation65_spill] sm:$0xff]  ;;  %v15002_v38 = vld [vmem:[#allocation51_spill] sm:$0xff]  ;;  %v1497_v19 = vrot.slane %v10223_v54, 5  ;;  %v15027_v16 = vld [vmem:[#allocation8_spill] sm:$0xff] }
 0x10a   : > { %2067 = vrot.lane.b32.xlu1 %v10499_v17, %s14755_s25  ;;  %2032 = vrot.lane.b32.xlu0 %v10503_v59, %s9031_s27  ;;  %v2267_v49 = vsel %vm2257_vm15, %v2234_v62, %v1984_v41  ;;  %v1635_v41 = vrot.slane %v1633_v29, 4  ;;  %v8586_v44 = vld [vmem:[%s14504_s3 + $0x48] ss:$8 sps:$4 sm:$0xff]   ;;  %v10556_v6 = vcombine.low %v1491_v45, %v1494_v57  ;;  %v7822_v45 = vrot.slane %v10218_v32, 9 }
 0x10b   : > { %2953 = vmatprep.subr.bf16.mxu0 %v8582_v26  ;;  %4654 = vmatpush1.bf16.msra.mxu1 %v8586_v44  ;;  %v1643_v44 = vrot.slane %v10263_v51, 6 }
 0x10c   : > { %v2054_v27 = vpop.permute.xlu1 %2053  ;;  %v10520_v37 = vpop.permute.xlu0 %2018  ;;  %15003 = vst [vmem:[#allocation51_spill] sm:$0xff] %v10556_v6 }
 0x10d   : > { %14999 = vst [vmem:[#allocation129_spill] sm:$0xff] %v10520_v37  ;;  %v2300_v61 = vsel %vm2290_vm0, %v2267_v49, %v10520_v37  ;;  %2954 = vmatpush1.bf16.msra.mxu0 %v8580_v20  ;;  %v1640_v49 = vrot.slane %v10223_v54, 6  ;;  %v8591_v20 = vld [vmem:[#allocation2 + $0x174] ss:$8 sps:$4 sm:$0xff]   ;;  %v1499_v54 = vrot.slane %v1497_v19, 4 }
 0x10e   : > { %1862 = vrot.lane.b32.xlu1 %v10432_v34, %s9026_s16  ;;  %1782 = vrot.lane.b32.xlu0 %v10436_v33, %s14785_s26  ;;  %v2333_v12 = vsel %vm2323_vm1, %v2300_v61, %v2054_v27  ;;  %v8585_v34 = vld [vmem:[#allocation2 + $0x164] ss:$8 sps:$4 sm:$0xff]   ;;  %v1634_v27 = vsel %vm9198_vm5, %v7837_v7, %v1633_v29  ;;  %v1637_v61 = vsel %vm9198_vm5, %v1635_v41, %v1636_v9  ;;  %v7838_v29 = vrot.slane %v10218_v32, 10  ;;  %v8589_v7 = vld [vmem:[#allocation2 + $0x170] ss:$8 sps:$4 sm:$0xff]  }
 0x10f   : > { %7896 = vmatmul.mubr.msk.bf16.gmra.mrb[16].mxu1 %vm2422_vm3, %v2333_v12  ;;  %7796 = vmatmul.mubr.msk.bf16.gmra.mrb[20].mxu0 %vm962_vm9, %v15000_v15  ;;  %v10574_v41 = vcombine.low %v1634_v27, %v1637_v61  ;;  %v10578_v9 = vcombine.low %v10233_v58, %v10248_v60  ;;  %v1650_v32 = vrot.slane %v10339_v23, 5  ;;  %v1498_v60 = vsel %vm9176_vm2, %v7822_v45, %v1497_v19 }
 0x110   : > { %v1849_v5 = vpop.permute.xlu1 %1848  ;;  %v10544_v62 = vpop.permute.xlu0 %1768  ;;  %2543 = vmatprep.mubr.bf16.mxu1 %v14976_v35  ;;  %1110 = vmatprep.mubr.bf16.mxu0 %v14976_v35  ;;  %v7839_v19 = vrot.slane %v10313_v10, 9 }
 0x111   : > { %15001 = vst [vmem:[#allocation65_spill] sm:$0xff] %v10544_v62  ;;  %v2094_v26 = vsel %vm962_vm9, %v15002_v38, %v10544_v62  ;;  %2955 = vmatprep.subr.bf16.mxu0 %v8585_v34  ;;  %v1500_v38 = vrot.slane %v10263_v51, 5  ;;  %v1642_v34 = vrot.slane %v1640_v49, 4 }
 0x112   : > { %1929 = vrot.lane.b32.xlu1 %v10503_v59, %s9032_s24  ;;  %1897 = vrot.lane.b32.xlu0 %v10485_v43, %s9025_s21  ;;  %v2137_v12 = vsel %vm2125_vm11, %v2094_v26, %v1849_v5  ;;  %v10583_v5 = vld [vmem:[%s9174_s23 + $0xe4] sm:$0xf]  ;;  %v15005_v26 = vld [vmem:[#allocation73_spill] sm:$0xff] }
 0x113   : > { %2956 = vmatpush1.bf16.msra.mxu0 %v8583_v40  ;;  %v8594_v40 = vld [vmem:[#allocation2 + $0x184] ss:$8 sps:$4 sm:$0xff]   ;;  %v10608_v45 = vshrl.u32 %v10583_v5, 16  ;;  %v7841_v50 = vrot.slane %v10583_v5, 9 }
 0x114   : > { %v10563_v28 = vpop.permute.xlu1 %1915  ;;  %v1884_v15 = vpop.permute.xlu0 %1883  ;;  %2957 = vmatprep.subr.bf16.mxu0 %v8591_v20  ;;  %v10598_v20 = vld [vmem:[%s9174_s23 + $0xe8] sm:$0xf] }
 0x115   : > { %15004 = vst [vmem:[#allocation130_spill] sm:$0xff] %v10563_v28  ;;  %v2170_v57 = vsel %vm2158_vm12, %v2137_v12, %v1884_v15  ;;  %v1501_v15 = vsel %vm9176_vm2, %v1499_v54, %v1500_v38  ;;  %15006 = vst [vmem:[#allocation73_spill] sm:$0xff] %v10608_v45  ;;  %v1652_v54 = vrot.slane %v1650_v32, 4  ;;  %v1653_v38 = vrot.slane %v10354_v18, 5 }
 0x116   : > { %1999 = vrot.lane.b32.xlu1 %v10556_v6, %s9027_s17  ;;  %1964 = vrot.lane.b32.xlu0 %v10499_v17, %s9028_s22  ;;  %v2203_v27 = vsel %vm2191_vm13, %v2170_v57, %v10563_v28  ;;  %v1644_v57 = vsel %vm9198_vm5, %v1642_v34, %v1643_v44  ;;  %v10618_v34 = vcombine.low %v1498_v60, %v1501_v15  ;;  %v10621_v44 = vshrl.u32 %v10598_v20, 16 }
 0x117   : > { %7797 = vmatmul.mubr.msk.bf16.gmra.mrb[24].mxu0 %vm962_vm9, %v15005_v26  ;;  %v1641_v26 = vsel %vm9198_vm5, %v7838_v29, %v1640_v49  ;;  %v10611_v49 = vshll.u32 %v10583_v5, 16  ;;  %v1657_v29 = vrot.slane %v10339_v23, 6  ;;  %v10624_v62 = vshll.u32 %v10598_v20, 16 }
 0x118   : > { %v1986_v12 = vpop.permute.xlu1 %1985  ;;  %v1951_v61 = vpop.permute.xlu0 %1950  ;;  %1120 = vmatprep.mubr.bf16.mxu0 %v14976_v35  ;;  %2958 = vmatpush1.bf16.msra.mxu0 %v8589_v7  ;;  %15009 = vst [vmem:[#allocation133_spill] sm:$0xff] %v10618_v34  ;;  %15010 = vst [vmem:[#allocation134_spill] sm:$0xff] %v10621_v44  ;;  %v10628_v30 = vcombine.low %v1641_v26, %v1644_v57  ;;  %v7840_v23 = vrot.slane %v10313_v10, 10  ;;  %v1651_v15 = vsel %vm9176_vm2, %v7839_v19, %v1650_v32 }
 0x119   : > { %v2236_v58 = vsel %vm2224_vm14, %v2203_v27, %v1951_v61  ;;  %15007 = vst [vmem:[#allocation131_spill] sm:$0xff] %v10611_v49  ;;  %2959 = vmatprep.subr.bf16.mxu0 %v8594_v40  ;;  %15011 = vst [vmem:[#allocation135_spill] sm:$0xff] %v10624_v62  ;;  %v10632_v40 = vld [vmem:[%s9174_s23 + $0xec] sm:$0x7]  ;;  %v1675_v26 = vrot.slane %v10608_v45, 5  ;;  %v1678_v10 = vrot.slane %v10611_v49, 6 }
 0x11a   : > { %2069 = vrot.lane.b32.xlu1 %v10574_v41, %s14755_s25  ;;  %2034 = vrot.lane.b32.xlu0 %v10578_v9, %s9031_s27  ;;  %v2269_v7 = vsel %vm2257_vm15, %v2236_v58, %v1986_v12  ;;  %15012 = vst [vmem:[#allocation136_spill] sm:$0xff] %v10632_v40  ;;  %v1667_v12 = vrot.slane %v10598_v20, 5  ;;  %v8597_v58 = vld [vmem:[#allocation2 + $0x194] ss:$8 sps:$4 sm:$0xff]   ;;  %v1659_v57 = vrot.slane %v1657_v29, 4  ;;  %v1684_v19 = vrot.slane %v10621_v44, 5 }
 0x11b   : > { %v1670_v31 = vrot.slane %v10632_v40, 5  ;;  %v1658_v22 = vsel %vm9198_vm5, %v7840_v23, %v1657_v29  ;;  %v15017_v29 = vshrl.u32 %v10632_v40, 16  ;;  %v8604_v45 = vld [vmem:[#allocation2 + $0x1c0] ss:$8 sps:$4 sm:$0xff]  }
 0x11c   : > { %v2056_v27 = vpop.permute.xlu1 %2055  ;;  %v10616_v61 = vpop.permute.xlu0 %2020  ;;  %2960 = vmatpush1.bf16.msra.mxu0 %v8592_v63  ;;  %v1654_v63 = vsel %vm9176_vm2, %v1652_v54, %v1653_v38  ;;  %v10658_v38 = vshll.u32 %v10632_v40, 16  ;;  %v1669_v37 = vrot.slane %v1667_v12, 4 }
 0x11d   : > { %15008 = vst [vmem:[#allocation132_spill] sm:$0xff] %v10616_v61  ;;  %v2302_v28 = vsel %vm2290_vm0, %v2269_v7, %v10616_v61  ;;  %v1702_v7 = vrot.slane %v10598_v20, 6  ;;  %v8600_v20 = vld [vmem:[#allocation2 + $0x1a4] ss:$8 sps:$4 sm:$0xff]   ;;  %2961 = vmatprep.subr.bf16.mxu0 %v8597_v58  ;;  %v10670_v54 = vcombine.low %v1651_v15, %v1654_v63  ;;  %v1705_v58 = vrot.slane %v10632_v40, 6 }
 0x11e   : > { %1864 = vrot.lane.b32.xlu1 %v10499_v17, %s9026_s16  ;;  %1784 = vrot.lane.b32.xlu0 %v10503_v59, %s14785_s26  ;;  %v2335_v60 = vsel %vm2323_vm1, %v2302_v28, %v2056_v27  ;;  %v1660_v17 = vrot.slane %v10354_v18, 6  ;;  %v8595_v28 = vld [vmem:[#allocation2 + $0x190] ss:$8 sps:$4 sm:$0xff]   ;;  %15014 = vst [vmem:[#allocation138_spill] sm:$0xff] %v10658_v38  ;;  %v1694_v23 = vrot.slane %v15017_v29, 5 }
 0x11f   : > { %7897 = vmatmul.mubr.msk.bf16.gmra.mrb[20].mxu1 %vm2422_vm3, %v2335_v60  ;;  %7798 = vmatmul.mubr.msk.bf16.gmra.mrb[28].mxu0 %vm962_vm9, %v9955_v55  ;;  %v1687_v60 = vrot.slane %v10624_v62, 6  ;;  %v15015_v55 = vld [vmem:[#allocation63_spill] sm:$0xff]  ;;  %v1679_v62 = vor.u32 %v1678_v10, %v1675_v26  ;;  %v1704_v44 = vrot.slane %v1702_v7, 4  ;;  %v1697_v26 = vrot.slane %v10658_v38, 6  ;;  %v351_v10 = vld [vmem:[%s9174_s23 + $0x10] sm:$0xf] }
 0x120   : > { %v1851_v27 = vpop.permute.xlu1 %1850  ;;  %v10651_v32 = vpop.permute.xlu0 %1770  ;;  %2553 = vmatprep.mubr.bf16.mxu1 %v14976_v35  ;;  %1130 = vmatprep.mubr.bf16.mxu0 %v14976_v35  ;;  %v15022_v38 = vld [vmem:[#allocation22_spill] sm:$0xff] }
 0x121   : > { %15013 = vst [vmem:[#allocation137_spill] sm:$0xff] %v10651_v32  ;;  %v2097_v61 = vsel %vm962_vm9, %v15015_v55, %v10651_v32  ;;  %v1661_v55 = vsel %vm9198_vm5, %v1659_v57, %v1660_v17  ;;  %v7842_v32 = vrot.slane %v10583_v5, 10  ;;  %2962 = vmatpush1.bf16.msra.mxu0 %v8595_v28  ;;  %v1688_v63 = vor.u32 %v1687_v60, %v1684_v19  ;;  %v8598_v57 = vld [vmem:[#allocation2 + $0x1a0] ss:$8 sps:$4 sm:$0xff]  }
 0x122   : > { %1931 = vrot.lane.b32.xlu1 %v10578_v9, %s9032_s24  ;;  %1899 = vrot.lane.b32.xlu0 %v10556_v6, %s9025_s21  ;;  %v2139_v49 = vsel %vm2125_vm11, %v2097_v61, %v1851_v27  ;;  %v10689_v17 = vcombine.low %v10326_v39, %v10336_v25  ;;  %v10693_v61 = vsel %vm9176_vm2, %v7841_v50, %v1667_v12  ;;  %v8603_v27 = vld [vmem:[#allocation2 + $0x1b4] ss:$8 sps:$4 sm:$0xff]   ;;  %v1680_v19 = vrot.slane %v1679_v62, 4  ;;  %v352_v39 = vld [vmem:[%s9174_s23 + $0x14] sm:$0x7] }
 0x123   : > { %2963 = vmatprep.subr.bf16.mxu0 %v8600_v20  ;;  %v10697_v28 = vsel %vm9176_vm2, %v1669_v37, %v1670_v31  ;;  %v10706_v25 = vshrl.u32 %v350_v1, 16  ;;  %v10708_v60 = vshll.u32 %v350_v1, 16  ;;  %v10712_v0 = vsel %vm9198_vm5, %v7842_v32, %v1702_v7 }
 0x124   : > { %v10679_v18 = vpop.permute.xlu1 %1917  ;;  %v1886_v15 = vpop.permute.xlu0 %1885  ;;  %v10716_v31 = vsel %vm9198_vm5, %v1704_v44, %v1705_v58  ;;  %v10718_v50 = vshll.u32 %v351_v10, 16  ;;  %v10720_v37 = vshrl.u32 %v351_v10, 16  ;;  %v1690_v7 = vrot.slane %v1688_v63, 4  ;;  %v8606_v58 = vld [vmem:[#allocation2 + $0x1c4] ss:$8 sps:$4 sm:$0xff]  }
 0x125   : > { %15016 = vst [vmem:[#allocation63_spill] sm:$0xff] %v10679_v18  ;;  %v2172_v5 = vsel %vm2158_vm12, %v2139_v49, %v1886_v15  ;;  %v10703_v49 = vcombine.low %v1658_v22, %v1661_v55  ;;  %15018 = vst [vmem:[#allocation139_spill] sm:$0xff] %v10706_v25  ;;  %v1698_v32 = vor.u32 %v1697_v26, %v1694_v23  ;;  %2964 = vmatpush1.bf16.msra.mxu0 %v8598_v57  ;;  %v8610_v23 = vld [vmem:[%s14504_s3 + $0x58] ss:$8 sps:$4 sm:$0xff]   ;;  %v8612_v26 = vld [vmem:[%s14504_s3 + $0x5c] ss:$8 sps:$4 sm:$0xff]  }
 0x126   : > { %2001 = vrot.lane.b32.xlu1 %v10618_v34, %s9027_s17  ;;  %1966 = vrot.lane.b32.xlu0 %v10574_v41, %s9028_s22  ;;  %15019 = vst [vmem:[#allocation140_spill] sm:$0xff] %v10708_v60  ;;  %v2205_v1 = vsel %vm2191_vm13, %v2172_v5, %v10679_v18  ;;  %v10732_v20 = vcombine.low %v10411_v56, %v10423_v42  ;;  %v3690_v55 = vshrl.u32 %v352_v39, 16  ;;  %v3699_v56 = vrot.slane %v10706_v25, 6 }
 0x127   : > { %7799 = vmatmul.mubr.msk.bf16.gmra.mrb[32].mxu0 %vm962_vm9, %v10085_v21  ;;  %v10734_v21 = vshll.u32 %v352_v39, 16  ;;  %2965 = vmatprep.subr.bf16.mxu0 %v8603_v27  ;;  %v10744_v29 = vsel %vm9274_vm8, %v1680_v19, %v1688_v63  ;;  %v3700_v42 = vrot.slane %v10708_v60, 7  ;;  %v3703_v10 = vrot.slane %v10720_v37, 6 }
 0x128   : > { %v1988_v22 = vpop.permute.xlu1 %1987  ;;  %v1953_v62 = vpop.permute.xlu0 %1952  ;;  %1140 = vmatprep.mubr.bf16.mxu0 %v14976_v35  ;;  %v3704_v57 = vrot.slane %v10718_v50, 7  ;;  %v3681_v5 = vrot.slane %v10706_v25, 5  ;;  %v3682_v63 = vrot.slane %v10708_v60, 6  ;;  %v3686_v15 = vrot.slane %v10718_v50, 6  ;;  %4655 = vmatprep.subr.bf16.mxu1 %v8612_v26  ;;  %v15059_v60 = vld [vmem:[#allocation35_spill] sm:$0xff] }
 0x129   : > { %v2238_v44 = vsel %vm2224_vm14, %v2205_v1, %v1953_v62  ;;  %15020 = vst [vmem:[#allocation141_spill] sm:$0xff] %v10734_v21  ;;  %v10763_v1 = vsel %vm9274_vm8, %v1690_v7, %v1698_v32  ;;  %v3685_v62 = vrot.slane %v10720_v37, 5  ;;  %2966 = vmatpush1.bf16.msra.mxu0 %v8601_v11  ;;  %v3708_v18 = vrot.slane %v3690_v55, 6  ;;  %4656 = vmatpush1.bf16.msra.mxu1 %v8610_v23  ;;  %v15024_v11 = vld [vmem:[#allocation24_spill] sm:$0xff] }
 0x12a   : > { %2071 = vrot.lane.b32.xlu1 %v10628_v30, %s14755_s25  ;;  %2036 = vrot.lane.b32.xlu0 %v10689_v17, %s9031_s27  ;;  %v2271_v27 = vsel %vm2257_vm15, %v2238_v44, %v1988_v22  ;;  %v3725_v40 = vrot.slane %v15022_v38, 6  ;;  %v15023_v22 = vld [vmem:[#allocation23_spill] sm:$0xff]  ;;  %v3709_v32 = vrot.slane %v10734_v21, 7  ;;  %v3729_v26 = vrot.slane %v15024_v11, 6  ;;  %s15038_s25 = smov 64  }
 0x12b   : > { %v3726_v44 = vrot.slane %v15023_v22, 7  ;;  %2967 = vmatprep.subr.bf16.mxu0 %v8606_v58  ;;  %v3701_v48 = vor.u32 %v3700_v42, %v3699_v56  ;;  %v3705_v14 = vor.u32 %v3704_v57, %v3703_v10  ;;  %v3683_v58 = vor.u32 %v3682_v63, %v3681_v5  ;;  %v8607_v10 = vld [vmem:[#allocation2 + $0x1d0] ss:$8 sps:$4 sm:$0xff]  }
 0x12c   : > { %v2058_v19 = vpop.permute.xlu1 %2057  ;;  %v10759_v39 = vpop.permute.xlu0 %2022  ;;  %v3692_v23 = vrot.slane %v3690_v55, 5  ;;  %v15028_v6 = vshrl.u32 %v15027_v16, 16  ;;  %v15030_v55 = vld [vmem:[#allocation72_spill] sm:$0xff]  ;;  %vm3696_vm2 = vsmask.f32 1280  ;;  %v3528_v57 = vrot.slane %v15023_v22, 5 }
 0x12d   : > { %15021 = vst [vmem:[#allocation142_spill] sm:$0xff] %v10759_v39  ;;  %v2304_v12 = vsel %vm2290_vm0, %v2271_v27, %v10759_v39  ;;  %v15025_v27 = vld [vmem:[#allocation25_spill] sm:$0xff]  ;;  %v3727_v42 = vor.u32 %v3726_v44, %v3725_v40  ;;  %2968 = vmatpush1.bf16.msra.mxu0 %v8604_v45  ;;  %v3702_v5 = vrot.slane %v3701_v48, 4  ;;  %v3707_v63 = vrot.slane %v3705_v14, 4  ;;  %vm10806_vm5 = vmor %vm3696_vm2, %vm3697_vm4 }
 0x12e   : > { %1866 = vrot.lane.b32.xlu1 %v10574_v41, %s9026_s16  ;;  %1786 = vrot.lane.b32.xlu0 %v10578_v9, %s14785_s26  ;;  %v2337_v7 = vsel %vm2323_vm1, %v2304_v12, %v2058_v19  ;;  %v3730_v39 = vrot.slane %v15025_v27, 7  ;;  %v8609_v41 = vld [vmem:[#allocation2 + $0x1d4] ss:$8 sps:$4 sm:$0xff]   ;;  %v3687_v12 = vor.u32 %v3686_v15, %v3685_v62  ;;  %v3693_v19 = vrot.slane %v10734_v21, 6  ;;  %v8615_v45 = vld [vmem:[#allocation2 + $0x1e4] ss:$8 sps:$4 sm:$0xff]   ;;  %vm10892_vm2 = vmor %vm3489_vm6, %vm3490_vm7 }
 0x12f   : > { %7898 = vmatmul.mubr.msk.bf16.gmra.mrb[24].mxu1 %vm2422_vm3, %v2337_v7  ;;  %7800 = vmatmul.mubr.msk.bf16.gmra.mrb[36].mxu0 %vm962_vm9, %v10205_v47  ;;  %v3734_v36 = vrot.slane %v15028_v6, 6  ;;  %v15029_v7 = vld [vmem:[#allocation26_spill] sm:$0xff]  ;;  %v3527_v15 = vrot.slane %v15022_v38, 4  ;;  %v3710_v62 = vor.u32 %v3709_v32, %v3708_v18  ;;  %v3684_v40 = vrot.slane %v3683_v58, 4  ;;  %v8613_v58 = vld [vmem:[#allocation2 + $0x1e0] ss:$8 sps:$4 sm:$0xff]  }
 0x130   : > { %v1853_v46 = vpop.permute.xlu1 %1852  ;;  %v10782_v51 = vpop.permute.xlu0 %1772  ;;  %2563 = vmatprep.mubr.bf16.mxu1 %v14976_v35  ;;  %v3735_v56 = vrot.slane %v15029_v7, 7  ;;  %1150 = vmatprep.mubr.bf16.mxu0 %v14976_v35  ;;  %v3731_v6 = vor.u32 %v3730_v39, %v3729_v26  ;;  %v3689_v38 = vrot.slane %v3687_v12, 4  ;;  %v3694_v39 = vor.u32 %v3693_v19, %v3692_v23  ;;  %v15034_v23 = vld [vmem:[#allocation28_spill] sm:$0xff]  ;;  %v15035_v19 = vld [vmem:[#allocation29_spill] sm:$0xff] }
 0x131   : > { %15026 = vst [vmem:[#allocation22_spill] sm:$0xff] %v10782_v51  ;;  %v2100_v47 = vsel %vm962_vm9, %v15030_v55, %v10782_v51  ;;  %2969 = vmatprep.subr.bf16.mxu0 %v8609_v41  ;;  %v3728_v18 = vrot.slane %v3727_v42, 4  ;;  %v14778_v32 = vrot.slane %v15025_v27, 5  ;;  %v3533_v26 = vrot.slane %v15024_v11, 4  ;;  %v8618_v42 = vld [vmem:[#allocation2 + $0x1f4] ss:$8 sps:$4 sm:$0xff]  }
 0x132   : > { %1933 = vrot.lane.b32.xlu1 %v10689_v17, %s9032_s24  ;;  %1901 = vrot.lane.b32.xlu0 %v10618_v34, %s9025_s21  ;;  %v2141_v55 = vsel %vm2125_vm11, %v2100_v47, %v1853_v46  ;;  %v3736_v22 = vor.u32 %v3735_v56, %v3734_v36  ;;  %v3733_v46 = vrot.slane %v3731_v6, 4  ;;  %v10817_v41 = vor.u32 %v3528_v57, %v3527_v15 }
 0x133   : > { %2970 = vmatpush1.bf16.msra.mxu0 %v8607_v10  ;;  %v3751_v36 = vrot.slane %v15034_v23, 6  ;;  %v10823_v56 = vsel %vm10806_vm5, %v3702_v5, %v3705_v14  ;;  %v10827_v11 = vsel %vm10806_vm5, %v3707_v63, %v3710_v62  ;;  %v10831_v47 = vsel %vm9274_vm8, %v3684_v40, %v3687_v12  ;;  %v15036_v5 = vld [vmem:[#allocation30_spill] sm:$0xff]  ;;  %v15037_v62 = vld [vmem:[#allocation31_spill] sm:$0xff] }
 0x134   : > { %v10801_v44 = vpop.permute.xlu1 %1919  ;;  %v1888_v51 = vpop.permute.xlu0 %1887  ;;  %2971 = vmatprep.subr.bf16.mxu0 %v8615_v45  ;;  %v10839_v57 = vsel %vm9274_vm8, %v3689_v38, %v3694_v39  ;;  %v3755_v63 = vrot.slane %v15036_v5, 6  ;;  %v3756_v12 = vrot.slane %v15037_v62, 7  ;;  %v3536_v45 = vrot.slane %v15029_v7, 5 }
 0x135   : > { %15031 = vst [vmem:[#allocation23_spill] sm:$0xff] %v10801_v44  ;;  %v2174_v48 = vsel %vm2158_vm12, %v2141_v55, %v1888_v51  ;;  %v3752_v51 = vrot.slane %v15035_v19, 7  ;;  %v8616_v55 = vld [vmem:[#allocation2 + $0x1f0] ss:$8 sps:$4 sm:$0xff]   ;;  %v3732_v38 = vsel %vm10806_vm5, %v3728_v18, %v3731_v6  ;;  %v3737_v39 = vsel %vm10806_vm5, %v3733_v46, %v3736_v22 }
 0x136   : > { %2003 = vrot.lane.b32.xlu1 %v10670_v54, %s9027_s17  ;;  %1968 = vrot.lane.b32.xlu0 %v10628_v30, %s9028_s22  ;;  %v2207_v15 = vsel %vm2191_vm13, %v2174_v48, %v10801_v44  ;;  %v3530_v48 = vrot.slane %v10817_v41, 4  ;;  %v3549_v44 = vrot.slane %v15034_v23, 4  ;;  %v3550_v4 = vrot.slane %v15035_v19, 5  ;;  %v15044_v23 = vld [vmem:[#allocation17_spill] sm:$0xff] }
 0x137   : > { %7801 = vmatmul.mubr.msk.bf16.gmra.mrb[40].mxu0 %vm962_vm9, %v10321_v8  ;;  %v3534_v8 = vor.u32 %v3533_v26, %v14778_v32  ;;  %v15039_v26 = vld [vmem:[#allocation27_spill] sm:$0xff]  ;;  %v3757_v18 = vor.u32 %v3756_v12, %v3755_v63  ;;  %v3553_v22 = vrot.slane %v15037_v62, 5  ;;  %v3555_v46 = vrot.slane %v15036_v5, 4  ;;  %v15046_v63 = vld [vmem:[#allocation18_spill] sm:$0xff]  ;;  %v15053_v12 = vld [vmem:[#allocation12_spill] sm:$0xff] }
 0x138   : > { %v1990_v10 = vpop.permute.xlu1 %1989  ;;  %v1955_v14 = vpop.permute.xlu0 %1954  ;;  %1160 = vmatprep.mubr.bf16.mxu0 %v14976_v35  ;;  %2972 = vmatpush1.bf16.msra.mxu0 %v8613_v58  ;;  %v15041_v58 = vld [vmem:[#allocation32_spill] sm:$0xff]  ;;  %v3544_v62 = vrot.slane %v15046_v63, 4  ;;  %vm5426_vm4 = vcmask 1040384   ;;  %vm5427_vm6 = vcmask 1044484  }
 0x139   : > { %v2240_v40 = vsel %vm2224_vm14, %v2207_v15, %v1955_v14  ;;  %v3753_v15 = vor.u32 %v3752_v51, %v3751_v36  ;;  %v15040_v14 = vshrl.u32 %v15039_v26, 16  ;;  %v3761_v32 = vrot.slane %v15041_v58, 7  ;;  %2973 = vmatprep.subr.bf16.mxu0 %v8618_v42  ;;  %v15043_v51 = vld [vmem:[#allocation16_spill] sm:$0xff] }
 0x13a   : > { %2073 = vrot.lane.b32.xlu1 %v10703_v49, %s15038_s25  ;;  %2038 = vrot.lane.b32.xlu0 %v10732_v20, %s9031_s27  ;;  %v2273_v34 = vsel %vm2257_vm15, %v2240_v40, %v1990_v10  ;;  %v3535_v36 = vrot.slane %v3534_v8, 4  ;;  %v3538_v26 = vrot.slane %v15043_v51, 4  ;;  %v15045_v10 = vld [vmem:[#allocation19_spill] sm:$0xff]  ;;  %v3551_v40 = vor.u32 %v3550_v4, %v3549_v44  ;;  %v8619_v4 = vld [vmem:[%s14504_s3 + $0x68] ss:$8 sps:$4 sm:$0xff]   ;;  %v15050_v44 = vld [vmem:[#allocation82_spill] sm:$0xff] }
 0x13b   : > { %v3760_v7 = vrot.slane %v15040_v14, 6  ;;  %v3539_v14 = vrot.slane %v15044_v23, 5  ;;  %v3754_v42 = vrot.slane %v3753_v15, 4  ;;  %v14791_v5 = vrot.slane %v15045_v10, 5 }
 0x13c   : > { %v2060_v21 = vpop.permute.xlu1 %2059  ;;  %v10863_v6 = vpop.permute.xlu0 %2024  ;;  %2974 = vmatpush1.bf16.msra.mxu0 %v8616_v55  ;;  %v3759_v15 = vrot.slane %v3757_v18, 4 }
 0x13d   : > { %15042 = vst [vmem:[#allocation24_spill] sm:$0xff] %v10863_v6  ;;  %v2306_v41 = vsel %vm2290_vm0, %v2273_v34, %v10863_v6  ;;  %v3713_v34 = vrot.slane %v15053_v12, 7  ;;  %v15058_v12 = vld [vmem:[#allocation33_spill] sm:$0xff] }
 0x13e   : > { %1868 = vrot.lane.b32.xlu1 %v10628_v30, %s9026_s16  ;;  %1788 = vrot.lane.b32.xlu0 %v10689_v17, %s14785_s26  ;;  %v2339_v19 = vsel %vm2323_vm1, %v2306_v41, %v2060_v21  ;;  %v10888_v21 = vcombine.low %v3732_v38, %v3737_v39  ;;  %v3762_v41 = vor.u32 %v3761_v32, %v3760_v7  ;;  %v15051_v39 = vrot.slane %v15025_v27, 5 }
 0x13f   : > { %7899 = vmatmul.mubr.msk.bf16.gmra.mrb[28].mxu1 %vm2422_vm3, %v2339_v19  ;;  %7802 = vmatmul.mubr.msk.bf16.gmra.mrb[44].mxu0 %vm962_vm9, %v10436_v33  ;;  %v3556_v19 = vor.u32 %v3555_v46, %v3553_v22  ;;  %v8621_v33 = vld [vmem:[%s14504_s3 + $0x6c] ss:$8 sps:$4 sm:$0xff]   ;;  %v10914_v7 = vsel %vm10892_vm2, %v3535_v36, %v3536_v45  ;;  %v3540_v46 = vor.u32 %v3539_v14, %v3538_v26  ;;  %v3552_v45 = vrot.slane %v3551_v40, 4 }
 0x140   : > { %v1855_v30 = vpop.permute.xlu1 %1854  ;;  %v10885_v8 = vpop.permute.xlu0 %1774  ;;  %2573 = vmatprep.mubr.bf16.mxu1 %v14976_v35  ;;  %1170 = vmatprep.mubr.bf16.mxu0 %v14976_v35  ;;  %v10910_v32 = vsel %vm10892_vm2, %v3530_v48, %v15051_v39  ;;  %v3545_v27 = vor.u32 %v3544_v62, %v14791_v5  ;;  %v15052_v48 = vld [vmem:[#allocation11_spill] sm:$0xff]  ;;  %v3558_v36 = vrot.slane %v15041_v58, 5  ;;  %v15054_v26 = vld [vmem:[#allocation13_spill] sm:$0xff]  ;;  %v3763_v62 = vsel %vm10806_vm5, %v3759_v15, %v3762_v41 }
 0x141   : > { %15047 = vst [vmem:[#allocation25_spill] sm:$0xff] %v10885_v8  ;;  %v2103_v38 = vsel %vm962_vm9, %v15050_v44, %v10885_v8  ;;  %v10922_v44 = vsel %vm10806_vm5, %v3754_v42, %v3757_v18  ;;  %v3712_v39 = vrot.slane %v15052_v48, 6  ;;  %v3716_v14 = vrot.slane %v15054_v26, 6  ;;  %v15055_v8 = vld [vmem:[#allocation14_spill] sm:$0xff]  ;;  %4657 = vmatprep.subr.bf16.mxu1 %v8621_v33  ;;  %v15057_v48 = vld [vmem:[#allocation21_spill] sm:$0xff] }
 0x142   : > { %1935 = vrot.lane.b32.xlu1 %v10732_v20, %s9032_s24  ;;  %1903 = vrot.lane.b32.xlu0 %v10670_v54, %s9025_s21  ;;  %v3717_v6 = vrot.slane %v15055_v8, 7  ;;  %v2143_v18 = vsel %vm2125_vm11, %v2103_v38, %v1855_v30  ;;  %v3557_v5 = vrot.slane %v3556_v19, 4  ;;  %v3547_v25 = vrot.slane %v15057_v48, 5  ;;  %v15061_v41 = vld [vmem:[#allocation37_spill] sm:$0xff]  ;;  %s9034_s24 = smov [#allocation5]  }
 0x143   : > { %4658 = vmatpush1.bf16.msra.mxu1 %v8619_v4  ;;  %v3541_v58 = vrot.slane %v3540_v46, 4  ;;  %v3560_v26 = vrot.slane %v15058_v12, 4  ;;  %v3561_v8 = vrot.slane %v15059_v60, 5  ;;  %v15060_v33 = vcombine.low %v10693_v61, %v10697_v28  ;;  %v15062_v4 = vld [vmem:[#allocation36_spill] sm:$0xff] }
 0x144   : > { %v10931_v54 = vpop.permute.xlu1 %1921  ;;  %v1890_v42 = vpop.permute.xlu0 %1889  ;;  %v3546_v30 = vrot.slane %v3545_v27, 4  ;;  %v10946_v15 = vor.u32 %v3713_v34, %v3712_v39  ;;  %v3564_v19 = vrot.slane %v15061_v41, 5  ;;  %v3566_v38 = vrot.slane %v15062_v4, 4 }
 0x145   : > { %15056 = vst [vmem:[#allocation8_spill] sm:$0xff] %v10931_v54  ;;  %v2176_v40 = vsel %vm2158_vm12, %v2143_v18, %v1890_v42  ;;  %v3554_v46 = vsel %vm10892_vm2, %v3552_v45, %v3553_v22  ;;  %v10952_v18 = vor.u32 %v3717_v6, %v3716_v14  ;;  %v3738_v42 = vrot.slane %v15043_v51, 6  ;;  %v15063_v51 = vld [vmem:[#allocation9_spill] sm:$0xff] }
 0x146   : > { %2005 = vrot.lane.b32.xlu1 %v15060_v33, %s9027_s17  ;;  %1970 = vrot.lane.b32.xlu0 %v10703_v49, %s9028_s22  ;;  %v3739_v61 = vrot.slane %v15044_v23, 7  ;;  %v2209_v49 = vsel %vm2191_vm13, %v2176_v40, %v10931_v54  ;;  %v3559_v27 = vsel %vm10892_vm2, %v3557_v5, %v3558_v36  ;;  %v3742_v39 = vrot.slane %v15046_v63, 6  ;;  %v8623_v40 = vld [vmem:[%s14504_s3 + $0x78] ss:$8 sps:$4 sm:$0xff]   ;;  %v8625_v5 = vld [vmem:[%s14504_s3 + $0x7c] ss:$8 sps:$4 sm:$0xff]  }
 0x147   : > { %7803 = vmatmul.mubr.msk.bf16.gmra.mrb[48].mxu0 %vm962_vm9, %v10503_v59  ;;  %v3743_v6 = vrot.slane %v15045_v10, 7  ;;  %v15064_v23 = vshrl.u32 %v15063_v51, 16  ;;  %v15065_v59 = vld [vmem:[#allocation15_spill] sm:$0xff]  ;;  %v3562_v33 = vor.u32 %v3561_v8, %v3560_v26  ;;  %v15066_v63 = vcombine.low %v10712_v0, %v10716_v31  ;;  %4659 = vmatprep.subr.bf16.mxu1 %v8625_v5 }
 0x148   : > { %v1992_v28 = vpop.permute.xlu1 %1991  ;;  %v1957_v34 = vpop.permute.xlu0 %1956  ;;  %1180 = vmatprep.mubr.bf16.mxu0 %v14976_v35  ;;  %v3722_v14 = vrot.slane %v15065_v59, 7  ;;  %v15067_v36 = vcombine.low %v10744_v29, %v10763_v1  ;;  %v15068_v8 = vrot.slane %v15045_v10, 5  ;;  %v3567_v51 = vor.u32 %v3566_v38, %v3564_v19  ;;  %4660 = vmatpush1.bf16.msra.mxu1 %v8623_v40 }
 0x149   : > { %v2242_v22 = vsel %vm2224_vm14, %v2209_v49, %v1957_v34  ;;  %v3721_v45 = vrot.slane %v15064_v23, 6  ;;  %v3548_v49 = vsel %vm10892_vm2, %v3546_v30, %v3547_v25  ;;  %v3715_v34 = vrot.slane %v10946_v15, 4  ;;  %v15070_v25 = vld [vmem:[#allocation10_spill] sm:$0xff] }
 0x14a   : > { %2075 = vrot.lane.b32.xlu1 %v15066_v63, %s15038_s25  ;;  %2040 = vrot.lane.b32.xlu0 %v15067_v36, %s9031_s27  ;;  %v3543_v26 = vsel %vm10892_vm2, %v3541_v58, %v15068_v8  ;;  %v3720_v0 = vrot.slane %v10952_v18, 4  ;;  %v3740_v31 = vor.u32 %v3739_v61, %v3738_v42  ;;  %v3764_v23 = vrot.slane %v15058_v12, 6  ;;  %v15072_v61 = vld [vmem:[#allocation38_spill] sm:$0xff] }
 0x14b   : > { %v3765_v29 = vrot.slane %v15059_v60, 7  ;;  %v2275_v1 = vsel %vm2257_vm15, %v2242_v22, %v1992_v28  ;;  %v3744_v63 = vor.u32 %v3743_v6, %v3742_v39  ;;  %v15071_v30 = vshrl.u32 %v15070_v25, 16 }
 0x14c   : > { %v2062_v10 = vpop.permute.xlu1 %2061  ;;  %v10996_v58 = vpop.permute.xlu0 %2026  ;;  %v3748_v36 = vrot.slane %v15057_v48, 7  ;;  %v3723_v42 = vor.u32 %v3722_v14, %v3721_v45  ;;  %v3563_v12 = vrot.slane %v3562_v33, 4  ;;  %v3569_v60 = vrot.slane %v15072_v61, 5 }
 0x14d   : > { %15069 = vst [vmem:[#allocation26_spill] sm:$0xff] %v10996_v58  ;;  %v3747_v15 = vrot.slane %v15071_v30, 6  ;;  %v2308_v38 = vsel %vm2290_vm0, %v2275_v1, %v10996_v58  ;;  %v15073_v28 = vcombine.low %v10823_v56, %v10827_v11  ;;  %v15075_v39 = vcombine.low %v10831_v47, %v10839_v57  ;;  %v15083_v30 = vld [vmem:[#allocation43_spill] sm:$0xff] }
 0x14e   : > { %v2341_v48 = vsel %vm2323_vm1, %v2308_v38, %v2062_v10  ;;  %v3568_v6 = vrot.slane %v3567_v51, 4  ;;  %v3768_v22 = vrot.slane %v15062_v4, 6  ;;  %v3769_v45 = vrot.slane %v15061_v41, 7  ;;  %v15080_v51 = vld [vmem:[#allocation40_spill] sm:$0xff]  ;;  %v15082_v10 = vld [vmem:[#allocation42_spill] sm:$0xff] }
 0x14f   : > { %4132 = vrot.lane.b32.xlu1 %v15073_v28, %s9026_s16  ;;  %4082 = vrot.lane.b32.xlu0 %v15075_v39, %s15074_s14  ;;  %v11018_v14 = vcombine.low %v10910_v32, %v10914_v7  ;;  %v11021_v56 = vcombine.low %v10922_v44, %v3763_v62  ;;  %v3741_v11 = vrot.slane %v3740_v31, 4  ;;  %v3766_v33 = vor.u32 %v3765_v29, %v3764_v23 }
 0x150   : > { %7900 = vmatmul.mubr.msk.bf16.gmra.mrb[32].mxu1 %vm2422_vm3, %v2341_v48  ;;  %7804 = vmatmul.mubr.msk.bf16.gmra.mrb[52].mxu0 %vm962_vm9, %v10578_v9  ;;  %v1857_v47 = vpop.permute.xlu1 %1856  ;;  %v11025_v57 = vpop.permute.xlu0 %1776  ;;  %v11027_v4 = vcombine.low %v3554_v46, %v3559_v27  ;;  %v11029_v40 = vcombine.low %v3543_v26, %v3548_v49  ;;  %v3746_v5 = vrot.slane %v3744_v63, 4  ;;  %v3749_v32 = vor.u32 %v3748_v36, %v3747_v15  ;;  %v15077_v27 = vld [vmem:[#allocation34_spill] sm:$0xff] }
 0x151   : > { %15076 = vst [vmem:[#allocation72_spill] sm:$0xff] %v11025_v57  ;;  %2583 = vmatprep.mubr.bf16.mxu1 %v14976_v35  ;;  %1190 = vmatprep.mubr.bf16.mxu0 %v14976_v35  ;;  %v2106_v7 = vsel %vm962_vm9, %v10040_v52, %v11025_v57  ;;  %v3719_v9 = vsel %vm10806_vm5, %v3715_v34, %v10952_v18  ;;  %v15078_v18 = vshrl.u32 %v15077_v27, 16  ;;  %v3774_v26 = vrot.slane %v15072_v61, 7 }
 0x152   : > { %v3724_v44 = vsel %vm10806_vm5, %v3720_v0, %v3723_v42  ;;  %v3565_v62 = vsel %vm10892_vm2, %v3563_v12, %v3564_v19  ;;  %v3570_v52 = vsel %vm10892_vm2, %v3568_v6, %v3569_v60  ;;  %v3770_v46 = vor.u32 %v3769_v45, %v3768_v22  ;;  %v15079_v19 = vld [vmem:[#allocation39_spill] sm:$0xff] }
 0x153   : > { %4208 = vrot.lane.b32.xlu1 %v10888_v21, %s9028_s22  ;;  %4170 = vrot.lane.b32.xlu0 %v11018_v14, %s9025_s21  ;;  %v3773_v8 = vrot.slane %v15078_v18, 6  ;;  %v3745_v41 = vsel %vm10806_vm5, %v3741_v11, %v3744_v63  ;;  %v3767_v49 = vrot.slane %v3766_v33, 4  ;;  %v3777_v34 = vrot.slane %v15079_v19, 6  ;;  %v15088_v18 = vld [vmem:[#allocation47_spill] sm:$0xff] }
 0x154   : > { %v3778_v0 = vrot.slane %v15080_v51, 7  ;;  %v11058_v31 = vpop.permute.xlu1 %1923  ;;  %v2145_v23 = vsel %vm2125_vm11, %v2106_v7, %v1857_v47  ;;  %v1892_v29 = vpop.permute.xlu0 %1891  ;;  %v3750_v1 = vsel %vm10806_vm5, %v3746_v5, %v3749_v32  ;;  %v3781_v25 = vrot.slane %v15082_v10, 6  ;;  %v15084_v5 = vld [vmem:[#allocation41_spill] sm:$0xff] }
 0x155   : > { %15081 = vst [vmem:[#allocation28_spill] sm:$0xff] %v11058_v31  ;;  %v3782_v15 = vrot.slane %v15083_v30, 7  ;;  %v2178_v36 = vsel %vm2158_vm12, %v2145_v23, %v1892_v29  ;;  %v7990_v63 = vcombine.low %v3719_v9, %v3724_v44  ;;  %v3571_v38 = vrot.slane %v15079_v19, 4  ;;  %v15086_v9 = vld [vmem:[#allocation44_spill] sm:$0xff] }
 0x156   : > { %v3572_v42 = vrot.slane %v15080_v51, 5  ;;  %v3772_v12 = vrot.slane %v3770_v46, 4  ;;  %v3775_v61 = vor.u32 %v3774_v26, %v3773_v8  ;;  %v3575_v60 = vrot.slane %v15083_v30, 5  ;;  %v15090_v19 = vld [vmem:[#allocation48_spill] sm:$0xff] }
 0x157   : > { %4289 = vrot.lane.b32.xlu1 %v11021_v56, %s15038_s25  ;;  %4246 = vrot.lane.b32.xlu0 %v11027_v4, %s9027_s17  ;;  %v3577_v28 = vrot.slane %v15082_v10, 4  ;;  %v11074_v39 = vcombine.low %v3565_v62, %v3570_v52  ;;  %v11076_v48 = vcombine.low %v3745_v41, %v3750_v1  ;;  %v3771_v6 = vsel %vm10806_vm5, %v3767_v49, %v3770_v46  ;;  %v15087_v46 = vld [vmem:[#allocation46_spill] sm:$0xff]  ;;  %v15089_v41 = vld [vmem:[#allocation49_spill] sm:$0xff] }
 0x158   : > { %v3779_v22 = vor.u32 %v3778_v0, %v3777_v34  ;;  %7805 = vmatmul.mubr.msk.bf16.gmra.mrb[56].mxu0 %vm962_vm9, %v10689_v17  ;;  %v1994_v45 = vpop.permute.xlu1 %1993  ;;  %v2211_v11 = vsel %vm2191_vm13, %v2178_v36, %v11058_v31  ;;  %v1959_v33 = vpop.permute.xlu0 %1958  ;;  %v3783_v47 = vor.u32 %v3782_v15, %v3781_v25  ;;  %v15085_v32 = vshrl.u32 %v15084_v5, 16 }
 0x159   : > { %v3787_v44 = vrot.slane %v15086_v9, 7  ;;  %1200 = vmatprep.mubr.bf16.mxu0 %v14976_v35  ;;  %v2244_v62 = vsel %vm2224_vm14, %v2211_v11, %v1959_v33  ;;  %v3573_v52 = vor.u32 %v3572_v42, %v3571_v38  ;;  %v3582_v27 = vrot.slane %v15087_v46, 4 }
 0x15a   : > { %v3786_v7 = vrot.slane %v15085_v32, 6  ;;  %v3583_v17 = vrot.slane %v15088_v18, 5  ;;  %v3776_v8 = vsel %vm10806_vm5, %v3772_v12, %v3775_v61  ;;  %v3578_v26 = vor.u32 %v3577_v28, %v3575_v60 }
 0x15b   : > { %4172 = vrot.lane.b32.xlu1 %v11029_v40, %s9025_s21  ;;  %4134 = vrot.lane.b32.xlu0 %v7990_v63, %s9026_s16  ;;  %v3586_v49 = vrot.slane %v15089_v41, 5  ;;  %v3588_v34 = vrot.slane %v15090_v19, 4  ;;  %v3790_v51 = vrot.slane %v15087_v46, 6  ;;  %v3791_v0 = vrot.slane %v15088_v18, 7 }
 0x15c   : > { %v3794_v23 = vrot.slane %v15090_v19, 6  ;;  %v3795_v29 = vrot.slane %v15089_v41, 7  ;;  %v2277_v1 = vsel %vm2257_vm15, %v2244_v62, %v1994_v45  ;;  %v2064_v10 = vpop.permute.xlu1 %2063  ;;  %v11103_v25 = vpop.permute.xlu0 %2028  ;;  %v3780_v30 = vrot.slane %v3779_v22, 4  ;;  %v15097_v19 = vld [vmem:[#allocation54_spill] sm:$0xff] }
 0x15d   : > { %15091 = vst [vmem:[#allocation29_spill] sm:$0xff] %v11103_v25  ;;  %v3785_v15 = vrot.slane %v3783_v47, 4  ;;  %v3788_v36 = vor.u32 %v3787_v44, %v3786_v7  ;;  %v2310_v63 = vsel %vm2290_vm0, %v2277_v1, %v11103_v25  ;;  %v11107_v38 = vcombine.low %v3771_v6, %v3776_v8  ;;  %v15092_v6 = vld [vmem:[#allocation45_spill] sm:$0xff]  ;;  %v15094_v7 = vld [vmem:[#allocation50_spill] sm:$0xff]  ;;  %v15149_v25 = vld [vmem:[#allocation88_spill] sm:$0xff] }
 0x15e   : > { %v3574_v42 = vrot.slane %v3573_v52, 4  ;;  %v3584_v12 = vor.u32 %v3583_v17, %v3582_v27  ;;  %v2343_v61 = vsel %vm2323_vm1, %v2310_v63, %v2064_v10  ;;  %v3579_v28 = vrot.slane %v3578_v26, 4  ;;  %v15096_v26 = vld [vmem:[#allocation52_spill] sm:$0xff] }
 0x15f   : > { %4248 = vrot.lane.b32.xlu1 %v11074_v39, %s9027_s17  ;;  %4210 = vrot.lane.b32.xlu0 %v11076_v48, %s9028_s22  ;;  %v3580_v22 = vrot.slane %v15086_v9, 5  ;;  %v3589_v45 = vor.u32 %v3588_v34, %v3586_v49  ;;  %v3792_v11 = vor.u32 %v3791_v0, %v3790_v51  ;;  %v3796_v33 = vor.u32 %v3795_v29, %v3794_v23  ;;  %v15100_v10 = vld [vmem:[#allocation56_spill] sm:$0xff] }
 0x160   : > { %7901 = vmatmul.mubr.msk.bf16.gmra.mrb[36].mxu1 %vm2422_vm3, %v2343_v61  ;;  %v15093_v5 = vshrl.u32 %v15092_v6, 16  ;;  %v3800_v44 = vrot.slane %v15094_v7, 7  ;;  %7806 = vmatmul.mubr.msk.bf16.gmra.mrb[60].mxu0 %vm962_vm9, %v10732_v20  ;;  %v1859_v62 = vpop.permute.xlu1 %1858  ;;  %v11121_v52 = vpop.permute.xlu0 %1778  ;;  %v3784_v46 = vsel %vm10806_vm5, %v3780_v30, %v3783_v47  ;;  %v3789_v9 = vsel %vm10806_vm5, %v3785_v15, %v3788_v36 }
 0x161   : > { %15095 = vst [vmem:[#allocation30_spill] sm:$0xff] %v11121_v52  ;;  %2593 = vmatprep.mubr.bf16.mxu1 %v14976_v35  ;;  %v2109_v27 = vsel %vm962_vm9, %v10142_v3, %v11121_v52  ;;  %v3576_v18 = vsel %vm10892_vm2, %v3574_v42, %v3575_v60  ;;  %v3585_v17 = vrot.slane %v3584_v12, 4  ;;  %v3591_v20 = vrot.slane %v15094_v7, 5 }
 0x162   : > { %v3799_v32 = vrot.slane %v15093_v5, 6  ;;  %v3581_v47 = vsel %vm10892_vm2, %v3579_v28, %v3580_v22  ;;  %v3590_v8 = vrot.slane %v3589_v45, 4  ;;  %v3803_v41 = vrot.slane %v15096_v26, 6 }
 0x163   : > { %4136 = vrot.lane.b32.xlu1 %v10888_v21, %s9026_s16  ;;  %4291 = vrot.lane.b32.xlu0 %v11107_v38, %s15038_s25  ;;  %v3804_v3 = vrot.slane %v15097_v19, 7  ;;  %v3793_v34 = vrot.slane %v3792_v11, 4  ;;  %v3798_v51 = vrot.slane %v3796_v33, 4  ;;  %v2147_v23 = vsel %vm2125_vm11, %v2109_v27, %v1859_v62  ;;  %v15099_v21 = vld [vmem:[#allocation55_spill] sm:$0xff]  ;;  %v15101_v11 = vld [vmem:[#allocation53_spill] sm:$0xff] }
 0x164   : > { %v3801_v60 = vor.u32 %v3800_v44, %v3799_v32  ;;  %v11142_v0 = vpop.permute.xlu1 %1925  ;;  %v1894_v29 = vpop.permute.xlu0 %1893  ;;  %v3807_v1 = vrot.slane %v15099_v21, 6  ;;  %v3808_v30 = vrot.slane %v15100_v10, 7  ;;  %v11148_v36 = vcombine.low %v3784_v46, %v3789_v9  ;;  %v15103_v32 = vld [vmem:[#allocation57_spill] sm:$0xff] }
 0x165   : > { %15098 = vst [vmem:[#allocation31_spill] sm:$0xff] %v11142_v0  ;;  %v2180_v15 = vsel %vm2158_vm12, %v2147_v23, %v1894_v29  ;;  %v11150_v63 = vcombine.low %v3576_v18, %v3581_v47  ;;  %v3587_v42 = vsel %vm10892_vm2, %v3585_v17, %v3586_v49  ;;  %v3592_v12 = vsel %vm10892_vm2, %v3590_v8, %v3591_v20  ;;  %v15106_v23 = vld [vmem:[#allocation59_spill] sm:$0xff] }
 0x166   : > { %v3805_v61 = vor.u32 %v3804_v3, %v3803_v41  ;;  %v3593_v28 = vrot.slane %v15096_v26, 4  ;;  %v3594_v22 = vrot.slane %v15097_v19, 5  ;;  %v3797_v45 = vsel %vm10806_vm5, %v3793_v34, %v3796_v33 }
 0x167   : > { %4212 = vrot.lane.b32.xlu1 %v11021_v56, %s9028_s22  ;;  %4174 = vrot.lane.b32.xlu0 %v11027_v4, %s9025_s21  ;;  %v3802_v49 = vsel %vm10806_vm5, %v3798_v51, %v3801_v60  ;;  %v15102_v6 = vshrl.u32 %v15101_v11, 16  ;;  %v3813_v7 = vrot.slane %v15103_v32, 7  ;;  %v2213_v62 = vsel %vm2191_vm13, %v2180_v15, %v11142_v0 }
 0x168   : > { %v1996_v44 = vpop.permute.xlu1 %1995  ;;  %v1961_v46 = vpop.permute.xlu0 %1960  ;;  %v3809_v9 = vor.u32 %v3808_v30, %v3807_v1  ;;  %v3597_v27 = vrot.slane %v15100_v10, 5  ;;  %v3599_v18 = vrot.slane %v15099_v21, 4  ;;  %v11178_v17 = vcombine.low %v3587_v42, %v3592_v12  ;;  %v15107_v1 = vld [vmem:[#allocation60_spill] sm:$0xff]  ;;  %v15108_v30 = vld [vmem:[#allocation62_spill] sm:$0xff]  ;;  %v15109_v42 = vld [vmem:[#allocation61_spill] sm:$0xff] }
 0x169   : > { %v3812_v5 = vrot.slane %v15102_v6, 6  ;;  %v2246_v33 = vsel %vm2224_vm14, %v2213_v62, %v1961_v46  ;;  %v3595_v20 = vor.u32 %v3594_v22, %v3593_v28  ;;  %v11180_v47 = vcombine.low %v3797_v45, %v3802_v49  ;;  %v15110_v6 = vld [vmem:[#allocation67_spill] sm:$0xff] }
 0x16a   : > { %15104 = vst [vmem:[#allocation27_spill] sm:$0xff] %v11178_v17  ;;  %v3806_v8 = vrot.slane %v3805_v61, 4  ;;  %v3602_v41 = vrot.slane %v15103_v32, 5  ;;  %v2279_v19 = vsel %vm2257_vm15, %v2246_v33, %v1996_v44  ;;  %v3811_v51 = vrot.slane %v3809_v9, 4  ;;  %v15111_v32 = vld [vmem:[#allocation68_spill] sm:$0xff] }
 0x16b   : > { %4293 = vrot.lane.b32.xlu1 %v11148_v36, %s15038_s25  ;;  %4250 = vrot.lane.b32.xlu0 %v11150_v63, %s9027_s17  ;;  %v3814_v26 = vor.u32 %v3813_v7, %v3812_v5  ;;  %v3600_v60 = vor.u32 %v3599_v18, %v3597_v27  ;;  %v3604_v29 = vrot.slane %v15106_v23, 4  ;;  %v3605_v10 = vrot.slane %v15107_v1, 5  ;;  %v15113_v33 = vld [vmem:[#allocation64_spill] sm:$0xff] }
 0x16c   : > { %v2066_v3 = vpop.permute.xlu1 %2065  ;;  %v11184_v34 = vpop.permute.xlu0 %2030  ;;  %v3608_v15 = vrot.slane %v15108_v30, 5  ;;  %v3610_v12 = vrot.slane %v15109_v42, 4  ;;  %v3596_v28 = vrot.slane %v3595_v20, 4  ;;  %v3816_v22 = vrot.slane %v15106_v23, 6  ;;  %v15114_v23 = vld [vmem:[#allocation69_spill] sm:$0xff] }
 0x16d   : > { %15105 = vst [vmem:[#allocation32_spill] sm:$0xff] %v11184_v34  ;;  %v2312_v21 = vsel %vm2290_vm0, %v2279_v19, %v11184_v34  ;;  %v3817_v45 = vrot.slane %v15107_v1, 7  ;;  %v3820_v49 = vrot.slane %v15109_v42, 6  ;;  %v3821_v11 = vrot.slane %v15108_v30, 7  ;;  %v15115_v1 = vld [vmem:[#allocation70_spill] sm:$0xff] }
 0x16e   : > { %v2345_v61 = vsel %vm2323_vm1, %v2312_v21, %v2066_v3  ;;  %v3829_v5 = vrot.slane %v15110_v6, 6  ;;  %v3830_v7 = vrot.slane %v15111_v32, 7  ;;  %v3815_v46 = vsel %vm10806_vm5, %v3811_v51, %v3814_v26  ;;  %v15116_v51 = vld [vmem:[#allocation58_spill] sm:$0xff] }
 0x16f   : > { %4176 = vrot.lane.b32.xlu1 %v11074_v39, %s9025_s21  ;;  %4138 = vrot.lane.b32.xlu0 %v11076_v48, %s9026_s16  ;;  %v3810_v48 = vsel %vm10806_vm5, %v3806_v8, %v3809_v9  ;;  %v3601_v18 = vrot.slane %v3600_v60, 4  ;;  %v3613_v20 = vrot.slane %v15113_v33, 5  ;;  %v3606_v3 = vor.u32 %v3605_v10, %v3604_v29 }
 0x170   : > { %7902 = vmatmul.mubr.msk.bf16.gmra.mrb[40].mxu1 %vm2422_vm3, %v2345_v61  ;;  %v1861_v44 = vpop.permute.xlu1 %1860  ;;  %v11204_v62 = vpop.permute.xlu0 %1780  ;;  %v3833_v21 = vrot.slane %v15114_v23, 6  ;;  %v3834_v42 = vrot.slane %v15115_v1, 7  ;;  %v3598_v9 = vsel %vm10892_vm2, %v3596_v28, %v3597_v27  ;;  %v3611_v8 = vor.u32 %v3610_v12, %v3608_v15  ;;  %v15121_v27 = vld [vmem:[#allocation71_spill] sm:$0xff] }
 0x171   : > { %15112 = vst [vmem:[#allocation16_spill] sm:$0xff] %v11204_v62  ;;  %2603 = vmatprep.mubr.bf16.mxu1 %v14976_v35  ;;  %v2112_v19 = vsel %vm962_vm9, %v10275_v2, %v11204_v62  ;;  %v3818_v26 = vor.u32 %v3817_v45, %v3816_v22  ;;  %v15117_v2 = vshrl.u32 %v15116_v51, 16  ;;  %v3822_v29 = vor.u32 %v3821_v11, %v3820_v49  ;;  %v15118_v62 = vld [vmem:[#allocation66_spill] sm:$0xff]  ;;  %v8022_v45 = vld [vmem:[%s14504_s3 + $0x88] sm:$0xff] }
 0x172   : > { %v3826_v10 = vrot.slane %v15113_v33, 7  ;;  %v3831_v61 = vor.u32 %v3830_v7, %v3829_v5  ;;  %v15119_v52 = vshrl.u32 %v15118_v62, 16  ;;  %v2149_v57 = vsel %vm2125_vm11, %v2112_v19, %v1861_v44 }
 0x173   : > { %4252 = vrot.lane.b32.xlu1 %v11178_v17, %s9027_s17  ;;  %4214 = vrot.lane.b32.xlu0 %v11107_v38, %s9028_s22  ;;  %v3825_v60 = vrot.slane %v15117_v2, 6  ;;  %v3839_v28 = vrot.slane %v15121_v27, 7  ;;  %v3615_v12 = vrot.slane %v15110_v6, 4  ;;  %v3616_v22 = vrot.slane %v15111_v32, 5 }
 0x174   : > { %v3838_v0 = vrot.slane %v15119_v52, 6  ;;  %v11230_v34 = vpop.permute.xlu1 %1927  ;;  %v1896_v31 = vpop.permute.xlu0 %1895  ;;  %v3603_v52 = vsel %vm10892_vm2, %v3601_v18, %v3602_v41  ;;  %v3607_v11 = vrot.slane %v3606_v3, 4  ;;  %v3835_v5 = vor.u32 %v3834_v42, %v3833_v21 }
 0x175   : > { %15120 = vst [vmem:[#allocation17_spill] sm:$0xff] %v11230_v34  ;;  %v2182_v49 = vsel %vm2158_vm12, %v2149_v57, %v1896_v31  ;;  %v3612_v6 = vrot.slane %v3611_v8, 4  ;;  %v3819_v7 = vrot.slane %v3818_v26, 4  ;;  %v3619_v32 = vrot.slane %v15115_v1, 5  ;;  %v15122_v26 = vld [vmem:[#allocation75_spill] sm:$0xff]  ;;  %v15123_v1 = vld [vmem:[#allocation76_spill] sm:$0xff] }
 0x176   : > { %v3621_v44 = vrot.slane %v15114_v23, 4  ;;  %v3824_v62 = vrot.slane %v3822_v29, 4  ;;  %v3827_v33 = vor.u32 %v3826_v10, %v3825_v60  ;;  %v3832_v57 = vrot.slane %v3831_v61, 4 }
 0x177   : > { %4140 = vrot.lane.b32.xlu1 %v11021_v56, %s9026_s16  ;;  %4295 = vrot.lane.b32.xlu0 %v11180_v47, %s15038_s25  ;;  %v8033_v31 = vcombine.high %v8022_v45, %v8022_v45  ;;  %v2215_v41 = vsel %vm2191_vm13, %v2182_v49, %v11230_v34  ;;  %v3840_v3 = vor.u32 %v3839_v28, %v3838_v0  ;;  %v3837_v8 = vrot.slane %v3835_v5, 4 }
 0x178   : > { %v1998_v19 = vpop.permute.xlu1 %1997  ;;  %v1963_v18 = vpop.permute.xlu0 %1962  ;;  %v3617_v56 = vor.u32 %v3616_v22, %v3615_v12  ;;  %v8032_v21 = vcombine.low %v8022_v45, %v8022_v45  ;;  %v3626_v51 = vrot.slane %v15122_v26, 4  ;;  %v3627_v2 = vrot.slane %v15123_v1, 5 }
 0x179   : > { %v2248_v42 = vsel %vm2224_vm14, %v2215_v41, %v1963_v18  ;;  %8034 = vmatprep.subr.msk.bf16.mxu1 %vm1011_vm10, %v8033_v31  ;;  %v11258_v23 = vcombine.low %v3810_v48, %v3815_v46  ;;  %v3622_v0 = vor.u32 %v3621_v44, %v3619_v32  ;;  %v11261_v10 = vcombine.low %v3598_v9, %v3603_v52  ;;  %v15130_v41 = vld [vmem:[#allocation79_spill] sm:$0xff] }
 0x17a   : > { %v4648_v60 = vsel %vm1011_vm10, %v8032_v21, 0  ;;  %v3609_v61 = vsel %vm10892_vm2, %v3607_v11, %v3608_v15  ;;  %v3614_v28 = vsel %vm10892_vm2, %v3612_v6, %v3613_v20  ;;  %v2281_v12 = vsel %vm2257_vm15, %v2248_v42, %v1998_v19 }
 0x17b   : > { %4216 = vrot.lane.b32.xlu1 %v11148_v36, %s9028_s22  ;;  %4178 = vrot.lane.b32.xlu0 %v11150_v63, %s9025_s21  ;;  %15124 = vst [vmem:[#allocation19_spill] sm:$0xff] %v11261_v10  ;;  %v3823_v48 = vsel %vm10806_vm5, %v3819_v7, %v3822_v29  ;;  %v3828_v46 = vsel %vm10806_vm5, %v3824_v62, %v3827_v33  ;;  %v3618_v9 = vrot.slane %v3617_v56, 4  ;;  %v3623_v52 = vrot.slane %v3622_v0, 4  ;;  %v15127_v7 = vld [vmem:[#allocation78_spill] sm:$0xff]  ;;  %v15128_v62 = vld [vmem:[#allocation77_spill] sm:$0xff] }
 0x17c   : > { %4662 = vmatpush1.bf16.msra.mxu1 %v4648_v60  ;;  %v2068_v22 = vpop.permute.xlu1 %2067  ;;  %v11270_v45 = vpop.permute.xlu0 %2032  ;;  %v3836_v15 = vsel %vm10806_vm5, %v3832_v57, %v3835_v5  ;;  %v3841_v20 = vsel %vm10806_vm5, %v3837_v8, %v3840_v3  ;;  %v3628_v49 = vor.u32 %v3627_v2, %v3626_v51  ;;  %v3624_v11 = vrot.slane %v15121_v27, 5  ;;  %v15131_v2 = vld [vmem:[#allocation99_spill] sm:$0xff] }
 0x17d   : > { %15125 = vst [vmem:[#allocation18_spill] sm:$0xff] %v11270_v45  ;;  %v2314_v30 = vsel %vm2290_vm0, %v2281_v12, %v11270_v45  ;;  %v11289_v6 = vcombine.low %v3609_v61, %v3614_v28  ;;  %v11291_v5 = vcombine.low %v3823_v48, %v3828_v46  ;;  %v3630_v44 = vrot.slane %v15127_v7, 5  ;;  %v15133_v61 = vld [vmem:[#allocation100_spill] sm:$0xff] }
 0x17e   : > { %v2347_v29 = vsel %vm2323_vm1, %v2314_v30, %v2068_v22  ;;  %v3632_v33 = vrot.slane %v15128_v62, 4  ;;  %v11298_v19 = vcombine.low %v3836_v15, %v3841_v20  ;;  %v3620_v27 = vsel %vm10892_vm2, %v3618_v9, %v3619_v32  ;;  %v15134_v12 = vld [vmem:[#allocation80_spill] sm:$0xff]  ;;  %v15136_v9 = vld [vmem:[#allocation81_spill] sm:$0xff] }
 0x17f   : > { %4297 = vrot.lane.b32.xlu1 %v11258_v23, %s15038_s25  ;;  %4254 = vrot.lane.b32.xlu0 %v11261_v10, %s9027_s17  ;;  %15126 = vst [vmem:[#allocation82_spill] sm:$0xff] %v11289_v6  ;;  %v3842_v3 = vrot.slane %v15122_v26, 6  ;;  %v3629_v21 = vrot.slane %v3628_v49, 4  ;;  %v3843_v42 = vrot.slane %v15123_v1, 7  ;;  %v3846_v8 = vrot.slane %v15128_v62, 6  ;;  %v15132_v1 = vld [vmem:[#allocation105_spill] sm:$0xff] }
 0x180   : > { %7903 = vmatmul.mubr.msk.bf16.gmra.mrb[44].mxu1 %vm2422_vm3, %v2347_v29  ;;  %v1863_v57 = vpop.permute.xlu1 %1862  ;;  %v11295_v31 = vpop.permute.xlu0 %1782  ;;  %v3625_v32 = vsel %vm10892_vm2, %v3623_v52, %v3624_v11  ;;  %v3847_v26 = vrot.slane %v15127_v7, 7  ;;  %v3670_v51 = vrot.slane %v10125_v13, 4  ;;  %v11318_v0 = vor.u32 %v3632_v33, %v3630_v44  ;;  %v15137_v15 = vld [vmem:[#allocation84_spill] sm:$0xff]  ;;  %v15138_v49 = vld [vmem:[#allocation85_spill] sm:$0xff]  ;;  %v15139_v62 = vld [vmem:[#allocation74_spill] sm:$0xff] }
 0x181   : > { %15129 = vst [vmem:[#allocation21_spill] sm:$0xff] %v11295_v31  ;;  %2613 = vmatprep.mubr.bf16.mxu1 %v14976_v35  ;;  %v2115_v56 = vsel %vm962_vm9, %v10407_v53, %v11295_v31  ;;  %v3671_v53 = vrot.slane %v15131_v2, 5  ;;  %v3676_v28 = vrot.slane %v15133_v61, 4  ;;  %v3855_v22 = vrot.slane %v15134_v12, 6 }
 0x182   : > { %v3856_v30 = vrot.slane %v15136_v9, 7  ;;  %v3859_v20 = vrot.slane %v15137_v15, 6  ;;  %v3860_v29 = vrot.slane %v15138_v49, 7  ;;  %v11330_v11 = vcombine.low %v3620_v27, %v3625_v32 }
 0x183   : > { %4180 = vrot.lane.b32.xlu1 %v11178_v17, %s9025_s21  ;;  %4142 = vrot.lane.b32.xlu0 %v11107_v38, %s9026_s16  ;;  %v2151_v38 = vsel %vm2125_vm11, %v2115_v56, %v1863_v57  ;;  %v3844_v7 = vor.u32 %v3843_v42, %v3842_v3  ;;  %v15140_v33 = vshrl.u32 %v15139_v62, 16  ;;  %v11340_v57 = vsel %vm10892_vm2, %v3629_v21, %v3630_v44  ;;  %v15144_v42 = vld [vmem:[#allocation86_spill] sm:$0xff] }
 0x184   : > { %v11323_v48 = vpop.permute.xlu1 %1929  ;;  %v1898_v46 = vpop.permute.xlu0 %1897  ;;  %v3848_v56 = vor.u32 %v3847_v26, %v3846_v8  ;;  %v3852_v60 = vrot.slane %v15130_v41, 7  ;;  %v3637_v27 = vrot.slane %v15134_v12, 4  ;;  %v3638_v3 = vrot.slane %v15136_v9, 5  ;;  %v15142_v12 = vld [vmem:[#allocation83_spill] sm:$0xff] }
 0x185   : > { %15135 = vst [vmem:[#allocation33_spill] sm:$0xff] %v11323_v48  ;;  %v2184_v52 = vsel %vm2158_vm12, %v2151_v38, %v1898_v46  ;;  %v3851_v18 = vrot.slane %v15140_v33, 6  ;;  %v3672_v38 = vor.u32 %v3671_v53, %v3670_v51  ;;  %v3643_v32 = vrot.slane %v15137_v15, 4 }
 0x186   : > { %v2217_v62 = vsel %vm2191_vm13, %v2184_v52, %v11323_v48  ;;  %v15141_v44 = vrot.slane %v15132_v1, 5  ;;  %v3857_v8 = vor.u32 %v3856_v30, %v3855_v22  ;;  %v3861_v26 = vor.u32 %v3860_v29, %v3859_v20  ;;  %v15145_v20 = vld [vmem:[#allocation106_spill] sm:$0xff] }
 0x187   : > { %4256 = vrot.lane.b32.xlu1 %v11289_v6, %s9027_s17  ;;  %4218 = vrot.lane.b32.xlu0 %v11180_v47, %s9028_s22  ;;  %v3634_v53 = vrot.slane %v11318_v0, 4  ;;  %v15143_v9 = vshrl.u32 %v15142_v12, 16  ;;  %v3865_v34 = vrot.slane %v15144_v42, 7  ;;  %v3845_v15 = vrot.slane %v3844_v7, 4 }
 0x188   : > { %v2000_v46 = vpop.permute.xlu1 %1999  ;;  %v1965_v33 = vpop.permute.xlu0 %1964  ;;  %v3677_v21 = vor.u32 %v3676_v28, %v15141_v44  ;;  %v3850_v52 = vrot.slane %v3848_v56, 4  ;;  %v3853_v28 = vor.u32 %v3852_v60, %v3851_v18  ;;  %v899_v22 = vlaneseq  ;;  %v15148_v60 = vld [vmem:[#allocation87_spill] sm:$0xff] }
 0x189   : > { %v2250_v51 = vsel %vm2224_vm14, %v2217_v62, %v1965_v33  ;;  %v3864_v31 = vrot.slane %v15143_v9, 6  ;;  %v3673_v30 = vrot.slane %v3672_v38, 4  ;;  %v3679_v29 = vrot.slane %v15145_v20, 5 }
 0x18a   : > { %v3639_v62 = vor.u32 %v3638_v3, %v3637_v27  ;;  %v15146_v0 = vrot.slane %v15138_v49, 5  ;;  %v2283_v44 = vsel %vm2257_vm15, %v2250_v51, %v2000_v46  ;;  %v3858_v48 = vrot.slane %v3857_v8, 4 }
 0x18b   : > { %4144 = vrot.lane.b32.xlu1 %v11148_v36, %s9026_s16  ;;  %4299 = vrot.lane.b32.xlu0 %v11291_v5, %s15038_s25  ;;  %v3678_v36 = vrot.slane %v3677_v21, 4  ;;  %v3863_v45 = vrot.slane %v3861_v26, 4  ;;  %v3866_v18 = vor.u32 %v3865_v34, %v3864_v31  ;;  %v3648_v38 = vrot.slane %v15148_v60, 4  ;;  %v15151_v21 = vld [vmem:[#allocation89_spill] sm:$0xff] }
 0x18c   : > { %v3644_v33 = vor.u32 %v3643_v32, %v15146_v0  ;;  %v2070_v12 = vpop.permute.xlu1 %2069  ;;  %v11364_v9 = vpop.permute.xlu0 %2034  ;;  %v3649_v54 = vrot.slane %v15149_v25, 5  ;;  %v900_v3 = vshrl.u32 %v899_v22, 7  ;;  %v15150_v32 = vld [vmem:[#allocation90_spill] sm:$0xff]  ;;  %v3654_v8 = vrot.slane %v15151_v21, 4 }
 0x18d   : > { %15147 = vst [vmem:[#allocation35_spill] sm:$0xff] %v11364_v9  ;;  %v2316_v7 = vsel %vm2290_vm0, %v2283_v44, %v11364_v9  ;;  %v14821_v46 = vrot.slane %v15150_v32, 5  ;;  %v15152_v34 = vrot.slane %v15130_v41, 5  ;;  %v3640_v51 = vrot.slane %v3639_v62, 4 }
 0x18e   : > { %v2349_v27 = vsel %vm2323_vm1, %v2316_v7, %v2070_v12  ;;  %v3645_v0 = vrot.slane %v3644_v33, 4  ;;  %v3646_v44 = vrot.slane %v15144_v42, 5  ;;  %v3849_v22 = vsel %vm10806_vm5, %v3845_v15, %v3848_v56  ;;  %v8635_v42 = vld [vmem:[%s14504_s3 + $0x94] ss:$8 sps:$4 sm:$0xff]  }
 0x18f   : > { %4220 = vrot.lane.b32.xlu1 %v11258_v23, %s9028_s22  ;;  %4182 = vrot.lane.b32.xlu0 %v11261_v10, %s9025_s21  ;;  %v3636_v31 = vsel %vm10892_vm2, %v3634_v53, %v15152_v34  ;;  %v3854_v12 = vsel %vm10806_vm5, %v3850_v52, %v3853_v28  ;;  %v15154_v41 = vrot.slane %v15132_v1, 5  ;;  %v3680_v62 = vsel %vm10892_vm2, %v3678_v36, %v3679_v29  ;;  %v11428_v36 = vld [vmem:[%s14505_s4] sm:$0x3] }
 0x190   : > { %7904 = vmatmul.mubr.msk.bf16.gmra.mrb[48].mxu1 %vm2422_vm3, %v2349_v27  ;;  %v1865_v9 = vpop.permute.xlu1 %1864  ;;  %v11383_v10 = vpop.permute.xlu0 %1784  ;;  %v3862_v56 = vsel %vm10806_vm5, %v3858_v48, %v3861_v26  ;;  %v3867_v15 = vsel %vm10806_vm5, %v3863_v45, %v3866_v18  ;;  %v3650_v52 = vor.u32 %v3649_v54, %v3648_v38  ;;  %v11410_v28 = vsub.s32 0, %v900_v3  ;;  %6251 = vmatprep.subr.bf16.mxu1 %v8635_v42  ;;  %v15159_v34 = vld [vmem:[#allocation91_spill] sm:$0xff] }
 0x191   : > { %15153 = vst [vmem:[#allocation37_spill] sm:$0xff] %v11383_v10  ;;  %2623 = vmatprep.mubr.bf16.mxu1 %v14976_v35  ;;  %v3675_v53 = vsel %vm10892_vm2, %v3673_v30, %v15154_v41  ;;  %v2118_v33 = vsel %vm962_vm9, %v10485_v43, %v11383_v10  ;;  %v3655_v30 = vor.u32 %v3654_v8, %v14821_v46  ;;  %v3868_v43 = vrot.slane %v15148_v60, 6 }
 0x192   : > { %15155 = vst [vmem:[#allocation36_spill] sm:$0xff] %v11410_v28  ;;  %v3869_v29 = vrot.slane %v15149_v25, 7  ;;  %v11417_v48 = vcombine.low %v11340_v57, %v3636_v31  ;;  %v15156_v54 = vrot.slane %v15138_v49, 5  ;;  %v3647_v26 = vsel %vm10892_vm2, %v3645_v0, %v3646_v44 }
 0x193   : > { %4301 = vrot.lane.b32.xlu1 %v11298_v19, %s15038_s25  ;;  %4258 = vrot.lane.b32.xlu0 %v11330_v11, %s9027_s17  ;;  %v2153_v25 = vsel %vm2125_vm11, %v2118_v33, %v1865_v9  ;;  %v11433_v18 = vcombine.low %v3849_v22, %v3854_v12  ;;  %v11435_v49 = vcombine.low %v3675_v53, %v3680_v62  ;;  %v11440_v27 = vsub.s32 1, %v900_v3  ;;  %v15160_v12 = vld [vmem:[#allocation92_spill] sm:$0xff]  ;;  %v15161_v53 = vld [vmem:[#allocation94_spill] sm:$0xff] }
 0x194   : > { %v3642_v45 = vsel %vm10892_vm2, %v3640_v51, %v15156_v54  ;;  %v11430_v7 = vpop.permute.xlu1 %1931  ;;  %v1900_v57 = vpop.permute.xlu0 %1899  ;;  %v11437_v60 = vcombine.low %v3862_v56, %v3867_v15  ;;  %v3651_v8 = vrot.slane %v3650_v52, 4  ;;  %v3657_v31 = vrot.slane %v15159_v34, 5  ;;  %v15163_v52 = vld [vmem:[#allocation95_spill] sm:$0xff] }
 0x195   : > { %15157 = vst [vmem:[#allocation9_spill] sm:$0xff] %v11430_v7  ;;  %v2186_v38 = vsel %vm2158_vm12, %v2153_v25, %v1900_v57  ;;  %15158 = vst [vmem:[#allocation15_spill] sm:$0xff] %v11440_v27  ;;  %v11447_v9 = vcombine.low %v3642_v45, %v3647_v26  ;;  %v11451_v51 = vrot.slane %v11428_v36, %v11410_v28  ;;  %v3656_v0 = vrot.slane %v3655_v30, 4 }
 0x196   : > { %v11453_v44 = vor.u32 %v3869_v29, %v3868_v43  ;;  %v3872_v3 = vrot.slane %v15151_v21, 6  ;;  %v3873_v22 = vrot.slane %v15150_v32, 7  ;;  %v3881_v41 = vrot.slane %v15160_v12, 6  ;;  %v15164_v43 = vld [vmem:[#allocation97_spill] sm:$0xff] }
 0x197   : > { %4184 = vrot.lane.b32.xlu1 %v11289_v6, %s9025_s21  ;;  %4146 = vrot.lane.b32.xlu0 %v11180_v47, %s9026_s16  ;;  %v3882_v62 = vrot.slane %v15161_v53, 7  ;;  %v2219_v47 = vsel %vm2191_vm13, %v2186_v38, %v11430_v7  ;;  %v15162_v56 = vshrl.u32 %v9993_v24, 16  ;;  %v3885_v30 = vrot.slane %v15163_v52, 6  ;;  %v15168_v6 = vld [vmem:[#allocation93_spill] sm:$0xff] }
 0x198   : > { %v2002_v42 = vpop.permute.xlu1 %2001  ;;  %v1967_v33 = vpop.permute.xlu0 %1966  ;;  %v3886_v29 = vrot.slane %v15164_v43, 7  ;;  %v3878_v54 = vrot.slane %v15159_v34, 7  ;;  %v3659_v45 = vrot.slane %v15160_v12, 4  ;;  %v3660_v26 = vrot.slane %v15161_v53, 5 }
 0x199   : > { %v3877_v15 = vrot.slane %v15162_v56, 6  ;;  %v2252_v21 = vsel %vm2224_vm14, %v2219_v47, %v1967_v33  ;;  %v3663_v24 = vrot.slane %v15164_v43, 5  ;;  %v3665_v25 = vrot.slane %v15163_v52, 4  ;;  %v15165_v33 = vld [vmem:[#allocation140_spill] sm:$0xff]  ;;  %v15166_v56 = vld [vmem:[#allocation139_spill] sm:$0xff]  ;;  %v15170_v52 = vld [vmem:[#allocation98_spill] sm:$0xff] }
 0x19a   : > { %v3504_v57 = vrot.slane %v10718_v50, 5  ;;  %v3508_v38 = vrot.slane %v10720_v37, 4  ;;  %v3874_v47 = vor.u32 %v3873_v22, %v3872_v3  ;;  %v3883_v34 = vor.u32 %v3882_v62, %v3881_v41 }
 0x19b   : > { %4260 = vrot.lane.b32.xlu1 %v11417_v48, %s9027_s17  ;;  %4222 = vrot.lane.b32.xlu0 %v11291_v5, %s9028_s22  ;;  %v3498_v12 = vrot.slane %v15165_v33, 5  ;;  %v3495_v53 = vrot.slane %v15166_v56, 4  ;;  %v2285_v46 = vsel %vm2257_vm15, %v2252_v21, %v2002_v42  ;;  %v3887_v28 = vor.u32 %v3886_v29, %v3885_v30 }
 0x19c   : > { %v2072_v10 = vpop.permute.xlu1 %2071  ;;  %v11480_v7 = vpop.permute.xlu0 %2036  ;;  %v15169_v43 = vshrl.u32 %v15168_v6, 16  ;;  %v3891_v17 = vrot.slane %v15170_v52, 7  ;;  %v15171_v3 = vrot.slane %v15150_v32, 5  ;;  %v3658_v41 = vsel %vm10892_vm2, %v3656_v0, %v3657_v31 }
 0x19d   : > { %15167 = vst [vmem:[#allocation10_spill] sm:$0xff] %v11480_v7  ;;  %v2318_v37 = vsel %vm2290_vm0, %v2285_v46, %v11480_v7  ;;  %v3661_v62 = vor.u32 %v3660_v26, %v3659_v45  ;;  %v3871_v42 = vrot.slane %v11453_v44, 4  ;;  %v3666_v46 = vor.u32 %v3665_v25, %v3663_v24 }
 0x19e   : > { %v3890_v58 = vrot.slane %v15169_v43, 6  ;;  %v3653_v22 = vsel %vm10892_vm2, %v3651_v8, %v15171_v3  ;;  %v2351_v6 = vsel %vm2323_vm1, %v2318_v37, %v2072_v10  ;;  %v3509_v32 = vor.u32 %v3508_v38, %v3504_v57  ;;  %v15174_v38 = vld [vmem:[#allocation141_spill] sm:$0xff] }
 0x19f   : > { %4148 = vrot.lane.b32.xlu1 %v11258_v23, %s9026_s16  ;;  %4303 = vrot.lane.b32.xlu0 %v11433_v18, %s15038_s25  ;;  %v3879_v8 = vor.u32 %v3878_v54, %v3877_v15  ;;  %v3499_v30 = vor.u32 %v3498_v12, %v3495_v53  ;;  %v3894_v31 = vrot.slane %v10125_v13, 6  ;;  %v3895_v0 = vrot.slane %v15131_v2, 7  ;;  %v15173_v2 = vld [vmem:[#allocation51_spill] sm:$0xff]  ;;  %v15176_v53 = vld [vmem:[#allocation12_spill] sm:$0xff] }
 0x1a0   : > { %7905 = vmatmul.mubr.msk.bf16.gmra.mrb[52].mxu1 %vm2422_vm3, %v2351_v6  ;;  %v1867_v23 = vpop.permute.xlu1 %1866  ;;  %v11504_v29 = vpop.permute.xlu0 %1786  ;;  %v3876_v10 = vrot.slane %v3874_v47, 4  ;;  %v3884_v21 = vrot.slane %v3883_v34, 4  ;;  %v3889_v44 = vrot.slane %v3887_v28, 4  ;;  %v3892_v45 = vor.u32 %v3891_v17, %v3890_v58  ;;  %v15175_v12 = vld [vmem:[#allocation11_spill] sm:$0xff] }
 0x1a1   : > { %15172 = vst [vmem:[#allocation38_spill] sm:$0xff] %v11504_v29  ;;  %2633 = vmatprep.mubr.bf16.mxu1 %v14976_v35  ;;  %v11509_v26 = vrot.slane %v11428_v36, %v11440_v27  ;;  %v11511_v25 = vcombine.low %v3653_v22, %v3658_v41  ;;  %v3662_v15 = vrot.slane %v3661_v62, 4  ;;  %v3668_v13 = vrot.slane %v15170_v52, 5 }
 0x1a2   : > { %v2121_v54 = vsel %vm962_vm9, %v15173_v2, %v11504_v29  ;;  %v3667_v58 = vrot.slane %v3666_v46, 4  ;;  %v3510_v17 = vrot.slane %v3509_v32, 4  ;;  %v3514_v36 = vrot.slane %v15174_v38, 5  ;;  %v15181_v2 = vld [vmem:[#allocation13_spill] sm:$0xff] }
 0x1a3   : > { %4224 = vrot.lane.b32.xlu1 %v11298_v19, %s9028_s22  ;;  %4186 = vrot.lane.b32.xlu0 %v11330_v11, %s9025_s21  ;;  %v3500_v34 = vrot.slane %v3499_v30, 4  ;;  %v3896_v33 = vor.u32 %v3895_v0, %v3894_v31  ;;  %v3516_v56 = vrot.slane %v15175_v12, 4  ;;  %v3517_v43 = vrot.slane %v15176_v53, 5 }
 0x1a4   : > { %v11524_v52 = vpop.permute.xlu1 %1933  ;;  %v1902_v37 = vpop.permute.xlu0 %1901  ;;  %v3875_v3 = vsel %vm10806_vm5, %v3871_v42, %v3874_v47  ;;  %v3880_v22 = vsel %vm10806_vm5, %v3876_v10, %v3879_v8  ;;  %v3888_v41 = vsel %vm10806_vm5, %v3884_v21, %v3887_v28  ;;  %v3893_v62 = vsel %vm10806_vm5, %v3889_v44, %v3892_v45 }
 0x1a5   : > { %15177 = vst [vmem:[#allocation34_spill] sm:$0xff] %v11524_v52  ;;  %v2155_v6 = vsel %vm2125_vm11, %v2121_v54, %v1867_v23  ;;  %v3664_v46 = vsel %vm10892_vm2, %v3662_v15, %v3663_v24  ;;  %v3898_v32 = vrot.slane %v15133_v61, 6  ;;  %v3899_v30 = vrot.slane %v15132_v1, 7  ;;  %v15178_v24 = vld [vmem:[#allocation103_spill] sm:$0xff]  ;;  %v15180_v15 = vld [vmem:[#allocation14_spill] sm:$0xff] }
 0x1a6   : > { %v2188_v47 = vsel %vm2158_vm12, %v2155_v6, %v1902_v37  ;;  %v3669_v28 = vsel %vm10892_vm2, %v3667_v58, %v3668_v13  ;;  %v11548_v42 = vsel %vm10892_vm2, %v3510_v17, %v3514_v36  ;;  %v15179_v8 = vshrl.u32 %v15178_v24, 16  ;;  %v15182_v58 = vld [vmem:[#allocation107_spill] sm:$0xff]  ;;  %v15184_v6 = vld [vmem:[#allocation110_spill] sm:$0xff] }
 0x1a7   : > { %4305 = vrot.lane.b32.xlu1 %v11437_v60, %s15038_s25  ;;  %4262 = vrot.lane.b32.xlu0 %v11447_v9, %s9027_s17  ;;  %v11556_v1 = vsel %vm10892_vm2, %v3500_v34, %v3504_v57  ;;  %v3897_v31 = vrot.slane %v3896_v33, 4  ;;  %v3904_v0 = vrot.slane %v15145_v20, 7  ;;  %v11559_v23 = vor.u32 %v3517_v43, %v3516_v56  ;;  %v15183_v20 = vld [vmem:[#allocation109_spill] sm:$0xff] }
 0x1a8   : > { %v3903_v61 = vrot.slane %v15179_v8, 6  ;;  %v2004_v10 = vpop.permute.xlu1 %2003  ;;  %v1969_v21 = vpop.permute.xlu0 %1968  ;;  %v11561_v44 = vcombine.low %v3875_v3, %v3880_v22  ;;  %v11563_v45 = vcombine.low %v3888_v41, %v3893_v62  ;;  %v3520_v13 = vrot.slane %v15180_v15, 5 }
 0x1a9   : > { %v3522_v54 = vrot.slane %v15181_v2, 4  ;;  %v2221_v50 = vsel %vm2191_vm13, %v2188_v47, %v11524_v52  ;;  %v11569_v57 = vor.u32 %v3899_v30, %v3898_v32  ;;  %v3929_v17 = vrot.slane %v15182_v58, 6  ;;  %v15185_v32 = vld [vmem:[#allocation113_spill] sm:$0xff] }
 0x1aa   : > { %v3930_v38 = vrot.slane %v15183_v20, 7  ;;  %v2254_v36 = vsel %vm2224_vm14, %v2221_v50, %v1969_v21  ;;  %v2495_v34 = vpop.f32.mrb[0].mxu1  ;;  %v11578_v33 = vcombine.low %v3664_v46, %v3669_v28  ;;  %v11588_v37 = vor.u32 %v3904_v0, %v3903_v61 }
 0x1ab   : > { %4188 = vrot.lane.b32.xlu1 %v11417_v48, %s9025_s21  ;;  %4150 = vrot.lane.b32.xlu0 %v11291_v5, %s9026_s16  ;;  %v2496_v56 = vadd.f32 %v2495_v34, %v11451_v51  ;;  %v2497_v53 = vpop.f32.mrb[1].mxu1  ;;  %v11586_v43 = vsel %vm10806_vm5, %v3897_v31, %v11569_v57  ;;  %v3519_v3 = vrot.slane %v11559_v23, 4  ;;  %v3523_v62 = vor.u32 %v3522_v54, %v3520_v13 }
 0x1ac   : > { %v2498_v22 = vadd.f32 %v2497_v53, %v11509_v26  ;;  %v2499_v5 = vpop.f32.mrb[2].mxu1  ;;  %v2074_v41 = vpop.permute.xlu1 %2073  ;;  %v3933_v46 = vrot.slane %v15184_v6, 6  ;;  %v3934_v30 = vrot.slane %v15185_v32, 7  ;;  %v2287_v47 = vsel %vm2257_vm15, %v2254_v36, %v2004_v10 }
 0x1ad   : > { %v2500_v28 = vadd.f32 %v2499_v5, %v11451_v51  ;;  %v11596_v24 = vpop.permute.xlu0 %2038  ;;  %v2501_v8 = vpop.f32.mrb[3].mxu1  ;;  %v11598_v61 = vor.u32 %v3930_v38, %v3929_v17  ;;  %v3907_v31 = vrot.slane %v15182_v58, 4  ;;  %v3908_v10 = vrot.slane %v15183_v20, 5 }
 0x1ae   : > { %15186 = vst [vmem:[#allocation39_spill] sm:$0xff] %v11596_v24  ;;  %v2502_v0 = vadd.f32 %v2501_v8, %v11509_v26  ;;  %v2320_v23 = vsel %vm2290_vm0, %v2287_v47, %v11596_v24  ;;  %v14832_v21 = vrot.slane %v15185_v32, 5  ;;  %v2654_v15 = vmax.f32 %v2496_v56, 0.0  ;;  %v15187_v47 = vld [vmem:[#allocation111_spill] sm:$0xff]  ;;  %v15189_v8 = vld [vmem:[#allocation114_spill] sm:$0xff] }
 0x1af   : > { %4264 = vrot.lane.b32.xlu1 %v11511_v25, %s9027_s17  ;;  %4226 = vrot.lane.b32.xlu0 %v11433_v18, %s9028_s22  ;;  %v2656_v2 = vmax.f32 %v2500_v28, 0.0  ;;  %v2353_v54 = vsel %vm2323_vm1, %v2320_v23, %v2074_v41  ;;  %v3913_v50 = vrot.slane %v15184_v6, 4  ;;  %v2655_v58 = vmax.f32 %v2498_v22, 0.0  ;;  %v15190_v6 = vld [vmem:[#allocation133_spill] sm:$0xff] }
 0x1b0   : > { %v2657_v17 = vmax.f32 %v2502_v0, 0.0  ;;  %7906 = vmatmul.mubr.msk.bf16.gmra.mrb[56].mxu1 %vm2422_vm3, %v2353_v54  ;;  %v1869_v38 = vpop.permute.xlu1 %1868  ;;  %v3524_v36 = vrot.slane %v3523_v62, 4  ;;  %v3525_v34 = vrot.slane %v15065_v59, 5  ;;  %v3935_v20 = vor.u32 %v3934_v30, %v3933_v46 }
 0x1b1   : > { %v2718_v53 = vpack.c.bf16 %v2656_v2, %v2654_v15  ;;  %v1789_v5 = vpop.permute.xlu0 %1788  ;;  %2643 = vmatprep.mubr.bf16.mxu1 %v14976_v35  ;;  %v15188_v56 = vshrl.u32 %v15187_v47, 16  ;;  %v3939_v41 = vrot.slane %v15189_v8, 7  ;;  %v3902_v59 = vrot.slane %v11569_v57, 4 }
 0x1b2   : > { %v2719_v23 = vpack.c.bf16 %v2657_v17, %v2655_v58  ;;  %v2124_v22 = vsel %vm962_vm9, %v15190_v6, %v1789_v5  ;;  %v2505_v0 = vpop.f32.mrb[4].mxu1  ;;  %v3909_v62 = vor.u32 %v3908_v10, %v3907_v31  ;;  %v11628_v15 = vsel %vm10892_vm2, %v3519_v3, %v3520_v13  ;;  %v15192_v31 = vld [vmem:[#allocation116_spill] sm:$0xff]  ;;  %v15193_v5 = vld [vmem:[#allocation117_spill] sm:$0xff] }
 0x1b3   : > { %v3938_v28 = vrot.slane %v15188_v56, 6  ;;  %4152 = vrot.lane.b32.xlu1 %v11298_v19, %s9026_s16  ;;  %4307 = vrot.lane.b32.xlu0 %v11561_v44, %s15038_s25  ;;  %v2506_v46 = vadd.f32 %v2505_v0, %v11451_v51  ;;  %v2507_v30 = vpop.f32.mrb[5].mxu1  ;;  %v3932_v2 = vrot.slane %v11598_v61, 4  ;;  %v3914_v54 = vor.u32 %v3913_v50, %v14832_v21 }
 0x1b4   : > { %v2508_v19 = vadd.f32 %v2507_v30, %v11509_v26  ;;  %2975 = vmatprep.mubr.bf16.mxu0 %v2719_v23  ;;  %v11634_v58 = vpop.permute.xlu1 %1935  ;;  %v2509_v17 = vpop.f32.mrb[6].mxu1  ;;  %v3526_v57 = vsel %vm10892_vm2, %v3524_v36, %v3525_v34  ;;  %v3918_v10 = vrot.slane %v15192_v31, 4  ;;  %v3919_v47 = vrot.slane %v15193_v5, 5 }
 0x1b5   : > { %15191 = vst [vmem:[#allocation40_spill] sm:$0xff] %v11634_v58  ;;  %v2157_v13 = vsel %vm2125_vm11, %v2124_v22, %v1869_v38  ;;  %v1904_v3 = vpop.permute.xlu0 %1903  ;;  %v2510_v61 = vadd.f32 %v2509_v17, %v11451_v51  ;;  %2976 = vmatmul.mubr.bf16.vlgmr.msra.gmra.mrb[64].mxu0 %v2718_v53  ;;  %v2511_v50 = vpop.f32.mrb[7].mxu1  ;;  %v3937_v56 = vrot.slane %v3935_v20, 4  ;;  %v3940_v6 = vor.u32 %v3939_v41, %v3938_v28  ;;  %v15194_v53 = vld [vmem:[#allocation121_spill] sm:$0xff] }
 0x1b6   : > { %v2190_v23 = vsel %vm2158_vm12, %v2157_v13, %v1904_v3  ;;  %v2512_v0 = vadd.f32 %v2511_v50, %v11509_v26  ;;  %v3910_v36 = vrot.slane %v3909_v62, 4  ;;  %v3916_v38 = vrot.slane %v15189_v8, 5  ;;  %v15195_v3 = vld [vmem:[#allocation119_spill] sm:$0xff] }
 0x1b7   : > { %4228 = vrot.lane.b32.xlu1 %v11437_v60, %s9028_s22  ;;  %4190 = vrot.lane.b32.xlu0 %v11447_v9, %s9025_s21  ;;  %v2658_v34 = vmax.f32 %v2506_v46, 0.0  ;;  %v2660_v22 = vmax.f32 %v2510_v61, 0.0  ;;  %v3915_v30 = vrot.slane %v3914_v54, 4  ;;  %v3922_v17 = vrot.slane %v15194_v53, 5 }
 0x1b8   : > { %v2659_v12 = vmax.f32 %v2508_v19, 0.0  ;;  %v2661_v28 = vmax.f32 %v2512_v0, 0.0  ;;  %v2006_v41 = vpop.permute.xlu1 %2005  ;;  %v3920_v13 = vor.u32 %v3919_v47, %v3918_v10  ;;  %v3924_v50 = vrot.slane %v15195_v3, 4  ;;  %v15197_v0 = vld [vmem:[#allocation73_spill] sm:$0xff] }
 0x1b9   : > { %v2720_v21 = vpack.c.bf16 %v2660_v22, %v2658_v34  ;;  %v2223_v29 = vsel %vm2191_vm13, %v2190_v23, %v11634_v58  ;;  %v1971_v52 = vpop.permute.xlu0 %1970  ;;  %v3942_v62 = vrot.slane %v15192_v31, 6  ;;  %v3943_v8 = vrot.slane %v15193_v5, 7 }
 0x1ba   : > { %v2721_v46 = vpack.c.bf16 %v2661_v28, %v2659_v12  ;;  %v2256_v54 = vsel %vm2224_vm14, %v2223_v29, %v1971_v52  ;;  %v3946_v19 = vrot.slane %v15195_v3, 6  ;;  %v3947_v10 = vrot.slane %v15194_v53, 7 }
 0x1bb   : > { %4309 = vrot.lane.b32.xlu1 %v11563_v45, %s15038_s25  ;;  %4266 = vrot.lane.b32.xlu0 %v11578_v33, %s9027_s17  ;;  %v3906_v47 = vsel %vm10806_vm5, %v3902_v59, %v11588_v37  ;;  %v7973_v31 = vcombine.low %v11628_v15, %v3526_v57  ;;  %v3936_v12 = vsel %vm10806_vm5, %v3932_v2, %v3935_v20  ;;  %v15196_v5 = vrot.slane %v15185_v32, 5  ;;  %v15198_v59 = vld [vmem:[#allocation131_spill] sm:$0xff] }
 0x1bc   : > { %v3941_v29 = vsel %vm10806_vm5, %v3937_v56, %v3940_v6  ;;  %v2076_v52 = vpop.permute.xlu1 %2075  ;;  %2985 = vmatprep.mubr.bf16.mxu0 %v2721_v46  ;;  %v3917_v23 = vsel %vm10892_vm2, %v3915_v30, %v3916_v38  ;;  %v4005_v37 = vrot.slane %v15197_v0, 6  ;;  %v4006_v15 = vrot.slane %v15198_v59, 7  ;;  %v15200_v38 = vld [vmem:[#allocation118_spill] sm:$0xff] }
 0x1bd   : > { %v3912_v61 = vsel %vm10892_vm2, %v3910_v36, %v15196_v5  ;;  %v2289_v57 = vsel %vm2257_vm15, %v2256_v54, %v2006_v41  ;;  %v11679_v20 = vpop.permute.xlu0 %2040  ;;  %2986 = vmatmul.mubr.bf16.gmra.mrb[68].mxu0 %v2720_v21  ;;  %v3921_v2 = vrot.slane %v3920_v13, 4  ;;  %v11681_v56 = vor.u32 %v3924_v50, %v3922_v17  ;;  %v15202_v21 = vld [vmem:[#allocation122_spill] sm:$0xff]  ;;  %v15203_v41 = vld [vmem:[#allocation96_spill] sm:$0xff]  ;;  %v15206_v54 = vld [vmem:[#allocation135_spill] sm:$0xff] }
 0x1be   : > { %15199 = vst [vmem:[#allocation42_spill] sm:$0xff] %v11679_v20  ;;  %v11683_v6 = vor.u32 %v3943_v8, %v3942_v62  ;;  %v2322_v32 = vsel %vm2290_vm0, %v2289_v57, %v11679_v20  ;;  %v11691_v36 = vor.u32 %v3947_v10, %v3946_v19  ;;  %v15201_v34 = vshrl.u32 %v15200_v38, 16  ;;  %v15205_v46 = vld [vmem:[#allocation134_spill] sm:$0xff] }
 0x1bf   : > { %4192 = vrot.lane.b32.xlu1 %v11511_v25, %s9025_s21  ;;  %4154 = vrot.lane.b32.xlu0 %v11433_v18, %s9026_s16  ;;  %v3952_v30 = vrot.slane %v15202_v21, 7  ;;  %v2355_v53 = vsel %vm2323_vm1, %v2322_v32, %v2076_v52  ;;  %v11698_v28 = vcombine.low %v11586_v43, %v3906_v47  ;;  %v11702_v13 = vsel %vm962_vm9, %v7973_v31, %v15203_v41  ;;  %v15204_v18 = vld [vmem:[#allocation102_spill] sm:$0xff] }
 0x1c0   : > { %v3951_v22 = vrot.slane %v15201_v34, 6  ;;  %v11707_v3 = vsel %vm962_vm9, %v11018_v14, %v15204_v18  ;;  %7907 = vmatmul.mubr.msk.bf16.gmra.mrb[60].mxu1 %vm2422_vm3, %v2355_v53  ;;  %v11710_v62 = vcombine.low %v3936_v12, %v3941_v29  ;;  %v11712_v8 = vor.u32 %v4006_v15, %v4005_v37  ;;  %v407_v37 = vld [vmem:[%s9174_s23 + $0xf0] sm:$0xf]  ;;  %v15211_v32 = vld [vmem:[#allocation138_spill] sm:$0xff] }
 0x1c1   : > { %v4133_v50 = vpop.permute.xlu1 %4132  ;;  %v4009_v43 = vrot.slane %v15205_v46, 6  ;;  %v4010_v19 = vrot.slane %v15206_v54, 7  ;;  %v11716_v10 = vpop.permute.xlu0 %4082  ;;  %4685 = vmatprep.mubr.bf16.mxu1 %v14976_v35  ;;  %v11719_v47 = vcombine.low %v3912_v61, %v3917_v23  ;;  %v11723_v14 = vsel %vm10892_vm2, %v3921_v2, %v3922_v17 }
 0x1c2   : > { %15207 = vst [vmem:[#allocation43_spill] sm:$0xff] %v11716_v10  ;;  %v3927_v12 = vrot.slane %v15202_v21, 5  ;;  %v15208_v29 = vcombine.low %v11556_v1, %v11548_v42  ;;  %v2515_v5 = vpop.f32.mrb[8].mxu1  ;;  %v3945_v17 = vrot.slane %v11683_v6, 4  ;;  %v11738_v23 = vor.u32 %v3952_v30, %v3951_v22  ;;  %v15209_v42 = vld [vmem:[#allocation136_spill] sm:$0xff] }
 0x1c3   : > { %4268 = vrot.lane.b32.xlu1 %v11435_v49, %s9027_s17  ;;  %4230 = vrot.lane.b32.xlu0 %v11561_v44, %s9028_s22  ;;  %v2516_v15 = vadd.f32 %v2515_v5, %v11451_v51  ;;  %v2517_v57 = vpop.f32.mrb[9].mxu1  ;;  %v15210_v1 = vshrl.u32 %v15209_v42, 16  ;;  %v4015_v38 = vrot.slane %v15211_v32, 7  ;;  %v3955_v34 = vrot.slane %v15197_v0, 4  ;;  %v408_v21 = vld [vmem:[%s9174_s23 + $0xf4] sm:$0xf] }
 0x1c4   : > { %v4323_v52 = vsel %vm962_vm9, %v15208_v29, %v11716_v10  ;;  %v2518_v53 = vadd.f32 %v2517_v57, %v11509_v26  ;;  %v2519_v29 = vpop.f32.mrb[10].mxu1  ;;  %v4008_v61 = vrot.slane %v11712_v8, 4  ;;  %v4011_v22 = vor.u32 %v4010_v19, %v4009_v43  ;;  %v15212_v19 = vld [vmem:[#allocation101_spill] sm:$0xff] }
 0x1c5   : > { %v4014_v2 = vrot.slane %v15210_v1, 6  ;;  %v4209_v6 = vpop.permute.xlu1 %4208  ;;  %v3956_v30 = vrot.slane %v15198_v59, 5  ;;  %v2520_v5 = vadd.f32 %v2519_v29, %v11451_v51  ;;  %v4171_v31 = vpop.permute.xlu0 %4170  ;;  %v4355_v42 = vsel %vm2125_vm11, %v4323_v52, %v4133_v50 }
 0x1c6   : > { %v2521_v1 = vpop.f32.mrb[11].mxu1  ;;  %v11752_v41 = vshrl.u32 %v407_v37, 16  ;;  %v11754_v18 = vshll.u32 %v407_v37, 16  ;;  %v4387_v0 = vsel %vm2158_vm12, %v4355_v42, %v4171_v31  ;;  %v11763_v8 = vshll.u32 %v408_v21, 16 }
 0x1c7   : > { %v2522_v57 = vadd.f32 %v2521_v1, %v11509_v26  ;;  %4156 = vrot.lane.b32.xlu1 %v11437_v60, %s9026_s16  ;;  %4311 = vrot.lane.b32.xlu0 %v11698_v28, %s15038_s25  ;;  %v2662_v50 = vmax.f32 %v2516_v15, 0.0  ;;  %v2664_v43 = vmax.f32 %v2520_v5, 0.0  ;;  %v4418_v52 = vsel %vm2191_vm13, %v4387_v0, %v15212_v19 }
 0x1c8   : > { %v11767_v37 = vshrl.u32 %v408_v21, 16  ;;  %v2663_v31 = vmax.f32 %v2518_v53, 0.0  ;;  %v4435_v1 = vsel %vm2224_vm14, %v4418_v52, %v4209_v6  ;;  %v3961_v60 = vrot.slane %v15205_v46, 4  ;;  %v15213_v46 = vld [vmem:[#allocation108_spill] sm:$0xff] }
 0x1c9   : > { %v2665_v29 = vmax.f32 %v2522_v57, 0.0  ;;  %v4290_v42 = vpop.permute.xlu1 %4289  ;;  %v2722_v10 = vpack.c.bf16 %v2664_v43, %v2662_v50  ;;  %v4247_v58 = vpop.permute.xlu0 %4246  ;;  %v3957_v20 = vor.u32 %v3956_v30, %v3955_v34  ;;  %v3969_v59 = vrot.slane %v11752_v41, 4  ;;  %v15214_v34 = vld [vmem:[#allocation112_spill] sm:$0xff]  ;;  %v8633_v57 = vld [vmem:[%s14504_s3 + $0x90] ss:$8 sps:$4 sm:$0xff]  }
 0x1ca   : > { %v3972_v15 = vrot.slane %v11754_v18, 5  ;;  %v4467_v24 = vsel %vm2257_vm15, %v4435_v1, %v4247_v58  ;;  %v4013_v21 = vrot.slane %v4011_v22, 4  ;;  %v4016_v53 = vor.u32 %v4015_v38, %v4014_v2 }
 0x1cb   : > { %v2723_v5 = vpack.c.bf16 %v2665_v29, %v2663_v31  ;;  %4232 = vrot.lane.b32.xlu1 %v11563_v45, %s9028_s22  ;;  %4194 = vrot.lane.b32.xlu0 %v11578_v33, %s9025_s21  ;;  %v4498_v6 = vsel %vm2290_vm0, %v4467_v24, %v15213_v46  ;;  %v11783_v30 = vsel %vm962_vm9, %v11029_v40, %v15214_v34  ;;  %v3978_v0 = vrot.slane %v11763_v8, 5  ;;  %v11801_v31 = vld [vmem:[%s9174_s23 + $0xf8] sm:$0x7]  ;;  %v8641_v29 = vld [vmem:[%s14504_s3 + $0xa4] ss:$8 sps:$4 sm:$0xff]  }
 0x1cc   : > { %v3982_v58 = vrot.slane %v11767_v37, 4  ;;  %v4516_v50 = vsel %vm2323_vm1, %v4498_v6, %v4290_v42  ;;  %v15215_v38 = vrot.slane %v11681_v56, 4  ;;  %v3949_v40 = vsel %vm10806_vm5, %v3945_v17, %v11691_v36 }
 0x1cd   : > { %2995 = vmatprep.mubr.bf16.mxu0 %v2723_v5  ;;  %v4173_v2 = vpop.permute.xlu1 %4172  ;;  %v15216_v43 = vrot.slane %v15206_v54, 5  ;;  %v4135_v42 = vpop.permute.xlu0 %4134  ;;  %8035 = vmatmul.mubr.msk.bf16.vlgmr.msra.gmra.mrb[64].mxu1 %vm2422_vm3, %v4516_v50  ;;  %v15217_v56 = vrot.slane %v11691_v36, 4  ;;  %v11814_v17 = vsel %vm10806_vm5, %v4008_v61, %v4011_v22  ;;  %v3958_v1 = vrot.slane %v3957_v20, 4 }
 0x1ce   : > { %v3928_v24 = vsel %vm10892_vm2, %v15215_v38, %v3927_v12  ;;  %2996 = vmatmul.mubr.bf16.gmra.mrb[72].mxu0 %v2722_v10  ;;  %v4357_v5 = vsel %vm2125_vm11, %v11702_v13, %v4135_v42  ;;  %v11824_v36 = vsel %vm10806_vm5, %v4013_v21, %v4016_v53  ;;  %v4018_v10 = vrot.slane %v11752_v41, 6  ;;  %4695 = vmatprep.mubr.bf16.mxu1 %v14976_v35  ;;  %v15218_v21 = vld [vmem:[#allocation104_spill] sm:$0xff] }
 0x1cf   : > { %v3962_v52 = vor.u32 %v3961_v60, %v15216_v43  ;;  %v3954_v12 = vsel %vm10806_vm5, %v15217_v56, %v11738_v23  ;;  %v3973_v60 = vor.u32 %v3972_v15, %v3969_v59  ;;  %4313 = vrot.lane.b32.xlu1 %v11710_v62, %s15038_s25  ;;  %4270 = vrot.lane.b32.xlu0 %v11719_v47, %s9027_s17  ;;  %v4019_v61 = vrot.slane %v11754_v18, 7  ;;  %v8639_v59 = vld [vmem:[%s14504_s3 + $0xa0] ss:$8 sps:$4 sm:$0xff]  }
 0x1d0   : > { %v4389_v20 = vsel %vm2158_vm12, %v4357_v5, %v4173_v2  ;;  %v11831_v13 = vcombine.low %v11723_v14, %v3928_v24  ;;  %v3983_v23 = vor.u32 %v3982_v58, %v3978_v0  ;;  %v11836_v22 = vshll.u32 %v11801_v31, 16  ;;  %6252 = vmatpush1.bf16.msra.mxu1 %v8633_v57  ;;  %v8647_v58 = vld [vmem:[%s14504_s3 + $0xb4] ss:$8 sps:$4 sm:$0xff]  }
 0x1d1   : > { %v4249_v15 = vpop.permute.xlu1 %4248  ;;  %v4419_v53 = vsel %vm2191_vm13, %v4389_v20, %v15218_v21  ;;  %v3963_v46 = vrot.slane %v3962_v52, 4  ;;  %v3964_v6 = vrot.slane %v15211_v32, 5  ;;  %v14843_v14 = vshrl.u32 %v11801_v31, 16  ;;  %6253 = vmatprep.subr.bf16.mxu1 %v8641_v29  ;;  %v4211_v50 = vpop.permute.xlu0 %4210 }
 0x1d2   : > { %v11848_v57 = vcombine.low %v3949_v40, %v3954_v12  ;;  %v15219_v38 = vmov %v15216_v43  ;;  %v3974_v32 = vrot.slane %v3973_v60, 4  ;;  %v4437_v43 = vsel %vm2224_vm14, %v4419_v53, %v4211_v50  ;;  %v2525_v52 = vpop.f32.mrb[12].mxu1 }
 0x1d3   : > { %v11856_v24 = vsel %vm10892_vm2, %v3958_v1, %v15219_v38  ;;  %4196 = vrot.lane.b32.xlu1 %v11435_v49, %s9025_s21  ;;  %4158 = vrot.lane.b32.xlu0 %v11561_v44, %s9026_s16  ;;  %v11863_v40 = vor.u32 %v4019_v61, %v4018_v10  ;;  %v4022_v29 = vrot.slane %v11767_v37, 6  ;;  %v4023_v54 = vrot.slane %v11763_v8, 7  ;;  %v2527_v12 = vpop.f32.mrb[13].mxu1  ;;  %v15220_v44 = vld [vmem:[#allocation120_spill] sm:$0xff] }
 0x1d4   : > { %v4469_v42 = vsel %vm2257_vm15, %v4437_v43, %v4249_v15  ;;  %v2526_v56 = vadd.f32 %v2525_v52, %v11451_v51  ;;  %v3984_v1 = vrot.slane %v3983_v23, 4  ;;  %v3988_v60 = vrot.slane %v11836_v22, 5  ;;  %6254 = vmatpush1.bf16.msra.mxu1 %v8639_v59  ;;  %v2529_v20 = vpop.f32.mrb[14].mxu1  ;;  %v8645_v23 = vld [vmem:[%s14504_s3 + $0xb0] ss:$8 sps:$4 sm:$0xff]  }
 0x1d5   : > { %v2528_v5 = vadd.f32 %v2527_v12, %v11509_v26  ;;  %v4137_v53 = vpop.permute.xlu1 %4136  ;;  %v4499_v10 = vsel %vm2290_vm0, %v4469_v42, %v15220_v44  ;;  %v11875_v61 = vsel %vm10892_vm2, %v3963_v46, %v3964_v6  ;;  %v4027_v15 = vrot.slane %v14843_v14, 6  ;;  %6255 = vmatprep.subr.bf16.mxu1 %v8647_v58  ;;  %v4292_v50 = vpop.permute.xlu0 %4291 }
 0x1d6   : > { %v2530_v59 = vadd.f32 %v2529_v20, %v11451_v51  ;;  %v2531_v38 = vpop.f32.mrb[15].mxu1  ;;  %v11887_v46 = vsel %vm10892_vm2, %v3974_v32, %v3978_v0  ;;  %v4028_v6 = vrot.slane %v11836_v22, 7  ;;  %v3990_v43 = vrot.slane %v11752_v41, 5  ;;  %v11899_v20 = vld [vmem:[%s9174_s23] sm:$0xf] }
 0x1d7   : > { %v4518_v52 = vsel %vm2323_vm1, %v4499_v10, %v4292_v50  ;;  %v2532_v42 = vadd.f32 %v2531_v38, %v11509_v26  ;;  %4272 = vrot.lane.b32.xlu1 %v11831_v13, %s9027_s17  ;;  %4234 = vrot.lane.b32.xlu0 %v11698_v28, %s9028_s22  ;;  %v4021_v58 = vrot.slane %v11863_v40, 4  ;;  %v4024_v12 = vor.u32 %v4023_v54, %v4022_v29  ;;  %v11908_v50 = vld [vmem:[%s9174_s23 + $0x4] sm:$0xf] }
 0x1d8   : > { %v2666_v0 = vmax.f32 %v2526_v56, 0.0  ;;  %v2668_v32 = vmax.f32 %v2530_v59, 0.0  ;;  %8036 = vmatmul.mubr.msk.bf16.gmra.mrb[68].mxu1 %vm2422_vm3, %v4518_v52  ;;  %v11904_v41 = vsel %vm10892_vm2, %v3984_v1, %v3988_v60  ;;  %v3991_v10 = vrot.slane %v11754_v18, 6  ;;  %v8652_v52 = vld [vmem:[%s14504_s3 + $0xc4] ss:$8 sps:$4 sm:$0xff]  }
 0x1d9   : > { %v2667_v38 = vmax.f32 %v2528_v5, 0.0  ;;  %v2669_v2 = vmax.f32 %v2532_v42, 0.0  ;;  %v4213_v14 = vpop.permute.xlu1 %4212  ;;  %4705 = vmatprep.mubr.bf16.mxu1 %v14976_v35  ;;  %v3994_v40 = vrot.slane %v11767_v37, 5  ;;  %v3995_v29 = vrot.slane %v11763_v8, 6  ;;  %6256 = vmatpush1.bf16.msra.mxu1 %v8645_v23  ;;  %v4175_v56 = vpop.permute.xlu0 %4174 }
 0x1da   : > { %v2724_v54 = vpack.c.bf16 %v2668_v32, %v2666_v0  ;;  %v4359_v55 = vsel %vm2125_vm11, %v11707_v3, %v4137_v53  ;;  %v5393_v1 = vshrl.u32 %v11899_v20, 16  ;;  %v5396_v18 = vshll.u32 %v11899_v20, 16  ;;  %v15221_v3 = vld [vmem:[#allocation115_spill] sm:$0xff]  ;;  %6257 = vmatprep.subr.bf16.mxu1 %v8652_v52 }
 0x1db   : > { %v2725_v60 = vpack.c.bf16 %v2669_v2, %v2667_v38  ;;  %v4391_v5 = vsel %vm2158_vm12, %v4359_v55, %v4175_v56  ;;  %4160 = vrot.lane.b32.xlu1 %v11563_v45, %s9026_s16  ;;  %4315 = vrot.lane.b32.xlu0 %v11848_v57, %s15038_s25  ;;  %v5402_v8 = vshrl.u32 %v11908_v50, 16  ;;  %v5405_v37 = vshll.u32 %v11908_v50, 16  ;;  %v8650_v45 = vld [vmem:[%s14504_s3 + $0xc0] ss:$8 sps:$4 sm:$0xff]  }
 0x1dc   : > { %v4420_v53 = vsel %vm2191_vm13, %v4391_v5, %v15221_v3  ;;  %v8009_v23 = vcombine.low %v11856_v24, %v11875_v61  ;;  %v4026_v2 = vrot.slane %v4024_v12, 4  ;;  %v4029_v59 = vor.u32 %v4028_v6, %v4027_v15  ;;  %v11940_v15 = vld [vmem:[%s9174_s23 + $0x8] sm:$0x7] }
 0x1dd   : > { %3005 = vmatprep.mubr.bf16.mxu0 %v2725_v60  ;;  %v4294_v42 = vpop.permute.xlu1 %4293  ;;  %v4439_v0 = vsel %vm2224_vm14, %v4420_v53, %v4213_v14  ;;  %v8010_v32 = vcombine.low %v11887_v46, %v11904_v41  ;;  %v3992_v38 = vor.u32 %v3991_v10, %v3990_v43  ;;  %v15222_v24 = vshrl.u32 %v11801_v31, 16  ;;  %v4251_v6 = vpop.permute.xlu0 %4250  ;;  %v15223_v10 = vld [vmem:[#allocation126_spill] sm:$0xff]  ;;  %6258 = vmatpush1.bf16.msra.mxu1 %v8650_v45  ;;  %v8655_v41 = vld [vmem:[#allocation2] ss:$8 sps:$4 sm:$0xff]  }
 0x1de   : > { %3006 = vmatmul.mubr.bf16.gmra.mrb[76].mxu0 %v2724_v54  ;;  %v3996_v55 = vor.u32 %v3995_v29, %v3994_v40  ;;  %v4002_v56 = vrot.slane %v11836_v22, 6  ;;  %v5395_v5 = vrot.slane %v5393_v1, 5  ;;  %v5398_v34 = vrot.slane %v5396_v18, 6 }
 0x1df   : > { %v4001_v61 = vrot.slane %v15222_v24, 5  ;;  %v4471_v60 = vsel %vm2257_vm15, %v4439_v0, %v4251_v6  ;;  %4236 = vrot.lane.b32.xlu1 %v11710_v62, %s9028_s22  ;;  %4198 = vrot.lane.b32.xlu0 %v11719_v47, %s9025_s21  ;;  %v11950_v31 = vsel %vm10806_vm5, %v4021_v58, %v4024_v12  ;;  %v5404_v14 = vrot.slane %v5402_v8, 5 }
 0x1e0   : > { %v5407_v43 = vrot.slane %v5405_v37, 6  ;;  %v4500_v22 = vsel %vm2290_vm0, %v4471_v60, %v15223_v10  ;;  %v11956_v40 = vsel %vm10806_vm5, %v4026_v2, %v4029_v59  ;;  %v5412_v29 = vshrl.u32 %v11940_v15, 16  ;;  %vm11989_vm5 = vmor %vm5426_vm4, %vm5427_vm6 }
 0x1e1   : > { %v5415_v62 = vshll.u32 %v11940_v15, 16  ;;  %v4177_v54 = vpop.permute.xlu1 %4176  ;;  %v4520_v47 = vsel %vm2323_vm1, %v4500_v22, %v4294_v42  ;;  %v3993_v1 = vrot.slane %v3992_v38, 4  ;;  %v4139_v58 = vpop.permute.xlu0 %4138  ;;  %v3998_v12 = vrot.slane %v3996_v55, 4  ;;  %v15225_v38 = vld [vmem:[#allocation124_spill] sm:$0xff] }
 0x1e2   : > { %8037 = vmatmul.mubr.msk.bf16.gmra.mrb[72].mxu1 %vm2422_vm3, %v4520_v47  ;;  %v4003_v18 = vor.u32 %v4002_v56, %v4001_v61  ;;  %v5431_v16 = vrot.slane %v11908_v50, 7  ;;  %v5399_v8 = vor.u32 %v5398_v34, %v5395_v5  ;;  %v4361_v37 = vsel %vm2125_vm11, %v11783_v30, %v4139_v58  ;;  %v2535_v53 = vpop.f32.mrb[16].mxu1 }
 0x1e3   : > { %v15224_v2 = vcombine.low %v11814_v17, %v11824_v36  ;;  %4274 = vrot.lane.b32.xlu0 %v8009_v23, %s9027_s17  ;;  %v8013_v59 = vcombine.low %v11950_v31, %v11956_v40  ;;  %v8083_v45 = vrot.slane %v11899_v20, 11  ;;  %v11973_v52 = vor.u32 %v5407_v43, %v5404_v14  ;;  %v2537_v30 = vpop.f32.mrb[17].mxu1  ;;  %4715 = vmatprep.mubr.bf16.mxu1 %v14976_v35  ;;  %v8659_v40 = vld [vmem:[#allocation2 + $0x10] ss:$8 sps:$4 sm:$0xff]  }
 0x1e4   : > { %v4393_v34 = vsel %vm2158_vm12, %v4361_v37, %v4177_v54  ;;  %v2536_v50 = vadd.f32 %v2535_v53, %v11451_v51  ;;  %v5414_v42 = vrot.slane %v5412_v29, 5  ;;  %v5417_v0 = vrot.slane %v5415_v62, 6  ;;  %v2539_v36 = vpop.f32.mrb[18].mxu1  ;;  %v12001_v54 = vld [vmem:[%s9174_s23 + $0x28] sm:$0xf] }
 0x1e5   : > { %4317 = vrot.lane.b32.xlu1 %v15224_v2, %s15038_s25  ;;  %v2538_v17 = vadd.f32 %v2537_v30, %v11509_v26  ;;  %v4253_v23 = vpop.permute.xlu1 %4252  ;;  %v4421_v24 = vsel %vm2191_vm13, %v4393_v34, %v15225_v38  ;;  %v3997_v61 = vsel %vm9274_vm8, %v3993_v1, %v3996_v55  ;;  %v5434_v6 = vrot.slane %v11940_v15, 7  ;;  %v4215_v5 = vpop.permute.xlu0 %4214 }
 0x1e6   : > { %v2540_v56 = vadd.f32 %v2539_v36, %v11451_v51  ;;  %v2541_v60 = vpop.f32.mrb[19].mxu1  ;;  %v4004_v14 = vsel %vm9274_vm8, %v3998_v12, %v4003_v18  ;;  %v5433_v22 = vrot.slane %v5431_v16, 4  ;;  %v5400_v29 = vrot.slane %v5399_v8, 4 }
 0x1e7   : > { %v4441_v62 = vsel %vm2224_vm14, %v4421_v24, %v4215_v5  ;;  %v2542_v55 = vadd.f32 %v2541_v60, %v11509_v26  ;;  %4162 = vrot.lane.b32.xlu0 %v11698_v28, %s9026_s16  ;;  %v5410_v15 = vrot.slane %v11973_v52, 4  ;;  %v5452_v47 = vrot.slane %v12001_v54, 7  ;;  %v8863_v5 = vld [vmem:[%s9174_s23 + $0x4c] sm:$0xf] }
 0x1e8   : > { %v2670_v1 = vmax.f32 %v2536_v50, 0.0  ;;  %v2672_v58 = vmax.f32 %v2540_v56, 0.0  ;;  %v4473_v12 = vsel %vm2257_vm15, %v4441_v62, %v4253_v23  ;;  %v5418_v18 = vor.u32 %v5417_v0, %v5414_v42  ;;  %v8861_v42 = vld [vmem:[%s9174_s23 + $0x24] sm:$0xf] }
 0x1e9   : > { %4200 = vrot.lane.b32.xlu1 %v11831_v13, %s9025_s21  ;;  %v2671_v8 = vmax.f32 %v2538_v17, 0.0  ;;  %v2673_v37 = vmax.f32 %v2542_v55, 0.0  ;;  %v4141_v53 = vpop.permute.xlu1 %4140  ;;  %v15229_v13 = vld [vmem:[#allocation129_spill] sm:$0xff]  ;;  %v12009_v28 = vsel %vm11989_vm5, %v8083_v45, %v5431_v16  ;;  %v4296_v30 = vpop.permute.xlu0 %4295  ;;  %v8011_v36 = vcombine.low %v3997_v61, %v4004_v14  ;;  %v8862_v45 = vld [vmem:[%s9174_s23 + $0x2c] sm:$0x7] }
 0x1ea   : > { %v4501_v2 = vsel %vm2290_vm0, %v4473_v12, %v15229_v13  ;;  %v2726_v34 = vpack.c.bf16 %v2672_v58, %v2670_v1  ;;  %v12013_v50 = vsel %vm11989_vm5, %v5433_v22, %v5434_v6  ;;  %v8086_v0 = vrot.slane %v8861_v42, 11  ;;  %v8657_v61 = vld [vmem:[#allocation2 + $0x4] ss:$8 sps:$4 sm:$0xff]   ;;  %v8864_v55 = vld [vmem:[%s9174_s23 + $0x10] sm:$0xf] }
 0x1eb   : > { %v2727_v17 = vpack.c.bf16 %v2673_v37, %v2671_v8  ;;  %v4522_v23 = vsel %vm2323_vm1, %v4501_v2, %v4296_v30  ;;  %4238 = vrot.lane.b32.xlu0 %v11848_v57, %s9028_s22  ;;  %v5454_v16 = vrot.slane %v5452_v47, 4  ;;  %v5455_v24 = vrot.slane %v8862_v45, 7  ;;  %v8159_v22 = vld [vmem:[%s14504_s3 + $0xd0] sm:$0xff]  ;;  %3296 = vmatprep.subr.bf16.mxu0 %v8657_v61  ;;  %v8865_v8 = vld [vmem:[%s9174_s23 + $0x48] sm:$0xf]  ;;  %v15232_v2 = vld [vmem:[#allocation127_spill] sm:$0xff] }
 0x1ec   : > { %8038 = vmatmul.mubr.msk.bf16.gmra.mrb[76].mxu1 %vm2422_vm3, %v4522_v23  ;;  %v5409_v6 = vsel %vm9274_vm8, %v5400_v29, %v11973_v52  ;;  %v5419_v56 = vsel %vm9274_vm8, %v5410_v15, %v5418_v18  ;;  %v5473_v46 = vrot.slane %v8863_v5, 7  ;;  %v8122_v14 = vcombine.low %v12009_v28, %v12013_v50  ;;  %v8661_v52 = vld [vmem:[#allocation2 + $0x14] ss:$8 sps:$4 sm:$0xff]   ;;  %v15231_v37 = vld [vmem:[#allocation128_spill] sm:$0xff]  ;;  %v8866_v30 = vld [vmem:[%s9174_s23 + $0x50] sm:$0x7]  ;;  %3297 = vmatpush1.bf16.msra.mxu0 %v8655_v41 }
 0x1ed   : > { %4276 = vrot.lane.b32.xlu1 %v8010_v32, %s9027_s17  ;;  %v15230_v32 = vld [vmem:[#allocation123_spill] sm:$0xff]  ;;  %3015 = vmatprep.mubr.bf16.mxu0 %v2727_v17  ;;  %v4217_v60 = vpop.permute.xlu1 %4216  ;;  %v4179_v62 = vpop.permute.xlu0 %4178  ;;  %v5438_v15 = vrot.slane %v8864_v55, 7  ;;  %v8170_v1 = vcombine.high %v8159_v22, %v8159_v22  ;;  %v8121_v12 = vcombine.low %v5409_v6, %v5419_v56  ;;  %v5456_v18 = vsel %vm11989_vm5, %v5454_v16, %v5455_v24  ;;  %v8665_v23 = vld [vmem:[#allocation2 + $0x24] ss:$8 sps:$4 sm:$0xff]  }
 0x1ee   : > { %v4331_v57 = vsel %vm962_vm9, %v11027_v4, %v15230_v32  ;;  %4725 = vmatprep.mubr.bf16.mxu1 %v14976_v35  ;;  %3016 = vmatmul.mubr.bf16.gmra.mrb[80].mxu0 %v2726_v34  ;;  %v5453_v4 = vsel %vm11989_vm5, %v8086_v0, %v5452_v47  ;;  %v8089_v47 = vrot.slane %v8865_v8, 11  ;;  %v4333_v28 = vsel %vm962_vm9, %v11074_v39, %v15232_v2  ;;  %v8867_v0 = vld [vmem:[%s9174_s23 + $0xc] sm:$0xf]  ;;  %v8868_v61 = vld [vmem:[%s9174_s23 + $0x14] sm:$0x7] }
 0x1ef   : > { %v4363_v29 = vsel %vm2125_vm11, %v4331_v57, %v4141_v53  ;;  %4281 = vrot.lane.b32.xlu0 %v8011_v36, %s9031_s27  ;;  %v5475_v34 = vrot.slane %v5473_v46, 4  ;;  %v5476_v31 = vrot.slane %v8866_v30, 7  ;;  %8171 = vmatprep.subr.msk.bf16.mxu1 %vm1011_vm10, %v8170_v1  ;;  %v12062_v50 = vcombine.low %v8861_v42, %v12001_v54  ;;  %v12069_v56 = vld [vmem:[%s9174_s23 + $0x34] sm:$0xf] }
 0x1f0   : > { %v4395_v58 = vsel %vm2158_vm12, %v4363_v29, %v4179_v62  ;;  %v8084_v17 = vrot.slane %v8867_v0, 11  ;;  %3298 = vmatprep.subr.bf16.mxu0 %v8661_v52  ;;  %v8169_v39 = vcombine.low %v8159_v22, %v8159_v22  ;;  %v12065_v45 = vcombine.low %v5453_v4, %v5456_v18  ;;  %v15234_v22 = vld [vmem:[#allocation132_spill] sm:$0xff]  ;;  %v8872_v0 = vld [vmem:[%s9174_s23 + $0x1c] sm:$0xf] }
 0x1f1   : > { %4319 = vrot.lane.b32.xlu1 %v8013_v59, %s15038_s25  ;;  %v4422_v53 = vsel %vm2191_vm13, %v4395_v58, %v15231_v37  ;;  %v4298_v59 = vpop.permute.xlu1 %4297  ;;  %v4255_v16 = vpop.permute.xlu0 %4254  ;;  %v5440_v24 = vrot.slane %v5438_v15, 4  ;;  %v5441_v6 = vrot.slane %v8868_v61, 7  ;;  %v5459_v41 = vrot.slane %v12069_v56, 7  ;;  %3299 = vmatpush1.bf16.msra.mxu0 %v8659_v40 }
 0x1f2   : > { %v4443_v36 = vsel %vm2224_vm14, %v4422_v53, %v4217_v60  ;;  %v2545_v54 = vpop.f32.mrb[20].mxu1  ;;  %v5474_v42 = vsel %vm11989_vm5, %v8089_v47, %v5473_v46  ;;  %v12077_v60 = vcombine.low %v8865_v8, %v8863_v5  ;;  %v6246_v52 = vsel %vm1011_vm10, %v8169_v39, 0  ;;  %v8663_v46 = vld [vmem:[#allocation2 + $0x20] ss:$8 sps:$4 sm:$0xff]   ;;  %v8871_v47 = vld [vmem:[%s9174_s23 + $0x38] sm:$0x7]  ;;  %3300 = vmatprep.subr.bf16.mxu0 %v8665_v23 }
 0x1f3   : > { %v4475_v57 = vsel %vm2257_vm15, %v4443_v36, %v4255_v16  ;;  %5668 = vrot.lane.b32.xlu0 %v8121_v12, %s15074_s14  ;;  %v2546_v62 = vadd.f32 %v2545_v54, %v11451_v51  ;;  %v2547_v4 = vpop.f32.mrb[21].mxu1  ;;  %v5477_v55 = vsel %vm11989_vm5, %v5475_v34, %v5476_v31  ;;  %6260 = vmatpush1.bf16.msra.mxu1 %v6246_v52  ;;  %v5462_v53 = vrot.slane %v8871_v47, 7  ;;  %v8669_v34 = vld [vmem:[#allocation2 + $0x34] ss:$8 sps:$4 sm:$0xff]   ;;  %v8873_v16 = vld [vmem:[%s9174_s23 + $0x18] sm:$0xf] }
 0x1f4   : > { %15233 = vst [vmem:[#allocation41_spill] sm:$0xff] %v12077_v60  ;;  %v4502_v29 = vsel %vm2290_vm0, %v4475_v57, %v15234_v22  ;;  %v2548_v5 = vadd.f32 %v2547_v4, %v11509_v26  ;;  %v2549_v58 = vpop.f32.mrb[22].mxu1  ;;  %v12093_v8 = vsel %vm11989_vm5, %v8084_v17, %v5438_v15  ;;  %v5442_v36 = vsel %vm11989_vm5, %v5440_v24, %v5441_v6  ;;  %v8874_v6 = vld [vmem:[%s9174_s23 + $0x58] sm:$0xf]  ;;  %s8958_s14 = sshll.u32 %s9034_s24, 4  ;;  %s8959_s14 = int_to_ptr.vmem [resolvable:$false] %s8958_s14 }
 0x1f5   : > { %5718 = vrot.lane.b32.xlu1 %v8122_v14, %s9026_s16  ;;  %v12086_v14 = vld [vmem:[%s9174_s23 + $0x30] sm:$0xf]  ;;  %v4181_v12 = vpop.permute.xlu1 %4180  ;;  %v4524_v18 = vsel %vm2323_vm1, %v4502_v29, %v4298_v59  ;;  %v2550_v30 = vadd.f32 %v2549_v58, %v11451_v51  ;;  %v4143_v31 = vpop.permute.xlu0 %4142  ;;  %v5461_v59 = vrot.slane %v5459_v41, 4  ;;  %v5445_v39 = vrot.slane %v8872_v0, 7  ;;  %3301 = vmatpush1.bf16.msra.mxu0 %v8663_v46  ;;  %v8667_v52 = vld [vmem:[#allocation2 + $0x30] ss:$8 sps:$4 sm:$0xff]  }
 0x1f6   : > { %v8087_v1 = vrot.slane %v12086_v14, 11  ;;  %8039 = vmatmul.mubr.msk.bf16.gmra.mrb[80].mxu1 %vm2422_vm3, %v4524_v18  ;;  %v2551_v40 = vpop.f32.mrb[23].mxu1  ;;  %v4365_v15 = vsel %vm2125_vm11, %v4333_v28, %v4143_v31  ;;  %v12107_v23 = vcombine.low %v5474_v42, %v5477_v55  ;;  %v8085_v61 = vrot.slane %v8873_v16, 11  ;;  %v15235_v18 = vld [vmem:[#allocation130_spill] sm:$0xff]  ;;  %3302 = vmatprep.subr.bf16.mxu0 %v8669_v34  ;;  %v8671_v16 = vld [vmem:[#allocation2 + $0x40] ss:$8 sps:$4 sm:$0xff]  }
 0x1f7   : > { %v2552_v17 = vadd.f32 %v2551_v40, %v11509_v26  ;;  %5759 = vrot.lane.b32.xlu0 %v12062_v50, %s9025_s21  ;;  %v2674_v57 = vmax.f32 %v2546_v62, 0.0  ;;  %v2676_v54 = vmax.f32 %v2550_v30, 0.0  ;;  %v4397_v24 = vsel %vm2158_vm12, %v4365_v15, %v4181_v12  ;;  %4735 = vmatprep.mubr.bf16.mxu1 %v14976_v35  ;;  %v12127_v40 = vld [vmem:[%s9174_s23 + $0x40] sm:$0xf]  ;;  %v8878_v15 = vld [vmem:[%s9174_s23 + $0x5c] sm:$0x7] }
 0x1f8   : > { %v5480_v28 = vrot.slane %v8874_v6, 7  ;;  %v2675_v29 = vmax.f32 %v2548_v5, 0.0  ;;  %v4423_v42 = vsel %vm2191_vm13, %v4397_v24, %v15235_v18  ;;  %v8123_v55 = vcombine.low %v12093_v8, %v5442_v36  ;;  %v8875_v8 = vld [vmem:[%s9174_s23 + $0x20] sm:$0x7] }
 0x1f9   : > { %5800 = vrot.lane.b32.xlu1 %v12065_v45, %s9028_s22  ;;  %v2677_v4 = vmax.f32 %v2552_v17, 0.0  ;;  %v4257_v58 = vpop.permute.xlu1 %4256  ;;  %v2728_v62 = vpack.c.bf16 %v2676_v54, %v2674_v57  ;;  %v4219_v12 = vpop.permute.xlu0 %4218  ;;  %v5460_v47 = vsel %vm11989_vm5, %v8087_v1, %v5459_v41  ;;  %v5463_v46 = vsel %vm11989_vm5, %v5461_v59, %v5462_v53  ;;  %v8673_v1 = vld [vmem:[#allocation2 + $0x44] ss:$8 sps:$4 sm:$0xff]   ;;  %3303 = vmatpush1.bf16.msra.mxu0 %v8667_v52  ;;  %v15236_v54 = vld [vmem:[#allocation142_spill] sm:$0xff] }
 0x1fa   : > { %v5447_v5 = vrot.slane %v5445_v39, 4  ;;  %v4445_v31 = vsel %vm2224_vm14, %v4423_v42, %v4219_v12  ;;  %v5448_v34 = vrot.slane %v8875_v8, 7  ;;  %v5466_v41 = vrot.slane %v12127_v40, 7  ;;  %v8877_v53 = vld [vmem:[%s9174_s23 + $0x54] sm:$0xf]  ;;  %3304 = vmatprep.subr.bf16.mxu0 %v8673_v1 }
 0x1fb   : > { %v2729_v30 = vpack.c.bf16 %v2677_v4, %v2675_v29  ;;  %5841 = vrot.lane.b32.xlu0 %v12077_v60, %s9027_s17  ;;  %v4477_v36 = vsel %vm2257_vm15, %v4445_v31, %v4257_v58  ;;  %v8090_v59 = vrot.slane %v8877_v53, 11  ;;  %v5482_v0 = vrot.slane %v5480_v28, 4  ;;  %v8677_v4 = vld [vmem:[#allocation2 + $0x54] ss:$8 sps:$4 sm:$0xff]   ;;  %v15237_v1 = vld [vmem:[#allocation65_spill] sm:$0xff] }
 0x1fc   : > { %v5483_v17 = vrot.slane %v8878_v15, 7  ;;  %v4503_v24 = vsel %vm2290_vm0, %v4477_v36, %v15236_v54  ;;  %v12137_v29 = vcombine.low %v12086_v14, %v12069_v56  ;;  %v12139_v42 = vcombine.low %v5460_v47, %v5463_v46  ;;  %v12144_v12 = vld [vmem:[%s9174_s23 + $0x3c] sm:$0xf]  ;;  %v12160_v46 = vld [vmem:[%s9174_s23 + $0x64] sm:$0xf] }
 0x1fd   : > { %5887 = vrot.lane.b32.xlu1 %v12107_v23, %s15038_s25  ;;  %3025 = vmatprep.mubr.bf16.mxu0 %v2729_v30  ;;  %v4145_v57 = vpop.permute.xlu1 %4144  ;;  %v4300_v58 = vpop.permute.xlu0 %4299  ;;  %v5446_v52 = vsel %vm11989_vm5, %v8085_v61, %v5445_v39  ;;  %v8088_v30 = vrot.slane %v12144_v12, 11  ;;  %v5449_v56 = vsel %vm11989_vm5, %v5447_v5, %v5448_v34  ;;  %v5468_v14 = vrot.slane %v5466_v41, 4 }
 0x1fe   : > { %3026 = vmatmul.mubr.bf16.gmra.mrb[84].mxu0 %v2728_v62  ;;  %v4526_v31 = vsel %vm2323_vm1, %v4503_v24, %v4300_v58  ;;  %v8880_v62 = vld [vmem:[%s9174_s23 + $0x44] sm:$0x7]  ;;  %v5481_v39 = vsel %vm11989_vm5, %v8090_v59, %v5480_v28  ;;  %v5484_v61 = vsel %vm11989_vm5, %v5482_v0, %v5483_v17  ;;  %v5487_v8 = vrot.slane %v12160_v46, 7  ;;  %v8681_v28 = vld [vmem:[#allocation2 + $0x64] ss:$8 sps:$4 sm:$0xff]  }
 0x1ff   : > { %5720 = vrot.lane.b32.xlu0 %v8123_v55, %s9026_s16  ;;  %v5469_v47 = vrot.slane %v8880_v62, 7  ;;  %8040 = vmatmul.mubr.msk.bf16.gmra.mrb[84].mxu1 %vm2422_vm3, %v4526_v31  ;;  %v8675_v55 = vld [vmem:[#allocation2 + $0x50] ss:$8 sps:$4 sm:$0xff]   ;;  %v4335_v5 = vsel %vm962_vm9, %v11150_v63, %v15237_v1  ;;  %v12166_v36 = vcombine.low %v8877_v53, %v8874_v6  ;;  %v8124_v15 = vcombine.low %v5446_v52, %v5449_v56  ;;  %v8883_v31 = vld [vmem:[%s9174_s23 + $0x68] sm:$0x7] }
 0x200   : > { %3305 = vmatpush1.bf16.msra.mxu0 %v8671_v16  ;;  %4745 = vmatprep.mubr.bf16.mxu1 %v14976_v35  ;;  %v4367_v59 = vsel %vm2125_vm11, %v4335_v5, %v4145_v57  ;;  %v5467_v17 = vsel %vm11989_vm5, %v8088_v30, %v5466_v41  ;;  %v12177_v63 = vcombine.low %v5481_v39, %v5484_v61  ;;  %v8882_v53 = vld [vmem:[%s9174_s23 + $0x60] sm:$0xf]  ;;  %v5489_v30 = vrot.slane %v5487_v8, 4  ;;  %v8679_v62 = vld [vmem:[#allocation2 + $0x60] ss:$8 sps:$4 sm:$0xff]  }
 0x201   : > { %5761 = vrot.lane.b32.xlu1 %v12137_v29, %s9025_s21  ;;  %v4221_v34 = vpop.permute.xlu1 %4220  ;;  %15238 = vst [vmem:[#allocation44_spill] sm:$0xff] %v12166_v36  ;;  %3306 = vmatprep.subr.bf16.mxu0 %v8677_v4  ;;  %v4183_v0 = vpop.permute.xlu0 %4182  ;;  %v5470_v6 = vsel %vm11989_vm5, %v5468_v14, %v5469_v47  ;;  %v8091_v57 = vrot.slane %v8882_v53, 11  ;;  %v15239_v4 = vld [vmem:[#allocation63_spill] sm:$0xff]  ;;  %v5490_v56 = vrot.slane %v8883_v31, 7 }
 0x202   : > { %v4399_v16 = vsel %vm2158_vm12, %v4367_v59, %v4183_v0  ;;  %v2555_v24 = vpop.f32.mrb[24].mxu1  ;;  %v8684_v14 = vld [vmem:[#allocation2 + $0x74] ss:$8 sps:$4 sm:$0xff]   ;;  %v12189_v1 = vcombine.low %v5467_v17, %v5470_v6  ;;  %v8682_v6 = vld [vmem:[#allocation2 + $0x70] ss:$8 sps:$4 sm:$0xff]  }
 0x203   : > { %5802 = vrot.lane.b32.xlu0 %v12139_v42, %s9028_s22  ;;  %v4424_v58 = vsel %vm2191_vm13, %v4399_v16, %v15239_v4  ;;  %v2556_v41 = vadd.f32 %v2555_v24, %v11451_v51  ;;  %v2557_v52 = vpop.f32.mrb[25].mxu1  ;;  %v5491_v17 = vsel %vm11989_vm5, %v5489_v30, %v5490_v56 }
 0x204   : > { %3307 = vmatpush1.bf16.msra.mxu0 %v8675_v55  ;;  %v2558_v5 = vadd.f32 %v2557_v52, %v11509_v26  ;;  %v2559_v39 = vpop.f32.mrb[26].mxu1  ;;  %v4447_v59 = vsel %vm2224_vm14, %v4424_v58, %v4221_v34  ;;  %v5488_v55 = vsel %vm11989_vm5, %v8091_v57, %v5487_v8  ;;  %v15240_v58 = vld [vmem:[#allocation24_spill] sm:$0xff]  ;;  %v15242_v57 = vld [vmem:[#allocation137_spill] sm:$0xff] }
 0x205   : > { %5843 = vrot.lane.b32.xlu1 %v12166_v36, %s9027_s17  ;;  %v4302_v61 = vpop.permute.xlu1 %4301  ;;  %3308 = vmatprep.subr.bf16.mxu0 %v8681_v28  ;;  %v2560_v47 = vadd.f32 %v2559_v39, %v11451_v51  ;;  %v4259_v0 = vpop.permute.xlu0 %4258  ;;  %v2678_v34 = vmax.f32 %v2556_v41, 0.0  ;;  %v15243_v41 = vld [vmem:[#allocation27_spill] sm:$0xff] }
 0x206   : > { %v2561_v16 = vpop.f32.mrb[27].mxu1  ;;  %v4479_v24 = vsel %vm2257_vm15, %v4447_v59, %v4259_v0  ;;  %v2679_v39 = vmax.f32 %v2558_v5, 0.0 }
 0x207   : > { %v2562_v31 = vadd.f32 %v2561_v16, %v11509_v26  ;;  %5889 = vrot.lane.b32.xlu0 %v12177_v63, %s15038_s25  ;;  %v2680_v28 = vmax.f32 %v2560_v47, 0.0  ;;  %v4504_v52 = vsel %vm2290_vm0, %v4479_v24, %v15240_v58  ;;  %v12205_v16 = vcombine.low %v12144_v12, %v12127_v40 }
 0x208   : > { %3309 = vmatpush1.bf16.msra.mxu0 %v8679_v62  ;;  %v4528_v0 = vsel %vm2323_vm1, %v4504_v52, %v4302_v61  ;;  %v4337_v47 = vsel %vm962_vm9, %v15243_v41, %v15242_v57  ;;  %v12216_v40 = vcombine.low %v5488_v55, %v5491_v17  ;;  %v8884_v62 = vld [vmem:[%s9174_s23 + $0x70] sm:$0xf]  ;;  %v12224_v52 = vcombine.low %v8882_v53, %v12160_v46  ;;  %v8691_v55 = vld [vmem:[#allocation2 + $0x94] ss:$8 sps:$4 sm:$0xff]   ;;  %v8886_v41 = vld [vmem:[%s9174_s23 + $0x74] sm:$0x7] }
 0x209   : > { %5722 = vrot.lane.b32.xlu1 %v8124_v15, %s9026_s16  ;;  %v2681_v59 = vmax.f32 %v2562_v31, 0.0  ;;  %v4185_v15 = vpop.permute.xlu1 %4184  ;;  %15241 = vst [vmem:[#allocation46_spill] sm:$0xff] %v12205_v16  ;;  %3310 = vmatprep.subr.bf16.mxu0 %v8684_v14  ;;  %v2730_v8 = vpack.c.bf16 %v2680_v28, %v2678_v34  ;;  %v4147_v24 = vpop.permute.xlu0 %4146  ;;  %v5494_v5 = vrot.slane %v8884_v62, 7  ;;  %v8685_v61 = vld [vmem:[#allocation2 + $0x80] ss:$8 sps:$4 sm:$0xff]   ;;  %v15244_v34 = vld [vmem:[#allocation23_spill] sm:$0xff] }
 0x20a   : > { %8041 = vmatmul.mubr.msk.bf16.gmra.mrb[88].mxu1 %vm2422_vm3, %v4528_v0  ;;  %v4369_v56 = vsel %vm2125_vm11, %v4337_v47, %v4147_v24  ;;  %v8687_v14 = vld [vmem:[#allocation2 + $0x84] ss:$8 sps:$4 sm:$0xff]   ;;  %15245 = vst [vmem:[#allocation47_spill] sm:$0xff] %v12224_v52  ;;  %v5497_v46 = vrot.slane %v8886_v41, 7  ;;  %v8689_v53 = vld [vmem:[#allocation2 + $0x90] ss:$8 sps:$4 sm:$0xff]  }
 0x20b   : > { %v2731_v30 = vpack.c.bf16 %v2681_v59, %v2679_v39  ;;  %5763 = vrot.lane.b32.xlu0 %v12205_v16, %s9025_s21  ;;  %v4401_v12 = vsel %vm2158_vm12, %v4369_v56, %v4185_v15  ;;  %4755 = vmatprep.mubr.bf16.mxu1 %v14976_v35  ;;  %v8885_v59 = vld [vmem:[%s9174_s23 + $0x6c] sm:$0xf]  ;;  %v5496_v0 = vrot.slane %v5494_v5, 4  ;;  %v15246_v47 = vld [vmem:[#allocation26_spill] sm:$0xff] }
 0x20c   : > { %3311 = vmatpush1.bf16.msra.mxu0 %v8682_v6  ;;  %v4425_v28 = vsel %vm2191_vm13, %v4401_v12, %v15244_v34  ;;  %v8092_v15 = vrot.slane %v8885_v59, 11  ;;  %v15247_v41 = vld [vmem:[#allocation22_spill] sm:$0xff] }
 0x20d   : > { %5804 = vrot.lane.b32.xlu1 %v12189_v1, %s9028_s22  ;;  %3035 = vmatprep.mubr.bf16.mxu0 %v2731_v30  ;;  %v4261_v31 = vpop.permute.xlu1 %4260  ;;  %v4223_v17 = vpop.permute.xlu0 %4222  ;;  %v8694_v30 = vld [vmem:[#allocation2 + $0xa4] ss:$8 sps:$4 sm:$0xff]   ;;  %v8888_v34 = vld [vmem:[%s9174_s23 + $0x78] sm:$0xf] }
 0x20e   : > { %3036 = vmatmul.mubr.bf16.gmra.mrb[88].mxu0 %v2730_v8  ;;  %3312 = vmatprep.subr.bf16.mxu0 %v8687_v14  ;;  %v4449_v39 = vsel %vm2224_vm14, %v4425_v28, %v4223_v17  ;;  %v5495_v28 = vsel %vm11989_vm5, %v8092_v15, %v5494_v5  ;;  %v12248_v17 = vld [vmem:[%s9174_s23 + $0x7c] sm:$0xf]  ;;  %v12255_v5 = vcombine.low %v8885_v59, %v8884_v62  ;;  %v8889_v59 = vld [vmem:[%s9174_s23 + $0x80] sm:$0x7] }
 0x20f   : > { %5845 = vrot.lane.b32.xlu0 %v12224_v52, %s9027_s17  ;;  %v4481_v6 = vsel %vm2257_vm15, %v4449_v39, %v4261_v31  ;;  %v5501_v39 = vrot.slane %v12248_v17, 7  ;;  %v8698_v15 = vld [vmem:[#allocation2 + $0xb4] ss:$8 sps:$4 sm:$0xff]  }
 0x210   : > { %3313 = vmatpush1.bf16.msra.mxu0 %v8685_v61  ;;  %v4505_v24 = vsel %vm2290_vm0, %v4481_v6, %v15246_v47  ;;  %v8692_v6 = vld [vmem:[#allocation2 + $0xa0] ss:$8 sps:$4 sm:$0xff]   ;;  %15249 = vst [vmem:[#allocation49_spill] sm:$0xff] %v12255_v5  ;;  %v8093_v47 = vrot.slane %v8888_v34, 11 }
 0x211   : > { %5891 = vrot.lane.b32.xlu1 %v12216_v40, %s15038_s25  ;;  %v4149_v8 = vpop.permute.xlu1 %4148  ;;  %3314 = vmatprep.subr.bf16.mxu0 %v8691_v55  ;;  %v4304_v56 = vpop.permute.xlu0 %4303  ;;  %v5498_v55 = vsel %vm11989_vm5, %v5496_v0, %v5497_v46  ;;  %v5503_v4 = vrot.slane %v5501_v39, 4 }
 0x212   : > { %v4530_v12 = vsel %vm2323_vm1, %v4505_v24, %v4304_v56  ;;  %v2565_v14 = vpop.f32.mrb[28].mxu1  ;;  %v12267_v62 = vcombine.low %v5495_v28, %v5498_v55 }
 0x213   : > { %5724 = vrot.lane.b32.xlu0 %v12065_v45, %s9026_s16  ;;  %v2566_v61 = vadd.f32 %v2565_v14, %v11451_v51  ;;  %8042 = vmatmul.mubr.msk.bf16.gmra.mrb[92].mxu1 %vm2422_vm3, %v4530_v12  ;;  %v2567_v31 = vpop.f32.mrb[29].mxu1  ;;  %v15248_v45 = vld [vmem:[#allocation19_spill] sm:$0xff] }
 0x214   : > { %3315 = vmatpush1.bf16.msra.mxu0 %v8689_v53  ;;  %v4339_v24 = vsel %vm962_vm9, %v15248_v45, %v15247_v41  ;;  %v2568_v56 = vadd.f32 %v2567_v31, %v11509_v26  ;;  %v2569_v12 = vpop.f32.mrb[30].mxu1  ;;  %4765 = vmatprep.mubr.bf16.mxu1 %v14976_v35 }
 0x215   : > { %5765 = vrot.lane.b32.xlu1 %v12077_v60, %s9025_s21  ;;  %v4225_v14 = vpop.permute.xlu1 %4224  ;;  %3316 = vmatprep.subr.bf16.mxu0 %v8694_v30  ;;  %v4371_v0 = vsel %vm2125_vm11, %v4339_v24, %v4149_v8  ;;  %v2570_v46 = vadd.f32 %v2569_v12, %v11451_v51  ;;  %v4187_v53 = vpop.permute.xlu0 %4186  ;;  %v5504_v8 = vrot.slane %v8889_v59, 7  ;;  %v2682_v30 = vmax.f32 %v2566_v61, 0.0  ;;  %v15250_v12 = vld [vmem:[#allocation8_spill] sm:$0xff]  ;;  %v15251_v61 = vld [vmem:[#allocation29_spill] sm:$0xff] }
 0x216   : > { %v2571_v57 = vpop.f32.mrb[31].mxu1  ;;  %v4403_v45 = vsel %vm2158_vm12, %v4371_v0, %v4187_v53  ;;  %v8696_v0 = vld [vmem:[#allocation2 + $0xb0] ss:$8 sps:$4 sm:$0xff]   ;;  %v2683_v53 = vmax.f32 %v2568_v56, 0.0  ;;  %v5502_v56 = vsel %vm11989_vm5, %v8093_v47, %v5501_v39  ;;  %v8890_v47 = vld [vmem:[%s9174_s23 + $0x88] sm:$0xf] }
 0x217   : > { %v2572_v31 = vadd.f32 %v2571_v57, %v11509_v26  ;;  %5806 = vrot.lane.b32.xlu0 %v12107_v23, %s9028_s22  ;;  %v2684_v24 = vmax.f32 %v2570_v46, 0.0  ;;  %v4426_v41 = vsel %vm2191_vm13, %v4403_v45, %v15250_v12  ;;  %v15252_v46 = vld [vmem:[#allocation25_spill] sm:$0xff]  ;;  %v15253_v45 = vld [vmem:[#allocation82_spill] sm:$0xff]  ;;  %v5508_v39 = vrot.slane %v8890_v47, 7 }
 0x218   : > { %3317 = vmatpush1.bf16.msra.mxu0 %v8692_v6  ;;  %v4451_v2 = vsel %vm2224_vm14, %v4426_v41, %v4225_v14  ;;  %v5505_v41 = vsel %vm11989_vm5, %v5503_v4, %v5504_v8  ;;  %v1052_v14 = vpop.f32.mrb[0].mxu0  ;;  %v897_v4 = vld [vmem:[%s14503_s2] sm:$0x3] }
 0x219   : > { %5847 = vrot.lane.b32.xlu1 %v12255_v5, %s9027_s17  ;;  %v2685_v57 = vmax.f32 %v2572_v31, 0.0  ;;  %v4306_v60 = vpop.permute.xlu1 %4305  ;;  %3318 = vmatprep.subr.bf16.mxu0 %v8698_v15  ;;  %v2732_v58 = vpack.c.bf16 %v2684_v24, %v2682_v30  ;;  %v4263_v18 = vpop.permute.xlu0 %4262  ;;  %v8701_v15 = vld [vmem:[#allocation2 + $0xc4] ss:$8 sps:$4 sm:$0xff]   ;;  %v4341_v31 = vsel %vm962_vm9, %v15253_v45, %v15252_v46  ;;  %v8704_v30 = vld [vmem:[#allocation2 + $0xd4] ss:$8 sps:$4 sm:$0xff]   ;;  %v12298_v24 = vcombine.low %v5502_v56, %v5505_v41 }
 0x21a   : > { %v4483_v55 = vsel %vm2257_vm15, %v4451_v2, %v4263_v18  ;;  %v1054_v8 = vpop.f32.mrb[1].mxu0  ;;  %v12311_v56 = vcombine.low %v8888_v34, %v12248_v17  ;;  %v15257_v41 = vld [vmem:[#allocation72_spill] sm:$0xff] }
 0x21b   : > { %v2733_v28 = vpack.c.bf16 %v2685_v57, %v2683_v53  ;;  %5893 = vrot.lane.b32.xlu0 %v12267_v62, %s15038_s25  ;;  %v4506_v6 = vsel %vm2290_vm0, %v4483_v55, %v15251_v61  ;;  %v15254_v53 = vld [vmem:[#allocation36_spill] sm:$0xff] }
 0x21c   : > { %3319 = vmatpush1.bf16.msra.mxu0 %v8696_v0  ;;  %v4532_v18 = vsel %vm2323_vm1, %v4506_v6, %v4306_v60  ;;  %v12303_v57 = vrot.slane %v897_v4, %v15254_v53  ;;  %15256 = vst [vmem:[#allocation48_spill] sm:$0xff] %v12311_v56  ;;  %v8892_v46 = vld [vmem:[%s9174_s23 + $0x8c] sm:$0x7] }
 0x21d   : > { %5726 = vrot.lane.b32.xlu1 %v12139_v42, %s9026_s16  ;;  %3045 = vmatprep.mubr.bf16.mxu0 %v2733_v28  ;;  %v4189_v2 = vpop.permute.xlu1 %4188  ;;  %v8699_v42 = vld [vmem:[#allocation2 + $0xc0] ss:$8 sps:$4 sm:$0xff]   ;;  %v4151_v59 = vpop.permute.xlu0 %4150  ;;  %v12306_v28 = vrot.slane %v897_v4, %v11440_v27  ;;  %v5510_v4 = vrot.slane %v5508_v39, 4  ;;  %v5511_v12 = vrot.slane %v8892_v46, 7  ;;  %v8707_v17 = vld [vmem:[#allocation2 + $0xe4] ss:$8 sps:$4 sm:$0xff]  }
 0x21e   : > { %8043 = vmatmul.mubr.msk.bf16.gmra.mrb[96].mxu1 %vm2422_vm3, %v4532_v18  ;;  %3046 = vmatmul.mubr.bf16.gmra.mrb[92].mxu0 %v2732_v58  ;;  %v4373_v60 = vsel %vm2125_vm11, %v4341_v31, %v4151_v59  ;;  %v1056_v58 = vpop.f32.mrb[2].mxu0  ;;  %v15255_v18 = vld [vmem:[#allocation28_spill] sm:$0xff]  ;;  %v8702_v59 = vld [vmem:[#allocation2 + $0xd0] ss:$8 sps:$4 sm:$0xff]  }
 0x21f   : > { %5767 = vrot.lane.b32.xlu0 %v12166_v36, %s9025_s21  ;;  %v4405_v0 = vsel %vm2158_vm12, %v4373_v60, %v4189_v2  ;;  %4775 = vmatprep.mubr.bf16.mxu1 %v14976_v35  ;;  %v1058_v55 = vpop.f32.mrb[3].mxu0  ;;  %v12316_v2 = vsel %vm962_vm9, %v11330_v11, %v15257_v41  ;;  %v1055_v34 = vadd.f32 %v1054_v8, %v12306_v28  ;;  %v12333_v8 = vld [vmem:[%s9174_s23 + $0x90] sm:$0xf]  ;;  %v15259_v53 = vld [vmem:[#allocation32_spill] sm:$0xff] }
 0x220   : > { %3320 = vmatprep.subr.bf16.mxu0 %v8701_v15  ;;  %v4427_v45 = vsel %vm2191_vm13, %v4405_v0, %v15255_v18  ;;  %v8891_v15 = vld [vmem:[%s9174_s23 + $0x84] sm:$0xf]  ;;  %v1053_v0 = vadd.f32 %v1052_v14, %v12303_v57 }
 0x221   : > { %5808 = vrot.lane.b32.xlu1 %v12177_v63, %s9028_s22  ;;  %v4265_v6 = vpop.permute.xlu1 %4264  ;;  %v8094_v31 = vrot.slane %v8891_v15, 11  ;;  %3321 = vmatpush1.bf16.msra.mxu0 %v8699_v42  ;;  %v4227_v60 = vpop.permute.xlu0 %4226  ;;  %v12327_v11 = vcombine.low %v8891_v15, %v8890_v47  ;;  %v1057_v42 = vadd.f32 %v1056_v58, %v12303_v57 }
 0x222   : > { %3322 = vmatprep.subr.bf16.mxu0 %v8704_v30  ;;  %v4453_v18 = vsel %vm2224_vm14, %v4427_v45, %v4227_v60  ;;  %v1211_v60 = vmax.f32 %v1053_v0, 0.0  ;;  %v1212_v45 = vmax.f32 %v1055_v34, 0.0 }
 0x223   : > { %v2575_v61 = vpop.f32.mrb[32].mxu1  ;;  %5849 = vrot.lane.b32.xlu0 %v12311_v56, %s9027_s17  ;;  %15258 = vst [vmem:[#allocation45_spill] sm:$0xff] %v12327_v11  ;;  %v4485_v46 = vsel %vm2257_vm15, %v4453_v18, %v4265_v6  ;;  %v1213_v58 = vmax.f32 %v1057_v42, 0.0  ;;  %v1059_v6 = vadd.f32 %v1058_v55, %v12306_v28  ;;  %v8705_v18 = vld [vmem:[#allocation2 + $0xe0] ss:$8 sps:$4 sm:$0xff]   ;;  %v5509_v0 = vsel %vm11989_vm5, %v8094_v31, %v5508_v39 }
 0x224   : > { %v2576_v14 = vadd.f32 %v2575_v61, %v11451_v51  ;;  %v2577_v30 = vpop.f32.mrb[33].mxu1  ;;  %v4507_v47 = vsel %vm2290_vm0, %v4485_v46, %v15259_v53  ;;  %v8710_v46 = vld [vmem:[#allocation2 + $0xf4] ss:$8 sps:$4 sm:$0xff]  }
 0x225   : > { %5895 = vrot.lane.b32.xlu1 %v12298_v24, %s15038_s25  ;;  %v2578_v41 = vadd.f32 %v2577_v30, %v11509_v26  ;;  %v2579_v36 = vpop.f32.mrb[34].mxu1  ;;  %v4153_v27 = vpop.permute.xlu1 %4152  ;;  %3323 = vmatpush1.bf16.msra.mxu0 %v8702_v59  ;;  %v5512_v30 = vsel %vm11989_vm5, %v5510_v4, %v5511_v12  ;;  %v12352_v53 = vpack.c.bf16 %v1213_v58, %v1211_v60  ;;  %v8895_v12 = vld [vmem:[%s9174_s23 + $0x98] sm:$0x7]  ;;  %v1214_v34 = vmax.f32 %v1059_v6, 0.0 }
 0x226   : > { %v2580_v61 = vadd.f32 %v2579_v36, %v11451_v51  ;;  %v4308_v15 = vpop.permute.xlu0 %4307  ;;  %v2581_v16 = vpop.f32.mrb[35].mxu1  ;;  %3324 = vmatprep.subr.bf16.mxu0 %v8707_v17  ;;  %v8894_v36 = vld [vmem:[%s9174_s23 + $0x94] sm:$0xf]  ;;  %v2686_v39 = vmax.f32 %v2576_v14, 0.0  ;;  %v5518_v4 = vrot.slane %v8895_v12, 7  ;;  %v12356_v32 = vcombine.low %v5509_v0, %v5512_v30 }
 0x227   : > { %v4534_v59 = vsel %vm2323_vm1, %v4507_v47, %v4308_v15  ;;  %v2582_v42 = vadd.f32 %v2581_v16, %v11509_v26  ;;  %5728 = vrot.lane.b32.xlu0 %v12189_v1, %s9026_s16  ;;  %v5515_v55 = vrot.slane %v8894_v36, 7  ;;  %15260 = vst [vmem:[#allocation50_spill] sm:$0xff] %v12352_v53  ;;  %v1062_v17 = vpop.f32.mrb[4].mxu0  ;;  %v2687_v47 = vmax.f32 %v2578_v41, 0.0  ;;  %v8708_v1 = vld [vmem:[#allocation2 + $0xf0] ss:$8 sps:$4 sm:$0xff]  }
 0x228   : > { %v2688_v31 = vmax.f32 %v2580_v61, 0.0  ;;  %8044 = vmatmul.mubr.msk.bf16.gmra.mrb[100].mxu1 %vm2422_vm3, %v4534_v59  ;;  %v1063_v60 = vadd.f32 %v1062_v17, %v12303_v57  ;;  %v1064_v58 = vpop.f32.mrb[5].mxu0  ;;  %v4375_v61 = vsel %vm2125_vm11, %v12316_v2, %v4153_v27  ;;  %v12362_v12 = vpack.c.bf16 %v1214_v34, %v1212_v45  ;;  %v15261_v2 = vld [vmem:[#allocation31_spill] sm:$0xff] }
 0x229   : > { %5769 = vrot.lane.b32.xlu1 %v12224_v52, %s9025_s21  ;;  %v2689_v16 = vmax.f32 %v2582_v42, 0.0  ;;  %v4229_v15 = vpop.permute.xlu1 %4228  ;;  %4785 = vmatprep.mubr.bf16.mxu1 %v14976_v35  ;;  %v1065_v41 = vadd.f32 %v1064_v58, %v12306_v28  ;;  %v1066_v6 = vpop.f32.mrb[6].mxu0 }
 0x22a   : > { %3325 = vmatpush1.bf16.msra.mxu0 %v8705_v18  ;;  %v2734_v14 = vpack.c.bf16 %v2688_v31, %v2686_v39  ;;  %v4191_v59 = vpop.permute.xlu0 %4190  ;;  %v1215_v18 = vmax.f32 %v1063_v60, 0.0  ;;  %v1067_v42 = vadd.f32 %v1066_v6, %v12303_v57  ;;  %v1068_v27 = vpop.f32.mrb[7].mxu0  ;;  %v15262_v60 = vrot.slane %v12333_v8, 11 }
 0x22b   : > { %3326 = vmatprep.subr.bf16.mxu0 %v8710_v46  ;;  %v2735_v0 = vpack.c.bf16 %v2689_v16, %v2687_v47  ;;  %v4407_v30 = vsel %vm2158_vm12, %v4375_v61, %v4191_v59  ;;  %5810 = vrot.lane.b32.xlu0 %v12216_v40, %s9028_s22  ;;  %v5517_v46 = vrot.slane %v5515_v55, 4  ;;  %v1216_v39 = vmax.f32 %v1065_v41, 0.0  ;;  %v1072_v59 = vpop.f32.mrb[8].mxu0  ;;  %v15264_v41 = vld [vmem:[#allocation18_spill] sm:$0xff] }
 0x22c   : > { %v4428_v45 = vsel %vm2191_vm13, %v4407_v30, %v15261_v2  ;;  %v1069_v31 = vadd.f32 %v1068_v27, %v12306_v28  ;;  %v1217_v47 = vmax.f32 %v1067_v42, 0.0  ;;  %v5516_v58 = vsel %vm11989_vm5, %v15262_v60, %v5515_v55  ;;  %v15266_v27 = vld [vmem:[#allocation30_spill] sm:$0xff] }
 0x22d   : > { %5851 = vrot.lane.b32.xlu1 %v12327_v11, %s9027_s17  ;;  %3055 = vmatprep.mubr.bf16.mxu0 %v2735_v0  ;;  %v4310_v34 = vpop.permute.xlu1 %4309  ;;  %v4455_v17 = vsel %vm2224_vm14, %v4428_v45, %v4229_v15  ;;  %v5519_v0 = vsel %vm11989_vm5, %v5517_v46, %v5518_v4  ;;  %v12407_v46 = vld [vmem:[%s9174_s23 + $0xa0] sm:$0xf] }
 0x22e   : > { %3327 = vmatpush1.bf16.msra.mxu0 %v8708_v1  ;;  %v4267_v16 = vpop.permute.xlu0 %4266  ;;  %v1218_v61 = vmax.f32 %v1069_v31, 0.0  ;;  %v12384_v15 = vpack.c.bf16 %v1217_v47, %v1215_v18  ;;  %v1073_v1 = vadd.f32 %v1072_v59, %v12303_v57  ;;  %v4345_v18 = vsel %vm962_vm9, %v11417_v48, %v15266_v27  ;;  %v12403_v47 = vld [vmem:[%s9174_s23 + $0x9c] sm:$0xf] }
 0x22f   : > { %3056 = vmatmul.mubr.bf16.gmra.mrb[96].mxu0 %v2734_v14  ;;  %v4487_v6 = vsel %vm2257_vm15, %v4455_v17, %v4267_v16  ;;  %5897 = vrot.lane.b32.xlu0 %v12356_v32, %s15038_s25  ;;  %v1074_v14 = vpop.f32.mrb[9].mxu0  ;;  %v12400_v17 = vcombine.low %v12333_v8, %v8894_v36  ;;  %v12411_v16 = vld [vmem:[%s9174_s23 + $0xa4] sm:$0x7]  ;;  %v12419_v8 = vcombine.low %v5516_v58, %v5519_v0  ;;  %v15268_v0 = vld [vmem:[#allocation17_spill] sm:$0xff] }
 0x230   : > { %15263 = vst [vmem:[#allocation52_spill] sm:$0xff] %v12384_v15  ;;  %v4508_v55 = vsel %vm2290_vm0, %v4487_v6, %v15264_v41  ;;  %v12391_v30 = vpack.c.bf16 %v1218_v61, %v1216_v39  ;;  %v5522_v39 = vrot.slane %v12407_v46, 7  ;;  %v5525_v48 = vrot.slane %v12411_v16, 7  ;;  %v1076_v60 = vpop.f32.mrb[10].mxu0 }
 0x231   : > { %5730 = vrot.lane.b32.xlu1 %v12107_v23, %s9026_s16  ;;  %v1075_v23 = vadd.f32 %v1074_v14, %v12306_v28  ;;  %v4193_v42 = vpop.permute.xlu1 %4192  ;;  %v4536_v45 = vsel %vm2323_vm1, %v4508_v55, %v4310_v34  ;;  %15267 = vst [vmem:[#allocation55_spill] sm:$0xff] %v12400_v17  ;;  %v1219_v36 = vmax.f32 %v1073_v1, 0.0  ;;  %v1077_v59 = vadd.f32 %v1076_v60, %v12303_v57  ;;  %v1078_v6 = vpop.f32.mrb[11].mxu0 }
 0x232   : > { %15265 = vst [vmem:[#allocation54_spill] sm:$0xff] %v12391_v30  ;;  %v4155_v31 = vpop.permute.xlu0 %4154  ;;  %8045 = vmatmul.mubr.msk.bf16.gmra.mrb[104].mxu1 %vm2422_vm3, %v4536_v45  ;;  %v1082_v16 = vpop.f32.mrb[12].mxu0 }
 0x233   : > { %v4377_v34 = vsel %vm2125_vm11, %v4345_v18, %v4155_v31  ;;  %v2585_v61 = vpop.f32.mrb[36].mxu1  ;;  %5771 = vrot.lane.b32.xlu0 %v12255_v5, %s9025_s21  ;;  %4795 = vmatprep.mubr.bf16.mxu1 %v14976_v35  ;;  %v1220_v18 = vmax.f32 %v1075_v23, 0.0  ;;  %v1079_v31 = vadd.f32 %v1078_v6, %v12306_v28  ;;  %v1221_v60 = vmax.f32 %v1077_v59, 0.0 }
 0x234   : > { %v4409_v14 = vsel %vm2158_vm12, %v4377_v34, %v4193_v42  ;;  %v2586_v55 = vadd.f32 %v2585_v61, %v11451_v51  ;;  %v2587_v45 = vpop.f32.mrb[37].mxu1  ;;  %v1083_v2 = vadd.f32 %v1082_v16, %v12303_v57  ;;  %v5524_v5 = vrot.slane %v5522_v39, 4 }
 0x235   : > { %5812 = vrot.lane.b32.xlu1 %v12267_v62, %s9028_s22  ;;  %v2588_v4 = vadd.f32 %v2587_v45, %v11509_v26  ;;  %v2589_v27 = vpop.f32.mrb[38].mxu1  ;;  %v4269_v58 = vpop.permute.xlu1 %4268  ;;  %v4429_v1 = vsel %vm2191_vm13, %v4409_v14, %v15268_v0  ;;  %v1222_v23 = vmax.f32 %v1079_v31, 0.0  ;;  %v12437_v59 = vpack.c.bf16 %v1221_v60, %v1219_v36 }
 0x236   : > { %v2690_v42 = vmax.f32 %v2586_v55, 0.0  ;;  %v2590_v34 = vadd.f32 %v2589_v27, %v11451_v51  ;;  %v4231_v61 = vpop.permute.xlu0 %4230  ;;  %v2591_v41 = vpop.f32.mrb[39].mxu1 }
 0x237   : > { %v2691_v52 = vmax.f32 %v2588_v4, 0.0  ;;  %v4457_v6 = vsel %vm2224_vm14, %v4429_v1, %v4231_v61  ;;  %v2592_v45 = vadd.f32 %v2591_v41, %v11509_v26  ;;  %5853 = vrot.lane.b32.xlu0 %v12400_v17, %s9027_s17  ;;  %15269 = vst [vmem:[#allocation56_spill] sm:$0xff] %v12437_v59  ;;  %v1084_v14 = vpop.f32.mrb[13].mxu0  ;;  %v12440_v16 = vpack.c.bf16 %v1222_v23, %v1220_v18  ;;  %v15271_v41 = vld [vmem:[#allocation35_spill] sm:$0xff]  ;;  %v12447_v59 = vld [vmem:[%s9174_s23 + $0xac] sm:$0xf] }
 0x238   : > { %v2692_v27 = vmax.f32 %v2590_v34, 0.0  ;;  %v4489_v55 = vsel %vm2257_vm15, %v4457_v6, %v4269_v58  ;;  %v1223_v4 = vmax.f32 %v1083_v2, 0.0  ;;  %v1086_v31 = vpop.f32.mrb[14].mxu0  ;;  %v1085_v15 = vadd.f32 %v1084_v14, %v12306_v28 }
 0x239   : > { %5899 = vrot.lane.b32.xlu1 %v12419_v8, %s15038_s25  ;;  %15270 = vst [vmem:[#allocation53_spill] sm:$0xff] %v12440_v16  ;;  %v2693_v1 = vmax.f32 %v2592_v45, 0.0  ;;  %v4157_v61 = vpop.permute.xlu1 %4156  ;;  %v4509_v0 = vsel %vm2290_vm0, %v4489_v55, %v15271_v41  ;;  %v1087_v30 = vadd.f32 %v1086_v31, %v12303_v57  ;;  %v1088_v53 = vpop.f32.mrb[15].mxu0  ;;  %v5529_v58 = vrot.slane %v12447_v59, 7  ;;  %v8713_v16 = vld [vmem:[#allocation2 + $0x204] ss:$8 sps:$4 sm:$0xff]  }
 0x23a   : > { %v2736_v36 = vpack.c.bf16 %v2692_v27, %v2690_v42  ;;  %v4312_v60 = vpop.permute.xlu0 %4311  ;;  %v1089_v18 = vadd.f32 %v1088_v53, %v12306_v28  ;;  %v1224_v23 = vmax.f32 %v1085_v15, 0.0  ;;  %v15272_v42 = vrot.slane %v12403_v47, 11  ;;  %v1092_v27 = vpop.f32.mrb[16].mxu0  ;;  %5135 = vmatprep.subr.bf16.mxu0 %v8713_v16 }
 0x23b   : > { %v2737_v2 = vpack.c.bf16 %v2693_v1, %v2691_v52  ;;  %v4538_v34 = vsel %vm2323_vm1, %v4509_v0, %v4312_v60  ;;  %5732 = vrot.lane.b32.xlu0 %v12177_v63, %s9026_s16  ;;  %v1225_v6 = vmax.f32 %v1087_v30, 0.0  ;;  %v5526_v52 = vsel %vm11989_vm5, %v5524_v5, %v5525_v48  ;;  %v15273_v0 = vld [vmem:[#allocation16_spill] sm:$0xff]  ;;  %v1094_v1 = vpop.f32.mrb[17].mxu0  ;;  %v15277_v60 = vld [vmem:[#allocation33_spill] sm:$0xff] }
 0x23c   : > { %8046 = vmatmul.mubr.msk.bf16.gmra.mrb[108].mxu1 %vm2422_vm3, %v4538_v34  ;;  %v5523_v45 = vsel %vm11989_vm5, %v15272_v42, %v5522_v39  ;;  %v1226_v53 = vmax.f32 %v1089_v18, 0.0  ;;  %v4347_v14 = vsel %vm962_vm9, %v11447_v9, %v15273_v0  ;;  %v12468_v15 = vcombine.low %v12403_v47, %v12407_v46  ;;  %v8900_v48 = vld [vmem:[%s9174_s23 + $0xa8] sm:$0xf] }
 0x23d   : > { %5773 = vrot.lane.b32.xlu1 %v12311_v56, %s9025_s21  ;;  %3065 = vmatprep.mubr.bf16.mxu0 %v2737_v2  ;;  %v4233_v63 = vpop.permute.xlu1 %4232  ;;  %v12471_v30 = vpack.c.bf16 %v1225_v6, %v1223_v4  ;;  %v4379_v39 = vsel %vm2125_vm11, %v4347_v14, %v4157_v61  ;;  %v8097_v55 = vrot.slane %v8900_v48, 11  ;;  %v1093_v9 = vadd.f32 %v1092_v27, %v12303_v57  ;;  %v8901_v2 = vld [vmem:[%s9174_s23 + $0xb0] sm:$0x7] }
 0x23e   : > { %15274 = vst [vmem:[#allocation57_spill] sm:$0xff] %v12468_v15  ;;  %4805 = vmatprep.mubr.bf16.mxu1 %v14976_v35  ;;  %v4195_v5 = vpop.permute.xlu0 %4194  ;;  %3066 = vmatmul.mubr.bf16.gmra.mrb[100].mxu0 %v2736_v36  ;;  %v12475_v31 = vpack.c.bf16 %v1226_v53, %v1224_v23  ;;  %v12483_v46 = vcombine.low %v5523_v45, %v5526_v52  ;;  %v5531_v4 = vrot.slane %v5529_v58, 4  ;;  %v1096_v36 = vpop.f32.mrb[18].mxu0  ;;  %v5532_v34 = vrot.slane %v8901_v2, 7 }
 0x23f   : > { %15275 = vst [vmem:[#allocation59_spill] sm:$0xff] %v12471_v30  ;;  %v4411_v47 = vsel %vm2158_vm12, %v4379_v39, %v4195_v5  ;;  %5814 = vrot.lane.b32.xlu0 %v12298_v24, %s9028_s22  ;;  %v1095_v61 = vadd.f32 %v1094_v1, %v12306_v28  ;;  %v1227_v23 = vmax.f32 %v1093_v9, 0.0  ;;  %v1097_v6 = vadd.f32 %v1096_v36, %v12303_v57  ;;  %v1098_v42 = vpop.f32.mrb[19].mxu0 }
 0x240   : > { %15276 = vst [vmem:[#allocation60_spill] sm:$0xff] %v12475_v31  ;;  %v4430_v18 = vsel %vm2191_vm13, %v4411_v47, %v15277_v60  ;;  %v1099_v45 = vadd.f32 %v1098_v42, %v12306_v28  ;;  %v5530_v9 = vsel %vm11989_vm5, %v8097_v55, %v5529_v58 }
 0x241   : > { %5855 = vrot.lane.b32.xlu1 %v12468_v15, %s9027_s17  ;;  %v4314_v53 = vpop.permute.xlu1 %4313  ;;  %v4459_v14 = vsel %vm2224_vm14, %v4430_v18, %v4233_v63  ;;  %v1228_v27 = vmax.f32 %v1095_v61, 0.0  ;;  %v1229_v39 = vmax.f32 %v1097_v6, 0.0  ;;  %v5533_v18 = vsel %vm11989_vm5, %v5531_v4, %v5532_v34 }
 0x242   : > { %v4271_v52 = vpop.permute.xlu0 %4270  ;;  %v1230_v47 = vmax.f32 %v1099_v45, 0.0  ;;  %v15280_v45 = vld [vmem:[#allocation21_spill] sm:$0xff]  ;;  %v12516_v34 = vcombine.low %v8900_v48, %v12447_v59 }
 0x243   : > { %v4491_v5 = vsel %vm2257_vm15, %v4459_v14, %v4271_v52  ;;  %v2595_v1 = vpop.f32.mrb[40].mxu1  ;;  %5901 = vrot.lane.b32.xlu0 %v12483_v46, %s15038_s25  ;;  %v12504_v2 = vpack.c.bf16 %v1229_v39, %v1227_v23  ;;  %v4349_v52 = vsel %vm962_vm9, %v11511_v25, %v15280_v45  ;;  %v8902_v25 = vld [vmem:[%s9174_s23 + $0xb8] sm:$0xf] }
 0x244   : > { %v4510_v63 = vsel %vm2290_vm0, %v4491_v5, %v11480_v7  ;;  %v2596_v61 = vadd.f32 %v2595_v1, %v11451_v51  ;;  %v2597_v36 = vpop.f32.mrb[41].mxu1  ;;  %v12508_v58 = vpack.c.bf16 %v1230_v47, %v1228_v27  ;;  %15281 = vst [vmem:[#allocation67_spill] sm:$0xff] %v12516_v34  ;;  %v5536_v27 = vrot.slane %v8902_v25, 7  ;;  %v1102_v1 = vpop.f32.mrb[20].mxu0  ;;  %v12546_v7 = vld [vmem:[%s9174_s23 + $0xc4] sm:$0xf] }
 0x245   : > { %5734 = vrot.lane.b32.xlu1 %v12216_v40, %s9026_s16  ;;  %15278 = vst [vmem:[#allocation62_spill] sm:$0xff] %v12504_v2  ;;  %v2598_v40 = vadd.f32 %v2597_v36, %v11509_v26  ;;  %v2599_v6 = vpop.f32.mrb[42].mxu1  ;;  %v4197_v42 = vpop.permute.xlu1 %4196  ;;  %v4540_v14 = vsel %vm2323_vm1, %v4510_v63, %v4314_v53  ;;  %v12524_v53 = vcombine.low %v5530_v9, %v5533_v18 }
 0x246   : > { %15279 = vst [vmem:[#allocation61_spill] sm:$0xff] %v12508_v58  ;;  %v2600_v55 = vadd.f32 %v2599_v6, %v11451_v51  ;;  %v4159_v5 = vpop.permute.xlu0 %4158  ;;  %8047 = vmatmul.mubr.msk.bf16.gmra.mrb[112].mxu1 %vm2422_vm3, %v4540_v14  ;;  %v2601_v4 = vpop.f32.mrb[43].mxu1  ;;  %v2694_v47 = vmax.f32 %v2596_v61, 0.0  ;;  %v1103_v48 = vadd.f32 %v1102_v1, %v12303_v57 }
 0x247   : > { %v4381_v23 = vsel %vm2125_vm11, %v4349_v52, %v4159_v5  ;;  %v2602_v39 = vadd.f32 %v2601_v4, %v11509_v26  ;;  %5775 = vrot.lane.b32.xlu0 %v12327_v11, %s9025_s21  ;;  %4815 = vmatprep.mubr.bf16.mxu1 %v14976_v35  ;;  %v1104_v36 = vpop.f32.mrb[21].mxu0  ;;  %v2695_v6 = vmax.f32 %v2598_v40, 0.0  ;;  %v15282_v5 = vld [vmem:[#allocation9_spill] sm:$0xff] }
 0x248   : > { %v2696_v63 = vmax.f32 %v2600_v55, 0.0  ;;  %v4413_v59 = vsel %vm2158_vm12, %v4381_v23, %v4197_v42  ;;  %v1105_v18 = vadd.f32 %v1104_v36, %v12306_v28  ;;  %v1106_v4 = vpop.f32.mrb[22].mxu0  ;;  %v8903_v55 = vld [vmem:[%s9174_s23 + $0xb4] sm:$0xf]  ;;  %v1231_v42 = vmax.f32 %v1103_v48, 0.0 }
 0x249   : > { %5816 = vrot.lane.b32.xlu1 %v12356_v32, %s9028_s22  ;;  %v2697_v14 = vmax.f32 %v2602_v39, 0.0  ;;  %v4273_v52 = vpop.permute.xlu1 %4272  ;;  %v4431_v9 = vsel %vm2191_vm13, %v4413_v59, %v15282_v5  ;;  %v8098_v0 = vrot.slane %v8903_v55, 11  ;;  %v1107_v23 = vadd.f32 %v1106_v4, %v12303_v57  ;;  %v1108_v60 = vpop.f32.mrb[23].mxu0  ;;  %v8904_v48 = vld [vmem:[%s9174_s23 + $0xbc] sm:$0x7] }
 0x24a   : > { %v2738_v45 = vpack.c.bf16 %v2696_v63, %v2694_v47  ;;  %v4235_v61 = vpop.permute.xlu0 %4234  ;;  %v1232_v39 = vmax.f32 %v1105_v18, 0.0  ;;  %v1109_v47 = vadd.f32 %v1108_v60, %v12306_v28  ;;  %v5538_v59 = vrot.slane %v5536_v27, 4 }
 0x24b   : > { %v2739_v1 = vpack.c.bf16 %v2697_v14, %v2695_v6  ;;  %v4461_v40 = vsel %vm2224_vm14, %v4431_v9, %v4235_v61  ;;  %5857 = vrot.lane.b32.xlu0 %v12516_v34, %s9027_s17  ;;  %v5539_v36 = vrot.slane %v8904_v48, 7  ;;  %v1233_v4 = vmax.f32 %v1107_v23, 0.0  ;;  %v15283_v14 = vld [vmem:[#allocation39_spill] sm:$0xff] }
 0x24c   : > { %v4493_v63 = vsel %vm2257_vm15, %v4461_v40, %v4273_v52  ;;  %v1234_v61 = vmax.f32 %v1109_v47, 0.0  ;;  %v5543_v18 = vrot.slane %v12546_v7, 7  ;;  %v15286_v40 = vld [vmem:[#allocation37_spill] sm:$0xff] }
 0x24d   : > { %5903 = vrot.lane.b32.xlu1 %v12524_v53, %s15038_s25  ;;  %3075 = vmatprep.mubr.bf16.mxu0 %v2739_v1  ;;  %v4161_v6 = vpop.permute.xlu1 %4160  ;;  %v4511_v9 = vsel %vm2290_vm0, %v4493_v63, %v15283_v14  ;;  %v12549_v60 = vpack.c.bf16 %v1233_v4, %v1231_v42  ;;  %v5540_v42 = vsel %vm11989_vm5, %v5538_v59, %v5539_v36  ;;  %v1112_v1 = vpop.f32.mrb[24].mxu0  ;;  %v8907_v59 = vld [vmem:[%s9174_s23 + $0xc8] sm:$0x7] }
 0x24e   : > { %v4316_v5 = vpop.permute.xlu0 %4315  ;;  %3076 = vmatmul.mubr.bf16.gmra.mrb[104].mxu0 %v2738_v45  ;;  %v12556_v23 = vpack.c.bf16 %v1234_v61, %v1232_v39  ;;  %v5537_v45 = vsel %vm11989_vm5, %v8098_v0, %v5536_v27  ;;  %v12566_v63 = vcombine.low %v8903_v55, %v8902_v25  ;;  %v1113_v48 = vadd.f32 %v1112_v1, %v12303_v57  ;;  %v1114_v4 = vpop.f32.mrb[25].mxu0 }
 0x24f   : > { %15284 = vst [vmem:[#allocation68_spill] sm:$0xff] %v12549_v60  ;;  %v4542_v52 = vsel %vm2323_vm1, %v4511_v9, %v4316_v5  ;;  %5736 = vrot.lane.b32.xlu0 %v12267_v62, %s9026_s16  ;;  %v4351_v5 = vsel %vm962_vm9, %v11578_v33, %v15286_v40  ;;  %v8906_v62 = vld [vmem:[%s9174_s23 + $0xc0] sm:$0xf]  ;;  %v5545_v9 = vrot.slane %v5543_v18, 4  ;;  %v5546_v36 = vrot.slane %v8907_v59, 7  ;;  %v15288_v40 = vld [vmem:[#allocation34_spill] sm:$0xff] }
 0x250   : > { %15285 = vst [vmem:[#allocation64_spill] sm:$0xff] %v12556_v23  ;;  %8048 = vmatmul.mubr.msk.bf16.gmra.mrb[116].mxu1 %vm2422_vm3, %v4542_v52  ;;  %15287 = vst [vmem:[#allocation69_spill] sm:$0xff] %v12566_v63  ;;  %v8099_v39 = vrot.slane %v8906_v62, 11  ;;  %v4383_v0 = vsel %vm2125_vm11, %v4351_v5, %v4161_v6  ;;  %v1115_v61 = vadd.f32 %v1114_v4, %v12306_v28  ;;  %v1116_v52 = vpop.f32.mrb[26].mxu0  ;;  %v1235_v1 = vmax.f32 %v1113_v48, 0.0 }
 0x251   : > { %5777 = vrot.lane.b32.xlu1 %v12400_v17, %s9025_s21  ;;  %v4237_v47 = vpop.permute.xlu1 %4236  ;;  %4825 = vmatprep.mubr.bf16.mxu1 %v14976_v35  ;;  %v12579_v55 = vcombine.low %v5537_v45, %v5540_v42  ;;  %v1117_v6 = vadd.f32 %v1116_v52, %v12303_v57  ;;  %v1118_v5 = vpop.f32.mrb[27].mxu0  ;;  %v15289_v17 = vld [vmem:[#allocation38_spill] sm:$0xff] }
 0x252   : > { %v4199_v27 = vpop.permute.xlu0 %4198  ;;  %v4353_v11 = vsel %vm962_vm9, %v11435_v49, %v15289_v17 }
 0x253   : > { %v4415_v33 = vsel %vm2158_vm12, %v4383_v0, %v4199_v27  ;;  %v2605_v25 = vpop.f32.mrb[44].mxu1  ;;  %5818 = vrot.lane.b32.xlu0 %v12419_v8, %s9028_s22  ;;  %v1236_v0 = vmax.f32 %v1115_v61, 0.0  ;;  %v1119_v27 = vadd.f32 %v1118_v5, %v12306_v28  ;;  %v1237_v41 = vmax.f32 %v1117_v6, 0.0 }
 0x254   : > { %v4432_v59 = vsel %vm2191_vm13, %v4415_v33, %v15288_v40  ;;  %v2606_v4 = vadd.f32 %v2605_v25, %v11451_v51  ;;  %v2607_v14 = vpop.f32.mrb[45].mxu1  ;;  %v5544_v61 = vsel %vm11989_vm5, %v8099_v39, %v5543_v18  ;;  %v5547_v25 = vsel %vm11989_vm5, %v5545_v9, %v5546_v36  ;;  %v15291_v39 = vld [vmem:[#allocation42_spill] sm:$0xff] }
 0x255   : > { %5859 = vrot.lane.b32.xlu1 %v12566_v63, %s9027_s17  ;;  %v2608_v45 = vadd.f32 %v2607_v14, %v11509_v26  ;;  %v2609_v42 = vpop.f32.mrb[46].mxu1  ;;  %v4463_v52 = vsel %vm2224_vm14, %v4432_v59, %v4237_v47  ;;  %v1238_v5 = vmax.f32 %v1119_v27, 0.0  ;;  %v12602_v14 = vpack.c.bf16 %v1237_v41, %v1235_v1  ;;  %v1122_v47 = vpop.f32.mrb[28].mxu0 }
 0x256   : > { %v2610_v60 = vadd.f32 %v2609_v42, %v11451_v51  ;;  %v4275_v33 = vpop.permute.xlu0 %4274  ;;  %v2611_v40 = vpop.f32.mrb[47].mxu1  ;;  %v2698_v56 = vmax.f32 %v2606_v4, 0.0  ;;  %v1123_v6 = vadd.f32 %v1122_v47, %v12303_v57  ;;  %v15293_v47 = vld [vmem:[#allocation40_spill] sm:$0xff] }
 0x257   : > { %v4318_v48 = vpop.permute.xlu1 %4317  ;;  %v4495_v49 = vsel %vm2257_vm15, %v4463_v52, %v4275_v33  ;;  %v2612_v17 = vadd.f32 %v2611_v40, %v11509_v26  ;;  %5905 = vrot.lane.b32.xlu0 %v12579_v55, %s15038_s25  ;;  %15290 = vst [vmem:[#allocation70_spill] sm:$0xff] %v12602_v14  ;;  %v12606_v36 = vpack.c.bf16 %v1238_v5, %v1236_v0  ;;  %v1124_v59 = vpop.f32.mrb[29].mxu0  ;;  %v2699_v40 = vmax.f32 %v2608_v45, 0.0  ;;  %v8908_v0 = vld [vmem:[%s9174_s23 + $0xd0] sm:$0xf] }
 0x258   : > { %v2700_v18 = vmax.f32 %v2610_v60, 0.0  ;;  %v4512_v9 = vsel %vm2290_vm0, %v4495_v49, %v15291_v39  ;;  %v1125_v42 = vadd.f32 %v1124_v59, %v12306_v28  ;;  %v12612_v60 = vcombine.low %v5544_v61, %v5547_v25  ;;  %v1126_v5 = vpop.f32.mrb[30].mxu0 }
 0x259   : > { %5738 = vrot.lane.b32.xlu1 %v12298_v24, %s9026_s16  ;;  %15292 = vst [vmem:[#allocation58_spill] sm:$0xff] %v12606_v36  ;;  %v2701_v4 = vmax.f32 %v2612_v17, 0.0  ;;  %v4544_v24 = vsel %vm2323_vm1, %v4512_v9, %v4318_v48  ;;  %v12615_v52 = vcombine.low %v8906_v62, %v12546_v7  ;;  %v5550_v33 = vrot.slane %v8908_v0, 7  ;;  %v1128_v61 = vpop.f32.mrb[31].mxu0  ;;  %v8909_v9 = vld [vmem:[%s9174_s23 + $0xcc] sm:$0xf] }
 0x25a   : > { %v2740_v41 = vpack.c.bf16 %v2700_v18, %v2698_v56  ;;  %v4163_v1 = vpop.permute.xlu0 %4162  ;;  %8049 = vmatmul.mubr.msk.bf16.gmra.mrb[120].mxu1 %vm2422_vm3, %v4544_v24  ;;  %v1239_v56 = vmax.f32 %v1123_v6, 0.0  ;;  %v1127_v48 = vadd.f32 %v1126_v5, %v12303_v57  ;;  %v1240_v62 = vmax.f32 %v1125_v42, 0.0  ;;  %v1132_v17 = vpop.f32.mrb[32].mxu0  ;;  %v8910_v42 = vld [vmem:[%s9174_s23 + $0xd4] sm:$0x7] }
 0x25b   : > { %v4201_v27 = vpop.permute.xlu1 %4200  ;;  %v2741_v45 = vpack.c.bf16 %v2701_v4, %v2699_v40  ;;  %v4385_v49 = vsel %vm2125_vm11, %v4353_v11, %v4163_v1  ;;  %5779 = vrot.lane.b32.xlu0 %v12468_v15, %s9025_s21  ;;  %4835 = vmatprep.mubr.bf16.mxu1 %v14976_v35  ;;  %v1129_v25 = vadd.f32 %v1128_v61, %v12306_v28  ;;  %v8100_v59 = vrot.slane %v8909_v9, 11  ;;  %v1134_v4 = vpop.f32.mrb[33].mxu0 }
 0x25c   : > { %v4417_v7 = vsel %vm2158_vm12, %v4385_v49, %v4201_v27  ;;  %v1241_v6 = vmax.f32 %v1127_v48, 0.0  ;;  %v1133_v40 = vadd.f32 %v1132_v17, %v12303_v57  ;;  %v5552_v24 = vrot.slane %v5550_v33, 4  ;;  %v8911_v17 = vld [vmem:[%s9174_s23] sm:$0xf] }
 0x25d   : > { %5820 = vrot.lane.b32.xlu1 %v12483_v46, %s9028_s22  ;;  %3085 = vmatprep.mubr.bf16.mxu0 %v2741_v45  ;;  %v4433_v18 = vsel %vm2191_vm13, %v4417_v7, %v15293_v47  ;;  %v5553_v1 = vrot.slane %v8910_v42, 7  ;;  %v1242_v5 = vmax.f32 %v1129_v25, 0.0  ;;  %v1135_v45 = vadd.f32 %v1134_v4, %v12306_v28  ;;  %v1136_v7 = vpop.f32.mrb[34].mxu0  ;;  %v8912_v47 = vld [vmem:[%s9174_s23 + $0x4] sm:$0xf] }
 0x25e   : > { %v4239_v27 = vpop.permute.xlu0 %4238  ;;  %3086 = vmatmul.mubr.bf16.gmra.mrb[108].mxu0 %v2740_v41  ;;  %v12638_v48 = vpack.c.bf16 %v1241_v6, %v1239_v56  ;;  %v8105_v25 = vcombine.low %v8911_v17, %v8912_v47  ;;  %v5551_v4 = vsel %vm11989_vm5, %v8100_v59, %v5550_v33  ;;  %v1138_v42 = vpop.f32.mrb[35].mxu0  ;;  %v12659_v59 = vcombine.low %v8909_v9, %v8908_v0 }
 0x25f   : > { %v4277_v11 = vpop.permute.xlu1 %4276  ;;  %v4465_v49 = vsel %vm2224_vm14, %v4433_v18, %v4239_v27  ;;  %5861 = vrot.lane.b32.xlu0 %v12615_v52, %s9027_s17  ;;  %v12640_v61 = vpack.c.bf16 %v1242_v5, %v1240_v62  ;;  %v1243_v18 = vmax.f32 %v1133_v40, 0.0  ;;  %v1137_v27 = vadd.f32 %v1136_v7, %v12303_v57 }
 0x260   : > { %15294 = vst [vmem:[#allocation66_spill] sm:$0xff] %v12638_v48  ;;  %v4497_v56 = vsel %vm2257_vm15, %v4465_v49, %v4277_v11  ;;  %v5554_v62 = vsel %vm11989_vm5, %v5552_v24, %v5553_v1  ;;  %v1244_v5 = vmax.f32 %v1135_v45, 0.0  ;;  %v1139_v39 = vadd.f32 %v1138_v42, %v12306_v28  ;;  %v12662_v11 = vld [vmem:[%s9174_s23 + $0xdc] sm:$0xf]  ;;  %v12666_v1 = vld [vmem:[%s9174_s23 + $0xc] sm:$0xf] }
 0x261   : > { %5907 = vrot.lane.b32.xlu1 %v12612_v60, %s15038_s25  ;;  %15295 = vst [vmem:[#allocation71_spill] sm:$0xff] %v12640_v61  ;;  %v5557_v40 = vrot.slane %v12662_v11, 7  ;;  %v1245_v24 = vmax.f32 %v1137_v27, 0.0  ;;  %v12669_v45 = vld [vmem:[%s9174_s23 + $0x10] sm:$0xf] }
 0x262   : > { %v12648_v6 = vpop.permute.xlu0 %4281  ;;  %v8106_v49 = vcombine.low %v12666_v1, %v12669_v45  ;;  %v1246_v0 = vmax.f32 %v1139_v39, 0.0  ;;  %v8917_v39 = vld [vmem:[%s9174_s23 + $0xd8] sm:$0xf] }
 0x263   : > { %v4320_v41 = vpop.permute.xlu1 %4319  ;;  %15296 = vst [vmem:[#allocation75_spill] sm:$0xff] %v12648_v6  ;;  %v4514_v47 = vsel %vm2290_vm0, %v4497_v56, %v12648_v6  ;;  %v2615_v33 = vpop.f32.mrb[48].mxu1  ;;  %5740 = vrot.lane.b32.xlu0 %v12356_v32, %s9026_s16  ;;  %v12677_v56 = vcombine.low %v5551_v4, %v5554_v62  ;;  %v12680_v6 = vld [vmem:[%s9174_s23 + $0xe8] sm:$0xf] }
 0x264   : > { %v2616_v7 = vadd.f32 %v2615_v33, %v11451_v51  ;;  %v2617_v17 = vpop.f32.mrb[49].mxu1  ;;  %v4546_v32 = vsel %vm2323_vm1, %v4514_v47, %v4320_v41  ;;  %v5598_v1 = vrot.slane %v12680_v6, 7  ;;  %v12683_v33 = vpack.c.bf16 %v1245_v24, %v1243_v18  ;;  %v12698_v24 = vld [vmem:[%s9174_s23 + $0xe4] sm:$0xf] }
 0x265   : > { %5781 = vrot.lane.b32.xlu1 %v12516_v34, %s9025_s21  ;;  %v2618_v9 = vadd.f32 %v2617_v17, %v11509_v26  ;;  %8050 = vmatmul.mubr.msk.bf16.gmra.mrb[124].mxu1 %vm2422_vm3, %v4546_v32  ;;  %v2619_v27 = vpop.f32.mrb[50].mxu1  ;;  %v8101_v17 = vrot.slane %v8917_v39, 11  ;;  %v8918_v32 = vld [vmem:[%s9174_s23 + $0xe0] sm:$0x7]  ;;  %v12689_v4 = vpack.c.bf16 %v1246_v0, %v1244_v5  ;;  %v5559_v18 = vrot.slane %v5557_v40, 4 }
 0x266   : > { %15297 = vst [vmem:[#allocation76_spill] sm:$0xff] %v12683_v33  ;;  %v2620_v45 = vadd.f32 %v2619_v27, %v11451_v51  ;;  %v5669_v41 = vpop.permute.xlu0 %5668  ;;  %v2621_v47 = vpop.f32.mrb[51].mxu1  ;;  %6283 = vmatprep.mubr.bf16.mxu1 %v14976_v35  ;;  %v5560_v34 = vrot.slane %v8918_v32, 7  ;;  %v8102_v27 = vrot.slane %v12698_v24, 11  ;;  %v2702_v48 = vmax.f32 %v2616_v7, 0.0 }
 0x267   : > { %v5719_v42 = vpop.permute.xlu1 %5718  ;;  %15298 = vst [vmem:[#allocation78_spill] sm:$0xff] %v12689_v4  ;;  %v5921_v62 = vsel %vm962_vm9, %v8105_v25, %v5669_v41  ;;  %v2622_v15 = vadd.f32 %v2621_v47, %v11509_v26  ;;  %5822 = vrot.lane.b32.xlu0 %v12524_v53, %s9028_s22  ;;  %v1142_v33 = vpop.f32.mrb[36].mxu0  ;;  %v8920_v5 = vld [vmem:[%s9174_s23 + $0xec] sm:$0x7]  ;;  %v2703_v47 = vmax.f32 %v2618_v9, 0.0  ;;  %v5600_v14 = vrot.slane %v5598_v1, 4 }
 0x268   : > { %v2704_v32 = vmax.f32 %v2620_v45, 0.0  ;;  %v5601_v0 = vrot.slane %v8920_v5, 7  ;;  %v1143_v25 = vadd.f32 %v1142_v33, %v12303_v57  ;;  %v1144_v41 = vpop.f32.mrb[37].mxu0  ;;  %v5953_v58 = vsel %vm2125_vm11, %v5921_v62, %v5719_v42 }
 0x269   : > { %5863 = vrot.lane.b32.xlu1 %v12659_v59, %s9027_s17  ;;  %v2705_v4 = vmax.f32 %v2622_v15, 0.0  ;;  %v1145_v36 = vadd.f32 %v1144_v41, %v12306_v28  ;;  %v1146_v23 = vpop.f32.mrb[38].mxu0  ;;  %v5561_v42 = vsel %vm11989_vm5, %v5559_v18, %v5560_v34  ;;  %v12726_v34 = vsel %vm11989_vm5, %v8102_v27, %v5598_v1  ;;  %v15300_v27 = vld [vmem:[#allocation102_spill] sm:$0xff] }
 0x26a   : > { %v2742_v2 = vpack.c.bf16 %v2704_v32, %v2702_v48  ;;  %v5760_v30 = vpop.permute.xlu0 %5759  ;;  %v1247_v31 = vmax.f32 %v1143_v25, 0.0  ;;  %v1147_v7 = vadd.f32 %v1146_v23, %v12303_v57  ;;  %v1148_v45 = vpop.f32.mrb[39].mxu0  ;;  %v5558_v23 = vsel %vm11989_vm5, %v8101_v17, %v5557_v40  ;;  %v12752_v17 = vld [vmem:[%s9174_s23 + $0x1c] sm:$0xf] }
 0x26b   : > { %v5801_v61 = vpop.permute.xlu1 %5800  ;;  %v2743_v5 = vpack.c.bf16 %v2705_v4, %v2703_v47  ;;  %v5985_v33 = vsel %vm2158_vm12, %v5953_v58, %v5760_v30  ;;  %5909 = vrot.lane.b32.xlu0 %v12677_v56, %s15038_s25  ;;  %v1248_v15 = vmax.f32 %v1145_v36, 0.0  ;;  %v1149_v48 = vadd.f32 %v1148_v45, %v12306_v28  ;;  %v15299_v30 = vld [vmem:[#allocation43_spill] sm:$0xff] }
 0x26c   : > { %v6016_v9 = vsel %vm2191_vm13, %v5985_v33, %v15212_v19  ;;  %v1249_v4 = vmax.f32 %v1147_v7, 0.0  ;;  %v12722_v40 = vcombine.low %v8917_v39, %v12662_v11  ;;  %v12730_v16 = vsel %vm11989_vm5, %v5600_v14, %v5601_v0  ;;  %v12742_v11 = vld [vmem:[%s9174_s23 + $0xfc] sm:$0xf]  ;;  %v1152_v39 = vpop.f32.mrb[40].mxu0  ;;  %v12749_v14 = vld [vmem:[%s9174_s23 + $0x18] sm:$0xf] }
 0x26d   : > { %5742 = vrot.lane.b32.xlu1 %v12419_v8, %s9026_s16  ;;  %v5923_v8 = vsel %vm962_vm9, %v8106_v49, %v15299_v30  ;;  %3095 = vmatprep.mubr.bf16.mxu0 %v2743_v5  ;;  %v6033_v36 = vsel %vm2224_vm14, %v6016_v9, %v5801_v61  ;;  %v1250_v62 = vmax.f32 %v1149_v48, 0.0  ;;  %v12759_v32 = vsel %vm962_vm9, %v12062_v50, %v15300_v27  ;;  %v1154_v25 = vpop.f32.mrb[41].mxu0  ;;  %v12770_v50 = vld [vmem:[%s9174_s23 + $0xf4] sm:$0xf] }
 0x26e   : > { %v5842_v19 = vpop.permute.xlu0 %5841  ;;  %3096 = vmatmul.mubr.bf16.gmra.mrb[112].mxu0 %v2742_v2  ;;  %v12732_v49 = vpack.c.bf16 %v1249_v4, %v1247_v31  ;;  %v12739_v2 = vcombine.low %v5558_v23, %v5561_v42  ;;  %v1153_v0 = vadd.f32 %v1152_v39, %v12303_v57  ;;  %v1155_v45 = vadd.f32 %v1154_v25, %v12306_v28  ;;  %v1156_v5 = vpop.f32.mrb[42].mxu0 }
 0x26f   : > { %v5888_v58 = vpop.permute.xlu1 %5887  ;;  %v6065_v61 = vsel %vm2257_vm15, %v6033_v36, %v5842_v19  ;;  %5783 = vrot.lane.b32.xlu0 %v12566_v63, %s9025_s21  ;;  %v12744_v1 = vpack.c.bf16 %v1250_v62, %v1248_v15  ;;  %v14858_v15 = vrot.slane %v12770_v50, 7  ;;  %v5563_v48 = vshrl.u32 %v12742_v11, 16  ;;  %v1158_v42 = vpop.f32.mrb[43].mxu0 }
 0x270   : > { %v6096_v31 = vsel %vm2290_vm0, %v6065_v61, %v15220_v44  ;;  %v1251_v9 = vmax.f32 %v1153_v0, 0.0  ;;  %v1157_v23 = vadd.f32 %v1156_v5, %v12303_v57  ;;  %v1252_v36 = vmax.f32 %v1155_v45, 0.0  ;;  %v8925_v5 = vld [vmem:[%s9174_s23 + $0xf8] sm:$0x7] }
 0x271   : > { %5824 = vrot.lane.b32.xlu1 %v12579_v55, %s9028_s22  ;;  %v6114_v41 = vsel %vm2323_vm1, %v6096_v31, %v5888_v58  ;;  %v5566_v58 = vshll.u32 %v12742_v11, 16  ;;  %v1159_v62 = vadd.f32 %v1158_v42, %v12306_v28  ;;  %v12799_v18 = vrot.slane %v5563_v48, 5 }
 0x272   : > { %8172 = vmatmul.mubr.msk.bf16.vlgmr.msra.gmra.mrb[128].mxu1 %vm2422_vm3, %v6114_v41  ;;  %v5721_v33 = vpop.permute.xlu0 %5720  ;;  %v1253_v27 = vmax.f32 %v1157_v23, 0.0  ;;  %v5607_v23 = vrot.slane %v14858_v15, 4 }
 0x273   : > { %v5762_v47 = vpop.permute.xlu1 %5761  ;;  %v5955_v4 = vsel %vm2125_vm11, %v5923_v8, %v5721_v33  ;;  %v2625_v30 = vpop.f32.mrb[52].mxu1  ;;  %5865 = vrot.lane.b32.xlu0 %v12722_v40, %s9027_s17  ;;  %6293 = vmatprep.mubr.bf16.mxu1 %v14976_v35  ;;  %v12786_v8 = vld [vmem:[%s9174_s23 + $0xf0] sm:$0xf]  ;;  %v12794_v33 = vld [vmem:[%s9174_s23 + $0x100] sm:$0xf]  ;;  %v1254_v42 = vmax.f32 %v1159_v62, 0.0 }
 0x274   : > { %v5987_v19 = vsel %vm2158_vm12, %v5955_v4, %v5762_v47  ;;  %v2626_v61 = vadd.f32 %v2625_v30, %v11451_v51  ;;  %v2627_v39 = vpop.f32.mrb[53].mxu1  ;;  %v8103_v31 = vrot.slane %v12786_v8, 11  ;;  %v5608_v47 = vrot.slane %v8925_v5, 7  ;;  %v12810_v62 = vld [vmem:[%s9174_s23 + $0x104] sm:$0x7]  ;;  %s7770_s23 = sshll.u32 %s338_s28, 9 }
 0x275   : > { %5911 = vrot.lane.b32.xlu1 %v12739_v2, %s15038_s25  ;;  %v2628_v0 = vadd.f32 %v2627_v39, %v11509_v26  ;;  %v2629_v25 = vpop.f32.mrb[54].mxu1  ;;  %v6017_v45 = vsel %vm2191_vm13, %v5987_v19, %v15218_v21  ;;  %v12801_v39 = vpack.c.bf16 %v1253_v27, %v1251_v9  ;;  %v5568_v19 = vrot.slane %v5566_v58, 6 }
 0x276   : > { %v2630_v4 = vadd.f32 %v2629_v25, %v11451_v51  ;;  %v5803_v30 = vpop.permute.xlu0 %5802  ;;  %v2631_v7 = vpop.f32.mrb[55].mxu1  ;;  %v12812_v25 = vpack.c.bf16 %v1254_v42, %v1252_v36  ;;  %v2706_v5 = vmax.f32 %v2626_v61, 0.0  ;;  %v5572_v27 = vshrl.u32 %v12794_v33, 16 }
 0x277   : > { %v5844_v41 = vpop.permute.xlu1 %5843  ;;  %15301 = vst [vmem:[#allocation77_spill] sm:$0xff] %v12801_v39  ;;  %v6035_v44 = vsel %vm2224_vm14, %v6017_v45, %v5803_v30  ;;  %v2632_v21 = vadd.f32 %v2631_v7, %v11509_v26  ;;  %5744 = vrot.lane.b32.xlu0 %v12483_v46, %s9026_s16  ;;  %v1162_v45 = vpop.f32.mrb[44].mxu0  ;;  %v2707_v30 = vmax.f32 %v2628_v0, 0.0  ;;  %v5575_v36 = vshll.u32 %v12794_v33, 16 }
 0x278   : > { %v2708_v48 = vmax.f32 %v2630_v4, 0.0  ;;  %v6067_v9 = vsel %vm2257_vm15, %v6035_v44, %v5844_v41  ;;  %v1163_v46 = vadd.f32 %v1162_v45, %v12303_v57  ;;  %v1164_v63 = vpop.f32.mrb[45].mxu0  ;;  %v5582_v61 = vshrl.u32 %v12810_v62, 16 }
 0x279   : > { %5785 = vrot.lane.b32.xlu1 %v12615_v52, %s9025_s21  ;;  %v2709_v7 = vmax.f32 %v2632_v21, 0.0  ;;  %v6097_v52 = vsel %vm2290_vm0, %v6067_v9, %v15223_v10  ;;  %v1165_v44 = vadd.f32 %v1164_v63, %v12306_v28  ;;  %v1166_v41 = vpop.f32.mrb[46].mxu0  ;;  %v15302_v4 = vcombine.low %v12698_v24, %v12680_v6 }
 0x27a   : > { %v2744_v39 = vpack.c.bf16 %v2708_v48, %v2706_v5  ;;  %v5890_v58 = vpop.permute.xlu0 %5889  ;;  %v1255_v10 = vmax.f32 %v1163_v46, 0.0  ;;  %v1167_v21 = vadd.f32 %v1166_v41, %v12303_v57  ;;  %v1168_v5 = vpop.f32.mrb[47].mxu0  ;;  %v15303_v48 = vld [vmem:[#allocation96_spill] sm:$0xff]  ;;  %v15304_v63 = vcombine.low %v12749_v14, %v12752_v17 }
 0x27b   : > { %v5723_v15 = vpop.permute.xlu1 %5722  ;;  %v2745_v42 = vpack.c.bf16 %v2709_v7, %v2707_v30  ;;  %v6116_v0 = vsel %vm2323_vm1, %v6097_v52, %v5890_v58  ;;  %5826 = vrot.lane.b32.xlu0 %v12612_v60, %s9028_s22  ;;  %v5585_v45 = vshll.u32 %v12810_v62, 16  ;;  %v1256_v30 = vmax.f32 %v1165_v44, 0.0 }
 0x27c   : > { %v5925_v9 = vsel %vm962_vm9, %v15304_v63, %v15303_v48  ;;  %8173 = vmatmul.mubr.msk.bf16.gmra.mrb[132].mxu1 %vm2422_vm3, %v6116_v0  ;;  %v1169_v6 = vadd.f32 %v1168_v5, %v12306_v28  ;;  %v15305_v60 = vrot.slane %v12770_v50, 7  ;;  %v5609_v14 = vsel %vm11989_vm5, %v5607_v23, %v5608_v47  ;;  %v1172_v0 = vpop.f32.mrb[48].mxu0 }
 0x27d   : > { %5867 = vrot.lane.b32.xlu1 %v15302_v4, %s9027_s17  ;;  %3105 = vmatprep.mubr.bf16.mxu0 %v2745_v42  ;;  %v5569_v17 = vor.u32 %v5568_v19, %v12799_v18  ;;  %v1257_v52 = vmax.f32 %v1167_v21, 0.0  ;;  %v5957_v46 = vsel %vm2125_vm11, %v5925_v9, %v5723_v15  ;;  %v5574_v44 = vrot.slane %v5572_v27, 5  ;;  %v1174_v23 = vpop.f32.mrb[49].mxu0 }
 0x27e   : > { %6303 = vmatprep.mubr.bf16.mxu1 %v14976_v35  ;;  %v12843_v7 = vsel %vm11989_vm5, %v8103_v31, %v15305_v60  ;;  %v5764_v58 = vpop.permute.xlu0 %5763  ;;  %3106 = vmatmul.mubr.bf16.gmra.mrb[116].mxu0 %v2744_v39  ;;  %v5577_v41 = vrot.slane %v5575_v36, 6  ;;  %v1258_v42 = vmax.f32 %v1169_v6, 0.0  ;;  %v15306_v31 = vcombine.low %v12726_v34, %v12730_v16  ;;  %v1176_v9 = vpop.f32.mrb[50].mxu0 }
 0x27f   : > { %v5805_v24 = vpop.permute.xlu1 %5804  ;;  %v5989_v4 = vsel %vm2158_vm12, %v5957_v46, %v5764_v58  ;;  %v12856_v18 = vrot.slane %v5582_v61, 5  ;;  %v12858_v47 = vpack.c.bf16 %v1257_v52, %v1255_v10  ;;  %v1173_v15 = vadd.f32 %v1172_v0, %v12303_v57  ;;  %v1178_v6 = vpop.f32.mrb[51].mxu0 }
 0x280   : > { %5913 = vrot.lane.b32.xlu0 %v15306_v31, %s15038_s25  ;;  %v6018_v39 = vsel %vm2191_vm13, %v5989_v4, %v15221_v3  ;;  %v12863_v19 = vrot.slane %v5585_v45, 6  ;;  %v12865_v27 = vpack.c.bf16 %v1258_v42, %v1256_v30  ;;  %v8145_v16 = vcombine.low %v12786_v8, %v12770_v50 }
 0x281   : > { %5746 = vrot.lane.b32.xlu1 %v12524_v53, %s9026_s16  ;;  %v1175_v53 = vadd.f32 %v1174_v23, %v12306_v28  ;;  %v6037_v34 = vsel %vm2224_vm14, %v6018_v39, %v5805_v24  ;;  %v8149_v61 = vcombine.low %v12843_v7, %v5609_v14  ;;  %v12872_v10 = vrot.slane %v5569_v17, 4 }
 0x282   : > { %v5846_v21 = vpop.permute.xlu0 %5845  ;;  %v8146_v3 = vcombine.low %v12742_v11, %v12794_v33  ;;  %v12876_v5 = vor.u32 %v5577_v41, %v5574_v44  ;;  %v8104_v48 = vrot.slane %v12742_v11, 11  ;;  %v5612_v63 = vrot.slane %v12794_v33, 7 }
 0x283   : > { %v5892_v36 = vpop.permute.xlu1 %5891  ;;  %v6069_v45 = vsel %vm2257_vm15, %v6037_v34, %v5846_v21  ;;  %v5615_v50 = vrot.slane %v12810_v62, 7  ;;  %v1259_v8 = vmax.f32 %v1173_v15, 0.0  ;;  %v1177_v30 = vadd.f32 %v1176_v9, %v12303_v57  ;;  %v2635_v60 = vpop.f32.mrb[56].mxu1 }
 0x284   : > { %5787 = vrot.lane.b32.xlu0 %v12659_v59, %s9025_s21  ;;  %v6098_v24 = vsel %vm2290_vm0, %v6069_v45, %v15229_v13  ;;  %v5588_v7 = vor.u32 %v12863_v19, %v12856_v18  ;;  %v1260_v14 = vmax.f32 %v1175_v53, 0.0  ;;  %v1179_v17 = vadd.f32 %v1178_v6, %v12306_v28  ;;  %v1182_v59 = vpop.f32.mrb[52].mxu0 }
 0x285   : > { %5828 = vrot.lane.b32.xlu1 %v12677_v56, %s9028_s22  ;;  %v2636_v52 = vadd.f32 %v2635_v60, %v11451_v51  ;;  %v2637_v56 = vpop.f32.mrb[57].mxu1  ;;  %v6118_v62 = vsel %vm2323_vm1, %v6098_v24, %v5892_v36  ;;  %v5579_v58 = vsel %vm9274_vm8, %v12872_v10, %v12876_v5  ;;  %v1261_v13 = vmax.f32 %v1177_v30, 0.0  ;;  %v1184_v53 = vpop.f32.mrb[53].mxu0 }
 0x286   : > { %v2638_v44 = vadd.f32 %v2637_v56, %v11509_v26  ;;  %v2639_v41 = vpop.f32.mrb[58].mxu1  ;;  %8174 = vmatmul.mubr.msk.bf16.gmra.mrb[136].mxu1 %vm2422_vm3, %v6118_v62  ;;  %v5725_v42 = vpop.permute.xlu0 %5724  ;;  %v5580_v0 = vrot.slane %v12876_v5, 4  ;;  %v1262_v4 = vmax.f32 %v1179_v17, 0.0  ;;  %v1183_v31 = vadd.f32 %v1182_v59, %v12303_v57 }
 0x287   : > { %v5766_v46 = vpop.permute.xlu1 %5765  ;;  %v2640_v18 = vadd.f32 %v2639_v41, %v11451_v51  ;;  %v5959_v15 = vsel %vm2125_vm11, %v12759_v32, %v5725_v42  ;;  %v2641_v23 = vpop.f32.mrb[59].mxu1  ;;  %v5614_v39 = vrot.slane %v5612_v63, 4  ;;  %v12909_v19 = vpack.c.bf16 %v1261_v13, %v1259_v8  ;;  %6313 = vmatprep.mubr.bf16.mxu1 %v14976_v35 }
 0x288   : > { %5869 = vrot.lane.b32.xlu0 %v8145_v16, %s9027_s17  ;;  %v2710_v36 = vmax.f32 %v2636_v52, 0.0  ;;  %v5991_v34 = vsel %vm2158_vm12, %v5959_v15, %v5766_v46  ;;  %v2642_v10 = vadd.f32 %v2641_v23, %v11509_v26  ;;  %v12914_v21 = vpack.c.bf16 %v1262_v4, %v1260_v14  ;;  %v1186_v32 = vpop.f32.mrb[54].mxu0 }
 0x289   : > { %5915 = vrot.lane.b32.xlu1 %v8149_v61, %s15038_s25  ;;  %v2711_v5 = vmax.f32 %v2638_v44, 0.0  ;;  %v2712_v16 = vmax.f32 %v2640_v18, 0.0  ;;  %v6019_v61 = vsel %vm2191_vm13, %v5991_v34, %v15225_v38  ;;  %v1185_v45 = vadd.f32 %v1184_v53, %v12306_v28  ;;  %v1188_v8 = vpop.f32.mrb[55].mxu0 }
 0x28a   : > { %v2713_v30 = vmax.f32 %v2642_v10, 0.0  ;;  %v5807_v6 = vpop.permute.xlu0 %5806  ;;  %v1263_v24 = vmax.f32 %v1183_v31, 0.0  ;;  %v1187_v60 = vadd.f32 %v1186_v32, %v12303_v57  ;;  %v1189_v17 = vadd.f32 %v1188_v8, %v12306_v28 }
 0x28b   : > { %v5848_v9 = vpop.permute.xlu1 %5847  ;;  %v2746_v59 = vpack.c.bf16 %v2712_v16, %v2710_v36  ;;  %v6039_v14 = vsel %vm2224_vm14, %v6019_v61, %v5807_v6  ;;  %v5589_v38 = vsel %vm9274_vm8, %v5580_v0, %v5588_v7  ;;  %v1264_v52 = vmax.f32 %v1185_v45, 0.0 }
 0x28c   : > { %5748 = vrot.lane.b32.xlu0 %v12579_v55, %s9026_s16  ;;  %v2747_v56 = vpack.c.bf16 %v2713_v30, %v2711_v5  ;;  %v6071_v46 = vsel %vm2257_vm15, %v6039_v14, %v5848_v9  ;;  %v1265_v62 = vmax.f32 %v1187_v60, 0.0  ;;  %v1266_v13 = vmax.f32 %v1189_v17, 0.0 }
 0x28d   : > { %5789 = vrot.lane.b32.xlu1 %v12722_v40, %s9025_s21  ;;  %v6099_v41 = vsel %vm2290_vm0, %v6071_v46, %v15234_v22  ;;  %v5613_v55 = vsel %vm11989_vm5, %v8104_v48, %v5612_v63  ;;  %v5616_v20 = vsel %vm11989_vm5, %v5614_v39, %v5615_v50  ;;  %v1192_v40 = vpop.f32.mrb[56].mxu0  ;;  %v8147_v48 = vcombine.low %v5579_v58, %v5589_v38  ;;  %v15307_v39 = vld [vmem:[#allocation112_spill] sm:$0xff]  ;;  %s14330_s21 = scalar_lea.vmem [#allocation5], %s7770_s23  ;;  %s8960_s23 = scalar_lea.vmem %s8959_s14, 16384 }
 0x28e   : > { %3115 = vmatprep.mubr.bf16.mxu0 %v2747_v56  ;;  %v5894_v7 = vpop.permute.xlu0 %5893  ;;  %v12939_v42 = vpack.c.bf16 %v1265_v62, %v1263_v24  ;;  %v12941_v0 = vpack.c.bf16 %v1266_v13, %v1264_v52  ;;  %v1193_v4 = vadd.f32 %v1192_v40, %v12303_v57  ;;  %v1194_v22 = vpop.f32.mrb[57].mxu0  ;;  %v8150_v50 = vcombine.low %v5613_v55, %v5616_v20  ;;  %v15309_v20 = vld [vmem:[#allocation46_spill] sm:$0xff] }
 0x28f   : > { %v5727_v44 = vpop.permute.xlu1 %5726  ;;  %v6120_v31 = vsel %vm2323_vm1, %v6099_v41, %v5894_v7  ;;  %3116 = vmatmul.mubr.bf16.gmra.mrb[120].mxu0 %v2746_v59  ;;  %v1195_v43 = vadd.f32 %v1194_v22, %v12306_v28  ;;  %v1196_v63 = vpop.f32.mrb[58].mxu0 }
 0x290   : > { %5830 = vrot.lane.b32.xlu0 %v12739_v2, %s9028_s22  ;;  %8175 = vmatmul.mubr.msk.bf16.gmra.mrb[140].mxu1 %vm2422_vm3, %v6120_v31  ;;  %v1267_v18 = vmax.f32 %v1193_v4, 0.0  ;;  %v1197_v15 = vadd.f32 %v1196_v63, %v12303_v57  ;;  %v1198_v23 = vpop.f32.mrb[59].mxu0  ;;  %v5929_v2 = vsel %vm962_vm9, %v12137_v29, %v15307_v39  ;;  %v8023_v31 = vld [vmem:[%s14505_s4 + $0x2] sm:$0x3]  ;;  %s7690_s22 = sshll.u32 %s14330_s21, 4  ;;  %s14447_s22 = int_to_ptr.vmem [resolvable:$true] %s7690_s22 }
 0x291   : > { %5871 = vrot.lane.b32.xlu1 %v8146_v3, %s9027_s17  ;;  %6323 = vmatprep.mubr.bf16.mxu1 %v14976_v35  ;;  %v1268_v53 = vmax.f32 %v1195_v43, 0.0  ;;  %v1199_v36 = vadd.f32 %v1198_v23, %v12306_v28  ;;  %v5961_v34 = vsel %vm2125_vm11, %v5929_v2, %v5727_v44  ;;  %v1202_v38 = vpop.f32.mrb[60].mxu0  ;;  %v15310_v2 = vld [vmem:[#allocation130_spill] sm:$0xff]  ;;  %s8261_s17 = sshll.u32 %s9107_s13, 13  ;;  %s8954_s26 = scalar_lea.vmem %s14447_s22, 8192 }
 0x292   : > { %v5768_v10 = vpop.permute.xlu0 %5767  ;;  %v1269_v11 = vmax.f32 %v1197_v15, 0.0  ;;  %v1203_v13 = vadd.f32 %v1202_v38, %v12303_v57  ;;  %v1204_v44 = vpop.f32.mrb[61].mxu0  ;;  %p8955_p6 = scmp.ne.s32.totalorder %s14447_s22, %s8954_s26  ;;  %p8961_p2 = scmp.lt.s32.totalorder %s14447_s22, %s8959_s14 }
 0x293   : > { %v5809_v58 = vpop.permute.xlu1 %5808  ;;  %v5993_v33 = vsel %vm2158_vm12, %v5961_v34, %v5768_v10  ;;  %v1270_v3 = vmax.f32 %v1199_v36, 0.0  ;;  %v2645_v5 = vpop.f32.mrb[60].mxu1  ;;  %v15311_v34 = vld [vmem:[#allocation36_spill] sm:$0xff]  ;;  %p8962_p3 = scmp.lt.s32.totalorder %s8960_s23, %s8954_s26 }
 0x294   : > { %5876 = vrot.lane.b32.xlu0 %v8147_v48, %s9031_s27  ;;  %v6020_v32 = vsel %vm2191_vm13, %v5993_v33, %v15231_v37  ;;  %v12965_v29 = vpack.c.bf16 %v1269_v11, %v1267_v18  ;;  %v2646_v16 = vadd.f32 %v2645_v5, %v11451_v51  ;;  %v2647_v9 = vpop.f32.mrb[61].mxu1  ;;  %v1206_v7 = vpop.f32.mrb[62].mxu0  ;;  %v1271_v48 = vmax.f32 %v1203_v13, 0.0  ;;  %v15312_v33 = vld [vmem:[#allocation15_spill] sm:$0xff]  ;;  %p8956_p10 = pnand %p8955_p6, %p15473_p9 }
 0x295   : > { %5917 = vrot.lane.b32.xlu1 %v8150_v50, %s15038_s25  ;;  %v6041_v45 = vsel %vm2224_vm14, %v6020_v32, %v5809_v58  ;;  %v12969_v8 = vpack.c.bf16 %v1270_v3, %v1268_v53  ;;  %v2648_v30 = vadd.f32 %v2647_v9, %v11509_v26  ;;  %v2649_v6 = vpop.f32.mrb[62].mxu1  ;;  %v1207_v43 = vadd.f32 %v1206_v7, %v12303_v57  ;;  %v1208_v63 = vpop.f32.mrb[63].mxu0  ;;  %s14437_s25 = scalar_lea.hbm %s14510_s9, %s8261_s17  ;;  %p8963_p4 = por %p8962_p3, %p8961_p2 }
 0x296   : > { %v5850_v24 = vpop.permute.xlu0 %5849  ;;  %v2650_v60 = vadd.f32 %v2649_v6, %v11451_v51  ;;  %v2651_v17 = vpop.f32.mrb[63].mxu1  ;;  %v2714_v52 = vmax.f32 %v2646_v16, 0.0  ;;  %v15308_v51 = vld [vmem:[#allocation123_spill] sm:$0xff]  ;;  %v1209_v23 = vadd.f32 %v1208_v63, %v12306_v28  ;;  %v12995_v10 = vrot.slane %v8023_v31, %v15311_v34  ;;  %v13011_v6 = vld [vmem:[#allocation2 + $0x304] ss:$8 sps:$4 sm:$0xff]   ;;  %p8957_p12 = pneg %p8956_p10 }
 0x297   : > { %v5896_v61 = vpop.permute.xlu1 %5895  ;;  %v6073_v37 = vsel %vm2257_vm15, %v6041_v45, %v5850_v24  ;;  %v2652_v14 = vadd.f32 %v2651_v17, %v11509_v26  ;;  %v2715_v41 = vmax.f32 %v2648_v30, 0.0  ;;  %v5931_v40 = vsel %vm962_vm9, %v15309_v20, %v15308_v51  ;;  %v13009_v30 = vld [vmem:[#allocation2 + $0x300] ss:$8 sps:$4 sm:$0xff]   ;;  %8262 = vmatprep.subr.bf16.mxu1 %v13011_v6  ;;  %v8714_v63 = vld [vmem:[#allocation2 + $0x210] ss:$8 sps:$4 sm:$0xff]  }
 0x298   : > { %v6100_v59 = vsel %vm2290_vm0, %v6073_v37, %v15236_v54  ;;  %v2716_v56 = vmax.f32 %v2650_v60, 0.0  ;;  %v1205_v26 = vadd.f32 %v1204_v44, %v12306_v28  ;;  %v1273_v53 = vmax.f32 %v1207_v43, 0.0  ;;  %8278 = vmatpush1.bf16.msra.mxu1 %v13009_v30  ;;  %v15318_v43 = vld [vmem:[#allocation54_spill] sm:$0xff]  ;;  %p8964_p7 = pnand %p8963_p4, %p8957_p12 }
 0x299   : > { %v6122_v62 = vsel %vm2323_vm1, %v6100_v59, %v5896_v61  ;;  %v2717_v55 = vmax.f32 %v2652_v14, 0.0  ;;  %v1274_v11 = vmax.f32 %v1209_v23, 0.0  ;;  %v12999_v3 = vrot.slane %v8023_v31, %v15312_v33  ;;  %v15313_v61 = vld [vmem:[#allocation24_spill] sm:$0xff]  ;;  %v15317_v31 = vld [vmem:[#allocation63_spill] sm:$0xff] }
 0x29a   : > { %8176 = vmatmul.mubr.msk.bf16.gmra.mrb[144].mxu1 %vm2422_vm3, %v6122_v62  ;;  %v5729_v54 = vpop.permute.xlu0 %5728  ;;  %v2748_v4 = vpack.c.bf16 %v2716_v56, %v2714_v52  ;;  %v1272_v15 = vmax.f32 %v1205_v26, 0.0  ;;  %v13001_v32 = vpack.c.bf16 %v1273_v53, %v1271_v48  ;;  %v8711_v52 = vld [vmem:[#allocation2 + $0x200] ss:$8 sps:$4 sm:$0xff]   ;;  %v15314_v56 = vld [vmem:[#allocation127_spill] sm:$0xff]  ;;  %v8719_v23 = vld [vmem:[#allocation2 + $0x224] ss:$8 sps:$4 sm:$0xff]  }
 0x29b   : > { %v5770_v46 = vpop.permute.xlu1 %5769  ;;  %v5963_v22 = vsel %vm2125_vm11, %v5931_v40, %v5729_v54  ;;  %6333 = vmatprep.mubr.bf16.mxu1 %v14976_v35  ;;  %v2749_v50 = vpack.c.bf16 %v2717_v55, %v2715_v41  ;;  %v8716_v41 = vld [vmem:[#allocation2 + $0x214] ss:$8 sps:$4 sm:$0xff]  }
 0x29c   : > { %v5995_v18 = vsel %vm2158_vm12, %v5963_v22, %v5770_v46  ;;  %v13005_v5 = vpack.c.bf16 %v1274_v11, %v1272_v15  ;;  %v15315_v46 = vld [vmem:[#allocation41_spill] sm:$0xff]  ;;  %v13037_v53 = vld [vmem:[#allocation2 + $0x314] ss:$8 sps:$4 sm:$0xff]  }
 0x29d   : > { %v6021_v58 = vsel %vm2191_vm13, %v5995_v18, %v15310_v2  ;;  %3125 = vmatprep.mubr.bf16.mxu0 %v2749_v50  ;;  %v5933_v62 = vsel %vm962_vm9, %v15315_v46, %v15314_v56  ;;  %8263 = vmatprep.subr.bf16.mxu1 %v13037_v53 }
 0x29e   : > { %v5811_v36 = vpop.permute.xlu0 %5810  ;;  %3126 = vmatmul.mubr.bf16.gmra.mrb[124].mxu0 %v2748_v4  ;;  %v15316_v4 = vld [vmem:[#allocation50_spill] sm:$0xff] }
 0x29f   : > { %v5852_v39 = vpop.permute.xlu1 %5851  ;;  %v6043_v57 = vsel %vm2224_vm14, %v6021_v58, %v5811_v36  ;;  %3328 = vmatprep.mubr.bf16.mxu0 %v12362_v12  ;;  %v15319_v36 = vld [vmem:[#allocation26_spill] sm:$0xff] }
 0x2a0   : > { %v6075_v28 = vsel %vm2257_vm15, %v6043_v57, %v5852_v39  ;;  %v4687_v16 = vpop.f32.mrb[64].mxu1 }
 0x2a1   : > { %v6101_v45 = vsel %vm2290_vm0, %v6075_v28, %v15313_v61  ;;  %v4688_v24 = vadd.f32 %v4687_v16, %v12995_v10  ;;  %v4689_v60 = vpop.f32.mrb[65].mxu1  ;;  %v8717_v16 = vld [vmem:[#allocation2 + $0x220] ss:$8 sps:$4 sm:$0xff]  }
 0x2a2   : > { %v5898_v37 = vpop.permute.xlu0 %5897  ;;  %v4690_v17 = vadd.f32 %v4689_v60, %v12999_v3  ;;  %v4691_v12 = vpop.f32.mrb[66].mxu1  ;;  %v8722_v60 = vld [vmem:[#allocation2 + $0x234] ss:$8 sps:$4 sm:$0xff]  }
 0x2a3   : > { %v5731_v9 = vpop.permute.xlu1 %5730  ;;  %v6124_v59 = vsel %vm2323_vm1, %v6101_v45, %v5898_v37  ;;  %v4692_v14 = vadd.f32 %v4691_v12, %v12995_v10  ;;  %v4693_v38 = vpop.f32.mrb[67].mxu1  ;;  %v4846_v55 = vmax.f32 %v4688_v24, 0.0  ;;  %v13044_v37 = vld [vmem:[#allocation2 + $0x310] ss:$8 sps:$4 sm:$0xff]   ;;  %v15320_v12 = vld [vmem:[#allocation65_spill] sm:$0xff] }
 0x2a4   : > { %8177 = vmatmul.mubr.msk.bf16.gmra.mrb[148].mxu1 %vm2422_vm3, %v6124_v59  ;;  %v4694_v13 = vadd.f32 %v4693_v38, %v12999_v3  ;;  %v5965_v51 = vsel %vm2125_vm11, %v5933_v62, %v5731_v9  ;;  %v4847_v54 = vmax.f32 %v4690_v17, 0.0  ;;  %v15322_v62 = vld [vmem:[#allocation52_spill] sm:$0xff] }
 0x2a5   : > { %6343 = vmatprep.mubr.bf16.mxu1 %v14976_v35  ;;  %v4848_v20 = vmax.f32 %v4692_v14, 0.0  ;;  %v15321_v14 = vld [vmem:[#allocation44_spill] sm:$0xff]  ;;  %8279 = vmatpush1.bf16.msra.mxu1 %v13044_v37 }
 0x2a6   : > { %v5772_v40 = vpop.permute.xlu0 %5771  ;;  %v4849_v26 = vmax.f32 %v4694_v13, 0.0  ;;  %3329 = vmatmul.mubr.bf16.vlgmr.msra.gmra.mrb[64].mxu0 %v15316_v4  ;;  %v5935_v38 = vsel %vm962_vm9, %v15321_v14, %v15320_v12 }
 0x2a7   : > { %v5813_v44 = vpop.permute.xlu1 %5812  ;;  %v5997_v7 = vsel %vm2158_vm12, %v5965_v51, %v5772_v40  ;;  %v13028_v22 = vpack.c.bf16 %v4848_v20, %v4846_v55  ;;  %3338 = vmatprep.mubr.bf16.mxu0 %v15318_v43  ;;  %5136 = vmatpush1.bf16.msra.mxu0 %v8711_v52  ;;  %v15323_v55 = vld [vmem:[#allocation53_spill] sm:$0xff]  ;;  %v8720_v51 = vld [vmem:[#allocation2 + $0x230] ss:$8 sps:$4 sm:$0xff]  }
 0x2a8   : > { %v6022_v48 = vsel %vm2191_vm13, %v5997_v7, %v15317_v31  ;;  %v13033_v50 = vpack.c.bf16 %v4849_v26, %v4847_v54  ;;  %5137 = vmatprep.subr.bf16.mxu0 %v8716_v41  ;;  %v8725_v20 = vld [vmem:[#allocation2 + $0x244] ss:$8 sps:$4 sm:$0xff]   ;;  %v15324_v7 = vld [vmem:[#allocation23_spill] sm:$0xff]  ;;  %v13061_v31 = vld [vmem:[#allocation2 + $0x320] ss:$8 sps:$4 sm:$0xff]  }
 0x2a9   : > { %v6045_v15 = vsel %vm2224_vm14, %v6022_v48, %v5813_v44  ;;  %v13063_v48 = vld [vmem:[#allocation2 + $0x324] ss:$8 sps:$4 sm:$0xff]  }
 0x2aa   : > { %v5854_v39 = vpop.permute.xlu0 %5853  ;;  %8264 = vmatprep.subr.bf16.mxu1 %v13063_v48 }
 0x2ab   : > { %v5900_v18 = vpop.permute.xlu1 %5899  ;;  %v6077_v2 = vsel %vm2257_vm15, %v6045_v15, %v5854_v39  ;;  %v4697_v58 = vpop.f32.mrb[68].mxu1  ;;  %5138 = vmatpush1.bf16.msra.mxu0 %v8714_v63  ;;  %8280 = vmatpush1.bf16.msra.mxu1 %v13061_v31 }
 0x2ac   : > { %v6102_v11 = vsel %vm2290_vm0, %v6077_v2, %v15319_v36  ;;  %v4698_v57 = vadd.f32 %v4697_v58, %v12995_v10  ;;  %v4699_v28 = vpop.f32.mrb[69].mxu1  ;;  %5139 = vmatprep.subr.bf16.mxu0 %v8719_v23  ;;  %v15325_v58 = vld [vmem:[#allocation29_spill] sm:$0xff] }
 0x2ad   : > { %v4700_v9 = vadd.f32 %v4699_v28, %v12999_v3  ;;  %v4701_v61 = vpop.f32.mrb[70].mxu1  ;;  %v6126_v24 = vsel %vm2323_vm1, %v6102_v11, %v5900_v18  ;;  %v8723_v11 = vld [vmem:[#allocation2 + $0x240] ss:$8 sps:$4 sm:$0xff]  }
 0x2ae   : > { %v4702_v17 = vadd.f32 %v4701_v61, %v12995_v10  ;;  %v4703_v59 = vpop.f32.mrb[71].mxu1  ;;  %8178 = vmatmul.mubr.msk.bf16.gmra.mrb[152].mxu1 %vm2422_vm3, %v6126_v24  ;;  %v5733_v52 = vpop.permute.xlu0 %5732  ;;  %3339 = vmatmul.mubr.bf16.gmra.mrb[68].mxu0 %v15322_v62  ;;  %v4850_v13 = vmax.f32 %v4698_v57, 0.0  ;;  %v13075_v57 = vld [vmem:[#allocation2 + $0x334] ss:$8 sps:$4 sm:$0xff]  }
 0x2af   : > { %v5774_v45 = vpop.permute.xlu1 %5773  ;;  %v4704_v56 = vadd.f32 %v4703_v59, %v12999_v3  ;;  %v5967_v46 = vsel %vm2125_vm11, %v5935_v38, %v5733_v52  ;;  %6353 = vmatprep.mubr.bf16.mxu1 %v14976_v35  ;;  %3348 = vmatprep.mubr.bf16.mxu0 %v15323_v55  ;;  %v4851_v40 = vmax.f32 %v4700_v9, 0.0  ;;  %v8728_v61 = vld [vmem:[#allocation2 + $0x254] ss:$8 sps:$4 sm:$0xff]   ;;  %v15327_v38 = vld [vmem:[#allocation60_spill] sm:$0xff]  ;;  %v15328_v52 = vld [vmem:[#allocation137_spill] sm:$0xff] }
 0x2b0   : > { %v4852_v44 = vmax.f32 %v4702_v17, 0.0  ;;  %v5999_v41 = vsel %vm2158_vm12, %v5967_v46, %v5774_v45  ;;  %5140 = vmatpush1.bf16.msra.mxu0 %v8717_v16  ;;  %v13078_v45 = vld [vmem:[#allocation2 + $0x330] ss:$8 sps:$4 sm:$0xff]   ;;  %v15326_v17 = vld [vmem:[#allocation56_spill] sm:$0xff]  ;;  %8265 = vmatprep.subr.bf16.mxu1 %v13075_v57 }
 0x2b1   : > { %v4853_v54 = vmax.f32 %v4704_v56, 0.0  ;;  %v6023_v4 = vsel %vm2191_vm13, %v5999_v41, %v15324_v7  ;;  %5141 = vmatprep.subr.bf16.mxu0 %v8722_v60  ;;  %v15329_v56 = vld [vmem:[#allocation47_spill] sm:$0xff]  ;;  %8281 = vmatpush1.bf16.msra.mxu1 %v13078_v45 }
 0x2b2   : > { %v13065_v43 = vpack.c.bf16 %v4852_v44, %v4850_v13  ;;  %v5815_v63 = vpop.permute.xlu0 %5814  ;;  %v5937_v46 = vsel %vm962_vm9, %v15329_v56, %v15328_v52  ;;  %v8726_v44 = vld [vmem:[#allocation2 + $0x250] ss:$8 sps:$4 sm:$0xff]  }
 0x2b3   : > { %v5856_v26 = vpop.permute.xlu1 %5855  ;;  %v13067_v18 = vpack.c.bf16 %v4853_v54, %v4851_v40  ;;  %v6047_v15 = vsel %vm2224_vm14, %v6023_v4, %v5815_v63  ;;  %v8731_v40 = vld [vmem:[#allocation2 + $0x264] ss:$8 sps:$4 sm:$0xff]  }
 0x2b4   : > { %v6079_v23 = vsel %vm2257_vm15, %v6047_v15, %v5856_v26  ;;  %5142 = vmatpush1.bf16.msra.mxu0 %v8720_v51  ;;  %v15330_v63 = vld [vmem:[#allocation8_spill] sm:$0xff] }
 0x2b5   : > { %v4707_v39 = vpop.f32.mrb[72].mxu1  ;;  %v6103_v36 = vsel %vm2290_vm0, %v6079_v23, %v15325_v58  ;;  %5143 = vmatprep.subr.bf16.mxu0 %v8725_v20  ;;  %v8729_v58 = vld [vmem:[#allocation2 + $0x260] ss:$8 sps:$4 sm:$0xff]  }
 0x2b6   : > { %v4708_v28 = vadd.f32 %v4707_v39, %v12995_v10  ;;  %v4709_v16 = vpop.f32.mrb[73].mxu1  ;;  %v5902_v9 = vpop.permute.xlu0 %5901  ;;  %3349 = vmatmul.mubr.bf16.gmra.mrb[72].mxu0 %v15326_v17 }
 0x2b7   : > { %v5735_v2 = vpop.permute.xlu1 %5734  ;;  %v4710_v24 = vadd.f32 %v4709_v16, %v12999_v3  ;;  %v6128_v60 = vsel %vm2323_vm1, %v6103_v36, %v5902_v9  ;;  %v4711_v59 = vpop.f32.mrb[74].mxu1  ;;  %3358 = vmatprep.mubr.bf16.mxu0 %v15327_v38  ;;  %v15331_v16 = vld [vmem:[#allocation59_spill] sm:$0xff] }
 0x2b8   : > { %v4712_v12 = vadd.f32 %v4711_v59, %v12995_v10  ;;  %v4713_v14 = vpop.f32.mrb[75].mxu1  ;;  %8179 = vmatmul.mubr.msk.bf16.gmra.mrb[156].mxu1 %vm2422_vm3, %v6128_v60  ;;  %5144 = vmatpush1.bf16.msra.mxu0 %v8723_v11  ;;  %v4854_v41 = vmax.f32 %v4708_v28, 0.0  ;;  %v5969_v55 = vsel %vm2125_vm11, %v5937_v46, %v5735_v2  ;;  %v8734_v11 = vld [vmem:[#allocation2 + $0x274] ss:$8 sps:$4 sm:$0xff]   ;;  %v15333_v59 = vld [vmem:[#allocation61_spill] sm:$0xff] }
 0x2b9   : > { %v4714_v62 = vadd.f32 %v4713_v14, %v12999_v3  ;;  %6363 = vmatprep.mubr.bf16.mxu1 %v14976_v35  ;;  %5145 = vmatprep.subr.bf16.mxu0 %v8728_v61  ;;  %v4855_v54 = vmax.f32 %v4710_v24, 0.0  ;;  %v15332_v61 = vld [vmem:[#allocation32_spill] sm:$0xff] }
 0x2ba   : > { %v4856_v51 = vmax.f32 %v4712_v12, 0.0  ;;  %v5776_v20 = vpop.permute.xlu0 %5775  ;;  %v13108_v12 = vld [vmem:[#allocation2 + $0x340] ss:$8 sps:$4 sm:$0xff]   ;;  %v13110_v14 = vld [vmem:[#allocation2 + $0x344] ss:$8 sps:$4 sm:$0xff]  }
 0x2bb   : > { %v5817_v13 = vpop.permute.xlu1 %5816  ;;  %v4857_v26 = vmax.f32 %v4714_v62, 0.0  ;;  %v6001_v7 = vsel %vm2158_vm12, %v5969_v55, %v5776_v20  ;;  %v8732_v62 = vld [vmem:[#allocation2 + $0x270] ss:$8 sps:$4 sm:$0xff]   ;;  %v15335_v55 = vld [vmem:[#allocation49_spill] sm:$0xff]  ;;  %8266 = vmatprep.subr.bf16.mxu1 %v13110_v14 }
 0x2bc   : > { %v13095_v4 = vpack.c.bf16 %v4856_v51, %v4854_v41  ;;  %v6024_v15 = vsel %vm2191_vm13, %v6001_v7, %v15330_v63  ;;  %5146 = vmatpush1.bf16.msra.mxu0 %v8726_v44  ;;  %v15334_v41 = vld [vmem:[#allocation22_spill] sm:$0xff]  ;;  %8282 = vmatpush1.bf16.msra.mxu1 %v13108_v12 }
 0x2bd   : > { %v13099_v23 = vpack.c.bf16 %v4857_v26, %v4855_v54  ;;  %v6049_v2 = vsel %vm2224_vm14, %v6024_v15, %v5817_v13  ;;  %5147 = vmatprep.subr.bf16.mxu0 %v8731_v40  ;;  %v5939_v51 = vsel %vm962_vm9, %v15335_v55, %v15334_v41  ;;  %v8737_v40 = vld [vmem:[#allocation2 + $0x284] ss:$8 sps:$4 sm:$0xff]  }
 0x2be   : > { %v5858_v36 = vpop.permute.xlu0 %5857  ;;  %3359 = vmatmul.mubr.bf16.gmra.mrb[76].mxu0 %v15331_v16 }
 0x2bf   : > { %v5904_v39 = vpop.permute.xlu1 %5903  ;;  %v6081_v28 = vsel %vm2257_vm15, %v6049_v2, %v5858_v36  ;;  %v4717_v9 = vpop.f32.mrb[76].mxu1  ;;  %3368 = vmatprep.mubr.bf16.mxu0 %v15333_v59  ;;  %v15336_v36 = vld [vmem:[#allocation28_spill] sm:$0xff] }
 0x2c0   : > { %v6104_v24 = vsel %vm2290_vm0, %v6081_v28, %v15332_v61  ;;  %v4718_v60 = vadd.f32 %v4717_v9, %v12995_v10  ;;  %v4719_v17 = vpop.f32.mrb[77].mxu1  ;;  %5148 = vmatpush1.bf16.msra.mxu0 %v8729_v58  ;;  %v8735_v28 = vld [vmem:[#allocation2 + $0x280] ss:$8 sps:$4 sm:$0xff]   ;;  %v8740_v61 = vld [vmem:[#allocation2 + $0x294] ss:$8 sps:$4 sm:$0xff]  }
 0x2c1   : > { %v4720_v38 = vadd.f32 %v4719_v17, %v12999_v3  ;;  %v4721_v52 = vpop.f32.mrb[78].mxu1  ;;  %v6130_v46 = vsel %vm2323_vm1, %v6104_v24, %v5904_v39  ;;  %5149 = vmatprep.subr.bf16.mxu0 %v8734_v11  ;;  %v15337_v17 = vld [vmem:[#allocation62_spill] sm:$0xff] }
 0x2c2   : > { %v4722_v13 = vadd.f32 %v4721_v52, %v12995_v10  ;;  %v4723_v44 = vpop.f32.mrb[79].mxu1  ;;  %8180 = vmatmul.mubr.msk.bf16.gmra.mrb[160].mxu1 %vm2422_vm3, %v6130_v46  ;;  %v5737_v20 = vpop.permute.xlu0 %5736  ;;  %v4858_v7 = vmax.f32 %v4718_v60, 0.0  ;;  %v15339_v46 = vld [vmem:[#allocation18_spill] sm:$0xff] }
 0x2c3   : > { %v5778_v56 = vpop.permute.xlu1 %5777  ;;  %v4724_v54 = vadd.f32 %v4723_v44, %v12999_v3  ;;  %v5971_v26 = vsel %vm2125_vm11, %v5939_v51, %v5737_v20  ;;  %6373 = vmatprep.mubr.bf16.mxu1 %v14976_v35  ;;  %v4859_v39 = vmax.f32 %v4720_v38, 0.0  ;;  %v15338_v38 = vld [vmem:[#allocation64_spill] sm:$0xff]  ;;  %v13137_v44 = vld [vmem:[#allocation2 + $0x354] ss:$8 sps:$4 sm:$0xff]  }
 0x2c4   : > { %v4860_v63 = vmax.f32 %v4722_v13, 0.0  ;;  %v6003_v15 = vsel %vm2158_vm12, %v5971_v26, %v5778_v56  ;;  %5150 = vmatpush1.bf16.msra.mxu0 %v8732_v62  ;;  %v8738_v13 = vld [vmem:[#allocation2 + $0x290] ss:$8 sps:$4 sm:$0xff]   ;;  %v8743_v20 = vld [vmem:[#allocation2 + $0x2a4] ss:$8 sps:$4 sm:$0xff]   ;;  %8267 = vmatprep.subr.bf16.mxu1 %v13137_v44 }
 0x2c5   : > { %v4861_v2 = vmax.f32 %v4724_v54, 0.0  ;;  %v6025_v11 = vsel %vm2191_vm13, %v6003_v15, %v15336_v36  ;;  %5151 = vmatprep.subr.bf16.mxu0 %v8737_v40  ;;  %v13140_v40 = vld [vmem:[#allocation2 + $0x350] ss:$8 sps:$4 sm:$0xff]  }
 0x2c6   : > { %v13127_v16 = vpack.c.bf16 %v4860_v63, %v4858_v7  ;;  %v5819_v9 = vpop.permute.xlu0 %5818  ;;  %3369 = vmatmul.mubr.bf16.gmra.mrb[80].mxu0 %v15337_v17  ;;  %8283 = vmatpush1.bf16.msra.mxu1 %v13140_v40 }
 0x2c7   : > { %v5860_v58 = vpop.permute.xlu1 %5859  ;;  %v13129_v24 = vpack.c.bf16 %v4861_v2, %v4859_v39  ;;  %v6051_v60 = vsel %vm2224_vm14, %v6025_v11, %v5819_v9  ;;  %3378 = vmatprep.mubr.bf16.mxu0 %v15338_v38  ;;  %v15340_v39 = vld [vmem:[#allocation25_spill] sm:$0xff]  ;;  %v15341_v2 = vld [vmem:[#allocation48_spill] sm:$0xff]  ;;  %v8746_v38 = vld [vmem:[#allocation2 + $0x2b4] ss:$8 sps:$4 sm:$0xff]  }
 0x2c8   : > { %v6083_v59 = vsel %vm2257_vm15, %v6051_v60, %v5860_v58  ;;  %5152 = vmatpush1.bf16.msra.mxu0 %v8735_v28  ;;  %v5941_v58 = vsel %vm962_vm9, %v15341_v2, %v15340_v39  ;;  %v8741_v28 = vld [vmem:[#allocation2 + $0x2a0] ss:$8 sps:$4 sm:$0xff]   ;;  %v13152_v9 = vld [vmem:[#allocation2 + $0x364] ss:$8 sps:$4 sm:$0xff]  }
 0x2c9   : > { %v4727_v52 = vpop.f32.mrb[80].mxu1  ;;  %v6105_v62 = vsel %vm2290_vm0, %v6083_v59, %v15339_v46  ;;  %5153 = vmatprep.subr.bf16.mxu0 %v8740_v61  ;;  %8268 = vmatprep.subr.bf16.mxu1 %v13152_v9  ;;  %v8749_v39 = vld [vmem:[#allocation2 + $0x2c4] ss:$8 sps:$4 sm:$0xff]  }
 0x2ca   : > { %v4728_v41 = vadd.f32 %v4727_v52, %v12995_v10  ;;  %v4729_v55 = vpop.f32.mrb[81].mxu1  ;;  %v5906_v51 = vpop.permute.xlu0 %5905  ;;  %v13156_v52 = vld [vmem:[#allocation2 + $0x360] ss:$8 sps:$4 sm:$0xff]  }
 0x2cb   : > { %v5739_v56 = vpop.permute.xlu1 %5738  ;;  %v4730_v54 = vadd.f32 %v4729_v55, %v12999_v3  ;;  %v6132_v26 = vsel %vm2323_vm1, %v6105_v62, %v5906_v51  ;;  %v4731_v7 = vpop.f32.mrb[82].mxu1  ;;  %v15342_v51 = vld [vmem:[#allocation68_spill] sm:$0xff]  ;;  %8284 = vmatpush1.bf16.msra.mxu1 %v13156_v52 }
 0x2cc   : > { %v4732_v63 = vadd.f32 %v4731_v7, %v12995_v10  ;;  %v4733_v15 = vpop.f32.mrb[83].mxu1  ;;  %8181 = vmatmul.mubr.msk.bf16.gmra.mrb[164].mxu1 %vm2422_vm3, %v6132_v26  ;;  %5154 = vmatpush1.bf16.msra.mxu0 %v8738_v13  ;;  %v4862_v61 = vmax.f32 %v4728_v41, 0.0  ;;  %v5973_v60 = vsel %vm2125_vm11, %v5941_v58, %v5739_v56  ;;  %v15344_v41 = vld [vmem:[#allocation31_spill] sm:$0xff]  ;;  %v15345_v26 = vld [vmem:[#allocation58_spill] sm:$0xff] }
 0x2cd   : > { %v4734_v36 = vadd.f32 %v4733_v15, %v12999_v3  ;;  %6383 = vmatprep.mubr.bf16.mxu1 %v14976_v35  ;;  %5155 = vmatprep.subr.bf16.mxu0 %v8743_v20  ;;  %v4863_v46 = vmax.f32 %v4730_v54, 0.0  ;;  %v8744_v54 = vld [vmem:[#allocation2 + $0x2b0] ss:$8 sps:$4 sm:$0xff]  }
 0x2ce   : > { %v4864_v17 = vmax.f32 %v4732_v63, 0.0  ;;  %v5780_v59 = vpop.permute.xlu0 %5779  ;;  %3379 = vmatmul.mubr.bf16.gmra.mrb[84].mxu0 %v15342_v51  ;;  %v15347_v51 = vld [vmem:[#allocation72_spill] sm:$0xff] }
 0x2cf   : > { %v5821_v11 = vpop.permute.xlu1 %5820  ;;  %v4865_v62 = vmax.f32 %v4734_v36, 0.0  ;;  %v6005_v55 = vsel %vm2158_vm12, %v5973_v60, %v5780_v59  ;;  %3388 = vmatprep.mubr.bf16.mxu0 %v15345_v26  ;;  %v15346_v36 = vld [vmem:[#allocation35_spill] sm:$0xff] }
 0x2d0   : > { %v13161_v13 = vpack.c.bf16 %v4864_v17, %v4862_v61  ;;  %v6026_v56 = vsel %vm2191_vm13, %v6005_v55, %v15344_v41  ;;  %5156 = vmatpush1.bf16.msra.mxu0 %v8741_v28  ;;  %v15348_v41 = vld [vmem:[#allocation45_spill] sm:$0xff] }
 0x2d1   : > { %v13166_v20 = vpack.c.bf16 %v4865_v62, %v4863_v46  ;;  %v6053_v63 = vsel %vm2224_vm14, %v6026_v56, %v5821_v11  ;;  %5157 = vmatprep.subr.bf16.mxu0 %v8746_v38  ;;  %v8747_v38 = vld [vmem:[#allocation2 + $0x2c0] ss:$8 sps:$4 sm:$0xff]   ;;  %v5943_v56 = vsel %vm962_vm9, %v15348_v41, %v15347_v51 }
 0x2d2   : > { %15343 = vst [vmem:[#allocation79_spill] sm:$0xff] %v13161_v13  ;;  %v5862_v15 = vpop.permute.xlu0 %5861  ;;  %v4737_v58 = vpop.f32.mrb[84].mxu1 }
 0x2d3   : > { %v5908_v7 = vpop.permute.xlu1 %5907  ;;  %v6085_v2 = vsel %vm2257_vm15, %v6053_v63, %v5862_v15  ;;  %v4738_v60 = vadd.f32 %v4737_v58, %v12995_v10  ;;  %v4739_v17 = vpop.f32.mrb[85].mxu1  ;;  %v8752_v63 = vld [vmem:[#allocation2 + $0x2d4] ss:$8 sps:$4 sm:$0xff]  }
 0x2d4   : > { %v6106_v61 = vsel %vm2290_vm0, %v6085_v2, %v15346_v36  ;;  %v4740_v59 = vadd.f32 %v4739_v17, %v12999_v3  ;;  %v4741_v46 = vpop.f32.mrb[86].mxu1  ;;  %5158 = vmatpush1.bf16.msra.mxu0 %v8744_v54  ;;  %v15349_v58 = vld [vmem:[#allocation70_spill] sm:$0xff] }
 0x2d5   : > { %v6134_v28 = vsel %vm2323_vm1, %v6106_v61, %v5908_v7  ;;  %v4742_v62 = vadd.f32 %v4741_v46, %v12995_v10  ;;  %v4743_v55 = vpop.f32.mrb[87].mxu1  ;;  %5159 = vmatprep.subr.bf16.mxu0 %v8749_v39  ;;  %v13185_v7 = vld [vmem:[#allocation2 + $0x370] ss:$8 sps:$4 sm:$0xff]   ;;  %v13187_v54 = vld [vmem:[#allocation2 + $0x374] ss:$8 sps:$4 sm:$0xff]   ;;  %v4866_v36 = vmax.f32 %v4738_v60, 0.0 }
 0x2d6   : > { %8182 = vmatmul.mubr.msk.bf16.gmra.mrb[168].mxu1 %vm2422_vm3, %v6134_v28  ;;  %v5741_v26 = vpop.permute.xlu0 %5740  ;;  %v4744_v15 = vadd.f32 %v4743_v55, %v12999_v3  ;;  %3389 = vmatmul.mubr.bf16.gmra.mrb[88].mxu0 %v15349_v58  ;;  %15350 = vst [vmem:[#allocation99_spill] sm:$0xff] %v13185_v7  ;;  %v15351_v46 = vld [vmem:[#allocation71_spill] sm:$0xff]  ;;  %v4867_v39 = vmax.f32 %v4740_v59, 0.0  ;;  %v15352_v55 = vld [vmem:[#allocation17_spill] sm:$0xff] }
 0x2d7   : > { %v5782_v11 = vpop.permute.xlu1 %5781  ;;  %v5975_v2 = vsel %vm2125_vm11, %v5943_v56, %v5741_v26  ;;  %6393 = vmatprep.mubr.bf16.mxu1 %v14976_v35  ;;  %v4868_v61 = vmax.f32 %v4742_v62, 0.0  ;;  %3398 = vmatprep.mubr.bf16.mxu0 %v15351_v46  ;;  %v8750_v56 = vld [vmem:[#allocation2 + $0x2d0] ss:$8 sps:$4 sm:$0xff]   ;;  %v8758_v60 = vld [vmem:[#allocation2 + $0x2e4] ss:$8 sps:$4 sm:$0xff]  }
 0x2d8   : > { %v6007_v17 = vsel %vm2158_vm12, %v5975_v2, %v5782_v11  ;;  %v4869_v28 = vmax.f32 %v4744_v15, 0.0  ;;  %5160 = vmatpush1.bf16.msra.mxu0 %v8747_v38  ;;  %8269 = vmatprep.subr.bf16.mxu1 %v13187_v54  ;;  %v8756_v46 = vld [vmem:[#allocation2 + $0x2e0] ss:$8 sps:$4 sm:$0xff]  }
 0x2d9   : > { %v6027_v41 = vsel %vm2191_vm13, %v6007_v17, %v15352_v55  ;;  %v13194_v26 = vpack.c.bf16 %v4868_v61, %v4866_v36  ;;  %5161 = vmatprep.subr.bf16.mxu0 %v8752_v63  ;;  %8285 = vmatpush1.bf16.msra.mxu1 %v13185_v7  ;;  %v15355_v17 = vld [vmem:[#allocation10_spill] sm:$0xff] }
 0x2da   : > { %v5823_v58 = vpop.permute.xlu0 %5822  ;;  %v13197_v11 = vpack.c.bf16 %v4869_v28, %v4867_v39  ;;  %v8761_v55 = vld [vmem:[#allocation2 + $0x2f4] ss:$8 sps:$4 sm:$0xff]  }
 0x2db   : > { %v5864_v51 = vpop.permute.xlu1 %5863  ;;  %15353 = vst [vmem:[#allocation105_spill] sm:$0xff] %v13194_v26  ;;  %v6055_v59 = vsel %vm2224_vm14, %v6027_v41, %v5823_v58  ;;  %v15356_v41 = vld [vmem:[#allocation66_spill] sm:$0xff] }
 0x2dc   : > { %15354 = vst [vmem:[#allocation100_spill] sm:$0xff] %v13197_v11  ;;  %v6087_v62 = vsel %vm2257_vm15, %v6055_v59, %v5864_v51  ;;  %5162 = vmatpush1.bf16.msra.mxu0 %v8750_v56  ;;  %v15357_v56 = vld [vmem:[#allocation78_spill] sm:$0xff] }
 0x2dd   : > { %v4747_v15 = vpop.f32.mrb[88].mxu1  ;;  %v6107_v38 = vsel %vm2290_vm0, %v6087_v62, %v15355_v17  ;;  %5163 = vmatprep.subr.bf16.mxu0 %v8758_v60  ;;  %v15358_v62 = vld [vmem:[#allocation30_spill] sm:$0xff] }
 0x2de   : > { %v4748_v36 = vadd.f32 %v4747_v15, %v12995_v10  ;;  %v4749_v61 = vpop.f32.mrb[89].mxu1  ;;  %v5910_v63 = vpop.permute.xlu0 %5909  ;;  %3399 = vmatmul.mubr.bf16.gmra.mrb[92].mxu0 %v15356_v41  ;;  %v15359_v15 = vld [vmem:[#allocation55_spill] sm:$0xff] }
 0x2df   : > { %v5743_v2 = vpop.permute.xlu1 %5742  ;;  %v4750_v39 = vadd.f32 %v4749_v61, %v12999_v3  ;;  %v6136_v28 = vsel %vm2323_vm1, %v6107_v38, %v5910_v63  ;;  %v4751_v51 = vpop.f32.mrb[90].mxu1  ;;  %3408 = vmatprep.mubr.bf16.mxu0 %v15357_v56  ;;  %v5945_v17 = vsel %vm962_vm9, %v15359_v15, %v15358_v62  ;;  %v8759_v38 = vld [vmem:[#allocation2 + $0x2f0] ss:$8 sps:$4 sm:$0xff]   ;;  %v13215_v61 = vld [vmem:[#allocation2 + $0x380] ss:$8 sps:$4 sm:$0xff]  }
 0x2e0   : > { %v4752_v58 = vadd.f32 %v4751_v51, %v12995_v10  ;;  %v4753_v59 = vpop.f32.mrb[91].mxu1  ;;  %8183 = vmatmul.mubr.msk.bf16.gmra.mrb[172].mxu1 %vm2422_vm3, %v6136_v28  ;;  %5164 = vmatpush1.bf16.msra.mxu0 %v8756_v46  ;;  %v13217_v63 = vld [vmem:[#allocation2 + $0x384] ss:$8 sps:$4 sm:$0xff]   ;;  %v4870_v41 = vmax.f32 %v4748_v36, 0.0  ;;  %v5977_v28 = vsel %vm2125_vm11, %v5945_v17, %v5743_v2 }
 0x2e1   : > { %v4754_v60 = vadd.f32 %v4753_v59, %v12999_v3  ;;  %6403 = vmatprep.mubr.bf16.mxu1 %v14976_v35  ;;  %5165 = vmatprep.subr.bf16.mxu0 %v8761_v55  ;;  %v4871_v11 = vmax.f32 %v4750_v39, 0.0  ;;  %v15361_v46 = vld [vmem:[#allocation33_spill] sm:$0xff] }
 0x2e2   : > { %v4872_v51 = vmax.f32 %v4752_v58, 0.0  ;;  %v5784_v56 = vpop.permute.xlu0 %5783  ;;  %8270 = vmatprep.subr.bf16.mxu1 %v13217_v63  ;;  %v15362_v58 = vld [vmem:[#allocation76_spill] sm:$0xff] }
 0x2e3   : > { %v5825_v26 = vpop.permute.xlu1 %5824  ;;  %v4873_v13 = vmax.f32 %v4754_v60, 0.0  ;;  %v6009_v62 = vsel %vm2158_vm12, %v5977_v28, %v5784_v56  ;;  %8286 = vmatpush1.bf16.msra.mxu1 %v13215_v61  ;;  %v15363_v60 = vld [vmem:[#allocation39_spill] sm:$0xff] }
 0x2e4   : > { %v13222_v59 = vpack.c.bf16 %v4872_v51, %v4870_v41  ;;  %v6028_v15 = vsel %vm2191_vm13, %v6009_v62, %v15361_v46  ;;  %5166 = vmatpush1.bf16.msra.mxu0 %v8759_v38  ;;  %v15364_v62 = vld [vmem:[#allocation16_spill] sm:$0xff]  ;;  %v15365_v46 = vld [vmem:[#allocation57_spill] sm:$0xff] }
 0x2e5   : > { %v13227_v7 = vpack.c.bf16 %v4873_v13, %v4871_v11  ;;  %v6057_v2 = vsel %vm2224_vm14, %v6028_v15, %v5825_v26  ;;  %6733 = vmatprep.subr.bf16.mxu0 %v13011_v6  ;;  %v5947_v15 = vsel %vm962_vm9, %v15365_v46, %v15364_v62 }
 0x2e6   : > { %15360 = vst [vmem:[#allocation80_spill] sm:$0xff] %v13222_v59  ;;  %v5866_v55 = vpop.permute.xlu0 %5865  ;;  %3409 = vmatmul.mubr.bf16.gmra.mrb[96].mxu0 %v15362_v58  ;;  %v4757_v17 = vpop.f32.mrb[92].mxu1  ;;  %v13249_v58 = vld [vmem:[#allocation2 + $0x394] ss:$8 sps:$4 sm:$0xff]  }
 0x2e7   : > { %v5912_v36 = vpop.permute.xlu1 %5911  ;;  %v6089_v39 = vsel %vm2257_vm15, %v6057_v2, %v5866_v55  ;;  %v4758_v28 = vadd.f32 %v4757_v17, %v12995_v10  ;;  %v4759_v51 = vpop.f32.mrb[93].mxu1  ;;  %3418 = vmatprep.mubr.bf16.mxu0 %v12744_v1  ;;  %8271 = vmatprep.subr.bf16.mxu1 %v13249_v58  ;;  %v15374_v59 = vld [vmem:[#allocation34_spill] sm:$0xff] }
 0x2e8   : > { %v6108_v41 = vsel %vm2290_vm0, %v6089_v39, %v15363_v60  ;;  %v4760_v13 = vadd.f32 %v4759_v51, %v12999_v3  ;;  %v4761_v26 = vpop.f32.mrb[94].mxu1  ;;  %v13247_v39 = vld [vmem:[#allocation2 + $0x390] ss:$8 sps:$4 sm:$0xff]  }
 0x2e9   : > { %v6138_v38 = vsel %vm2323_vm1, %v6108_v41, %v5912_v36  ;;  %v4762_v6 = vadd.f32 %v4761_v26, %v12995_v10  ;;  %v4763_v56 = vpop.f32.mrb[95].mxu1  ;;  %v4874_v36 = vmax.f32 %v4758_v28, 0.0  ;;  %8287 = vmatpush1.bf16.msra.mxu1 %v13247_v39 }
 0x2ea   : > { %8184 = vmatmul.mubr.msk.bf16.gmra.mrb[176].mxu1 %vm2422_vm3, %v6138_v38  ;;  %v5745_v2 = vpop.permute.xlu0 %5744  ;;  %v4764_v55 = vadd.f32 %v4763_v56, %v12999_v3  ;;  %v4875_v41 = vmax.f32 %v4760_v13, 0.0  ;;  %v15366_v38 = vld [vmem:[#allocation9_spill] sm:$0xff] }
 0x2eb   : > { %v5786_v11 = vpop.permute.xlu1 %5785  ;;  %v5979_v1 = vsel %vm2125_vm11, %v5947_v15, %v5745_v2  ;;  %6413 = vmatprep.mubr.bf16.mxu1 %v14976_v35  ;;  %v4876_v17 = vmax.f32 %v4762_v6, 0.0  ;;  %v15369_v2 = vld [vmem:[#allocation42_spill] sm:$0xff] }
 0x2ec   : > { %v6011_v60 = vsel %vm2158_vm12, %v5979_v1, %v5786_v11  ;;  %v4877_v51 = vmax.f32 %v4764_v55, 0.0  ;;  %v13266_v1 = vld [vmem:[#allocation2 + $0x3a0] ss:$8 sps:$4 sm:$0xff]  }
 0x2ed   : > { %v6029_v62 = vsel %vm2191_vm13, %v6011_v60, %v15366_v38  ;;  %v13255_v56 = vpack.c.bf16 %v4876_v17, %v4874_v36  ;;  %15370 = vst [vmem:[#allocation85_spill] sm:$0xff] %v13266_v1  ;;  %v13268_v36 = vld [vmem:[#allocation2 + $0x3a4] ss:$8 sps:$4 sm:$0xff]  }
 0x2ee   : > { %v5827_v46 = vpop.permute.xlu0 %5826  ;;  %v13258_v15 = vpack.c.bf16 %v4877_v51, %v4875_v41  ;;  %3419 = vmatmul.mubr.bf16.gmra.mrb[100].mxu0 %v12732_v49  ;;  %8272 = vmatprep.subr.bf16.mxu1 %v13268_v36 }
 0x2ef   : > { %v5868_v26 = vpop.permute.xlu1 %5867  ;;  %15367 = vst [vmem:[#allocation81_spill] sm:$0xff] %v13255_v56  ;;  %v6059_v28 = vsel %vm2224_vm14, %v6029_v62, %v5827_v46  ;;  %3428 = vmatprep.mubr.bf16.mxu0 %v12812_v25  ;;  %v15371_v62 = vld [vmem:[#allocation21_spill] sm:$0xff]  ;;  %v15372_v46 = vld [vmem:[#allocation67_spill] sm:$0xff]  ;;  %8288 = vmatpush1.bf16.msra.mxu1 %v13266_v1 }
 0x2f0   : > { %15368 = vst [vmem:[#allocation84_spill] sm:$0xff] %v13258_v15  ;;  %v6091_v13 = vsel %vm2257_vm15, %v6059_v28, %v5868_v26  ;;  %v5949_v28 = vsel %vm962_vm9, %v15372_v46, %v15371_v62  ;;  %v15373_v46 = vld [vmem:[#allocation77_spill] sm:$0xff] }
 0x2f1   : > { %v4767_v11 = vpop.f32.mrb[96].mxu1  ;;  %v6109_v55 = vsel %vm2290_vm0, %v6091_v13, %v15369_v2  ;;  %v13282_v2 = vld [vmem:[#allocation2 + $0x3b0] ss:$8 sps:$4 sm:$0xff]  }
 0x2f2   : > { %v4768_v17 = vadd.f32 %v4767_v11, %v12995_v10  ;;  %v4769_v60 = vpop.f32.mrb[97].mxu1  ;;  %v5914_v41 = vpop.permute.xlu0 %5913 }
 0x2f3   : > { %v5747_v6 = vpop.permute.xlu1 %5746  ;;  %v4770_v51 = vadd.f32 %v4769_v60, %v12999_v3  ;;  %v6140_v49 = vsel %vm2323_vm1, %v6109_v55, %v5914_v41  ;;  %v4771_v26 = vpop.f32.mrb[98].mxu1  ;;  %v13284_v55 = vld [vmem:[#allocation2 + $0x3b4] ss:$8 sps:$4 sm:$0xff]  }
 0x2f4   : > { %v4772_v25 = vadd.f32 %v4771_v26, %v12995_v10  ;;  %v4773_v38 = vpop.f32.mrb[99].mxu1  ;;  %8185 = vmatmul.mubr.msk.bf16.gmra.mrb[180].mxu1 %vm2422_vm3, %v6140_v49  ;;  %v4878_v60 = vmax.f32 %v4768_v17, 0.0  ;;  %v5981_v41 = vsel %vm2125_vm11, %v5949_v28, %v5747_v6  ;;  %8273 = vmatprep.subr.bf16.mxu1 %v13284_v55 }
 0x2f5   : > { %v4774_v13 = vadd.f32 %v4773_v38, %v12999_v3  ;;  %6423 = vmatprep.mubr.bf16.mxu1 %v14976_v35  ;;  %v4879_v56 = vmax.f32 %v4770_v51, 0.0  ;;  %8289 = vmatpush1.bf16.msra.mxu1 %v13282_v2 }
 0x2f6   : > { %v4880_v26 = vmax.f32 %v4772_v25, 0.0  ;;  %v5788_v49 = vpop.permute.xlu0 %5787  ;;  %3429 = vmatmul.mubr.bf16.gmra.mrb[104].mxu0 %v15373_v46  ;;  %v15377_v46 = vld [vmem:[#allocation69_spill] sm:$0xff] }
 0x2f7   : > { %v5829_v11 = vpop.permute.xlu1 %5828  ;;  %v4881_v15 = vmax.f32 %v4774_v13, 0.0  ;;  %v6013_v62 = vsel %vm2158_vm12, %v5981_v41, %v5788_v49  ;;  %3438 = vmatprep.mubr.bf16.mxu0 %v12865_v27 }
 0x2f8   : > { %v13290_v38 = vpack.c.bf16 %v4880_v26, %v4878_v60  ;;  %v6030_v1 = vsel %vm2191_vm13, %v6013_v62, %v15374_v59  ;;  %v15375_v60 = vld [vmem:[#allocation75_spill] sm:$0xff]  ;;  %v15376_v62 = vld [vmem:[#allocation37_spill] sm:$0xff] }
 0x2f9   : > { %v13295_v17 = vpack.c.bf16 %v4881_v15, %v4879_v56  ;;  %v6061_v6 = vsel %vm2224_vm14, %v6030_v1, %v5829_v11 }
 0x2fa   : > { %v5870_v51 = vpop.permute.xlu0 %5869 }
 0x2fb   : > { %v5916_v25 = vpop.permute.xlu1 %5915  ;;  %v6093_v28 = vsel %vm2257_vm15, %v6061_v6, %v5870_v51  ;;  %v4777_v13 = vpop.f32.mrb[100].mxu1  ;;  %v5951_v6 = vsel %vm962_vm9, %v15377_v46, %v15376_v62  ;;  %v15378_v46 = vld [vmem:[#allocation40_spill] sm:$0xff] }
 0x2fc   : > { %v4778_v41 = vadd.f32 %v4777_v13, %v12995_v10  ;;  %v6110_v26 = vsel %vm2290_vm0, %v6093_v28, %v15375_v60  ;;  %v4779_v49 = vpop.f32.mrb[101].mxu1  ;;  %v13316_v60 = vld [vmem:[#allocation2 + $0x3c4] ss:$8 sps:$4 sm:$0xff]  }
 0x2fd   : > { %v6142_v59 = vsel %vm2323_vm1, %v6110_v26, %v5916_v25  ;;  %v4780_v27 = vadd.f32 %v4779_v49, %v12999_v3  ;;  %v4781_v56 = vpop.f32.mrb[102].mxu1  ;;  %v13314_v25 = vld [vmem:[#allocation2 + $0x3c0] ss:$8 sps:$4 sm:$0xff]   ;;  %8274 = vmatprep.subr.bf16.mxu1 %v13316_v60 }
 0x2fe   : > { %v4782_v1 = vadd.f32 %v4781_v56, %v12995_v10  ;;  %v4783_v11 = vpop.f32.mrb[103].mxu1  ;;  %8186 = vmatmul.mubr.msk.bf16.gmra.mrb[184].mxu1 %vm2422_vm3, %v6142_v59  ;;  %v5749_v51 = vpop.permute.xlu0 %5748  ;;  %3439 = vmatmul.mubr.bf16.gmra.mrb[108].mxu0 %v12858_v47  ;;  %v4882_v26 = vmax.f32 %v4778_v41, 0.0  ;;  %v13320_v56 = vld [vmem:[#allocation2 + $0x3d4] ss:$8 sps:$4 sm:$0xff]   ;;  %v13328_v41 = vld [vmem:[#allocation2 + $0x3d0] ss:$8 sps:$4 sm:$0xff]  }
 0x2ff   : > { %v5790_v15 = vpop.permute.xlu1 %5789  ;;  %v4784_v13 = vadd.f32 %v4783_v11, %v12999_v3  ;;  %v5983_v28 = vsel %vm2125_vm11, %v5951_v6, %v5749_v51  ;;  %6433 = vmatprep.mubr.bf16.mxu1 %v14976_v35  ;;  %3448 = vmatprep.mubr.bf16.mxu0 %v12914_v21  ;;  %v4883_v62 = vmax.f32 %v4780_v27, 0.0 }
 0x300   : > { %v4884_v49 = vmax.f32 %v4782_v1, 0.0  ;;  %v6015_v59 = vsel %vm2158_vm12, %v5983_v28, %v5790_v15  ;;  %8290 = vmatpush1.bf16.msra.mxu1 %v13314_v25 }
 0x301   : > { %v4885_v11 = vmax.f32 %v4784_v13, 0.0  ;;  %v6031_v6 = vsel %vm2191_vm13, %v6015_v59, %v15378_v46  ;;  %8275 = vmatprep.subr.bf16.mxu1 %v13320_v56 }
 0x302   : > { %v13325_v47 = vpack.c.bf16 %v4884_v49, %v4882_v26  ;;  %v5831_v51 = vpop.permute.xlu0 %5830 }
 0x303   : > { %v5872_v35 = vpop.permute.xlu1 %5871  ;;  %v13330_v15 = vpack.c.bf16 %v4885_v11, %v4883_v62  ;;  %v6063_v21 = vsel %vm2224_vm14, %v6031_v6, %v5831_v51 }
 0x304   : > { %15379 = vst [vmem:[#allocation74_spill] sm:$0xff] %v13325_v47  ;;  %v6095_v1 = vsel %vm2257_vm15, %v6063_v21, %v5872_v35  ;;  %8291 = vmatpush1.bf16.msra.mxu1 %v13328_v41  ;;  %v13345_v21 = vld [vmem:[#allocation2 + $0x3e0] ss:$8 sps:$4 sm:$0xff]  }
 0x305   : > { %15380 = vst [vmem:[#allocation83_spill] sm:$0xff] %v13330_v15  ;;  %v4787_v27 = vpop.f32.mrb[104].mxu1 }
 0x306   : > { %v4788_v13 = vadd.f32 %v4787_v27, %v12995_v10  ;;  %v4789_v28 = vpop.f32.mrb[105].mxu1  ;;  %v5877_v26 = vpop.permute.xlu0 %5876  ;;  %3449 = vmatmul.mubr.bf16.gmra.mrb[112].mxu0 %v12909_v19  ;;  %v13347_v27 = vld [vmem:[#allocation2 + $0x3e4] ss:$8 sps:$4 sm:$0xff]   ;;  %v13349_v19 = vld [vmem:[#allocation2 + $0x3f4] ss:$8 sps:$4 sm:$0xff]  }
 0x307   : > { %v4790_v49 = vadd.f32 %v4789_v28, %v12999_v3  ;;  %v6112_v59 = vsel %vm2290_vm0, %v6095_v1, %v5877_v26  ;;  %v4791_v62 = vpop.f32.mrb[106].mxu1  ;;  %v5918_v11 = vpop.permute.xlu1 %5917  ;;  %3458 = vmatprep.mubr.bf16.mxu0 %v12941_v0  ;;  %8276 = vmatprep.subr.bf16.mxu1 %v13347_v27  ;;  %v13355_v0 = vld [vmem:[#allocation2 + $0x3f0] ss:$8 sps:$4 sm:$0xff]  }
 0x308   : > { %v4792_v46 = vadd.f32 %v4791_v62, %v12995_v10  ;;  %v6144_v6 = vsel %vm2323_vm1, %v6112_v59, %v5918_v11  ;;  %v4793_v51 = vpop.f32.mrb[107].mxu1  ;;  %v4886_v1 = vmax.f32 %v4788_v13, 0.0  ;;  %8292 = vmatpush1.bf16.msra.mxu1 %v13345_v21 }
 0x309   : > { %v4794_v35 = vadd.f32 %v4793_v51, %v12999_v3  ;;  %8187 = vmatmul.mubr.msk.bf16.gmra.mrb[188].mxu1 %vm2422_vm3, %v6144_v6  ;;  %v4887_v26 = vmax.f32 %v4790_v49, 0.0  ;;  %8277 = vmatprep.subr.bf16.mxu1 %v13349_v19 }
 0x30a   : > { %v4888_v28 = vmax.f32 %v4792_v46, 0.0 }
 0x30b   : > { %v4889_v47 = vmax.f32 %v4794_v35, 0.0 }
 0x30c   : > { %v13352_v59 = vpack.c.bf16 %v4888_v28, %v4886_v1  ;;  %8293 = vmatpush1.bf16.msra.mxu1 %v13355_v0 }
 0x30d   : > { %v13357_v62 = vpack.c.bf16 %v4889_v47, %v4887_v26 }
 0x30e   : > { %15381 = vst [vmem:[#allocation86_spill] sm:$0xff] %v13352_v59  ;;  %3459 = vmatmul.mubr.bf16.gmra.mrb[116].mxu0 %v12939_v42 }
 0x30f   : > { %15382 = vst [vmem:[#allocation106_spill] sm:$0xff] %v13357_v62  ;;  %v4797_v13 = vpop.f32.mrb[108].mxu1  ;;  %3468 = vmatprep.mubr.bf16.mxu0 %v12969_v8 }
 0x310   : > { %v4798_v11 = vadd.f32 %v4797_v13, %v12995_v10  ;;  %v4799_v46 = vpop.f32.mrb[109].mxu1 }
 0x311   : > { %v4800_v49 = vadd.f32 %v4799_v46, %v12999_v3  ;;  %v4801_v6 = vpop.f32.mrb[110].mxu1 }
 0x312   : > { %v4802_v51 = vadd.f32 %v4801_v6, %v12995_v10  ;;  %v4803_v35 = vpop.f32.mrb[111].mxu1  ;;  %v4890_v1 = vmax.f32 %v4798_v11, 0.0 }
 0x313   : > { %v4804_v47 = vadd.f32 %v4803_v35, %v12999_v3  ;;  %v4891_v26 = vmax.f32 %v4800_v49, 0.0  ;;  %v13380_v35 = vld [vmem:[%s14506_s5] sm:$0xff] }
 0x314   : > { %v4892_v28 = vmax.f32 %v4802_v51, 0.0 }
 0x315   : > { %v4893_v42 = vmax.f32 %v4804_v47, 0.0 }
 0x316   : > { %v13367_v59 = vpack.c.bf16 %v4892_v28, %v4890_v1  ;;  %3469 = vmatmul.mubr.bf16.gmra.mrb[120].mxu0 %v12965_v29 }
 0x317   : > { %v13369_v13 = vpack.c.bf16 %v4893_v42, %v4891_v26  ;;  %3478 = vmatprep.mubr.bf16.mxu0 %v13005_v5  ;;  %v8221_v5 = vcombine.high %v13380_v35, %v13380_v35 }
 0x319   : > { %v4807_v8 = vpop.f32.mrb[112].mxu1  ;;  %8222 = vmatprep.subr.msk.bf16.mxu1 %vm1011_vm10, %v8221_v5 }
 0x31a   : > { %v4808_v46 = vadd.f32 %v4807_v8, %v12995_v10  ;;  %v4809_v62 = vpop.f32.mrb[113].mxu1 }
 0x31b   : > { %v4810_v6 = vadd.f32 %v4809_v62, %v12999_v3  ;;  %v4811_v15 = vpop.f32.mrb[114].mxu1 }
 0x31c   : > { %v4812_v11 = vadd.f32 %v4811_v15, %v12995_v10  ;;  %v4813_v51 = vpop.f32.mrb[115].mxu1  ;;  %v4894_v29 = vmax.f32 %v4808_v46, 0.0 }
 0x31d   : > { %v4814_v49 = vadd.f32 %v4813_v51, %v12999_v3  ;;  %v4895_v1 = vmax.f32 %v4810_v6, 0.0 }
 0x31e   : > { %v4896_v47 = vmax.f32 %v4812_v11, 0.0  ;;  %3479 = vmatmul.mubr.bf16.gmra.mrb[124].mxu0 %v13001_v32 }
 0x31f   : > { %v4897_v28 = vmax.f32 %v4814_v49, 0.0  ;;  %5167 = vmatprep.mubr.bf16.mxu0 %v13033_v50 }
 0x320   : > { %v13385_v62 = vpack.c.bf16 %v4896_v47, %v4894_v29 }
 0x321   : > { %v13389_v15 = vpack.c.bf16 %v4897_v28, %v4895_v1 }
 0x323   : > { %v4817_v26 = vpop.f32.mrb[116].mxu1 }
 0x324   : > { %v4818_v42 = vadd.f32 %v4817_v26, %v12995_v10  ;;  %v4819_v8 = vpop.f32.mrb[117].mxu1 }
 0x325   : > { %v4820_v46 = vadd.f32 %v4819_v8, %v12999_v3  ;;  %v4821_v11 = vpop.f32.mrb[118].mxu1 }
 0x326   : > { %v4822_v6 = vadd.f32 %v4821_v11, %v12995_v10  ;;  %v4823_v51 = vpop.f32.mrb[119].mxu1  ;;  %5168 = vmatmul.mubr.bf16.vlgmr.msra.gmra.mrb[64].mxu0 %v13028_v22  ;;  %v4898_v49 = vmax.f32 %v4818_v42, 0.0 }
 0x327   : > { %v4824_v32 = vadd.f32 %v4823_v51, %v12999_v3  ;;  %5177 = vmatprep.mubr.bf16.mxu0 %v13067_v18  ;;  %6734 = vmatpush1.bf16.msra.mxu0 %v13009_v30  ;;  %v4899_v29 = vmax.f32 %v4820_v46, 0.0 }
 0x328   : > { %v4900_v50 = vmax.f32 %v4822_v6, 0.0  ;;  %6735 = vmatprep.subr.bf16.mxu0 %v13037_v53 }
 0x329   : > { %v4901_v47 = vmax.f32 %v4824_v32, 0.0 }
 0x32a   : > { %v13399_v5 = vpack.c.bf16 %v4900_v50, %v4898_v49 }
 0x32b   : > { %v13401_v1 = vpack.c.bf16 %v4901_v47, %v4899_v29  ;;  %6736 = vmatpush1.bf16.msra.mxu0 %v13044_v37 }
 0x32c   : > { %6737 = vmatprep.subr.bf16.mxu0 %v13063_v48 }
 0x32d   : > { %v4827_v28 = vpop.f32.mrb[120].mxu1 }
 0x32e   : > { %v4828_v22 = vadd.f32 %v4827_v28, %v12995_v10  ;;  %v4829_v26 = vpop.f32.mrb[121].mxu1  ;;  %5178 = vmatmul.mubr.bf16.gmra.mrb[68].mxu0 %v13065_v43 }
 0x32f   : > { %v4830_v18 = vadd.f32 %v4829_v26, %v12999_v3  ;;  %v4831_v42 = vpop.f32.mrb[122].mxu1  ;;  %5187 = vmatprep.mubr.bf16.mxu0 %v13099_v23  ;;  %6738 = vmatpush1.bf16.msra.mxu0 %v13061_v31  ;;  %v15385_v26 = vld [vmem:[#allocation100_spill] sm:$0xff] }
 0x330   : > { %v4832_v30 = vadd.f32 %v4831_v42, %v12995_v10  ;;  %v4833_v53 = vpop.f32.mrb[123].mxu1  ;;  %6739 = vmatprep.subr.bf16.mxu0 %v13075_v57  ;;  %v4902_v48 = vmax.f32 %v4828_v22, 0.0  ;;  %v15384_v22 = vld [vmem:[#allocation79_spill] sm:$0xff] }
 0x331   : > { %v4834_v37 = vadd.f32 %v4833_v53, %v12999_v3  ;;  %v4903_v46 = vmax.f32 %v4830_v18, 0.0 }
 0x332   : > { %v4904_v8 = vmax.f32 %v4832_v30, 0.0 }
 0x333   : > { %v4905_v11 = vmax.f32 %v4834_v37, 0.0  ;;  %6740 = vmatpush1.bf16.msra.mxu0 %v13078_v45 }
 0x334   : > { %v13413_v6 = vpack.c.bf16 %v4904_v8, %v4902_v48  ;;  %6741 = vmatprep.subr.bf16.mxu0 %v13110_v14 }
 0x335   : > { %v13416_v43 = vpack.c.bf16 %v4905_v11, %v4903_v46  ;;  %v15386_v46 = vld [vmem:[#allocation105_spill] sm:$0xff] }
 0x336   : > { %5188 = vmatmul.mubr.bf16.gmra.mrb[72].mxu0 %v13095_v4 }
 0x337   : > { %5197 = vmatprep.mubr.bf16.mxu0 %v13129_v24  ;;  %6742 = vmatpush1.bf16.msra.mxu0 %v13108_v12 }
 0x338   : > { %v4837_v23 = vpop.f32.mrb[124].mxu1  ;;  %6743 = vmatprep.subr.bf16.mxu0 %v13137_v44  ;;  %v8160_v44 = vld [vmem:[%s14505_s4 + $0x4] sm:$0x3] }
 0x339   : > { %v4838_v31 = vadd.f32 %v4837_v23, %v12995_v10  ;;  %v4839_v57 = vpop.f32.mrb[125].mxu1  ;;  %v15387_v23 = vld [vmem:[#allocation85_spill] sm:$0xff] }
 0x33a   : > { %v4840_v51 = vadd.f32 %v4839_v57, %v12999_v3  ;;  %v4841_v32 = vpop.f32.mrb[126].mxu1 }
 0x33b   : > { %v4842_v45 = vadd.f32 %v4841_v32, %v12995_v10  ;;  %v4843_v49 = vpop.f32.mrb[127].mxu1  ;;  %6744 = vmatpush1.bf16.msra.mxu0 %v13140_v40  ;;  %v4906_v4 = vmax.f32 %v4838_v31, 0.0  ;;  %v13444_v40 = vrot.slane %v8160_v44, %v15312_v33 }
 0x33c   : > { %v4844_v14 = vadd.f32 %v4843_v49, %v12999_v3  ;;  %6745 = vmatprep.subr.bf16.mxu0 %v13152_v9  ;;  %v4907_v12 = vmax.f32 %v4840_v51, 0.0  ;;  %v13441_v3 = vrot.slane %v8160_v44, %v15311_v34  ;;  %v15383_v9 = vld [vmem:[#allocation99_spill] sm:$0xff] }
 0x33d   : > { %v4908_v50 = vmax.f32 %v4842_v45, 0.0 }
 0x33e   : > { %v4909_v24 = vmax.f32 %v4844_v14, 0.0  ;;  %5198 = vmatmul.mubr.bf16.gmra.mrb[76].mxu0 %v13127_v16 }
 0x33f   : > { %v13429_v29 = vpack.c.bf16 %v4908_v50, %v4906_v4  ;;  %5207 = vmatprep.mubr.bf16.mxu0 %v13166_v20  ;;  %6746 = vmatpush1.bf16.msra.mxu0 %v13156_v52  ;;  %v15388_v50 = vld [vmem:[#allocation80_spill] sm:$0xff] }
 0x340   : > { %v13435_v10 = vpack.c.bf16 %v4909_v24, %v4907_v12  ;;  %6747 = vmatprep.subr.bf16.mxu0 %v13187_v54 }
 0x343   : > { %6748 = vmatpush1.bf16.msra.mxu0 %v15383_v9 }
 0x344   : > { %6749 = vmatprep.subr.bf16.mxu0 %v13217_v63 }
 0x345   : > { %v6285_v16 = vpop.f32.mrb[128].mxu1 }
 0x346   : > { %v6286_v47 = vadd.f32 %v6285_v16, %v13441_v3  ;;  %v6287_v28 = vpop.f32.mrb[129].mxu1  ;;  %5208 = vmatmul.mubr.bf16.gmra.mrb[80].mxu0 %v15384_v22 }
 0x347   : > { %v6288_v20 = vadd.f32 %v6287_v28, %v13444_v40  ;;  %v6289_v52 = vpop.f32.mrb[130].mxu1  ;;  %5217 = vmatprep.mubr.bf16.mxu0 %v15385_v26  ;;  %6750 = vmatpush1.bf16.msra.mxu0 %v13215_v61 }
 0x348   : > { %v6290_v54 = vadd.f32 %v6289_v52, %v13441_v3  ;;  %v6291_v18 = vpop.f32.mrb[131].mxu1  ;;  %6751 = vmatprep.subr.bf16.mxu0 %v13249_v58  ;;  %v6444_v63 = vmax.f32 %v6286_v47, 0.0 }
 0x349   : > { %v6292_v42 = vadd.f32 %v6291_v18, %v13444_v40  ;;  %v6445_v53 = vmax.f32 %v6288_v20, 0.0 }
 0x34a   : > { %v6446_v30 = vmax.f32 %v6290_v54, 0.0 }
 0x34b   : > { %v6447_v37 = vmax.f32 %v6292_v42, 0.0  ;;  %6752 = vmatpush1.bf16.msra.mxu0 %v13247_v39 }
 0x34c   : > { %v13456_v48 = vpack.c.bf16 %v6446_v30, %v6444_v63  ;;  %6753 = vmatprep.subr.bf16.mxu0 %v13268_v36 }
 0x34d   : > { %v13459_v8 = vpack.c.bf16 %v6447_v37, %v6445_v53  ;;  %v15391_v37 = vld [vmem:[#allocation83_spill] sm:$0xff] }
 0x34e   : > { %5218 = vmatmul.mubr.bf16.gmra.mrb[84].mxu0 %v15386_v46 }
 0x34f   : > { %v6295_v11 = vpop.f32.mrb[132].mxu1  ;;  %5227 = vmatprep.mubr.bf16.mxu0 %v13227_v7  ;;  %6754 = vmatpush1.bf16.msra.mxu0 %v15387_v23 }
 0x350   : > { %v6296_v61 = vadd.f32 %v6295_v11, %v13441_v3  ;;  %v6297_v58 = vpop.f32.mrb[133].mxu1  ;;  %6755 = vmatprep.subr.bf16.mxu0 %v13284_v55  ;;  %v15389_v55 = vld [vmem:[#allocation84_spill] sm:$0xff] }
 0x351   : > { %v6298_v31 = vadd.f32 %v6297_v58, %v13444_v40  ;;  %v6299_v57 = vpop.f32.mrb[134].mxu1 }
 0x352   : > { %v6300_v39 = vadd.f32 %v6299_v57, %v13441_v3  ;;  %v6301_v51 = vpop.f32.mrb[135].mxu1  ;;  %v6448_v32 = vmax.f32 %v6296_v61, 0.0  ;;  %v15392_v57 = vld [vmem:[#allocation74_spill] sm:$0xff] }
 0x353   : > { %v6302_v36 = vadd.f32 %v6301_v51, %v13444_v40  ;;  %6756 = vmatpush1.bf16.msra.mxu0 %v13282_v2  ;;  %v6449_v49 = vmax.f32 %v6298_v31, 0.0  ;;  %v15393_v51 = vld [vmem:[#allocation106_spill] sm:$0xff] }
 0x354   : > { %v6450_v45 = vmax.f32 %v6300_v39, 0.0  ;;  %6757 = vmatprep.subr.bf16.mxu0 %v13316_v60 }
 0x355   : > { %v6451_v14 = vmax.f32 %v6302_v36, 0.0 }
 0x356   : > { %v13472_v7 = vpack.c.bf16 %v6450_v45, %v6448_v32  ;;  %5228 = vmatmul.mubr.bf16.gmra.mrb[88].mxu0 %v15388_v50 }
 0x357   : > { %v13474_v4 = vpack.c.bf16 %v6451_v14, %v6449_v49  ;;  %5237 = vmatprep.mubr.bf16.mxu0 %v15389_v55  ;;  %6758 = vmatpush1.bf16.msra.mxu0 %v13314_v25 }
 0x358   : > { %6759 = vmatprep.subr.bf16.mxu0 %v13320_v56  ;;  %v15390_v56 = vld [vmem:[#allocation81_spill] sm:$0xff] }
 0x359   : > { %v6305_v12 = vpop.f32.mrb[136].mxu1 }
 0x35a   : > { %v6306_v24 = vadd.f32 %v6305_v12, %v13441_v3  ;;  %v6307_v2 = vpop.f32.mrb[137].mxu1 }
 0x35b   : > { %v6308_v44 = vadd.f32 %v6307_v2, %v13444_v40  ;;  %v6309_v9 = vpop.f32.mrb[138].mxu1  ;;  %6760 = vmatpush1.bf16.msra.mxu0 %v13328_v41 }
 0x35c   : > { %v6310_v60 = vadd.f32 %v6309_v9, %v13441_v3  ;;  %v6311_v16 = vpop.f32.mrb[139].mxu1  ;;  %6761 = vmatprep.subr.bf16.mxu0 %v13347_v27  ;;  %v6452_v28 = vmax.f32 %v6306_v24, 0.0  ;;  %v15394_v24 = vld [vmem:[#allocation86_spill] sm:$0xff] }
 0x35d   : > { %v6312_v47 = vadd.f32 %v6311_v16, %v13444_v40  ;;  %v6453_v20 = vmax.f32 %v6308_v44, 0.0 }
 0x35e   : > { %v6454_v25 = vmax.f32 %v6310_v60, 0.0  ;;  %5238 = vmatmul.mubr.bf16.gmra.mrb[92].mxu0 %v15390_v56 }
 0x35f   : > { %v6455_v22 = vmax.f32 %v6312_v47, 0.0  ;;  %5247 = vmatprep.mubr.bf16.mxu0 %v13295_v17  ;;  %6762 = vmatpush1.bf16.msra.mxu0 %v13345_v21 }
 0x360   : > { %v13487_v52 = vpack.c.bf16 %v6454_v25, %v6452_v28  ;;  %6763 = vmatprep.subr.bf16.mxu0 %v13349_v19 }
 0x361   : > { %v13491_v54 = vpack.c.bf16 %v6455_v22, %v6453_v20 }
 0x363   : > { %v6315_v41 = vpop.f32.mrb[140].mxu1  ;;  %6764 = vmatpush1.bf16.msra.mxu0 %v13355_v0 }
 0x364   : > { %v6316_v26 = vadd.f32 %v6315_v41, %v13441_v3  ;;  %v6317_v27 = vpop.f32.mrb[141].mxu1 }
 0x365   : > { %v6318_v18 = vadd.f32 %v6317_v27, %v13444_v40  ;;  %v6319_v42 = vpop.f32.mrb[142].mxu1 }
 0x366   : > { %v6320_v63 = vadd.f32 %v6319_v42, %v13441_v3  ;;  %v6321_v30 = vpop.f32.mrb[143].mxu1  ;;  %5248 = vmatmul.mubr.bf16.gmra.mrb[96].mxu0 %v13290_v38  ;;  %v6456_v21 = vmax.f32 %v6316_v26, 0.0 }
 0x367   : > { %v6322_v17 = vadd.f32 %v6321_v30, %v13444_v40  ;;  %5257 = vmatprep.mubr.bf16.mxu0 %v15391_v37  ;;  %v6457_v19 = vmax.f32 %v6318_v18, 0.0 }
 0x368   : > { %v6458_v53 = vmax.f32 %v6320_v63, 0.0 }
 0x369   : > { %v6459_v46 = vmax.f32 %v6322_v17, 0.0 }
 0x36a   : > { %v13501_v11 = vpack.c.bf16 %v6458_v53, %v6456_v21 }
 0x36b   : > { %v13503_v61 = vpack.c.bf16 %v6459_v46, %v6457_v19  ;;  %v8220_v46 = vcombine.low %v13380_v35, %v13380_v35 }
 0x36d   : > { %v6325_v0 = vpop.f32.mrb[144].mxu1 }
 0x36e   : > { %v6326_v58 = vadd.f32 %v6325_v0, %v13441_v3  ;;  %v6327_v23 = vpop.f32.mrb[145].mxu1  ;;  %5258 = vmatmul.mubr.bf16.gmra.mrb[100].mxu0 %v15392_v57 }
 0x36f   : > { %v6328_v31 = vadd.f32 %v6327_v23, %v13444_v40  ;;  %v6329_v39 = vpop.f32.mrb[146].mxu1  ;;  %5267 = vmatprep.mubr.bf16.mxu0 %v15393_v51  ;;  %v7116_v23 = vsel %vm1011_vm10, %v8220_v46, 0 }
 0x370   : > { %v6330_v38 = vadd.f32 %v6329_v39, %v13441_v3  ;;  %v6331_v36 = vpop.f32.mrb[147].mxu1  ;;  %v6460_v45 = vmax.f32 %v6326_v58, 0.0 }
 0x371   : > { %v6332_v32 = vadd.f32 %v6331_v36, %v13444_v40  ;;  %v6461_v14 = vmax.f32 %v6328_v31, 0.0 }
 0x372   : > { %v6462_v49 = vmax.f32 %v6330_v38, 0.0 }
 0x373   : > { %v6463_v50 = vmax.f32 %v6332_v32, 0.0 }
 0x374   : > { %v13511_v55 = vpack.c.bf16 %v6462_v49, %v6460_v45 }
 0x375   : > { %v13513_v12 = vpack.c.bf16 %v6463_v50, %v6461_v14 }
 0x376   : > { %5268 = vmatmul.mubr.bf16.gmra.mrb[104].mxu0 %v15394_v24 }
 0x377   : > { %v6335_v2 = vpop.f32.mrb[148].mxu1  ;;  %5277 = vmatprep.mubr.bf16.mxu0 %v13369_v13 }
 0x378   : > { %v6336_v44 = vadd.f32 %v6335_v2, %v13441_v3  ;;  %v6337_v9 = vpop.f32.mrb[149].mxu1 }
 0x379   : > { %v6338_v60 = vadd.f32 %v6337_v9, %v13444_v40  ;;  %v6339_v16 = vpop.f32.mrb[150].mxu1 }
 0x37a   : > { %v6340_v47 = vadd.f32 %v6339_v16, %v13441_v3  ;;  %v6341_v28 = vpop.f32.mrb[151].mxu1  ;;  %v6464_v20 = vmax.f32 %v6336_v44, 0.0 }
 0x37b   : > { %v6342_v25 = vadd.f32 %v6341_v28, %v13444_v40  ;;  %v6465_v56 = vmax.f32 %v6338_v60, 0.0 }
 0x37c   : > { %v6466_v22 = vmax.f32 %v6340_v47, 0.0 }
 0x37d   : > { %v6467_v41 = vmax.f32 %v6342_v25, 0.0 }
 0x37e   : > { %v13521_v26 = vpack.c.bf16 %v6466_v22, %v6464_v20  ;;  %5278 = vmatmul.mubr.bf16.gmra.mrb[108].mxu0 %v13367_v59 }
 0x37f   : > { %v13523_v27 = vpack.c.bf16 %v6467_v41, %v6465_v56  ;;  %5287 = vmatprep.mubr.bf16.mxu0 %v13389_v15 }
 0x381   : > { %v6345_v13 = vpop.f32.mrb[152].mxu1 }
 0x382   : > { %v6346_v18 = vadd.f32 %v6345_v13, %v13441_v3  ;;  %v6347_v42 = vpop.f32.mrb[153].mxu1 }
 0x383   : > { %v6348_v63 = vadd.f32 %v6347_v42, %v13444_v40  ;;  %v6349_v30 = vpop.f32.mrb[154].mxu1 }
 0x384   : > { %v6350_v17 = vadd.f32 %v6349_v30, %v13441_v3  ;;  %v6351_v21 = vpop.f32.mrb[155].mxu1  ;;  %v6468_v37 = vmax.f32 %v6346_v18, 0.0 }
 0x385   : > { %v6352_v53 = vadd.f32 %v6351_v21, %v13444_v40  ;;  %v6469_v59 = vmax.f32 %v6348_v63, 0.0 }
 0x386   : > { %v6470_v19 = vmax.f32 %v6350_v17, 0.0  ;;  %5288 = vmatmul.mubr.bf16.gmra.mrb[112].mxu0 %v13385_v62 }
 0x387   : > { %v6471_v0 = vmax.f32 %v6352_v53, 0.0  ;;  %5297 = vmatprep.mubr.bf16.mxu0 %v13401_v1 }
 0x388   : > { %v6520_v15 = vpack.c.bf16 %v6470_v19, %v6468_v37 }
 0x389   : > { %v6521_v58 = vpack.c.bf16 %v6471_v0, %v6469_v59 }
 0x38b   : > { %v6355_v31 = vpop.f32.mrb[156].mxu1  ;;  %6825 = vmatprep.mubr.bf16.mxu1 %v6521_v58 }
 0x38c   : > { %v6356_v57 = vadd.f32 %v6355_v31, %v13441_v3  ;;  %v6357_v39 = vpop.f32.mrb[157].mxu1  ;;  %6826 = vmatmul.mubr.bf16.vlgmr.msra.gmra.mrb[192].mxu1 %v6520_v15 }
 0x38d   : > { %v6358_v38 = vadd.f32 %v6357_v39, %v13444_v40  ;;  %v6359_v51 = vpop.f32.mrb[158].mxu1  ;;  %7122 = vmatpush1.bf16.msra.mxu1 %v7116_v23 }
 0x38e   : > { %v6360_v35 = vadd.f32 %v6359_v51, %v13441_v3  ;;  %v6361_v36 = vpop.f32.mrb[159].mxu1  ;;  %5298 = vmatmul.mubr.bf16.gmra.mrb[116].mxu0 %v13399_v5  ;;  %v6472_v1 = vmax.f32 %v6356_v57, 0.0 }
 0x38f   : > { %v6362_v62 = vadd.f32 %v6361_v36, %v13444_v40  ;;  %5307 = vmatprep.mubr.bf16.mxu0 %v13416_v43  ;;  %v6473_v45 = vmax.f32 %v6358_v38, 0.0 }
 0x390   : > { %v6474_v32 = vmax.f32 %v6360_v35, 0.0 }
 0x391   : > { %v6475_v49 = vmax.f32 %v6362_v62, 0.0 }
 0x392   : > { %v6522_v14 = vpack.c.bf16 %v6474_v32, %v6472_v1 }
 0x393   : > { %v6523_v50 = vpack.c.bf16 %v6475_v49, %v6473_v45 }
 0x395   : > { %v6365_v24 = vpop.f32.mrb[160].mxu1  ;;  %6835 = vmatprep.mubr.bf16.mxu1 %v6523_v50 }
 0x396   : > { %v6366_v2 = vadd.f32 %v6365_v24, %v13441_v3  ;;  %v6367_v44 = vpop.f32.mrb[161].mxu1  ;;  %6836 = vmatmul.mubr.bf16.gmra.mrb[196].mxu1 %v6522_v14  ;;  %5308 = vmatmul.mubr.bf16.gmra.mrb[120].mxu0 %v13413_v6 }
 0x397   : > { %v6368_v9 = vadd.f32 %v6367_v44, %v13444_v40  ;;  %v6369_v60 = vpop.f32.mrb[162].mxu1  ;;  %5317 = vmatprep.mubr.bf16.mxu0 %v13435_v10 }
 0x398   : > { %v6370_v5 = vadd.f32 %v6369_v60, %v13441_v3  ;;  %v6371_v43 = vpop.f32.mrb[163].mxu1  ;;  %v6476_v47 = vmax.f32 %v6366_v2, 0.0 }
 0x399   : > { %v6372_v16 = vadd.f32 %v6371_v43, %v13444_v40  ;;  %v6477_v25 = vmax.f32 %v6368_v9, 0.0 }
 0x39a   : > { %v6478_v28 = vmax.f32 %v6370_v5, 0.0 }
 0x39b   : > { %v6479_v20 = vmax.f32 %v6372_v16, 0.0 }
 0x39c   : > { %v6524_v22 = vpack.c.bf16 %v6478_v28, %v6476_v47 }
 0x39d   : > { %v6525_v56 = vpack.c.bf16 %v6479_v20, %v6477_v25 }
 0x39e   : > { %5318 = vmatmul.mubr.bf16.gmra.mrb[124].mxu0 %v13429_v29 }
 0x39f   : > { %v6375_v41 = vpop.f32.mrb[164].mxu1  ;;  %6845 = vmatprep.mubr.bf16.mxu1 %v6525_v56  ;;  %6765 = vmatprep.mubr.bf16.mxu0 %v13459_v8 }
 0x3a0   : > { %v6376_v6 = vadd.f32 %v6375_v41, %v13441_v3  ;;  %v6377_v13 = vpop.f32.mrb[165].mxu1  ;;  %6846 = vmatmul.mubr.bf16.gmra.mrb[200].mxu1 %v6524_v22 }
 0x3a1   : > { %v6378_v10 = vadd.f32 %v6377_v13, %v13444_v40  ;;  %v6379_v18 = vpop.f32.mrb[166].mxu1 }
 0x3a2   : > { %v6380_v42 = vadd.f32 %v6379_v18, %v13441_v3  ;;  %v6381_v63 = vpop.f32.mrb[167].mxu1  ;;  %v6480_v17 = vmax.f32 %v6376_v6, 0.0 }
 0x3a3   : > { %v6382_v30 = vadd.f32 %v6381_v63, %v13444_v40  ;;  %v6481_v53 = vmax.f32 %v6378_v10, 0.0 }
 0x3a4   : > { %v6482_v21 = vmax.f32 %v6380_v42, 0.0 }
 0x3a5   : > { %v6483_v29 = vmax.f32 %v6382_v30, 0.0 }
 0x3a6   : > { %v6526_v37 = vpack.c.bf16 %v6482_v21, %v6480_v17  ;;  %6766 = vmatmul.mubr.bf16.vlgmr.msra.gmra.mrb[64].mxu0 %v13456_v48 }
 0x3a7   : > { %v6527_v19 = vpack.c.bf16 %v6483_v29, %v6481_v53  ;;  %6775 = vmatprep.mubr.bf16.mxu0 %v13474_v4  ;;  %v15395_v29 = vld [vmem:[#allocation125_spill] sm:$0xff] }
 0x3a9   : > { %v6385_v8 = vpop.f32.mrb[168].mxu1  ;;  %6855 = vmatprep.mubr.bf16.mxu1 %v6527_v19 }
 0x3aa   : > { %v6386_v46 = vadd.f32 %v6385_v8, %v13441_v3  ;;  %v6387_v59 = vpop.f32.mrb[169].mxu1  ;;  %6856 = vmatmul.mubr.bf16.gmra.mrb[204].mxu1 %v6526_v37  ;;  %v7085_v37 = vrot.slane %v15395_v29, 4 }
 0x3ab   : > { %v6388_v0 = vadd.f32 %v6387_v59, %v13444_v40  ;;  %v6389_v15 = vpop.f32.mrb[170].mxu1 }
 0x3ac   : > { %v6390_v58 = vadd.f32 %v6389_v15, %v13441_v3  ;;  %v6391_v23 = vpop.f32.mrb[171].mxu1  ;;  %v6484_v57 = vmax.f32 %v6386_v46, 0.0  ;;  %v7086_v59 = vadd.f32 %v7085_v37, %v15395_v29  ;;  %v8838_v29 = vld [vmem:[#allocation2 + $0x494] ss:$8 sps:$4 sm:$0xff]  }
 0x3ad   : > { %v6392_v31 = vadd.f32 %v6391_v23, %v13444_v40  ;;  %v6485_v38 = vmax.f32 %v6388_v0, 0.0 }
 0x3ae   : > { %v6486_v39 = vmax.f32 %v6390_v58, 0.0  ;;  %6776 = vmatmul.mubr.bf16.gmra.mrb[68].mxu0 %v13472_v7 }
 0x3af   : > { %v6487_v48 = vmax.f32 %v6392_v31, 0.0  ;;  %6785 = vmatprep.mubr.bf16.mxu0 %v13491_v54 }
 0x3b0   : > { %v6528_v4 = vpack.c.bf16 %v6486_v39, %v6484_v57 }
 0x3b1   : > { %v6529_v51 = vpack.c.bf16 %v6487_v48, %v6485_v38  ;;  %v7087_v38 = vrot.slane %v7086_v59, 2 }
 0x3b3   : > { %v6395_v35 = vpop.f32.mrb[172].mxu1  ;;  %6865 = vmatprep.mubr.bf16.mxu1 %v6529_v51 }
 0x3b4   : > { %v6396_v36 = vadd.f32 %v6395_v35, %v13441_v3  ;;  %v6397_v62 = vpop.f32.mrb[173].mxu1  ;;  %6866 = vmatmul.mubr.bf16.gmra.mrb[208].mxu1 %v6528_v4  ;;  %v7088_v35 = vadd.f32 %v7087_v38, %v7086_v59  ;;  %v8844_v59 = vld [vmem:[#allocation2 + $0x4b4] ss:$8 sps:$4 sm:$0xff]  }
 0x3b5   : > { %v6398_v1 = vadd.f32 %v6397_v62, %v13444_v40  ;;  %v6399_v32 = vpop.f32.mrb[174].mxu1 }
 0x3b6   : > { %v6400_v45 = vadd.f32 %v6399_v32, %v13441_v3  ;;  %v6401_v49 = vpop.f32.mrb[175].mxu1  ;;  %6786 = vmatmul.mubr.bf16.gmra.mrb[72].mxu0 %v13487_v52  ;;  %v6488_v7 = vmax.f32 %v6396_v36, 0.0 }
 0x3b7   : > { %v6402_v14 = vadd.f32 %v6401_v49, %v13444_v40  ;;  %6795 = vmatprep.mubr.bf16.mxu0 %v13503_v61  ;;  %v6489_v54 = vmax.f32 %v6398_v1, 0.0  ;;  %v7089_v49 = vrot.slane %v7088_v35, 1 }
 0x3b8   : > { %v6490_v50 = vmax.f32 %v6400_v45, 0.0 }
 0x3b9   : > { %v6491_v24 = vmax.f32 %v6402_v14, 0.0 }
 0x3ba   : > { %v6530_v2 = vpack.c.bf16 %v6490_v50, %v6488_v7 }
 0x3bb   : > { %v6531_v44 = vpack.c.bf16 %v6491_v24, %v6489_v54 }
 0x3bd   : > { %v6405_v9 = vpop.f32.mrb[176].mxu1  ;;  %6875 = vmatprep.mubr.bf16.mxu1 %v6531_v44 }
 0x3be   : > { %v6406_v60 = vadd.f32 %v6405_v9, %v13441_v3  ;;  %v6407_v5 = vpop.f32.mrb[177].mxu1  ;;  %6876 = vmatmul.mubr.bf16.gmra.mrb[212].mxu1 %v6530_v2  ;;  %6796 = vmatmul.mubr.bf16.gmra.mrb[76].mxu0 %v13501_v11 }
 0x3bf   : > { %v6408_v43 = vadd.f32 %v6407_v5, %v13444_v40  ;;  %v6409_v16 = vpop.f32.mrb[178].mxu1  ;;  %6805 = vmatprep.mubr.bf16.mxu0 %v13513_v12 }
 0x3c0   : > { %v6410_v52 = vadd.f32 %v6409_v16, %v13441_v3  ;;  %v6411_v47 = vpop.f32.mrb[179].mxu1  ;;  %v6492_v28 = vmax.f32 %v6406_v60, 0.0  ;;  %v7090_v60 = vadd.f32 %v7089_v49, %v7088_v35  ;;  %v15396_v16 = vmov 0  }
 0x3c1   : > { %v6412_v61 = vadd.f32 %v6411_v47, %v13444_v40  ;;  %v6493_v20 = vmax.f32 %v6408_v43, 0.0  ;;  %v8809_v47 = vld [vmem:[#allocation2 + $0x400] ss:$8 sps:$4 sm:$0xff]  }
 0x3c2   : > { %v6494_v25 = vmax.f32 %v6410_v52, 0.0  ;;  %v7092_v43 = vmul.f32 0.00390625, %v7090_v60 }
 0x3c3   : > { %v6495_v22 = vmax.f32 %v6412_v61, 0.0  ;;  %v8814_v61 = vld [vmem:[#allocation2 + $0x414] ss:$8 sps:$4 sm:$0xff]  }
 0x3c4   : > { %v6532_v56 = vpack.c.bf16 %v6494_v25, %v6492_v28  ;;  %v7093_v52 = vpack.c.bf16 %v7092_v43, %v7092_v43  ;;  %v8815_v28 = vld [vmem:[#allocation2 + $0x420] ss:$8 sps:$4 sm:$0xff]   ;;  %v8817_v25 = vld [vmem:[#allocation2 + $0x424] ss:$8 sps:$4 sm:$0xff]  }
 0x3c5   : > { %v6533_v41 = vpack.c.bf16 %v6495_v22, %v6493_v20  ;;  %v8820_v20 = vld [vmem:[#allocation2 + $0x434] ss:$8 sps:$4 sm:$0xff]   ;;  %v8818_v22 = vld [vmem:[#allocation2 + $0x430] ss:$8 sps:$4 sm:$0xff]  }
 0x3c6   : > { %6806 = vmatmul.mubr.bf16.gmra.mrb[80].mxu0 %v13511_v55 }
 0x3c7   : > { %v6415_v6 = vpop.f32.mrb[180].mxu1  ;;  %6885 = vmatprep.mubr.bf16.mxu1 %v6533_v41  ;;  %6815 = vmatprep.mubr.bf16.mxu0 %v13523_v27  ;;  %v8823_v41 = vld [vmem:[#allocation2 + $0x444] ss:$8 sps:$4 sm:$0xff]  }
 0x3c8   : > { %v6416_v13 = vadd.f32 %v6415_v6, %v13441_v3  ;;  %v6417_v11 = vpop.f32.mrb[181].mxu1  ;;  %6886 = vmatmul.mubr.bf16.gmra.mrb[216].mxu1 %v6532_v56  ;;  %v8821_v56 = vld [vmem:[#allocation2 + $0x440] ss:$8 sps:$4 sm:$0xff]   ;;  %v8824_v6 = vld [vmem:[#allocation2 + $0x450] ss:$8 sps:$4 sm:$0xff]  }
 0x3c9   : > { %v6418_v12 = vadd.f32 %v6417_v11, %v13444_v40  ;;  %v6419_v10 = vpop.f32.mrb[182].mxu1  ;;  %v8827_v11 = vld [vmem:[#allocation2 + $0x460] ss:$8 sps:$4 sm:$0xff]  }
 0x3ca   : > { %v6420_v18 = vadd.f32 %v6419_v10, %v13441_v3  ;;  %v6421_v42 = vpop.f32.mrb[183].mxu1  ;;  %v6496_v30 = vmax.f32 %v6416_v13, 0.0  ;;  %v8826_v13 = vld [vmem:[#allocation2 + $0x454] ss:$8 sps:$4 sm:$0xff]   ;;  %v8830_v10 = vld [vmem:[#allocation2 + $0x470] ss:$8 sps:$4 sm:$0xff]  }
 0x3cb   : > { %v6422_v63 = vadd.f32 %v6421_v42, %v13444_v40  ;;  %v6497_v21 = vmax.f32 %v6418_v12, 0.0  ;;  %v8829_v12 = vld [vmem:[#allocation2 + $0x464] ss:$8 sps:$4 sm:$0xff]  }
 0x3cc   : > { %v6498_v17 = vmax.f32 %v6420_v18, 0.0  ;;  %v8832_v18 = vld [vmem:[#allocation2 + $0x474] ss:$8 sps:$4 sm:$0xff]   ;;  %v8835_v42 = vld [vmem:[#allocation2 + $0x484] ss:$8 sps:$4 sm:$0xff]  }
 0x3cd   : > { %v6499_v53 = vmax.f32 %v6422_v63, 0.0 }
 0x3ce   : > { %v6534_v55 = vpack.c.bf16 %v6498_v17, %v6496_v30  ;;  %6816 = vmatmul.mubr.bf16.gmra.mrb[84].mxu0 %v13521_v26  ;;  %v8833_v17 = vld [vmem:[#allocation2 + $0x480] ss:$8 sps:$4 sm:$0xff]  }
 0x3cf   : > { %v6535_v19 = vpack.c.bf16 %v6499_v53, %v6497_v21 }
 0x3d1   : > { %v6425_v27 = vpop.f32.mrb[184].mxu1  ;;  %6895 = vmatprep.mubr.bf16.mxu1 %v6535_v19 }
 0x3d2   : > { %v6426_v8 = vadd.f32 %v6425_v27, %v13441_v3  ;;  %v6427_v46 = vpop.f32.mrb[185].mxu1  ;;  %6896 = vmatmul.mubr.bf16.gmra.mrb[220].mxu1 %v6534_v55  ;;  %v8836_v55 = vld [vmem:[#allocation2 + $0x490] ss:$8 sps:$4 sm:$0xff]   ;;  %v8839_v27 = vld [vmem:[#allocation2 + $0x4a0] ss:$8 sps:$4 sm:$0xff]  }
 0x3d3   : > { %v6428_v0 = vadd.f32 %v6427_v46, %v13444_v40  ;;  %v6429_v15 = vpop.f32.mrb[186].mxu1 }
 0x3d4   : > { %v6430_v58 = vadd.f32 %v6429_v15, %v13441_v3  ;;  %v6431_v23 = vpop.f32.mrb[187].mxu1  ;;  %v6500_v57 = vmax.f32 %v6426_v8, 0.0  ;;  %v8841_v8 = vld [vmem:[#allocation2 + $0x4a4] ss:$8 sps:$4 sm:$0xff]   ;;  %v8842_v15 = vld [vmem:[#allocation2 + $0x4b0] ss:$8 sps:$4 sm:$0xff]  }
 0x3d5   : > { %v6432_v31 = vadd.f32 %v6431_v23, %v13444_v40  ;;  %v6501_v26 = vmax.f32 %v6428_v0, 0.0 }
 0x3d6   : > { %v6502_v39 = vmax.f32 %v6430_v58, 0.0 }
 0x3d7   : > { %v6503_v48 = vmax.f32 %v6432_v31, 0.0 }
 0x3d8   : > { %v6536_v4 = vpack.c.bf16 %v6502_v39, %v6500_v57  ;;  %v8845_v57 = vld [vmem:[#allocation2 + $0x4c0] ss:$8 sps:$4 sm:$0xff]   ;;  %v8847_v39 = vld [vmem:[#allocation2 + $0x4c4] ss:$8 sps:$4 sm:$0xff]  }
 0x3d9   : > { %v6537_v51 = vpack.c.bf16 %v6503_v48, %v6501_v26  ;;  %v8850_v26 = vld [vmem:[#allocation2 + $0x4d4] ss:$8 sps:$4 sm:$0xff]   ;;  %v8848_v48 = vld [vmem:[#allocation2 + $0x4d0] ss:$8 sps:$4 sm:$0xff]  }
 0x3db   : > { %6905 = vmatprep.mubr.bf16.mxu1 %v6537_v51 }
 0x3dc   : > { %v6435_v36 = vpop.f32.mrb[188].mxu1  ;;  %6906 = vmatmul.mubr.bf16.gmra.mrb[224].mxu1 %v6536_v4 }
 0x3dd   : > { %v6436_v62 = vadd.f32 %v6435_v36, %v13441_v3  ;;  %v6437_v1 = vpop.f32.mrb[189].mxu1 }
 0x3de   : > { %v6438_v32 = vadd.f32 %v6437_v1, %v13444_v40  ;;  %v6439_v45 = vpop.f32.mrb[190].mxu1  ;;  %v8853_v1 = vld [vmem:[#allocation2 + $0x4e4] ss:$8 sps:$4 sm:$0xff]  }
 0x3df   : > { %v6440_v14 = vadd.f32 %v6439_v45, %v13441_v3  ;;  %v6441_v7 = vpop.f32.mrb[191].mxu1  ;;  %v6504_v54 = vmax.f32 %v6436_v62, 0.0  ;;  %v8811_v3 = vld [vmem:[#allocation2 + $0x404] ss:$8 sps:$4 sm:$0xff]   ;;  %v8851_v62 = vld [vmem:[#allocation2 + $0x4e0] ss:$8 sps:$4 sm:$0xff]  }
 0x3e0   : > { %v6442_v50 = vadd.f32 %v6441_v7, %v13444_v40  ;;  %v6505_v2 = vmax.f32 %v6438_v32, 0.0  ;;  %7359 = vmatprep.subr.bf16.mxu1 %v8811_v3  ;;  %v8812_v40 = vld [vmem:[#allocation2 + $0x410] ss:$8 sps:$4 sm:$0xff]   ;;  %v8856_v32 = vld [vmem:[#allocation2 + $0x4f4] ss:$8 sps:$4 sm:$0xff]  }
 0x3e1   : > { %v6506_v24 = vmax.f32 %v6440_v14, 0.0  ;;  %v8854_v14 = vld [vmem:[#allocation2 + $0x4f0] ss:$8 sps:$4 sm:$0xff]  }
 0x3e2   : > { %v6507_v44 = vmax.f32 %v6442_v50, 0.0 }
 0x3e3   : > { %v6538_v9 = vpack.c.bf16 %v6506_v24, %v6504_v54 }
 0x3e4   : > { %v6539_v5 = vpack.c.bf16 %v6507_v44, %v6505_v2 }
 0x3e6   : > { %6915 = vmatprep.mubr.bf16.mxu1 %v6539_v5 }
 0x3e7   : > { %6916 = vmatmul.mubr.bf16.gmra.mrb[228].mxu1 %v6538_v9 }
 0x3e8   : > { %7153 = vmatprep.mubr.bf16.mxu1 %v15396_v16 }
 0x3ef   : > { %8223 = vmatmul.mubr.msk.bf16.vlgmr.msra.gmra.mrb[232].mxu1 %vm962_vm9, %v7093_v52 }
 0x3f0   : > { %7360 = vmatpush1.bf16.msra.mxu1 %v8809_v47 }
 0x3f1   : > { %7361 = vmatprep.subr.bf16.mxu1 %v8814_v61 }
 0x3f4   : > { %7362 = vmatpush1.bf16.msra.mxu1 %v8812_v40 }
 0x3f5   : > { %7363 = vmatprep.subr.bf16.mxu1 %v8817_v25 }
 0x3f8   : > { %7364 = vmatpush1.bf16.msra.mxu1 %v8815_v28 }
 0x3f9   : > { %7365 = vmatprep.subr.bf16.mxu1 %v8820_v20 }
 0x3fc   : > { %7366 = vmatpush1.bf16.msra.mxu1 %v8818_v22 }
 0x3fd   : > { %7367 = vmatprep.subr.bf16.mxu1 %v8823_v41 }
 0x400   : > { %7368 = vmatpush1.bf16.msra.mxu1 %v8821_v56 }
 0x401   : > { %7369 = vmatprep.subr.bf16.mxu1 %v8826_v13 }
 0x404   : > { %7370 = vmatpush1.bf16.msra.mxu1 %v8824_v6 }
 0x405   : > { %7371 = vmatprep.subr.bf16.mxu1 %v8829_v12 }
 0x408   : > { %7372 = vmatpush1.bf16.msra.mxu1 %v8827_v11 }
 0x409   : > { %7373 = vmatprep.subr.bf16.mxu1 %v8832_v18 }
 0x40c   : > { %7374 = vmatpush1.bf16.msra.mxu1 %v8830_v10 }
 0x40d   : > { %7375 = vmatprep.subr.bf16.mxu1 %v8835_v42 }
 0x410   : > { %7376 = vmatpush1.bf16.msra.mxu1 %v8833_v17 }
 0x411   : > { %7377 = vmatprep.subr.bf16.mxu1 %v8838_v29 }
 0x414   : > { %7378 = vmatpush1.bf16.msra.mxu1 %v8836_v55 }
 0x415   : > { %7379 = vmatprep.subr.bf16.mxu1 %v8841_v8 }
 0x418   : > { %7380 = vmatpush1.bf16.msra.mxu1 %v8839_v27 }
 0x419   : > { %7381 = vmatprep.subr.bf16.mxu1 %v8844_v59 }
 0x41c   : > { %7382 = vmatpush1.bf16.msra.mxu1 %v8842_v15 }
 0x41d   : > { %7383 = vmatprep.subr.bf16.mxu1 %v8847_v39 }
 0x420   : > { %7384 = vmatpush1.bf16.msra.mxu1 %v8845_v57 }
 0x421   : > { %7385 = vmatprep.subr.bf16.mxu1 %v8850_v26 }
 0x424   : > { %7386 = vmatpush1.bf16.msra.mxu1 %v8848_v48 }
 0x425   : > { %7387 = vmatprep.subr.bf16.mxu1 %v8853_v1 }
 0x428   : > { %7388 = vmatpush1.bf16.msra.mxu1 %v8851_v62 }
 0x429   : > { %v5229_v63 = vpop.f32.mrb[88].mxu0  ;;  %7389 = vmatprep.subr.bf16.mxu1 %v8856_v32 }
 0x42a   : > { %v5231_v30 = vpop.f32.mrb[89].mxu0 }
 0x42b   : > { %v5233_v21 = vpop.f32.mrb[90].mxu0 }
 0x42c   : > { %v5235_v53 = vpop.f32.mrb[91].mxu0  ;;  %7390 = vmatpush1.bf16.msra.mxu1 %v8854_v14 }
 0x431   : > { %v13593_v37 = vpop.f32.mrb[92].mxu0 }
 0x432   : > { %v13595_v19 = vpop.f32.mrb[93].mxu0 }
 0x433   : > { %v13597_v46 = vpop.f32.mrb[94].mxu0 }
 0x434   : > { %v13599_v0 = vpop.f32.mrb[95].mxu0 }
 0x439   : > { %v13601_v58 = vpop.f32.mrb[96].mxu0 }
 0x43a   : > { %v13603_v23 = vpop.f32.mrb[97].mxu0 }
 0x43b   : > { %v13605_v31 = vpop.f32.mrb[98].mxu0 }
 0x43c   : > { %v13607_v38 = vpop.f32.mrb[99].mxu0 }
 0x441   : > { %v13609_v4 = vpop.f32.mrb[100].mxu0 }
 0x442   : > { %v13611_v51 = vpop.f32.mrb[101].mxu0 }
 0x443   : > { %v13613_v35 = vpop.f32.mrb[102].mxu0 }
 0x444   : > { %v13615_v36 = vpop.f32.mrb[103].mxu0 }
 0x449   : > { %v13617_v45 = vpop.f32.mrb[104].mxu0 }
 0x44a   : > { %v13619_v49 = vpop.f32.mrb[105].mxu0 }
 0x44b   : > { %v13621_v7 = vpop.f32.mrb[106].mxu0 }
 0x44c   : > { %v13623_v50 = vpop.f32.mrb[107].mxu0 }
 0x451   : > { %v13625_v54 = vpop.f32.mrb[108].mxu0 }
 0x452   : > { %v13627_v24 = vpop.f32.mrb[109].mxu0 }
 0x453   : > { %v13629_v2 = vpop.f32.mrb[110].mxu0 }
 0x454   : > { %v13631_v44 = vpop.f32.mrb[111].mxu0 }
 0x459   : > { %v13633_v9 = vpop.f32.mrb[112].mxu0 }
 0x45a   : > { %v13635_v60 = vpop.f32.mrb[113].mxu0 }
 0x45b   : > { %v13637_v5 = vpop.f32.mrb[114].mxu0 }
 0x45c   : > { %v13639_v43 = vpop.f32.mrb[115].mxu0 }
 0x45f   : > { %v6827_v16 = vpop.f32.mrb[192].mxu1 }
 0x460   : > { %v13641_v52 = vadd.f32 %v6827_v16, %v5229_v63  ;;  %v6829_v47 = vpop.f32.mrb[193].mxu1 }
 0x461   : > { %v13643_v3 = vadd.f32 %v6829_v47, %v5231_v30  ;;  %v6831_v61 = vpop.f32.mrb[194].mxu1  ;;  %v13647_v28 = vpop.f32.mrb[116].mxu0 }
 0x462   : > { %v13645_v40 = vadd.f32 %v6831_v61, %v5233_v21  ;;  %v6833_v25 = vpop.f32.mrb[195].mxu1  ;;  %v13651_v22 = vpop.f32.mrb[117].mxu0 }
 0x463   : > { %15397 = vst [vmem:[#allocation87_spill] sm:$0xff] %v13643_v3  ;;  %v13649_v20 = vadd.f32 %v6833_v25, %v5235_v53  ;;  %v13653_v56 = vpop.f32.mrb[118].mxu0 }
 0x464   : > { %v13655_v41 = vpop.f32.mrb[119].mxu0 }
 0x465   : > { %15398 = vst [vmem:[#allocation88_spill] sm:$0xff] %v13649_v20 }
 0x469   : > { %v6837_v6 = vpop.f32.mrb[196].mxu1  ;;  %v13660_v11 = vpop.f32.mrb[120].mxu0 }
 0x46a   : > { %v13658_v13 = vadd.f32 %v6837_v6, %v13593_v37  ;;  %v6839_v12 = vpop.f32.mrb[197].mxu1  ;;  %v13665_v18 = vpop.f32.mrb[121].mxu0 }
 0x46b   : > { %v13663_v10 = vadd.f32 %v6839_v12, %v13595_v19  ;;  %v6841_v42 = vpop.f32.mrb[198].mxu1  ;;  %v13670_v30 = vpop.f32.mrb[122].mxu0 }
 0x46c   : > { %v13668_v63 = vadd.f32 %v6841_v42, %v13597_v46  ;;  %v6843_v17 = vpop.f32.mrb[199].mxu1  ;;  %v13675_v53 = vpop.f32.mrb[123].mxu0 }
 0x46d   : > { %15399 = vst [vmem:[#allocation90_spill] sm:$0xff] %v13663_v10  ;;  %v13673_v21 = vadd.f32 %v6843_v17, %v13599_v0 }
 0x46f   : > { %15400 = vst [vmem:[#allocation89_spill] sm:$0xff] %v13673_v21 }
 0x471   : > { %v13677_v55 = vpop.f32.mrb[124].mxu0 }
 0x472   : > { %v13679_v29 = vpop.f32.mrb[125].mxu0 }
 0x473   : > { %v6847_v37 = vpop.f32.mrb[200].mxu1  ;;  %v13684_v27 = vpop.f32.mrb[126].mxu0 }
 0x474   : > { %v13682_v19 = vadd.f32 %v6847_v37, %v13601_v58  ;;  %v6849_v8 = vpop.f32.mrb[201].mxu1  ;;  %v13689_v59 = vpop.f32.mrb[127].mxu0 }
 0x475   : > { %v13687_v46 = vadd.f32 %v6849_v8, %v13603_v23  ;;  %v6851_v0 = vpop.f32.mrb[202].mxu1 }
 0x476   : > { %v13692_v15 = vadd.f32 %v6851_v0, %v13605_v31  ;;  %v6853_v57 = vpop.f32.mrb[203].mxu1 }
 0x477   : > { %15401 = vst [vmem:[#allocation91_spill] sm:$0xff] %v13687_v46  ;;  %v13695_v39 = vadd.f32 %v6853_v57, %v13607_v38 }
 0x479   : > { %15402 = vst [vmem:[#allocation92_spill] sm:$0xff] %v13695_v39  ;;  %v13697_v26 = vpop.f32.mrb[64].mxu0 }
 0x47a   : > { %v13699_v58 = vpop.f32.mrb[65].mxu0 }
 0x47b   : > { %v13701_v48 = vpop.f32.mrb[66].mxu0 }
 0x47c   : > { %v13703_v62 = vpop.f32.mrb[67].mxu0 }
 0x47d   : > { %v6857_v23 = vpop.f32.mrb[204].mxu1 }
 0x47e   : > { %v13706_v1 = vadd.f32 %v6857_v23, %v13609_v4  ;;  %v6859_v32 = vpop.f32.mrb[205].mxu1 }
 0x47f   : > { %v13709_v31 = vadd.f32 %v6859_v32, %v13611_v51  ;;  %v6861_v14 = vpop.f32.mrb[206].mxu1 }
 0x480   : > { %v13712_v38 = vadd.f32 %v6861_v14, %v13613_v35  ;;  %v6863_v16 = vpop.f32.mrb[207].mxu1 }
 0x481   : > { %15403 = vst [vmem:[#allocation94_spill] sm:$0xff] %v13709_v31  ;;  %v13715_v47 = vadd.f32 %v6863_v16, %v13615_v36  ;;  %v13717_v61 = vpop.f32.mrb[68].mxu0 }
 0x482   : > { %v13719_v25 = vpop.f32.mrb[69].mxu0 }
 0x483   : > { %15404 = vst [vmem:[#allocation95_spill] sm:$0xff] %v13715_v47  ;;  %v13721_v6 = vpop.f32.mrb[70].mxu0 }
 0x484   : > { %v13723_v4 = vpop.f32.mrb[71].mxu0 }
 0x487   : > { %v6867_v12 = vpop.f32.mrb[208].mxu1 }
 0x488   : > { %v13726_v51 = vadd.f32 %v6867_v12, %v13617_v45  ;;  %v6869_v42 = vpop.f32.mrb[209].mxu1 }
 0x489   : > { %v13729_v35 = vadd.f32 %v6869_v42, %v13619_v49  ;;  %v6871_v17 = vpop.f32.mrb[210].mxu1  ;;  %v13734_v37 = vpop.f32.mrb[72].mxu0 }
 0x48a   : > { %v13732_v36 = vadd.f32 %v6871_v17, %v13621_v7  ;;  %v6873_v8 = vpop.f32.mrb[211].mxu1  ;;  %v13739_v57 = vpop.f32.mrb[73].mxu0 }
 0x48b   : > { %15405 = vst [vmem:[#allocation97_spill] sm:$0xff] %v13729_v35  ;;  %v13737_v0 = vadd.f32 %v6873_v8, %v13623_v50  ;;  %v13741_v23 = vpop.f32.mrb[74].mxu0 }
 0x48c   : > { %v13743_v45 = vpop.f32.mrb[75].mxu0 }
 0x48d   : > { %15406 = vst [vmem:[#allocation140_spill] sm:$0xff] %v13737_v0 }
 0x491   : > { %v6877_v32 = vpop.f32.mrb[212].mxu1  ;;  %v13748_v14 = vpop.f32.mrb[76].mxu0 }
 0x492   : > { %v13746_v49 = vadd.f32 %v6877_v32, %v13625_v54  ;;  %v6879_v7 = vpop.f32.mrb[213].mxu1  ;;  %v13753_v12 = vpop.f32.mrb[77].mxu0 }
 0x493   : > { %v13751_v16 = vadd.f32 %v6879_v7, %v13627_v24  ;;  %v6881_v50 = vpop.f32.mrb[214].mxu1  ;;  %v13758_v17 = vpop.f32.mrb[78].mxu0 }
 0x494   : > { %v13756_v42 = vadd.f32 %v6881_v50, %v13629_v2  ;;  %v6883_v8 = vpop.f32.mrb[215].mxu1  ;;  %v13763_v54 = vpop.f32.mrb[79].mxu0 }
 0x495   : > { %15407 = vst [vmem:[#allocation139_spill] sm:$0xff] %v13751_v16  ;;  %v13761_v0 = vadd.f32 %v6883_v8, %v13631_v44 }
 0x497   : > { %15408 = vst [vmem:[#allocation93_spill] sm:$0xff] %v13761_v0 }
 0x499   : > { %v13765_v32 = vpop.f32.mrb[80].mxu0 }
 0x49a   : > { %v13767_v35 = vpop.f32.mrb[81].mxu0 }
 0x49b   : > { %v6887_v24 = vpop.f32.mrb[216].mxu1  ;;  %v13772_v16 = vpop.f32.mrb[82].mxu0 }
 0x49c   : > { %v13770_v7 = vadd.f32 %v6887_v24, %v13633_v9  ;;  %v6889_v2 = vpop.f32.mrb[217].mxu1  ;;  %v13777_v47 = vpop.f32.mrb[83].mxu0 }
 0x49d   : > { %v13775_v50 = vadd.f32 %v6889_v2, %v13635_v60  ;;  %v6891_v44 = vpop.f32.mrb[218].mxu1 }
 0x49e   : > { %v13780_v8 = vadd.f32 %v6891_v44, %v13637_v5  ;;  %v6893_v0 = vpop.f32.mrb[219].mxu1 }
 0x49f   : > { %15409 = vst [vmem:[#allocation98_spill] sm:$0xff] %v13775_v50  ;;  %v13783_v31 = vadd.f32 %v6893_v0, %v13639_v43 }
 0x4a1   : > { %15410 = vst [vmem:[#allocation51_spill] sm:$0xff] %v13783_v31  ;;  %v6817_v39 = vpop.f32.mrb[84].mxu0 }
 0x4a2   : > { %v13785_v46 = vpop.f32.mrb[85].mxu0 }
 0x4a3   : > { %v6821_v9 = vpop.f32.mrb[86].mxu0 }
 0x4a4   : > { %v13787_v24 = vpop.f32.mrb[87].mxu0 }
 0x4a5   : > { %v6897_v21 = vpop.f32.mrb[220].mxu1 }
 0x4a6   : > { %v13790_v60 = vadd.f32 %v6897_v21, %v13647_v28  ;;  %v6899_v2 = vpop.f32.mrb[221].mxu1 }
 0x4a7   : > { %v13793_v50 = vadd.f32 %v6899_v2, %v13651_v22  ;;  %v6901_v5 = vpop.f32.mrb[222].mxu1 }
 0x4a8   : > { %v13796_v44 = vadd.f32 %v6901_v5, %v13653_v56  ;;  %v6903_v43 = vpop.f32.mrb[223].mxu1 }
 0x4a9   : > { %15411 = vst [vmem:[#allocation141_spill] sm:$0xff] %v13793_v50  ;;  %v13799_v0 = vadd.f32 %v6903_v43, %v13655_v41 }
 0x4ab   : > { %15412 = vst [vmem:[#allocation11_spill] sm:$0xff] %v13799_v0 }
 0x4af   : > { %v6907_v31 = vpop.f32.mrb[224].mxu1 }
 0x4b0   : > { %v13802_v10 = vadd.f32 %v6907_v31, %v13660_v11  ;;  %v6909_v20 = vpop.f32.mrb[225].mxu1 }
 0x4b1   : > { %v13805_v28 = vadd.f32 %v6909_v20, %v13665_v18  ;;  %v6911_v21 = vpop.f32.mrb[226].mxu1  ;;  %v7095_v20 = vld [vmem:[%s14507_s6] sm:$0x3] }
 0x4b2   : > { %v13808_v22 = vadd.f32 %v6911_v21, %v13670_v30  ;;  %v6913_v2 = vpop.f32.mrb[227].mxu1  ;;  %v7109_v21 = vrot.slane %v7095_v20, %v15312_v33 }
 0x4b3   : > { %15413 = vst [vmem:[#allocation12_spill] sm:$0xff] %v13805_v28  ;;  %v13811_v56 = vadd.f32 %v6913_v2, %v13675_v53  ;;  %v7105_v53 = vrot.slane %v7095_v20, %v15311_v34 }
 0x4b5   : > { %15414 = vst [vmem:[#allocation103_spill] sm:$0xff] %v13811_v56 }
 0x4ba   : > { %v6917_v5 = vpop.f32.mrb[228].mxu1 }
 0x4bb   : > { %v8330_v41 = vadd.f32 %v6917_v5, %v13677_v55  ;;  %v6919_v43 = vpop.f32.mrb[229].mxu1 }
 0x4bc   : > { %v13815_v0 = vadd.f32 %v6919_v43, %v13679_v29  ;;  %v6921_v11 = vpop.f32.mrb[230].mxu1 }
 0x4bd   : > { %v8332_v18 = vadd.f32 %v6921_v11, %v13684_v27  ;;  %v6923_v30 = vpop.f32.mrb[231].mxu1  ;;  %v7472_v27 = vld [vmem:[%s14509_s8] sm:$0x3] }
 0x4be   : > { %15415 = vst [vmem:[#allocation14_spill] sm:$0xff] %v13815_v0  ;;  %v13822_v31 = vadd.f32 %v6923_v30, %v13689_v59  ;;  %v13831_v30 = vrot.slane %v7472_v27, %v15311_v34 }
 0x4c2   : > { %v7155_v55 = vpop.f32.mrb[232].mxu1 }
 0x4c3   : > { %v7156_v2 = vadd.f32 %v7155_v55, %v7105_v53  ;;  %v7157_v5 = vpop.f32.mrb[233].mxu1  ;;  %v13834_v53 = vrot.slane %v7472_v27, %v15312_v33  ;;  %v15421_v27 = vld [vmem:[#allocation92_spill] sm:$0xff] }
 0x4c4   : > { %v7158_v29 = vadd.f32 %v7157_v5, %v7109_v21  ;;  %v7159_v43 = vpop.f32.mrb[234].mxu1 }
 0x4c5   : > { %v7162_v0 = vmax.f32 %v7156_v2, 0.0  ;;  %v7160_v56 = vpop.f32.mrb[235].mxu1  ;;  %v15420_v43 = vld [vmem:[#allocation91_spill] sm:$0xff] }
 0x4c6   : > { %v7163_v28 = vmax.f32 %v7158_v29, 0.0  ;;  %v15419_v29 = vld [vmem:[#allocation89_spill] sm:$0xff] }
 0x4c7   : > { %v7164_v3 = vpack.c.bf16 %v7162_v0, %v7162_v0 }
 0x4c8   : > { %v7165_v50 = vpack.c.bf16 %v7163_v28, %v7163_v28 }
 0x4ca   : > { %7391 = vmatprep.mubr.bf16.mxu1 %v7165_v50 }
 0x4cb   : > { %7392 = vmatmul.mubr.bf16.vlgmr.msra.gmra.mrb[236].mxu1 %v7164_v3 }
 0x59e   : > { %v7393_v59 = vpop.f32.mrb[236].mxu1 }
 0x59f   : > { %v7403_v11 = vrot.slane %v7393_v59, %v15311_v34  ;;  %v7395_v20 = vpop.f32.mrb[237].mxu1 }
 0x5a0   : > { %v13837_v56 = vrot.slane %v7395_v20, %v15311_v34  ;;  %v7397_v0 = vpop.f32.mrb[238].mxu1 }
 0x5a1   : > { %v13840_v3 = vadd.f32 %v7403_v11, %v13697_v26  ;;  %v13843_v50 = vadd.f32 %v7403_v11, %v13701_v48  ;;  %v13846_v28 = vadd.f32 %v7403_v11, %v13717_v61  ;;  %v13849_v21 = vadd.f32 %v7403_v11, %v13721_v6  ;;  %v7398_v55 = vpop.f32.mrb[239].mxu1  ;;  %v15425_v0 = vld [vmem:[#allocation95_spill] sm:$0xff] }
 0x5a2   : > { %v13852_v33 = vadd.f32 %v7403_v11, %v13734_v37  ;;  %v13855_v34 = vadd.f32 %v7403_v11, %v13741_v23  ;;  %v13858_v2 = vadd.f32 %v7403_v11, %v13748_v14  ;;  %v13861_v26 = vadd.f32 %v7403_v11, %v13758_v17 }
 0x5a3   : > { %v13864_v48 = vadd.f32 %v7403_v11, %v13765_v32  ;;  %v13867_v61 = vadd.f32 %v7403_v11, %v13772_v16  ;;  %v13869_v6 = vadd.f32 %v7403_v11, %v6817_v39  ;;  %v13871_v5 = vadd.f32 %v7403_v11, %v6821_v9 }
 0x5a4   : > { %v13874_v37 = vadd.f32 %v13641_v52, %v7403_v11  ;;  %v13877_v23 = vadd.f32 %v13645_v40, %v7403_v11  ;;  %v13880_v14 = vadd.f32 %v13658_v13, %v7403_v11  ;;  %v13883_v17 = vadd.f32 %v13668_v63, %v7403_v11 }
 0x5a5   : > { %v13886_v32 = vadd.f32 %v13682_v19, %v7403_v11  ;;  %v13889_v39 = vadd.f32 %v13692_v15, %v7403_v11  ;;  %v13892_v16 = vadd.f32 %v13706_v1, %v7403_v11  ;;  %v13895_v52 = vadd.f32 %v13712_v38, %v7403_v11 }
 0x5a6   : > { %v13898_v40 = vadd.f32 %v13726_v51, %v7403_v11  ;;  %v13901_v13 = vadd.f32 %v13732_v36, %v7403_v11  ;;  %v13904_v63 = vadd.f32 %v13746_v49, %v7403_v11  ;;  %v13907_v19 = vadd.f32 %v13756_v42, %v7403_v11 }
 0x5a7   : > { %v13910_v15 = vadd.f32 %v13770_v7, %v7403_v11  ;;  %v13913_v1 = vadd.f32 %v13780_v8, %v7403_v11  ;;  %v13916_v38 = vadd.f32 %v13790_v60, %v7403_v11  ;;  %v13919_v51 = vadd.f32 %v13796_v44, %v7403_v11 }
 0x5a8   : > { %v13922_v36 = vadd.f32 %v13802_v10, %v7403_v11  ;;  %v13925_v49 = vadd.f32 %v13808_v22, %v7403_v11  ;;  %v13927_v42 = vadd.f32 %v8330_v41, %v7403_v11  ;;  %v13929_v9 = vadd.f32 %v8332_v18, %v7403_v11  ;;  %v15416_v22 = vld [vmem:[#allocation87_spill] sm:$0xff]  ;;  %v15417_v41 = vld [vmem:[#allocation88_spill] sm:$0xff]  ;;  %v15418_v18 = vld [vmem:[#allocation90_spill] sm:$0xff] }
 0x5a9   : > { %v13933_v7 = vadd.f32 %v13837_v56, %v13699_v58  ;;  %v13937_v8 = vadd.f32 %v13837_v56, %v13703_v62  ;;  %v13941_v60 = vadd.f32 %v13837_v56, %v13719_v25  ;;  %v13945_v10 = vadd.f32 %v13837_v56, %v13723_v4  ;;  %v15423_v11 = vld [vmem:[#allocation94_spill] sm:$0xff] }
 0x5aa   : > { %v13949_v44 = vadd.f32 %v13837_v56, %v13739_v57  ;;  %v13953_v58 = vadd.f32 %v13837_v56, %v13743_v45  ;;  %v13957_v62 = vadd.f32 %v13837_v56, %v13753_v12  ;;  %v13961_v25 = vadd.f32 %v13837_v56, %v13763_v54 }
 0x5ab   : > { %v13965_v4 = vadd.f32 %v13837_v56, %v13767_v35  ;;  %v13969_v57 = vadd.f32 %v13837_v56, %v13777_v47  ;;  %v13973_v45 = vadd.f32 %v13837_v56, %v13785_v46  ;;  %v13977_v12 = vadd.f32 %v13837_v56, %v13787_v24 }
 0x5ac   : > { %v13981_v54 = vadd.f32 %v15416_v22, %v13837_v56  ;;  %v13985_v35 = vadd.f32 %v15417_v41, %v13837_v56  ;;  %v13989_v47 = vadd.f32 %v15418_v18, %v13837_v56  ;;  %v13993_v46 = vadd.f32 %v15419_v29, %v13837_v56  ;;  %v15427_v22 = vld [vmem:[#allocation97_spill] sm:$0xff]  ;;  %v15429_v18 = vld [vmem:[#allocation140_spill] sm:$0xff] }
 0x5ad   : > { %v13997_v24 = vadd.f32 %v15420_v43, %v13837_v56  ;;  %v14001_v59 = vadd.f32 %v15421_v27, %v13837_v56  ;;  %v14005_v20 = vadd.f32 %v15423_v11, %v13837_v56  ;;  %v14009_v55 = vadd.f32 %v15425_v0, %v13837_v56  ;;  %v15431_v43 = vld [vmem:[#allocation139_spill] sm:$0xff] }
 0x5ae   : > { %v14013_v41 = vadd.f32 %v15427_v22, %v13837_v56  ;;  %v14017_v29 = vadd.f32 %v15429_v18, %v13837_v56  ;;  %v14021_v27 = vadd.f32 %v15431_v43, %v13837_v56 }
 0x5af   : > { %15422 = vst [vmem:[#allocation13_spill] sm:$0xff] %v14001_v59  ;;  %15424 = vst [vmem:[#allocation107_spill] sm:$0xff] %v14005_v20  ;;  %v15433_v59 = vld [vmem:[#allocation93_spill] sm:$0xff]  ;;  %v15435_v20 = vld [vmem:[#allocation98_spill] sm:$0xff] }
 0x5b0   : > { %15426 = vst [vmem:[#allocation109_spill] sm:$0xff] %v14009_v55  ;;  %15428 = vst [vmem:[#allocation110_spill] sm:$0xff] %v14013_v41  ;;  %v14025_v11 = vadd.f32 %v15433_v59, %v13837_v56  ;;  %v14029_v0 = vadd.f32 %v15435_v20, %v13837_v56  ;;  %v15437_v55 = vld [vmem:[#allocation51_spill] sm:$0xff]  ;;  %v15438_v41 = vld [vmem:[#allocation141_spill] sm:$0xff] }
 0x5b1   : > { %15430 = vst [vmem:[#allocation113_spill] sm:$0xff] %v14017_v29  ;;  %15432 = vst [vmem:[#allocation111_spill] sm:$0xff] %v14021_v27  ;;  %v14033_v22 = vadd.f32 %v15437_v55, %v13837_v56  ;;  %v14037_v18 = vadd.f32 %v15438_v41, %v13837_v56  ;;  %v15439_v29 = vld [vmem:[#allocation11_spill] sm:$0xff]  ;;  %v15440_v27 = vld [vmem:[#allocation12_spill] sm:$0xff]  ;;  %v14057_v41 = vadd.f32 %v13822_v31, %v13837_v56 }
 0x5b2   : > { %15434 = vst [vmem:[#allocation114_spill] sm:$0xff] %v14025_v11  ;;  %15436 = vst [vmem:[#allocation133_spill] sm:$0xff] %v14029_v0  ;;  %v14041_v43 = vadd.f32 %v15439_v29, %v13837_v56  ;;  %v14045_v59 = vadd.f32 %v15440_v27, %v13837_v56  ;;  %v15441_v11 = vld [vmem:[#allocation103_spill] sm:$0xff]  ;;  %v15442_v0 = vld [vmem:[#allocation14_spill] sm:$0xff]  ;;  %v14061_v29 = vadd.f32 %v13831_v30, %v13840_v3 }
 0x5b3   : > { %v14049_v20 = vadd.f32 %v15441_v11, %v13837_v56  ;;  %v14053_v55 = vadd.f32 %v15442_v0, %v13837_v56  ;;  %v14065_v27 = vadd.f32 %v13831_v30, %v13843_v50  ;;  %v14069_v11 = vadd.f32 %v13831_v30, %v13846_v28 }
 0x5b4   : > { %v14073_v0 = vadd.f32 %v13831_v30, %v13849_v21  ;;  %v14077_v31 = vadd.f32 %v13831_v30, %v13852_v33  ;;  %v14081_v56 = vadd.f32 %v13831_v30, %v13855_v34  ;;  %v14085_v3 = vadd.f32 %v13831_v30, %v13858_v2 }
 0x5b5   : > { %v14089_v50 = vadd.f32 %v13831_v30, %v13861_v26  ;;  %v14093_v28 = vadd.f32 %v13831_v30, %v13864_v48  ;;  %v14097_v21 = vadd.f32 %v13831_v30, %v13867_v61  ;;  %v14101_v33 = vadd.f32 %v13831_v30, %v13869_v6 }
 0x5b6   : > { %v14105_v34 = vadd.f32 %v13831_v30, %v13871_v5  ;;  %v14109_v2 = vadd.f32 %v13831_v30, %v13874_v37  ;;  %v14113_v26 = vadd.f32 %v13831_v30, %v13877_v23  ;;  %v14117_v48 = vadd.f32 %v13831_v30, %v13880_v14 }
 0x5b7   : > { %v14121_v61 = vadd.f32 %v13831_v30, %v13883_v17  ;;  %v14125_v6 = vadd.f32 %v13831_v30, %v13886_v32  ;;  %v14129_v5 = vadd.f32 %v13831_v30, %v13889_v39  ;;  %v14133_v37 = vadd.f32 %v13831_v30, %v13892_v16 }
 0x5b8   : > { %v14137_v23 = vadd.f32 %v13831_v30, %v13895_v52  ;;  %v14141_v14 = vadd.f32 %v13831_v30, %v13898_v40  ;;  %v14145_v17 = vadd.f32 %v13831_v30, %v13901_v13  ;;  %v14149_v32 = vadd.f32 %v13831_v30, %v13904_v63 }
 0x5b9   : > { %v14153_v39 = vadd.f32 %v13831_v30, %v13907_v19  ;;  %v14157_v16 = vadd.f32 %v13831_v30, %v13910_v15  ;;  %v14161_v52 = vadd.f32 %v13831_v30, %v13913_v1  ;;  %v14165_v40 = vadd.f32 %v13831_v30, %v13916_v38 }
 0x5ba   : > { %v14169_v13 = vadd.f32 %v13831_v30, %v13919_v51  ;;  %v14173_v63 = vadd.f32 %v13831_v30, %v13922_v36  ;;  %v14177_v19 = vadd.f32 %v13831_v30, %v13925_v49  ;;  %v14181_v15 = vadd.f32 %v13831_v30, %v13927_v42 }
 0x5bb   : > { %v14185_v1 = vadd.f32 %v13831_v30, %v13929_v9  ;;  %v14189_v38 = vadd.f32 %v13834_v53, %v13933_v7  ;;  %v14193_v51 = vadd.f32 %v13834_v53, %v13937_v8  ;;  %v14197_v36 = vadd.f32 %v13834_v53, %v13941_v60 }
 0x5bc   : > { %v14201_v49 = vadd.f32 %v13834_v53, %v13945_v10  ;;  %v14206_v30 = vadd.f32 %v13834_v53, %v13949_v44  ;;  %v14210_v42 = vadd.f32 %v13834_v53, %v13953_v58  ;;  %v14214_v9 = vadd.f32 %v13834_v53, %v13957_v62 }
 0x5bd   : > { %v14218_v7 = vadd.f32 %v13834_v53, %v13961_v25  ;;  %v14222_v8 = vadd.f32 %v13834_v53, %v13965_v4  ;;  %v14226_v60 = vadd.f32 %v13834_v53, %v13969_v57  ;;  %v14230_v10 = vadd.f32 %v13834_v53, %v13973_v45  ;;  %v15447_v45 = vld [vmem:[#allocation13_spill] sm:$0xff] }
 0x5be   : > { %v14234_v44 = vadd.f32 %v13834_v53, %v13977_v12  ;;  %v14238_v58 = vadd.f32 %v13834_v53, %v13981_v54  ;;  %v14242_v62 = vadd.f32 %v13834_v53, %v13985_v35  ;;  %v14246_v25 = vadd.f32 %v13834_v53, %v13989_v47  ;;  %v15449_v54 = vld [vmem:[#allocation107_spill] sm:$0xff]  ;;  %v15451_v47 = vld [vmem:[#allocation109_spill] sm:$0xff] }
 0x5bf   : > { %v14250_v4 = vadd.f32 %v13834_v53, %v13993_v46  ;;  %v14256_v57 = vadd.f32 %v13834_v53, %v13997_v24  ;;  %v14260_v12 = vadd.f32 %v13834_v53, %v15447_v45  ;;  %v14264_v35 = vadd.f32 %v13834_v53, %v15449_v54  ;;  %v15452_v46 = vld [vmem:[#allocation110_spill] sm:$0xff] }
 0x5c0   : > { %15443 = vst [vmem:[#allocation116_spill] sm:$0xff] %v14242_v62  ;;  %15444 = vst [vmem:[#allocation117_spill] sm:$0xff] %v14246_v25  ;;  %v14268_v25 = vadd.f32 %v13834_v53, %v15451_v47  ;;  %v15453_v62 = vld [vmem:[#allocation113_spill] sm:$0xff] }
 0x5c1   : > { %15445 = vst [vmem:[#allocation121_spill] sm:$0xff] %v14250_v4  ;;  %15446 = vst [vmem:[#allocation119_spill] sm:$0xff] %v14256_v57  ;;  %v14272_v4 = vadd.f32 %v13834_v53, %v15452_v46  ;;  %v14276_v24 = vadd.f32 %v13834_v53, %v15453_v62  ;;  %v15454_v57 = vld [vmem:[#allocation111_spill] sm:$0xff]  ;;  %v14292_v46 = vadd.f32 %v13834_v53, %v14033_v22 }
 0x5c2   : > { %15448 = vst [vmem:[#allocation73_spill] sm:$0xff] %v14260_v12  ;;  %15450 = vst [vmem:[#allocation131_spill] sm:$0xff] %v14264_v35  ;;  %v14280_v45 = vadd.f32 %v13834_v53, %v15454_v57  ;;  %v15455_v12 = vld [vmem:[#allocation114_spill] sm:$0xff]  ;;  %v15456_v35 = vld [vmem:[#allocation133_spill] sm:$0xff]  ;;  %v14296_v62 = vadd.f32 %v13834_v53, %v14037_v18  ;;  %v14300_v57 = vadd.f32 %v13834_v53, %v14041_v43  ;;  %v7550_v43 = vmax.f32 %v14065_v27, 0.0 }
 0x5c3   : > { %v14284_v54 = vadd.f32 %v13834_v53, %v15455_v12  ;;  %v14288_v47 = vadd.f32 %v13834_v53, %v15456_v35  ;;  %v14304_v12 = vadd.f32 %v13834_v53, %v14045_v59  ;;  %v14308_v35 = vadd.f32 %v13834_v53, %v14049_v20 }
 0x5c4   : > { %15457 = vst [vmem:[#allocation118_spill] sm:$0xff] %v14296_v62  ;;  %15458 = vst [vmem:[#allocation122_spill] sm:$0xff] %v14300_v57  ;;  %v14312_v22 = vadd.f32 %v13834_v53, %v14053_v55  ;;  %v14316_v18 = vadd.f32 %v13834_v53, %v14057_v41  ;;  %v7548_v62 = vmax.f32 %v14061_v29, 0.0  ;;  %v7552_v57 = vmax.f32 %v14069_v11, 0.0 }
 0x5c5   : > { %15459 = vst [vmem:[#allocation134_spill] sm:$0xff] %v14304_v12  ;;  %15460 = vst [vmem:[#allocation135_spill] sm:$0xff] %v14308_v35  ;;  %v7554_v59 = vmax.f32 %v14073_v0, 0.0  ;;  %v7556_v12 = vmax.f32 %v14077_v31, 0.0  ;;  %v7558_v20 = vmax.f32 %v14081_v56, 0.0  ;;  %v7560_v35 = vmax.f32 %v14085_v3, 0.0 }
 0x5c6   : > { %15461 = vst [vmem:[#allocation136_spill] sm:$0xff] %v14312_v22  ;;  %v7562_v55 = vmax.f32 %v14089_v50, 0.0  ;;  %v7564_v22 = vmax.f32 %v14093_v28, 0.0  ;;  %v7566_v53 = vmax.f32 %v14097_v21, 0.0  ;;  %v7568_v41 = vmax.f32 %v14101_v33, 0.0  ;;  %7612 = vst [vmem:[%s14330_s21] sm:$0xff] %v7548_v62 }
 0x5c7   : > { %v7570_v29 = vmax.f32 %v14105_v34, 0.0  ;;  %7614 = vst [vmem:[%s14330_s21 + $0x10] sm:$0xff] %v7550_v43  ;;  %7616 = vst [vmem:[%s14330_s21 + $0x20] sm:$0xff] %v7552_v57  ;;  %v7572_v27 = vmax.f32 %v14109_v2, 0.0  ;;  %v7574_v11 = vmax.f32 %v14113_v26, 0.0  ;;  %v7576_v0 = vmax.f32 %v14117_v48, 0.0 }
 0x5c8   : > { %7618 = vst [vmem:[%s14330_s21 + $0x30] sm:$0xff] %v7554_v59  ;;  %v7578_v31 = vmax.f32 %v14121_v61, 0.0  ;;  %7620 = vst [vmem:[%s14330_s21 + $0x40] sm:$0xff] %v7556_v12  ;;  %v7580_v56 = vmax.f32 %v14125_v6, 0.0  ;;  %v7582_v3 = vmax.f32 %v14129_v5, 0.0  ;;  %v7584_v50 = vmax.f32 %v14133_v37, 0.0 }
 0x5c9   : > { %7622 = vst [vmem:[%s14330_s21 + $0x50] sm:$0xff] %v7558_v20  ;;  %7624 = vst [vmem:[%s14330_s21 + $0x60] sm:$0xff] %v7560_v35  ;;  %v7586_v28 = vmax.f32 %v14137_v23, 0.0  ;;  %v7588_v21 = vmax.f32 %v14141_v14, 0.0  ;;  %v7590_v33 = vmax.f32 %v14145_v17, 0.0  ;;  %v7592_v34 = vmax.f32 %v14149_v32, 0.0 }
 0x5ca   : > { %7626 = vst [vmem:[%s14330_s21 + $0x70] sm:$0xff] %v7562_v55  ;;  %7628 = vst [vmem:[%s14330_s21 + $0x80] sm:$0xff] %v7564_v22  ;;  %v7594_v2 = vmax.f32 %v14153_v39, 0.0  ;;  %v7596_v26 = vmax.f32 %v14157_v16, 0.0  ;;  %v7598_v48 = vmax.f32 %v14161_v52, 0.0  ;;  %v7600_v61 = vmax.f32 %v14165_v40, 0.0 }
 0x5cb   : > { %7630 = vst [vmem:[%s14330_s21 + $0x90] sm:$0xff] %v7566_v53  ;;  %7632 = vst [vmem:[%s14330_s21 + $0xa0] sm:$0xff] %v7568_v41  ;;  %v7602_v6 = vmax.f32 %v14169_v13, 0.0  ;;  %v7604_v5 = vmax.f32 %v14173_v63, 0.0  ;;  %v7606_v37 = vmax.f32 %v14177_v19, 0.0  ;;  %v7608_v23 = vmax.f32 %v14181_v15, 0.0 }
 0x5cc   : > { %7634 = vst [vmem:[%s14330_s21 + $0xb0] sm:$0xff] %v7570_v29  ;;  %7636 = vst [vmem:[%s14330_s21 + $0xc0] sm:$0xff] %v7572_v27  ;;  %v7610_v14 = vmax.f32 %v14185_v1, 0.0  ;;  %v7549_v17 = vmax.f32 %v14189_v38, 0.0  ;;  %v7551_v32 = vmax.f32 %v14193_v51, 0.0  ;;  %v7553_v39 = vmax.f32 %v14197_v36, 0.0 }
 0x5cd   : > { %7638 = vst [vmem:[%s14330_s21 + $0xd0] sm:$0xff] %v7574_v11  ;;  %7640 = vst [vmem:[%s14330_s21 + $0xe0] sm:$0xff] %v7576_v0  ;;  %v7555_v16 = vmax.f32 %v14201_v49, 0.0  ;;  %v7557_v52 = vmax.f32 %v14206_v30, 0.0  ;;  %v7559_v40 = vmax.f32 %v14210_v42, 0.0  ;;  %v7561_v13 = vmax.f32 %v14214_v9, 0.0 }
 0x5ce   : > { %7642 = vst [vmem:[%s14330_s21 + $0xf0] sm:$0xff] %v7578_v31  ;;  %7644 = vst [vmem:[%s14330_s21 + $0x100] sm:$0xff] %v7580_v56  ;;  %v7563_v63 = vmax.f32 %v14218_v7, 0.0  ;;  %v7565_v19 = vmax.f32 %v14222_v8, 0.0  ;;  %v7567_v15 = vmax.f32 %v14226_v60, 0.0  ;;  %v7569_v1 = vmax.f32 %v14230_v10, 0.0 }
 0x5cf   : > { %7646 = vst [vmem:[%s14330_s21 + $0x110] sm:$0xff] %v7582_v3  ;;  %7648 = vst [vmem:[%s14330_s21 + $0x120] sm:$0xff] %v7584_v50  ;;  %v7571_v38 = vmax.f32 %v14234_v44, 0.0  ;;  %v7573_v51 = vmax.f32 %v14238_v58, 0.0  ;;  %v15462_v36 = vld [vmem:[#allocation116_spill] sm:$0xff]  ;;  %v15463_v30 = vld [vmem:[#allocation117_spill] sm:$0xff] }
 0x5d0   : > { %7650 = vst [vmem:[%s14330_s21 + $0x130] sm:$0xff] %v7586_v28  ;;  %7652 = vst [vmem:[%s14330_s21 + $0x140] sm:$0xff] %v7588_v21  ;;  %v7575_v49 = vmax.f32 %v15462_v36, 0.0  ;;  %v7577_v42 = vmax.f32 %v15463_v30, 0.0  ;;  %v15464_v9 = vld [vmem:[#allocation121_spill] sm:$0xff]  ;;  %v15465_v8 = vld [vmem:[#allocation119_spill] sm:$0xff] }
 0x5d1   : > { %7654 = vst [vmem:[%s14330_s21 + $0x150] sm:$0xff] %v7590_v33  ;;  %7656 = vst [vmem:[%s14330_s21 + $0x160] sm:$0xff] %v7592_v34  ;;  %v7579_v7 = vmax.f32 %v15464_v9, 0.0  ;;  %v7581_v60 = vmax.f32 %v15465_v8, 0.0  ;;  %v15466_v10 = vld [vmem:[#allocation73_spill] sm:$0xff]  ;;  %v15467_v58 = vld [vmem:[#allocation131_spill] sm:$0xff] }
 0x5d2   : > { %7658 = vst [vmem:[%s14330_s21 + $0x170] sm:$0xff] %v7594_v2  ;;  %7660 = vst [vmem:[%s14330_s21 + $0x180] sm:$0xff] %v7596_v26  ;;  %v7583_v44 = vmax.f32 %v15466_v10, 0.0  ;;  %v7585_v62 = vmax.f32 %v15467_v58, 0.0  ;;  %v7587_v57 = vmax.f32 %v14268_v25, 0.0  ;;  %v7589_v12 = vmax.f32 %v14272_v4, 0.0 }
 0x5d3   : > { %7662 = vst [vmem:[%s14330_s21 + $0x190] sm:$0xff] %v7598_v48  ;;  %7664 = vst [vmem:[%s14330_s21 + $0x1a0] sm:$0xff] %v7600_v61  ;;  %v7591_v35 = vmax.f32 %v14276_v24, 0.0  ;;  %v7593_v22 = vmax.f32 %v14280_v45, 0.0  ;;  %v7595_v43 = vmax.f32 %v14284_v54, 0.0  ;;  %v7597_v25 = vmax.f32 %v14288_v47, 0.0 }
 0x5d4   : > { %7666 = vst [vmem:[%s14330_s21 + $0x1b0] sm:$0xff] %v7602_v6  ;;  %7668 = vst [vmem:[%s14330_s21 + $0x1c0] sm:$0xff] %v7604_v5  ;;  %v7599_v59 = vmax.f32 %v14292_v46, 0.0  ;;  %v15468_v20 = vld [vmem:[#allocation118_spill] sm:$0xff]  ;;  %v15471_v47 = vld [vmem:[#allocation135_spill] sm:$0xff]  ;;  %v7611_v29 = vmax.f32 %v14316_v18, 0.0 }
 0x5d5   : > { %7670 = vst [vmem:[%s14330_s21 + $0x1d0] sm:$0xff] %v7606_v37  ;;  %7672 = vst [vmem:[%s14330_s21 + $0x1e0] sm:$0xff] %v7608_v23  ;;  %v7601_v4 = vmax.f32 %v15468_v20, 0.0  ;;  %v15469_v55 = vld [vmem:[#allocation122_spill] sm:$0xff]  ;;  %v7607_v46 = vmax.f32 %v15471_v47, 0.0  ;;  %v15472_v53 = vld [vmem:[#allocation136_spill] sm:$0xff] }
 0x5d6   : > { %7674 = vst [vmem:[%s14330_s21 + $0x1f0] sm:$0xff] %v7610_v14  ;;  %7613 = vst [vmem:[%s14330_s21 + $0x8] sm:$0xff] %v7549_v17  ;;  %v7603_v24 = vmax.f32 %v15469_v55, 0.0  ;;  %v15470_v45 = vld [vmem:[#allocation134_spill] sm:$0xff]  ;;  %v7609_v41 = vmax.f32 %v15472_v53, 0.0 }
 0x5d7   : > { %7615 = vst [vmem:[%s14330_s21 + $0x18] sm:$0xff] %v7551_v32  ;;  %7617 = vst [vmem:[%s14330_s21 + $0x28] sm:$0xff] %v7553_v39  ;;  %v7605_v54 = vmax.f32 %v15470_v45, 0.0 }
 0x5d8   : > { %7619 = vst [vmem:[%s14330_s21 + $0x38] sm:$0xff] %v7555_v16  ;;  %7621 = vst [vmem:[%s14330_s21 + $0x48] sm:$0xff] %v7557_v52 }
 0x5d9   : > { %7623 = vst [vmem:[%s14330_s21 + $0x58] sm:$0xff] %v7559_v40  ;;  %7625 = vst [vmem:[%s14330_s21 + $0x68] sm:$0xff] %v7561_v13 }
 0x5da   : > { %7627 = vst [vmem:[%s14330_s21 + $0x78] sm:$0xff] %v7563_v63  ;;  %7629 = vst [vmem:[%s14330_s21 + $0x88] sm:$0xff] %v7565_v19 }
 0x5db   : > { %7631 = vst [vmem:[%s14330_s21 + $0x98] sm:$0xff] %v7567_v15  ;;  %7633 = vst [vmem:[%s14330_s21 + $0xa8] sm:$0xff] %v7569_v1 }
 0x5dc   : > { %7635 = vst [vmem:[%s14330_s21 + $0xb8] sm:$0xff] %v7571_v38  ;;  %7637 = vst [vmem:[%s14330_s21 + $0xc8] sm:$0xff] %v7573_v51 }
 0x5dd   : > { %7639 = vst [vmem:[%s14330_s21 + $0xd8] sm:$0xff] %v7575_v49  ;;  %7641 = vst [vmem:[%s14330_s21 + $0xe8] sm:$0xff] %v7577_v42 }
 0x5de   : > { %7643 = vst [vmem:[%s14330_s21 + $0xf8] sm:$0xff] %v7579_v7  ;;  %7645 = vst [vmem:[%s14330_s21 + $0x108] sm:$0xff] %v7581_v60 }
 0x5df   : > { %7647 = vst [vmem:[%s14330_s21 + $0x118] sm:$0xff] %v7583_v44  ;;  %7649 = vst [vmem:[%s14330_s21 + $0x128] sm:$0xff] %v7585_v62 }
 0x5e0   : > { %7651 = vst [vmem:[%s14330_s21 + $0x138] sm:$0xff] %v7587_v57  ;;  %7653 = vst [vmem:[%s14330_s21 + $0x148] sm:$0xff] %v7589_v12 }
 0x5e1   : > { %7655 = vst [vmem:[%s14330_s21 + $0x158] sm:$0xff] %v7591_v35  ;;  %7657 = vst [vmem:[%s14330_s21 + $0x168] sm:$0xff] %v7593_v22 }
 0x5e2   : > { %7659 = vst [vmem:[%s14330_s21 + $0x178] sm:$0xff] %v7595_v43  ;;  %7661 = vst [vmem:[%s14330_s21 + $0x188] sm:$0xff] %v7597_v25 }
 0x5e3   : > { %7663 = vst [vmem:[%s14330_s21 + $0x198] sm:$0xff] %v7599_v59  ;;  %7665 = vst [vmem:[%s14330_s21 + $0x1a8] sm:$0xff] %v7601_v4 }
 0x5e4   : > { %7667 = vst [vmem:[%s14330_s21 + $0x1b8] sm:$0xff] %v7603_v24  ;;  %7669 = vst [vmem:[%s14330_s21 + $0x1c8] sm:$0xff] %v7605_v54 }
 0x5e5   : > { %7671 = vst [vmem:[%s14330_s21 + $0x1d8] sm:$0xff] %v7607_v46  ;;  %7673 = vst [vmem:[%s14330_s21 + $0x1e8] sm:$0xff] %v7609_v41 }
 0x5e6   : > { %7675 = vst [vmem:[%s14330_s21 + $0x1f8] sm:$0xff] %v7611_v29 }
 0x5e7   : > { %8967 = shalt.err (!%p8964_p7)
}
 0x5e8   : > { %s8968_s28 = scalar_lea.hbm %s14437_s25, 8192  ;;  %s8972_s13 = scalar_lea.hbm %s14510_s9, 16384 }
 0x5e9   : > { %p8969_p8 = scmp.ne.s32.totalorder %s14437_s25, %s8968_s28  ;;  %p8973_p1 = scmp.lt.u32.totalorder %s14437_s25, %s14510_s9 }
 0x5ea   : > { %p8974_p0 = scmp.lt.u32.totalorder %s8972_s13, %s8968_s28  ;;  %p8976_p6 = scmp.lt.u32.totalorder %s8968_s28, %s14437_s25 }
 0x5eb   : > { %p8970_p11 = pnand %p8969_p8, %p15473_p9 }
 0x5ec   : > { %p8975_p5 = por %p8974_p0, %p8973_p1 }
 0x5ed   : > { %p8971_p13 = pneg %p8970_p11 }
 0x5ee   : > { %p8977_p10 = por %p8976_p6, %p8975_p5 }
 0x5f0   : > { %p8978_p12 = pnand %p8977_p10, %p8971_p13 }
 0x5f2   : > { %8981 = shalt.err (!%p8978_p12)
}
 0x5f3   : > { %s9035_s26 = smov 256  }
 0x5f4   : > { %8491 = dma.vmem_to_hbm [thread:$0]  (%p15473_p9), %s14447_s22, 8192, %s14437_s25, %s14459_s29, %s9035_s26, %s9035_s26, %s9026_s16  }
 0x5f5 PF: > { %p8503_p2 = scmp.ge.s32.totalorder %s9020_s12, 2  ;;  %s7705_s14 = sand.u32 1, %s9008_s30  }
 0x5f6   : > { %p15474_p3 = scmp.ne.s32.totalorder %s14864_s20, 0  ;;  %s7706_s23 = scalar_lea.sflag [#allocation4], %s7705_s14 }
 0x5f8   : > { %p8498_p4 = pnand %p8503_p2, %p15474_p3 }
 0x5fa   : > { %9003 = dma.done.wait (!%p8498_p4), %s7706_s23, 8192  }
 0x5fb   : > { %9005 = vsyncadd (!%p8498_p4), %s7706_s23, 4294959104  ;;  %p20_p7 = scmp.ge.s32.totalorder %s9111_s15, 4   ;;  %s15475_s30 = smov %s9012_s10 }
 0x5fc   : > { %s15476_s10 = smov %s9016_s11  ;;  %s15477_s11 = smov %s9122_s18 }
 0x5fd   : > { %s15478_s12 = smov %s9111_s15  ;;  %22 = sbr.rel (!%p20_p7) target bundleno = 4 (0x4), region = 104 }
 0x604   :  { %7711 = vsyncpa [#allocation3], 1 }
 0x605   :  { %7713 = vsyncpa [#allocation3 + $0x1], 1 }
 0x606   :  { %7714 = vsyncpa [#allocation4], 1 }
 0x607   :  { %7716 = vsyncpa [#allocation4 + $0x1], 1 }

</bundles_post_ra>
